<compile_context>
chip_gen: v7x
topology: tpu7x:2x2x1
jax: 0.10.0
libtpu: 0.0.40
codegen_flags: <defaults>
</compile_context>

<pallas_src>
import math

import jax
import jax.numpy as jnp
from jax.experimental import pallas as pl
from jax.experimental.pallas import tpu as pltpu

# ----- small, module-consistent hyperparameters -----
VOCAB = 50
EMB_DIM = 32                  # word embedding dim
N_HEAD = 2
D_K = 16
D_V = 16
QK_DIM = N_HEAD * D_K         # 32 = width of each of the q/k/v projections
NEWS_DIM = N_HEAD * D_V       # 32 = output dim of self-attention
QUERY_DIM = 32
TITLE_LEN = 30                # hard-coded news[:, :30] in the module
NEWS_LEN = 40                 # raw news token length (> 30 so the slice matters)
BATCH = 32
B_BLK = 8                     # titles per grid step (multiple of 8)


def attn_news_kernel(ids_ref, tid_row_ref, tid_col_ref, emb_ref,
                     wqkv_ref, bqkv_ref, w1_ref, b1_ref, w2_ref, b2_ref,
                     out_ref, ctx_ref):
    R = ids_ref.shape[0]                  # B_BLK * TITLE_LEN flattened rows
    b_blk = out_ref.shape[0]
    vocab = emb_ref.shape[0]

    # ---- fused embedding lookup: one_hot(ids) @ table on the MXU ----
    ids = ids_ref[...]                                               # [R, 1] int32
    vocab_iota = jax.lax.broadcasted_iota(jnp.int32, (R, vocab), 1)
    onehot = (ids == vocab_iota).astype(jnp.float32)                 # [R, V]
    x = jnp.dot(onehot, emb_ref[...],
                preferred_element_type=jnp.float32)                  # [R, E]
    # Dropout(0.2) is identity in eval mode.

    # ---- fused q|k|v projection: one [R, E] @ [E, 3*QK_DIM] matmul ----
    qkv = jnp.dot(x, wqkv_ref[...],
                  preferred_element_type=jnp.float32) + bqkv_ref[...]  # [R, 96]

    # block-diagonal (per-title) mask over the flattened rows
    tid_row = tid_row_ref[...]                                       # [R, 1] int32
    tid_col = tid_col_ref[...]                                       # [1, R] int32
    same_title = tid_row == tid_col                                  # [R, R] bool

    scale = 1.0 / math.sqrt(D_K)
    for h in range(N_HEAD):                                          # static unroll
        qh = qkv[:, h * D_K:(h + 1) * D_K]                           # [R, d_k]
        kh = qkv[:, QK_DIM + h * D_K: QK_DIM + (h + 1) * D_K]
        vh = qkv[:, 2 * QK_DIM + h * D_V: 2 * QK_DIM + (h + 1) * D_V]
        s = jax.lax.dot_general(qh, kh, (((1,), (1,)), ((), ())),
                                preferred_element_type=jnp.float32) * scale
        s = jnp.where(same_title, s, -1e30)            # mask cross-title scores
        s = s - jnp.max(s, axis=-1, keepdims=True)     # stable softmax
        p = jnp.exp(s)                                 # masked entries underflow to 0
        p = p * pl.reciprocal(jnp.sum(p, axis=-1, keepdims=True), approx=True)
        ctx_ref[:, h * D_V:(h + 1) * D_V] = jnp.dot(
            p, vh, preferred_element_type=jnp.float32)
    ctx = ctx_ref[...]                                               # [R, NEWS_DIM]

    # ---- attention pooling, batched over all b_blk titles ----
    e = jnp.tanh(jnp.dot(ctx, w1_ref[...],
                         preferred_element_type=jnp.float32) + b1_ref[...])  # [R, Q]
    a = jnp.exp(jnp.dot(e, w2_ref[...],
                        preferred_element_type=jnp.float32) + b2_ref[...])   # [R, 1]

    # pool[b, r] = 1 iff flattened row r belongs to title b  (0/1 matrix -> MXU)
    blk_iota = jax.lax.broadcasted_iota(jnp.int32, (b_blk, 1), 0)
    pool = (blk_iota == tid_col).astype(jnp.float32)                 # [b_blk, R]

    num = jnp.dot(pool, ctx * a, preferred_element_type=jnp.float32)  # [b_blk, N]
    den = jnp.dot(pool, a, preferred_element_type=jnp.float32)        # [b_blk, 1]
    # identical to sum(alpha*x) with alpha = exp(.) / (sum exp(.) + 1e-8)
    out_ref[...] = num * pl.reciprocal(den + 1e-8, approx=True)


def attn_news_encoder_pallas(news, word_emb, params, *, b_blk=B_BLK):
    """news: [B, NEWS_LEN] int32 token ids. Returns [B, NEWS_DIM] float32."""
    wq, bq, wk, bk, wv, bv, w1, b1, w2, b2 = params
    assert b_blk % 8 == 0, "b_blk must be a multiple of 8 (sublane tiling)"
    B = news.shape[0]

    title = news[:, :TITLE_LEN].astype(jnp.int32)        # news[:, :30]
    grid_b = pl.cdiv(B, b_blk)                           # >= 2 blocks for v7x megacore
    b_pad = grid_b * b_blk
    if b_pad != B:
        title = jnp.pad(title, ((0, b_pad - B), (0, 0)))

    R = b_blk * TITLE_LEN
    ids = title.reshape(b_pad * TITLE_LEN, 1)            # flattened row-major slab

    # per-row local title index (identical for every block): 0,0,...,1,1,...
    local_tid = jnp.arange(R, dtype=jnp.int32) // TITLE_LEN
    tid_row = local_tid[:, None]                         # [R, 1]
    tid_col = local_tid[None, :]                         # [1, R]

    w_qkv = jnp.concatenate([wq, wk, wv], axis=1)        # [E, 3*QK_DIM]
    b_qkv = jnp.concatenate([bq, bk, bv], axis=1)        # [1, 3*QK_DIM]

    def const_spec(a):
        return pl.BlockSpec(a.shape, lambda g: (0,) * a.ndim)

    out = pl.pallas_call(
        attn_news_kernel,
        out_shape=jax.ShapeDtypeStruct((b_pad, NEWS_DIM), jnp.float32),
        grid_spec=pltpu.PrefetchScalarGridSpec(
            num_scalar_prefetch=0,
            grid=(grid_b,),
            in_specs=[
                pl.BlockSpec((R, 1), lambda g: (g, 0)),   # this block's title ids
                const_spec(tid_row), const_spec(tid_col),
                const_spec(word_emb),
                const_spec(w_qkv), const_spec(b_qkv),
                const_spec(w1), const_spec(b1),
                const_spec(w2), const_spec(b2),
            ],
            out_specs=pl.BlockSpec((b_blk, NEWS_DIM), lambda g: (g, 0)),
            scratch_shapes=[pltpu.VMEM((R, NEWS_DIM), jnp.float32)],
        ),
        compiler_params=pltpu.CompilerParams(
            dimension_semantics=("parallel",)),
    )(ids, tid_row, tid_col, word_emb, w_qkv, b_qkv, w1, b1, w2, b2)
    return out[:B]


def reference_jax(news, word_emb, params):
    """Pure-JAX reference mirroring the PyTorch forward (eval mode)."""
    wq, bq, wk, bk, wv, bv, w1, b1, w2, b2 = params
    title = news[:, :TITLE_LEN]
    t_rep = jnp.take(word_emb, title, axis=0)            # [B, 30, EMB_DIM]
    B, L, _ = t_rep.shape
    q = t_rep @ wq + bq
    k = t_rep @ wk + bk
    v = t_rep @ wv + bv
    qh = q.reshape(B, L, N_HEAD, D_K).transpose(0, 2, 1, 3)
    kh = k.reshape(B, L, N_HEAD, D_K).transpose(0, 2, 1, 3)
    vh = v.reshape(B, L, N_HEAD, D_V).transpose(0, 2, 1, 3)
    s = jnp.einsum('bhqd,bhkd->bhqk', qh, kh) / math.sqrt(D_K)
    p = jax.nn.softmax(s, axis=-1)
    ctx = jnp.einsum('bhqk,bhkd->bhqd', p, vh).transpose(0, 2, 1, 3)
    ctx = ctx.reshape(B, L, NEWS_DIM)
    e = jnp.tanh(ctx @ w1 + b1)
    a = jnp.exp(e @ w2 + b2)
    a = a / (jnp.sum(a, axis=1, keepdims=True) + 1e-8)
    return jnp.sum(ctx * a, axis=1)


if __name__ == "__main__":
    key = jax.random.PRNGKey(0)
    ks = jax.random.split(key, 8)

    # deterministic synthetic parameters (shapes implied by the module __init__)
    word_emb = jax.random.normal(ks[0], (VOCAB, EMB_DIM), jnp.float32) * 0.1
    news = jax.random.randint(ks[1], (BATCH, NEWS_LEN), 0, VOCAB, jnp.int32)

    def linear(k, fan_in, fan_out):
        bound = 1.0 / math.sqrt(fan_in)
        kw, kb = jax.random.split(k)
        w = jax.random.uniform(kw, (fan_in, fan_out), jnp.float32, -bound, bound)
        b = jax.random.uniform(kb, (1, fan_out), jnp.float32, -bound, bound)
        return w, b

    wq, bq = linear(ks[2], EMB_DIM, N_HEAD * D_K)
    wk, bk = linear(ks[3], EMB_DIM, N_HEAD * D_K)
    wv, bv = linear(ks[4], EMB_DIM, N_HEAD * D_V)
    w1, b1 = linear(ks[5], NEWS_DIM, QUERY_DIM)
    w2, b2 = linear(ks[6], QUERY_DIM, 1)
    params = (wq, bq, wk, bk, wv, bv, w1, b1, w2, b2)

    out = attn_news_encoder_pallas(news, word_emb, params)
    out = jax.block_until_ready(out)

    ref = reference_jax(news, word_emb, params)
    assert out.shape == (BATCH, NEWS_DIM), out.shape
    assert float(jnp.max(jnp.abs(out - ref))) < 1e-3

    print("KERNEL_OK")
</pallas_src>

<mosaic_0001>
module attributes {stable_mosaic.version = 11 : i64} {
  func.func @attn_news_kernel(%arg0: i32, %arg1: memref<240x1xi32, #tpu.memory_space<vmem>>, %arg2: memref<240x1xi32, #tpu.memory_space<vmem>>, %arg3: memref<1x240xi32, #tpu.memory_space<vmem>>, %arg4: memref<50x32xf32, #tpu.memory_space<vmem>>, %arg5: memref<32x96xf32, #tpu.memory_space<vmem>>, %arg6: memref<1x96xf32, #tpu.memory_space<vmem>>, %arg7: memref<32x32xf32, #tpu.memory_space<vmem>>, %arg8: memref<1x32xf32, #tpu.memory_space<vmem>>, %arg9: memref<32x1xf32, #tpu.memory_space<vmem>>, %arg10: memref<1x1xf32, #tpu.memory_space<vmem>>, %arg11: memref<8x32xf32, #tpu.memory_space<vmem>>, %arg12: memref<240x32xf32, #tpu.memory_space<vmem>>) attributes {dimension_semantics = [#tpu.dimension_semantics<parallel>], iteration_bounds = array<i64: 4>, scalar_prefetch = 0 : i64, scratch_operands = 1 : i64, tpu.core_type = #tpu.core_type<tc>, window_params = [{transform_indices = @transform_0, window_bounds = array<i64: 240, 1>}, {pipeline_mode = #tpu.pipeline_mode<synchronous>, transform_indices = @transform_1, window_bounds = array<i64: 240, 1>}, {pipeline_mode = #tpu.pipeline_mode<synchronous>, transform_indices = @transform_2, window_bounds = array<i64: 1, 240>}, {pipeline_mode = #tpu.pipeline_mode<synchronous>, transform_indices = @transform_3, window_bounds = array<i64: 50, 32>}, {pipeline_mode = #tpu.pipeline_mode<synchronous>, transform_indices = @transform_4, window_bounds = array<i64: 32, 96>}, {pipeline_mode = #tpu.pipeline_mode<synchronous>, transform_indices = @transform_5, window_bounds = array<i64: 1, 96>}, {pipeline_mode = #tpu.pipeline_mode<synchronous>, transform_indices = @transform_6, window_bounds = array<i64: 32, 32>}, {pipeline_mode = #tpu.pipeline_mode<synchronous>, transform_indices = @transform_7, window_bounds = array<i64: 1, 32>}, {pipeline_mode = #tpu.pipeline_mode<synchronous>, transform_indices = @transform_8, window_bounds = array<i64: 32, 1>}, {pipeline_mode = #tpu.pipeline_mode<synchronous>, transform_indices = @transform_9, window_bounds = array<i64: 1, 1>}, {transform_indices = @transform_10, window_bounds = array<i64: 8, 32>}]} {
    %c0 = arith.constant 0 : index
    %c0_0 = arith.constant 0 : index
    %0 = vector.load %arg1[%c0, %c0_0] : memref<240x1xi32, #tpu.memory_space<vmem>>, vector<240x1xi32>
    %1 = tpu.iota {dimensions = array<i32: 1>} : vector<240x50xi32>
    %2 = vector.broadcast %0 : vector<240x1xi32> to vector<240x50xi32>
    %3 = arith.cmpi eq, %2, %1 : vector<240x50xi32>
    %4 = arith.extui %3 : vector<240x50xi1> to vector<240x50xi32>
    %5 = arith.sitofp %4 : vector<240x50xi32> to vector<240x50xf32>
    %c0_1 = arith.constant 0 : index
    %c0_2 = arith.constant 0 : index
    %6 = vector.load %arg4[%c0_1, %c0_2] : memref<50x32xf32, #tpu.memory_space<vmem>>, vector<50x32xf32>
    %cst = arith.constant dense<0.000000e+00> : vector<240x32xf32>
    %7 = tpu.matmul %5, %6, %cst {dimension_numbers = #tpu.dot_dimension_numbers<[1], [0], [0], [1], [0, 0, 1, 1], [], []>} : vector<240x50xf32>, vector<50x32xf32>, vector<240x32xf32> -> vector<240x32xf32>
    %c0_3 = arith.constant 0 : index
    %c0_4 = arith.constant 0 : index
    %8 = vector.load %arg5[%c0_3, %c0_4] : memref<32x96xf32, #tpu.memory_space<vmem>>, vector<32x96xf32>
    %cst_5 = arith.constant dense<0.000000e+00> : vector<240x96xf32>
    %9 = tpu.matmul %7, %8, %cst_5 {dimension_numbers = #tpu.dot_dimension_numbers<[1], [0], [0], [1], [0, 0, 1, 1], [], []>} : vector<240x32xf32>, vector<32x96xf32>, vector<240x96xf32> -> vector<240x96xf32>
    %c0_6 = arith.constant 0 : index
    %c0_7 = arith.constant 0 : index
    %10 = vector.load %arg6[%c0_6, %c0_7] : memref<1x96xf32, #tpu.memory_space<vmem>>, vector<1x96xf32>
    %11 = vector.broadcast %10 : vector<1x96xf32> to vector<240x96xf32>
    %12 = arith.addf %9, %11 : vector<240x96xf32>
    %c0_8 = arith.constant 0 : index
    %c0_9 = arith.constant 0 : index
    %13 = vector.load %arg2[%c0_8, %c0_9] : memref<240x1xi32, #tpu.memory_space<vmem>>, vector<240x1xi32>
    %c0_10 = arith.constant 0 : index
    %c0_11 = arith.constant 0 : index
    %14 = vector.load %arg3[%c0_10, %c0_11] : memref<1x240xi32, #tpu.memory_space<vmem>>, vector<1x240xi32>
    %15 = vector.broadcast %13 : vector<240x1xi32> to vector<240x240xi32>
    %16 = vector.broadcast %14 : vector<1x240xi32> to vector<240x240xi32>
    %17 = arith.cmpi eq, %15, %16 : vector<240x240xi32>
    %18 = vector.extract_strided_slice %12 {offsets = [0, 0], sizes = [240, 16], strides = [1, 1]} : vector<240x96xf32> to vector<240x16xf32>
    %19 = vector.extract_strided_slice %12 {offsets = [0, 32], sizes = [240, 16], strides = [1, 1]} : vector<240x96xf32> to vector<240x16xf32>
    %20 = vector.extract_strided_slice %12 {offsets = [0, 64], sizes = [240, 16], strides = [1, 1]} : vector<240x96xf32> to vector<240x16xf32>
    %cst_12 = arith.constant dense<0.000000e+00> : vector<240x240xf32>
    %21 = tpu.matmul %18, %19, %cst_12 {dimension_numbers = #tpu.dot_dimension_numbers<[1], [1], [0], [0], [0, 0, 1, 0], [], []>} : vector<240x16xf32>, vector<240x16xf32>, vector<240x240xf32> -> vector<240x240xf32>
    %cst_13 = arith.constant 2.500000e-01 : f32
    %22 = vector.broadcast %cst_13 : f32 to vector<240x240xf32>
    %23 = arith.mulf %21, %22 : vector<240x240xf32>
    %cst_14 = arith.constant -1.000000e+30 : f32
    %24 = vector.broadcast %cst_14 : f32 to vector<240x240xf32>
    %25 = arith.select %17, %23, %24 : vector<240x240xi1>, vector<240x240xf32>
    %cst_15 = arith.constant dense<0xFF800000> : vector<240xf32>
    %26 = vector.multi_reduction <maximumf>, %25, %cst_15 [1] : vector<240x240xf32> to vector<240xf32>
    %27 = vector.shape_cast %26 : vector<240xf32> to vector<240x1xf32>
    %28 = vector.broadcast %27 : vector<240x1xf32> to vector<240x240xf32>
    %29 = arith.subf %25, %28 : vector<240x240xf32>
    %30 = math.exp %29 : vector<240x240xf32>
    %cst_16 = arith.constant dense<0.000000e+00> : vector<240xf32>
    %31 = vector.multi_reduction <add>, %30, %cst_16 [1] : vector<240x240xf32> to vector<240xf32>
    %32 = vector.shape_cast %31 : vector<240xf32> to vector<240x1xf32>
    %33 = tpu.reciprocal %32 {approx = true} : vector<240x1xf32> -> vector<240x1xf32>
    %34 = vector.broadcast %33 : vector<240x1xf32> to vector<240x240xf32>
    %35 = arith.mulf %30, %34 : vector<240x240xf32>
    %cst_17 = arith.constant dense<0.000000e+00> : vector<240x16xf32>
    %36 = tpu.matmul %35, %20, %cst_17 {dimension_numbers = #tpu.dot_dimension_numbers<[1], [0], [0], [1], [0, 0, 1, 1], [], []>} : vector<240x240xf32>, vector<240x16xf32>, vector<240x16xf32> -> vector<240x16xf32>
    %c0_18 = arith.constant 0 : index
    %c0_19 = arith.constant 0 : index
    %37 = vector.load %arg12[%c0_18, %c0_19] : memref<240x32xf32, #tpu.memory_space<vmem>>, vector<240x16xf32>
    tpu.vector_store %arg12[%c0_18, %c0_19], %36 {strides = array<i32>} : memref<240x32xf32, #tpu.memory_space<vmem>>, vector<240x16xf32>,
    %38 = vector.extract_strided_slice %12 {offsets = [0, 16], sizes = [240, 16], strides = [1, 1]} : vector<240x96xf32> to vector<240x16xf32>
    %39 = vector.extract_strided_slice %12 {offsets = [0, 48], sizes = [240, 16], strides = [1, 1]} : vector<240x96xf32> to vector<240x16xf32>
    %40 = vector.extract_strided_slice %12 {offsets = [0, 80], sizes = [240, 16], strides = [1, 1]} : vector<240x96xf32> to vector<240x16xf32>
    %cst_20 = arith.constant dense<0.000000e+00> : vector<240x240xf32>
    %41 = tpu.matmul %38, %39, %cst_20 {dimension_numbers = #tpu.dot_dimension_numbers<[1], [1], [0], [0], [0, 0, 1, 0], [], []>} : vector<240x16xf32>, vector<240x16xf32>, vector<240x240xf32> -> vector<240x240xf32>
    %cst_21 = arith.constant 2.500000e-01 : f32
    %42 = vector.broadcast %cst_21 : f32 to vector<240x240xf32>
    %43 = arith.mulf %41, %42 : vector<240x240xf32>
    %cst_22 = arith.constant -1.000000e+30 : f32
    %44 = vector.broadcast %cst_22 : f32 to vector<240x240xf32>
    %45 = arith.select %17, %43, %44 : vector<240x240xi1>, vector<240x240xf32>
    %cst_23 = arith.constant dense<0xFF800000> : vector<240xf32>
    %46 = vector.multi_reduction <maximumf>, %45, %cst_23 [1] : vector<240x240xf32> to vector<240xf32>
    %47 = vector.shape_cast %46 : vector<240xf32> to vector<240x1xf32>
    %48 = vector.broadcast %47 : vector<240x1xf32> to vector<240x240xf32>
    %49 = arith.subf %45, %48 : vector<240x240xf32>
    %50 = math.exp %49 : vector<240x240xf32>
    %cst_24 = arith.constant dense<0.000000e+00> : vector<240xf32>
    %51 = vector.multi_reduction <add>, %50, %cst_24 [1] : vector<240x240xf32> to vector<240xf32>
    %52 = vector.shape_cast %51 : vector<240xf32> to vector<240x1xf32>
    %53 = tpu.reciprocal %52 {approx = true} : vector<240x1xf32> -> vector<240x1xf32>
    %54 = vector.broadcast %53 : vector<240x1xf32> to vector<240x240xf32>
    %55 = arith.mulf %50, %54 : vector<240x240xf32>
    %cst_25 = arith.constant dense<0.000000e+00> : vector<240x16xf32>
    %56 = tpu.matmul %55, %40, %cst_25 {dimension_numbers = #tpu.dot_dimension_numbers<[1], [0], [0], [1], [0, 0, 1, 1], [], []>} : vector<240x240xf32>, vector<240x16xf32>, vector<240x16xf32> -> vector<240x16xf32>
    %c0_26 = arith.constant 0 : index
    %c16 = arith.constant 16 : index
    %57 = vector.load %arg12[%c0_26, %c16] : memref<240x32xf32, #tpu.memory_space<vmem>>, vector<240x16xf32>
    tpu.vector_store %arg12[%c0_26, %c16], %56 {strides = array<i32>} : memref<240x32xf32, #tpu.memory_space<vmem>>, vector<240x16xf32>,
    %c0_27 = arith.constant 0 : index
    %c0_28 = arith.constant 0 : index
    %58 = vector.load %arg12[%c0_27, %c0_28] : memref<240x32xf32, #tpu.memory_space<vmem>>, vector<240x32xf32>
    %c0_29 = arith.constant 0 : index
    %c0_30 = arith.constant 0 : index
    %59 = vector.load %arg7[%c0_29, %c0_30] : memref<32x32xf32, #tpu.memory_space<vmem>>, vector<32x32xf32>
    %cst_31 = arith.constant dense<0.000000e+00> : vector<240x32xf32>
    %60 = tpu.matmul %58, %59, %cst_31 {dimension_numbers = #tpu.dot_dimension_numbers<[1], [0], [0], [1], [0, 0, 1, 1], [], []>} : vector<240x32xf32>, vector<32x32xf32>, vector<240x32xf32> -> vector<240x32xf32>
    %c0_32 = arith.constant 0 : index
    %c0_33 = arith.constant 0 : index
    %61 = vector.load %arg8[%c0_32, %c0_33] : memref<1x32xf32, #tpu.memory_space<vmem>>, vector<1x32xf32>
    %62 = vector.broadcast %61 : vector<1x32xf32> to vector<240x32xf32>
    %63 = arith.addf %60, %62 : vector<240x32xf32>
    %64 = math.tanh %63 : vector<240x32xf32>
    %c0_34 = arith.constant 0 : index
    %c0_35 = arith.constant 0 : index
    %65 = vector.load %arg9[%c0_34, %c0_35] : memref<32x1xf32, #tpu.memory_space<vmem>>, vector<32x1xf32>
    %cst_36 = arith.constant dense<0.000000e+00> : vector<240x1xf32>
    %66 = tpu.matmul %64, %65, %cst_36 {dimension_numbers = #tpu.dot_dimension_numbers<[1], [0], [0], [1], [0, 0, 1, 1], [], []>} : vector<240x32xf32>, vector<32x1xf32>, vector<240x1xf32> -> vector<240x1xf32>
    %c0_37 = arith.constant 0 : index
    %c0_38 = arith.constant 0 : index
    %67 = vector.load %arg10[%c0_37, %c0_38] : memref<1x1xf32, #tpu.memory_space<vmem>>, vector<1x1xf32>
    %68 = vector.broadcast %67 : vector<1x1xf32> to vector<240x1xf32>
    %69 = arith.addf %66, %68 : vector<240x1xf32>
    %70 = math.exp %69 : vector<240x1xf32>
    %71 = tpu.iota {dimensions = array<i32: 0>} : vector<8x1xi32>
    %72 = vector.broadcast %71 : vector<8x1xi32> to vector<8x240xi32>
    %73 = vector.broadcast %14 : vector<1x240xi32> to vector<8x240xi32>
    %74 = arith.cmpi eq, %72, %73 : vector<8x240xi32>
    %75 = arith.extui %74 : vector<8x240xi1> to vector<8x240xi32>
    %76 = arith.sitofp %75 : vector<8x240xi32> to vector<8x240xf32>
    %77 = vector.broadcast %70 : vector<240x1xf32> to vector<240x32xf32>
    %78 = arith.mulf %58, %77 : vector<240x32xf32>
    %cst_39 = arith.constant dense<0.000000e+00> : vector<8x32xf32>
    %79 = tpu.matmul %76, %78, %cst_39 {dimension_numbers = #tpu.dot_dimension_numbers<[1], [0], [0], [1], [0, 0, 1, 1], [], []>} : vector<8x240xf32>, vector<240x32xf32>, vector<8x32xf32> -> vector<8x32xf32>
    %cst_40 = arith.constant dense<0.000000e+00> : vector<8x1xf32>
    %80 = tpu.matmul %76, %70, %cst_40 {dimension_numbers = #tpu.dot_dimension_numbers<[1], [0], [0], [1], [0, 0, 1, 1], [], []>} : vector<8x240xf32>, vector<240x1xf32>, vector<8x1xf32> -> vector<8x1xf32>
    %cst_41 = arith.constant 9.99999993E-9 : f32
    %81 = vector.broadcast %cst_41 : f32 to vector<8x1xf32>
    %82 = arith.addf %80, %81 : vector<8x1xf32>
    %83 = tpu.reciprocal %82 {approx = true} : vector<8x1xf32> -> vector<8x1xf32>
    %84 = vector.broadcast %83 : vector<8x1xf32> to vector<8x32xf32>
    %85 = arith.mulf %79, %84 : vector<8x32xf32>
    %c0_42 = arith.constant 0 : index
    %c0_43 = arith.constant 0 : index
    %86 = vector.load %arg11[%c0_42, %c0_43] : memref<8x32xf32, #tpu.memory_space<vmem>>, vector<8x32xf32>
    tpu.vector_store %arg11[%c0_42, %c0_43], %85 {strides = array<i32>} : memref<8x32xf32, #tpu.memory_space<vmem>>, vector<8x32xf32>,
    return
  }
  func.func @transform_0(%arg0: i32) -> (i32, i32) {
    %c0_i32 = arith.constant 0 : i32
    %c0_i32_0 = arith.constant 0 : i32
    return %arg0, %c0_i32 : i32, i32
  }
  func.func @transform_1(%arg0: i32) -> (i32, i32) {
    %c0_i32 = arith.constant 0 : i32
    %c0_i32_0 = arith.constant 0 : i32
    %c0_i32_1 = arith.constant 0 : i32
    return %c0_i32, %c0_i32_0 : i32, i32
  }
  func.func @transform_2(%arg0: i32) -> (i32, i32) {
    %c0_i32 = arith.constant 0 : i32
    %c0_i32_0 = arith.constant 0 : i32
    %c0_i32_1 = arith.constant 0 : i32
    return %c0_i32, %c0_i32_0 : i32, i32
  }
  func.func @transform_3(%arg0: i32) -> (i32, i32) {
    %c0_i32 = arith.constant 0 : i32
    %c0_i32_0 = arith.constant 0 : i32
    %c0_i32_1 = arith.constant 0 : i32
    return %c0_i32, %c0_i32_0 : i32, i32
  }
  func.func @transform_4(%arg0: i32) -> (i32, i32) {
    %c0_i32 = arith.constant 0 : i32
    %c0_i32_0 = arith.constant 0 : i32
    %c0_i32_1 = arith.constant 0 : i32
    return %c0_i32, %c0_i32_0 : i32, i32
  }
  func.func @transform_5(%arg0: i32) -> (i32, i32) {
    %c0_i32 = arith.constant 0 : i32
    %c0_i32_0 = arith.constant 0 : i32
    %c0_i32_1 = arith.constant 0 : i32
    return %c0_i32, %c0_i32_0 : i32, i32
  }
  func.func @transform_6(%arg0: i32) -> (i32, i32) {
    %c0_i32 = arith.constant 0 : i32
    %c0_i32_0 = arith.constant 0 : i32
    %c0_i32_1 = arith.constant 0 : i32
    return %c0_i32, %c0_i32_0 : i32, i32
  }
  func.func @transform_7(%arg0: i32) -> (i32, i32) {
    %c0_i32 = arith.constant 0 : i32
    %c0_i32_0 = arith.constant 0 : i32
    %c0_i32_1 = arith.constant 0 : i32
    return %c0_i32, %c0_i32_0 : i32, i32
  }
  func.func @transform_8(%arg0: i32) -> (i32, i32) {
    %c0_i32 = arith.constant 0 : i32
    %c0_i32_0 = arith.constant 0 : i32
    %c0_i32_1 = arith.constant 0 : i32
    return %c0_i32, %c0_i32_0 : i32, i32
  }
  func.func @transform_9(%arg0: i32) -> (i32, i32) {
    %c0_i32 = arith.constant 0 : i32
    %c0_i32_0 = arith.constant 0 : i32
    %c0_i32_1 = arith.constant 0 : i32
    return %c0_i32, %c0_i32_0 : i32, i32
  }
  func.func @transform_10(%arg0: i32) -> (i32, i32) {
    %c0_i32 = arith.constant 0 : i32
    %c0_i32_0 = arith.constant 0 : i32
    return %arg0, %c0_i32 : i32, i32
  }
}

</mosaic_0001>

<bundles_post_ra>
// kernel: tpu_custom_call.1
= control target key start
LH: loop header
LB: loop body
LE: loop exit
PB: predicated region body
PF: predicated region fallthrough
CT: control target
= control target key end

     0   :  { %s11100_s0 = inlined_call_operand.vmem [shape: s32[960,1], index: 0, kind: input, shape index: {}]   ;;  %s11101_s1 = inlined_call_operand.vmem [shape: s32[240,1], index: 1, kind: input, shape index: {}]   ;;  %s11102_s2 = inlined_call_operand.vmem [shape: s32[1,240], index: 2, kind: input, shape index: {}]   ;;  %s11103_s3 = inlined_call_operand.vmem [shape: f32[50,32], index: 3, kind: input, shape index: {}]   ;;  %s11104_s4 = inlined_call_operand.vmem [shape: f32[32,96], index: 4, kind: input, shape index: {}]   ;;  %s11105_s5 = inlined_call_operand.vmem [shape: f32[1,96], index: 5, kind: input, shape index: {}]   ;;  %s11106_s6 = inlined_call_operand.vmem [shape: f32[32,32], index: 6, kind: input, shape index: {}]   ;;  %s11107_s7 = inlined_call_operand.vmem [shape: f32[1,32], index: 7, kind: input, shape index: {}]   ;;  %s11108_s8 = inlined_call_operand.vmem [shape: f32[32,1], index: 8, kind: input, shape index: {}]   ;;  %s11109_s9 = inlined_call_operand.<no memory space> [shape: f32[1,1], index: 9, kind: input, shape index: {}]   ;;  %s11110_s10 = inlined_call_operand.hbm [shape: f32[32,32], index: 10, kind: output, shape index: {}]  }
   0x1   :  { %v15_v0 = vstv %s11109_s9 }
   0x2   :  { %16 = vst [vmem:[#allocation3] sm:$0x1] %v15_v0 }
   0x3   :  { %17 = vsyncpa [#allocation5], 0 }
   0x4   :  { %19 = vsyncpa [#allocation5 + $0x1], 0  ;;  %s7773_s15 = smov 0   ;;  %s7775_s16 = smov 0  }
   0x5   :  { %s7777_s17 = smov 0   ;;  %s7779_s18 = smov 0  }
   0x6 LB: > { %s7794_s9 = sadd.s32 4294967295, %s7702_s18   ;;  %s5734_s19 = sadd.s32 4294967294, %s7702_s18   ;;  %s7702_s18 = sphi %s7779_s18, %s11777_s18   ;;  %s7698_s17 = sphi %s7777_s17, %s11776_s17   ;;  %s7694_s16 = sphi %s7775_s16, %s11775_s16   ;;  %s7690_s15 = sphi %s7773_s15, %s11774_s15  }
   0x7   : > { %s7798_s20 = sadd.s32 1, %s7702_s18   ;;  %s247_s21 = sadd.s32 1, %s7698_s17 }
   0x8   : > { %s244_s22 = ssub.s32 %s7702_s18, %s7798_s20  ;;  %p257_p0 = scmp.ne.s32.totalorder %s7698_s17, %s7694_s16 }
   0x9   : > { %p245_p1 = scmp.eq.s32.totalorder %s244_s22, 0  ;;  %p258_p2 = scmp.eq.s32.totalorder %s7794_s9, 3 }
   0xa   : > { %p263_p3 = scmp.ne.s32.totalorder %s7694_s16, %s7690_s15  ;;  %p264_p4 = scmp.eq.s32.totalorder %s5734_s19, 3 }
   0xb   : > { %s7809_s23 = scalar_select %p245_p1, %s7698_s17, %s247_s21  }
   0xc   : > { %p7811_p5 = por %p258_p2, %p257_p0  ;;  %p7815_p6 = por %p264_p4, %p263_p3 }
   0xd   : > { %p5737_p7 = scmp.ge.s32.totalorder %s7702_s18, 1  ;;  %p318_p8 = scmp.lt.s32.totalorder %s7702_s18, 5 }
   0xf   : > { %p319_p9 = pnand %p5737_p7, %p318_p8 }
  0x11   : > { %322 = sbr.rel (%p319_p9) target bundleno = 3482 (0xd9a), region = 60 }
  0x18   : > { %s356_s26 = smul.u32 30, %s7794_s9  ;;  %v574_v1 = vld [vmem:[%s11103_s3] sm:$0xff]  ;;  %v575_v2 = vld [vmem:[%s11103_s3 + $0x8] sm:$0xff]  ;;  %v576_v3 = vld [vmem:[%s11103_s3 + $0x10] sm:$0xff]  ;;  %v7704_v4 = vmov 0   ;;  %vm672_vm0 = vcmask 1041408   ;;  %v11111_v48 = vlaneseq }
  0x19   : > { %6857 = vset.pattern.permute.xlu1 %v7704_v4  ;;  %6856 = vset.pattern.permute.xlu0 %v7704_v4  ;;  %v6441_v5 = vpack.c.bf16 %v575_v2, %v574_v1  ;;  %v577_v6 = vld [vmem:[%s11103_s3 + $0x18] sm:$0xff]  ;;  %v578_v8 = vld [vmem:[%s11103_s3 + $0x20] sm:$0xff]  ;;  %v579_v9 = vld [vmem:[%s11103_s3 + $0x28] sm:$0xff]  ;;  %vm581_vm1 = vcmask 408576   ;;  %v11112_v52 = vmov 0.0   ;;  %s7708_s29 = smov 64  }
  0x1a   : > { %p357_p10 = scmp.lt.s32.totalorder %s356_s26, 119  ;;  %v6445_v7 = vpack.c.bf16 %v577_v6, %v576_v3  ;;  %v6449_v10 = vpack.c.bf16 %v579_v9, %v578_v8  ;;  %v580_v19 = vld [vmem:[%s11103_s3 + $0x30] sm:$0x3]  ;;  %v891_v42 = vld [vmem:[%s11104_s4] sm:$0xff]  ;;  %v892_v43 = vld [vmem:[%s11104_s4 + $0x8] sm:$0xff]  ;;  %v7891_v49 = vand.u32 127, %v11111_v48 }
  0x1b   : > { %6442 = vmatprep.subr.bf16.mxu0 %v6441_v5  ;;  %v893_v44 = vld [vmem:[%s11104_s4 + $0x10] sm:$0xff]  ;;  %v6453_v45 = vpack.c.bf16 %v892_v43, %v891_v42  ;;  %v894_v46 = vld [vmem:[%s11104_s4 + $0x18] sm:$0xff]  ;;  %s7709_s13 = smov 80   ;;  %s7710_s21 = smov 112  }
  0x1c   : > { %s11779_s26 = smov (!%p357_p10, %s356_s26), 119  ;;  %6444 = vmatpush3.bf16.msra.mxu0 %v6441_v5  ;;  %v6457_v47 = vpack.c.bf16 %v894_v46, %v893_v44  ;;  %s7711_s22 = smov 48  }
  0x1d   : > { %6446 = vmatprep.subr.bf16.mxu0 %v6445_v7  ;;  %s5739_s19 = sshll.u32 %s11779_s26, 3  ;;  %6454 = vmatprep.subr.bf16.mxu1 %v6453_v45  ;;  %s7707_s26 = smov 96  }
  0x1e   : > { %s7843_s11 = scalar_lea.vmem %s11100_s0, %s5739_s19  ;;  %6456 = vmatpush3.bf16.msra.mxu1 %v6453_v45  ;;  %s7712_s14 = smov 16  }
  0x1f   : > { %v364_v11 = vld [vmem:[%s7843_s11 + $0x10] sm:$0xff]  ;;  %v362_v12 = vld [vmem:[%s7843_s11] sm:$0xff]  ;;  %v365_v13 = vld [vmem:[%s7843_s11 + $0x18] sm:$0xff]  ;;  %6458 = vmatprep.subr.bf16.mxu1 %v6457_v47  ;;  %s6081_s19 = sshll.u32 %s7794_s9, 7  ;;  %s7714_s9 = smov [#allocation4]  }
  0x20   : > { %6448 = vmatpush3.bf16.msra.mxu0 %v6445_v7  ;;  %401 = vperm.xlu1 %6857, %v364_v11   ;;  %v363_v14 = vld [vmem:[%s7843_s11 + $0x8] sm:$0xff]  ;;  %v366_v16 = vld [vmem:[%s7843_s11 + $0x20] sm:$0xff]  ;;  %v369_v17 = vld [vmem:[%s7843_s11 + $0x38] sm:$0xff] }
  0x21   : > { %395 = vperm.xlu0 %6856, %v362_v12   ;;  %6450 = vmatprep.subr.bf16.mxu0 %v6449_v10  ;;  %v367_v15 = vld [vmem:[%s7843_s11 + $0x28] sm:$0xff]  ;;  %v368_v18 = vld [vmem:[%s7843_s11 + $0x30] sm:$0xff]  ;;  %v370_v21 = vld [vmem:[%s7843_s11 + $0x40] sm:$0xff] }
  0x22   : > { %v371_v20 = vld [vmem:[%s7843_s11 + $0x48] sm:$0xff]  ;;  %v373_v22 = vld [vmem:[%s7843_s11 + $0x58] sm:$0xff]  ;;  %v372_v23 = vld [vmem:[%s7843_s11 + $0x50] sm:$0xff]  ;;  %6460 = vmatpush3.bf16.msra.mxu1 %v6457_v47 }
  0x23   : > { %v375_v24 = vld [vmem:[%s7843_s11 + $0x68] sm:$0xff]  ;;  %v374_v25 = vld [vmem:[%s7843_s11 + $0x60] sm:$0xff]  ;;  %v377_v26 = vld [vmem:[%s7843_s11 + $0x78] sm:$0xff] }
  0x24   : > { %6452 = vmatpush3.bf16.msra.mxu0 %v6449_v10  ;;  %404 = vperm.xlu1 %6857, %v365_v13   ;;  %v376_v27 = vld [vmem:[%s7843_s11 + $0x70] sm:$0xff]  ;;  %v379_v28 = vld [vmem:[%s7843_s11 + $0x88] sm:$0xff]  ;;  %v378_v29 = vld [vmem:[%s7843_s11 + $0x80] sm:$0xff] }
  0x25   : > { %398 = vperm.xlu0 %6856, %v363_v14   ;;  %6235 = vmatprep.subr.msk.mxu0 %vm672_vm0, %v580_v19  ;;  %v381_v30 = vld [vmem:[%s7843_s11 + $0x98] sm:$0xff]  ;;  %v380_v31 = vld [vmem:[%s7843_s11 + $0x90] sm:$0xff]  ;;  %v383_v32 = vld [vmem:[%s7843_s11 + $0xa8] sm:$0xff] }
  0x26   : > { %v382_v33 = vld [vmem:[%s7843_s11 + $0xa0] sm:$0xff]  ;;  %v385_v34 = vld [vmem:[%s7843_s11 + $0xb8] sm:$0xff]  ;;  %v384_v35 = vld [vmem:[%s7843_s11 + $0xb0] sm:$0xff] }
  0x27   : > { %v387_v36 = vld [vmem:[%s7843_s11 + $0xc8] sm:$0xff]  ;;  %v386_v37 = vld [vmem:[%s7843_s11 + $0xc0] sm:$0xff]  ;;  %v389_v38 = vld [vmem:[%s7843_s11 + $0xd8] sm:$0xff] }
  0x28   : > { %410 = vperm.xlu1 %6857, %v367_v15   ;;  %6236 = vmatpush3.msk.msra.mxu0 %vm672_vm0, %v580_v19  ;;  %v388_v39 = vld [vmem:[%s7843_s11 + $0xd0] sm:$0xff]  ;;  %v391_v40 = vld [vmem:[%s7843_s11 + $0xe8] sm:$0xff]  ;;  %v390_v41 = vld [vmem:[%s7843_s11 + $0xe0] sm:$0xff] }
  0x29   : > { %407 = vperm.xlu0 %6856, %v366_v16  }
  0x2c   : > { %416 = vperm.xlu1 %6857, %v369_v17  }
  0x2d   : > { %413 = vperm.xlu0 %6856, %v368_v18  }
  0x30   : > { %422 = vperm.xlu1 %6857, %v371_v20  }
  0x31   : > { %419 = vperm.xlu0 %6856, %v370_v21  }
  0x34   : > { %428 = vperm.xlu1 %6857, %v373_v22  }
  0x35   : > { %425 = vperm.xlu0 %6856, %v372_v23  }
  0x38   : > { %434 = vperm.xlu1 %6857, %v375_v24  }
  0x39   : > { %431 = vperm.xlu0 %6856, %v374_v25  }
  0x3c   : > { %440 = vperm.xlu1 %6857, %v377_v26  }
  0x3d   : > { %437 = vperm.xlu0 %6856, %v376_v27  }
  0x40   : > { %446 = vperm.xlu1 %6857, %v379_v28  }
  0x41   : > { %443 = vperm.xlu0 %6856, %v378_v29  }
  0x44   : > { %452 = vperm.xlu1 %6857, %v381_v30  }
  0x45   : > { %449 = vperm.xlu0 %6856, %v380_v31  }
  0x48   : > { %458 = vperm.xlu1 %6857, %v383_v32  }
  0x49   : > { %455 = vperm.xlu0 %6856, %v382_v33  }
  0x4c   : > { %464 = vperm.xlu1 %6857, %v385_v34  }
  0x4d   : > { %461 = vperm.xlu0 %6856, %v384_v35  }
  0x50   : > { %470 = vperm.xlu1 %6857, %v387_v36  }
  0x51   : > { %467 = vperm.xlu0 %6856, %v386_v37  }
  0x54   : > { %476 = vperm.xlu1 %6857, %v389_v38  }
  0x55   : > { %473 = vperm.xlu0 %6856, %v388_v39  }
  0x58   : > { %482 = vperm.xlu1 %6857, %v391_v40  }
  0x59   : > { %479 = vperm.xlu0 %6856, %v390_v41  }
  0x9f   : > { %v402_v50 = vpop.permute.xlu1 %401 }
  0xa0   : > { %v396_v51 = vpop.permute.xlu0 %395  ;;  %vm486_vm3 = vcmp.eq.s32.totalorder %v402_v50, %v7891_v49 }
  0xa1   : > { %vm484_vm2 = vcmp.eq.s32.totalorder %v396_v51, %v7891_v49  ;;  %v5742_v56 = vsel %vm486_vm3, 1.0, %v11112_v52 }
  0xa2   : > { %v5740_v53 = vsel %vm484_vm2, 1.0, %v11112_v52 }
  0xa3   : > { %6237 = vmatprep.mubr.msk.f32.mxu0 %vm581_vm1, %v5740_v53  ;;  %v405_v54 = vpop.permute.xlu1 %404 }
  0xa4   : > { %v399_v55 = vpop.permute.xlu0 %398  ;;  %vm487_vm4 = vcmp.eq.s32.totalorder %v405_v54, %v7891_v49 }
  0xa5   : > { %vm485_vm5 = vcmp.eq.s32.totalorder %v399_v55, %v7891_v49  ;;  %v5743_v58 = vsel %vm487_vm4, 1.0, %v11112_v52 }
  0xa6   : > { %v5741_v57 = vsel %vm485_vm5, 1.0, %v11112_v52 }
  0xa7   : > { %6238 = vmatmul.mubr.msk.f32.vlgmr.msra.gmra.mrb[0].mxu0 %vm581_vm1, %v5741_v57  ;;  %v411_v59 = vpop.permute.xlu1 %410 }
  0xa8   : > { %v408_v60 = vpop.permute.xlu0 %407  ;;  %6240 = vmatprep.mubr.msk.f32.mxu0 %vm581_vm1, %v5742_v56  ;;  %vm489_vm7 = vcmp.eq.s32.totalorder %v411_v59, %v7891_v49 }
  0xa9   : > { %vm488_vm6 = vcmp.eq.s32.totalorder %v408_v60, %v7891_v49  ;;  %v5745_v0 = vsel %vm489_vm7, 1.0, %v11112_v52 }
  0xaa   : > { %v5744_v61 = vsel %vm488_vm6, 1.0, %v11112_v52 }
  0xab   : > { %6241 = vmatmul.mubr.msk.f32.gmra.mrb[2].mxu0 %vm581_vm1, %v5743_v58  ;;  %v417_v62 = vpop.permute.xlu1 %416 }
  0xac   : > { %6243 = vmatprep.mubr.msk.f32.mxu0 %vm581_vm1, %v5744_v61  ;;  %v414_v63 = vpop.permute.xlu0 %413  ;;  %vm491_vm9 = vcmp.eq.s32.totalorder %v417_v62, %v7891_v49 }
  0xad   : > { %vm490_vm8 = vcmp.eq.s32.totalorder %v414_v63, %v7891_v49  ;;  %v5747_v4 = vsel %vm491_vm9, 1.0, %v11112_v52 }
  0xae   : > { %v5746_v1 = vsel %vm490_vm8, 1.0, %v11112_v52 }
  0xaf   : > { %6244 = vmatmul.mubr.msk.f32.gmra.mrb[4].mxu0 %vm581_vm1, %v5745_v0  ;;  %v423_v2 = vpop.permute.xlu1 %422 }
  0xb0   : > { %6246 = vmatprep.mubr.msk.f32.mxu0 %vm581_vm1, %v5746_v1  ;;  %v420_v3 = vpop.permute.xlu0 %419  ;;  %vm493_vm11 = vcmp.eq.s32.totalorder %v423_v2, %v7891_v49 }
  0xb1   : > { %vm492_vm10 = vcmp.eq.s32.totalorder %v420_v3, %v7891_v49  ;;  %v5749_v8 = vsel %vm493_vm11, 1.0, %v11112_v52 }
  0xb2   : > { %v5748_v5 = vsel %vm492_vm10, 1.0, %v11112_v52 }
  0xb3   : > { %6247 = vmatmul.mubr.msk.f32.gmra.mrb[6].mxu0 %vm581_vm1, %v5747_v4  ;;  %v429_v6 = vpop.permute.xlu1 %428 }
  0xb4   : > { %6249 = vmatprep.mubr.msk.f32.mxu0 %vm581_vm1, %v5748_v5  ;;  %v426_v7 = vpop.permute.xlu0 %425  ;;  %vm495_vm13 = vcmp.eq.s32.totalorder %v429_v6, %v7891_v49 }
  0xb5   : > { %vm494_vm12 = vcmp.eq.s32.totalorder %v426_v7, %v7891_v49  ;;  %v5751_v12 = vsel %vm495_vm13, 1.0, %v11112_v52 }
  0xb6   : > { %v5750_v9 = vsel %vm494_vm12, 1.0, %v11112_v52 }
  0xb7   : > { %6250 = vmatmul.mubr.msk.f32.gmra.mrb[8].mxu0 %vm581_vm1, %v5749_v8  ;;  %v435_v10 = vpop.permute.xlu1 %434 }
  0xb8   : > { %6252 = vmatprep.mubr.msk.f32.mxu0 %vm581_vm1, %v5750_v9  ;;  %v432_v11 = vpop.permute.xlu0 %431  ;;  %vm497_vm15 = vcmp.eq.s32.totalorder %v435_v10, %v7891_v49 }
  0xb9   : > { %vm496_vm14 = vcmp.eq.s32.totalorder %v432_v11, %v7891_v49  ;;  %v5753_v16 = vsel %vm497_vm15, 1.0, %v11112_v52 }
  0xba   : > { %v5752_v13 = vsel %vm496_vm14, 1.0, %v11112_v52 }
  0xbb   : > { %6253 = vmatmul.mubr.msk.f32.gmra.mrb[10].mxu0 %vm581_vm1, %v5751_v12  ;;  %v441_v14 = vpop.permute.xlu1 %440 }
  0xbc   : > { %6255 = vmatprep.mubr.msk.f32.mxu0 %vm581_vm1, %v5752_v13  ;;  %v438_v15 = vpop.permute.xlu0 %437  ;;  %vm499_vm2 = vcmp.eq.s32.totalorder %v441_v14, %v7891_v49 }
  0xbd   : > { %vm498_vm0 = vcmp.eq.s32.totalorder %v438_v15, %v7891_v49  ;;  %v5755_v20 = vsel %vm499_vm2, 1.0, %v11112_v52  ;;  %vm11169_vm2 = vcmask 261120   ;;  %v11132_v15 = vmov 0.0|0.0  }
  0xbe   : > { %v5754_v17 = vsel %vm498_vm0, 1.0, %v11112_v52  ;;  %6461 = vmatprep.subr.bf16.mxu1 %v11132_v15  ;;  %6521 = vmatprep.subr.bf16.mxu0 %v11132_v15 }
  0xbf   : > { %6256 = vmatmul.mubr.msk.f32.gmra.mrb[12].mxu0 %vm581_vm1, %v5753_v16  ;;  %v447_v18 = vpop.permute.xlu1 %446  ;;  %v8019_v16 = vld [vmem:[%s11105_s5] ss:$0 sm:$0xff] }
  0xc0   : > { %6258 = vmatprep.mubr.msk.f32.mxu0 %vm581_vm1, %v5754_v17  ;;  %v444_v19 = vpop.permute.xlu0 %443  ;;  %vm501_vm4 = vcmp.eq.s32.totalorder %v447_v18, %v7891_v49 }
  0xc1   : > { %vm500_vm3 = vcmp.eq.s32.totalorder %v444_v19, %v7891_v49  ;;  %v5757_v24 = vsel %vm501_vm4, 1.0, %v11112_v52  ;;  %vm1973_vm4 = vcmask 916480  }
  0xc2   : > { %v5756_v21 = vsel %vm500_vm3, 1.0, %v11112_v52 }
  0xc3   : > { %6259 = vmatmul.mubr.msk.f32.gmra.mrb[14].mxu0 %vm581_vm1, %v5755_v20  ;;  %v453_v22 = vpop.permute.xlu1 %452 }
  0xc4   : > { %6261 = vmatprep.mubr.msk.f32.mxu0 %vm581_vm1, %v5756_v21  ;;  %v450_v23 = vpop.permute.xlu0 %449  ;;  %vm503_vm6 = vcmp.eq.s32.totalorder %v453_v22, %v7891_v49 }
  0xc5   : > { %vm502_vm5 = vcmp.eq.s32.totalorder %v450_v23, %v7891_v49  ;;  %v5759_v28 = vsel %vm503_vm6, 1.0, %v11112_v52 }
  0xc6   : > { %v5758_v25 = vsel %vm502_vm5, 1.0, %v11112_v52 }
  0xc7   : > { %6262 = vmatmul.mubr.msk.f32.gmra.mrb[16].mxu0 %vm581_vm1, %v5757_v24  ;;  %v459_v26 = vpop.permute.xlu1 %458 }
  0xc8   : > { %6264 = vmatprep.mubr.msk.f32.mxu0 %vm581_vm1, %v5758_v25  ;;  %v456_v27 = vpop.permute.xlu0 %455  ;;  %vm505_vm8 = vcmp.eq.s32.totalorder %v459_v26, %v7891_v49 }
  0xc9   : > { %vm504_vm7 = vcmp.eq.s32.totalorder %v456_v27, %v7891_v49  ;;  %v5761_v32 = vsel %vm505_vm8, 1.0, %v11112_v52 }
  0xca   : > { %v5760_v29 = vsel %vm504_vm7, 1.0, %v11112_v52 }
  0xcb   : > { %6265 = vmatmul.mubr.msk.f32.gmra.mrb[18].mxu0 %vm581_vm1, %v5759_v28  ;;  %v465_v30 = vpop.permute.xlu1 %464 }
  0xcc   : > { %6267 = vmatprep.mubr.msk.f32.mxu0 %vm581_vm1, %v5760_v29  ;;  %v462_v31 = vpop.permute.xlu0 %461  ;;  %vm507_vm10 = vcmp.eq.s32.totalorder %v465_v30, %v7891_v49 }
  0xcd   : > { %vm506_vm9 = vcmp.eq.s32.totalorder %v462_v31, %v7891_v49  ;;  %v5763_v36 = vsel %vm507_vm10, 1.0, %v11112_v52 }
  0xce   : > { %v5762_v33 = vsel %vm506_vm9, 1.0, %v11112_v52 }
  0xcf   : > { %6268 = vmatmul.mubr.msk.f32.gmra.mrb[20].mxu0 %vm581_vm1, %v5761_v32  ;;  %v471_v34 = vpop.permute.xlu1 %470 }
  0xd0   : > { %6270 = vmatprep.mubr.msk.f32.mxu0 %vm581_vm1, %v5762_v33  ;;  %v468_v35 = vpop.permute.xlu0 %467  ;;  %vm509_vm12 = vcmp.eq.s32.totalorder %v471_v34, %v7891_v49 }
  0xd1   : > { %vm508_vm11 = vcmp.eq.s32.totalorder %v468_v35, %v7891_v49  ;;  %v5765_v40 = vsel %vm509_vm12, 1.0, %v11112_v52 }
  0xd2   : > { %v5764_v37 = vsel %vm508_vm11, 1.0, %v11112_v52 }
  0xd3   : > { %6271 = vmatmul.mubr.msk.f32.gmra.mrb[22].mxu0 %vm581_vm1, %v5763_v36  ;;  %v477_v38 = vpop.permute.xlu1 %476 }
  0xd4   : > { %6273 = vmatprep.mubr.msk.f32.mxu0 %vm581_vm1, %v5764_v37  ;;  %v474_v39 = vpop.permute.xlu0 %473  ;;  %vm511_vm14 = vcmp.eq.s32.totalorder %v477_v38, %v7891_v49 }
  0xd5   : > { %vm510_vm13 = vcmp.eq.s32.totalorder %v474_v39, %v7891_v49  ;;  %v5767_v44 = vsel %vm511_vm14, 1.0, %v11112_v52 }
  0xd6   : > { %v5766_v41 = vsel %vm510_vm13, 1.0, %v11112_v52 }
  0xd7   : > { %6274 = vmatmul.mubr.msk.f32.gmra.mrb[24].mxu0 %vm581_vm1, %v5765_v40  ;;  %v483_v42 = vpop.permute.xlu1 %482 }
  0xd8   : > { %6276 = vmatprep.mubr.msk.f32.mxu0 %vm581_vm1, %v5766_v41  ;;  %v480_v43 = vpop.permute.xlu0 %479  ;;  %vm513_vm0 = vcmp.eq.s32.totalorder %v483_v42, %v7891_v49 }
  0xd9   : > { %vm512_vm15 = vcmp.eq.s32.totalorder %v480_v43, %v7891_v49  ;;  %v5769_v46 = vsel %vm513_vm0, 1.0, %v11112_v52 }
  0xda   : > { %v5768_v45 = vsel %vm512_vm15, 1.0, %v11112_v52 }
  0xdb   : > { %6277 = vmatmul.mubr.msk.f32.gmra.mrb[26].mxu0 %vm581_vm1, %v5767_v44 }
  0xdc   : > { %6279 = vmatprep.mubr.msk.f32.mxu0 %vm581_vm1, %v5768_v45 }
  0xdf   : > { %6280 = vmatmul.mubr.msk.f32.gmra.mrb[28].mxu0 %vm581_vm1, %v5769_v46  ;;  %vm1487_vm1 = vcmask 130048  }
  0xe0   : > { %vm8294_vm3 = vmpackc.low %vm1487_vm1, %vm1487_vm1 }
 0x17a   : > { %v6239_v47 = vpop.f32.mrb[0].mxu0 }
 0x17b   : > { %v742_v50 = vpop.f32.mrb[1].mxu0 }
 0x17c   : > { %6290 = vmatprep.mubr.msk.f32.mxu1 %vm11169_vm2, %v742_v50 }
 0x17d   : > { %6291 = vmatmul.mubr.msk.f32.vlgmr.msra.gmra.mrb[0].mxu1 %vm11169_vm2, %v6239_v47 }
 0x17e   : > { %v6242_v51 = vpop.f32.mrb[2].mxu0 }
 0x17f   : > { %v752_v53 = vpop.f32.mrb[3].mxu0 }
 0x180   : > { %6293 = vmatprep.mubr.msk.f32.mxu1 %vm11169_vm2, %v752_v53 }
 0x181   : > { %6294 = vmatmul.mubr.msk.f32.gmra.mrb[2].mxu1 %vm11169_vm2, %v6242_v51 }
 0x182   : > { %v6245_v49 = vpop.f32.mrb[4].mxu0 }
 0x183   : > { %v762_v54 = vpop.f32.mrb[5].mxu0 }
 0x184   : > { %6296 = vmatprep.mubr.msk.f32.mxu1 %vm11169_vm2, %v762_v54 }
 0x185   : > { %6297 = vmatmul.mubr.msk.f32.gmra.mrb[4].mxu1 %vm11169_vm2, %v6245_v49 }
 0x186   : > { %v6248_v55 = vpop.f32.mrb[6].mxu0 }
 0x187   : > { %v772_v56 = vpop.f32.mrb[7].mxu0 }
 0x188   : > { %6299 = vmatprep.mubr.msk.f32.mxu1 %vm11169_vm2, %v772_v56 }
 0x189   : > { %6300 = vmatmul.mubr.msk.f32.gmra.mrb[6].mxu1 %vm11169_vm2, %v6248_v55 }
 0x18a   : > { %v6251_v57 = vpop.f32.mrb[8].mxu0 }
 0x18b   : > { %v782_v58 = vpop.f32.mrb[9].mxu0 }
 0x18c   : > { %6302 = vmatprep.mubr.msk.f32.mxu1 %vm11169_vm2, %v782_v58 }
 0x18d   : > { %6303 = vmatmul.mubr.msk.f32.gmra.mrb[8].mxu1 %vm11169_vm2, %v6251_v57 }
 0x18e   : > { %v6254_v59 = vpop.f32.mrb[10].mxu0 }
 0x18f   : > { %v792_v60 = vpop.f32.mrb[11].mxu0 }
 0x190   : > { %6305 = vmatprep.mubr.msk.f32.mxu1 %vm11169_vm2, %v792_v60 }
 0x191   : > { %6306 = vmatmul.mubr.msk.f32.gmra.mrb[10].mxu1 %vm11169_vm2, %v6254_v59 }
 0x192   : > { %v6257_v61 = vpop.f32.mrb[12].mxu0 }
 0x193   : > { %v802_v62 = vpop.f32.mrb[13].mxu0 }
 0x194   : > { %6308 = vmatprep.mubr.msk.f32.mxu1 %vm11169_vm2, %v802_v62 }
 0x195   : > { %6309 = vmatmul.mubr.msk.f32.gmra.mrb[12].mxu1 %vm11169_vm2, %v6257_v61 }
 0x196   : > { %v6260_v63 = vpop.f32.mrb[14].mxu0 }
 0x197   : > { %v812_v0 = vpop.f32.mrb[15].mxu0 }
 0x198   : > { %6311 = vmatprep.mubr.msk.f32.mxu1 %vm11169_vm2, %v812_v0 }
 0x199   : > { %6312 = vmatmul.mubr.msk.f32.gmra.mrb[14].mxu1 %vm11169_vm2, %v6260_v63 }
 0x19a   : > { %v6263_v1 = vpop.f32.mrb[16].mxu0 }
 0x19b   : > { %v822_v2 = vpop.f32.mrb[17].mxu0 }
 0x19c   : > { %6314 = vmatprep.mubr.msk.f32.mxu1 %vm11169_vm2, %v822_v2 }
 0x19d   : > { %6315 = vmatmul.mubr.msk.f32.gmra.mrb[16].mxu1 %vm11169_vm2, %v6263_v1 }
 0x19e   : > { %v6266_v3 = vpop.f32.mrb[18].mxu0 }
 0x19f   : > { %v832_v4 = vpop.f32.mrb[19].mxu0 }
 0x1a0   : > { %6317 = vmatprep.mubr.msk.f32.mxu1 %vm11169_vm2, %v832_v4 }
 0x1a1   : > { %6318 = vmatmul.mubr.msk.f32.gmra.mrb[18].mxu1 %vm11169_vm2, %v6266_v3 }
 0x1a2   : > { %v6269_v5 = vpop.f32.mrb[20].mxu0 }
 0x1a3   : > { %v842_v6 = vpop.f32.mrb[21].mxu0 }
 0x1a4   : > { %6320 = vmatprep.mubr.msk.f32.mxu1 %vm11169_vm2, %v842_v6 }
 0x1a5   : > { %6321 = vmatmul.mubr.msk.f32.gmra.mrb[20].mxu1 %vm11169_vm2, %v6269_v5 }
 0x1a6   : > { %v6272_v7 = vpop.f32.mrb[22].mxu0 }
 0x1a7   : > { %v852_v8 = vpop.f32.mrb[23].mxu0 }
 0x1a8   : > { %6323 = vmatprep.mubr.msk.f32.mxu1 %vm11169_vm2, %v852_v8 }
 0x1a9   : > { %6324 = vmatmul.mubr.msk.f32.gmra.mrb[22].mxu1 %vm11169_vm2, %v6272_v7 }
 0x1aa   : > { %v6275_v9 = vpop.f32.mrb[24].mxu0 }
 0x1ab   : > { %v862_v10 = vpop.f32.mrb[25].mxu0 }
 0x1ac   : > { %6326 = vmatprep.mubr.msk.f32.mxu1 %vm11169_vm2, %v862_v10 }
 0x1ad   : > { %6327 = vmatmul.mubr.msk.f32.gmra.mrb[24].mxu1 %vm11169_vm2, %v6275_v9 }
 0x1ae   : > { %v6278_v11 = vpop.f32.mrb[26].mxu0 }
 0x1af   : > { %v872_v12 = vpop.f32.mrb[27].mxu0 }
 0x1b0   : > { %6329 = vmatprep.mubr.msk.f32.mxu1 %vm11169_vm2, %v872_v12 }
 0x1b1   : > { %6330 = vmatmul.mubr.msk.f32.gmra.mrb[26].mxu1 %vm11169_vm2, %v6278_v11 }
 0x1b2   : > { %v6281_v13 = vpop.f32.mrb[28].mxu0 }
 0x1b3   : > { %v882_v14 = vpop.f32.mrb[29].mxu0 }
 0x1b4   : > { %6332 = vmatprep.mubr.msk.f32.mxu1 %vm11169_vm2, %v882_v14 }
 0x1b5   : > { %6333 = vmatmul.mubr.msk.f32.gmra.mrb[28].mxu1 %vm11169_vm2, %v6281_v13 }
 0x1b6   : > { %1672 = vmatprep.mubr.f32.mxu1 %v11112_v52 }
 0x250   : > { %v6292_v17 = vpop.f32.mrb[0].mxu1 }
 0x251   : > { %v8022_v18 = vadd.f32 %v6292_v17, %v8019_v16  ;;  %v1059_v19 = vpop.f32.mrb[1].mxu1 }
 0x252   : > { %v8025_v20 = vadd.f32 %v8019_v16, %v1059_v19 }
 0x253   : > { %11356 = vst [vmem:[#allocation7_spill] sm:$0xff] %v8022_v18 }
 0x254   : > { %11357 = vst [vmem:[#allocation8_spill] sm:$0xff] %v8025_v20  ;;  %v6295_v21 = vpop.f32.mrb[2].mxu1  ;;  %v8029_v22 = vpack.i.bf16 %v8022_v18, %v8025_v20 }
 0x255   : > { %v8032_v23 = vadd.f32 %v6295_v21, %v8019_v16  ;;  %v1069_v24 = vpop.f32.mrb[3].mxu1 }
 0x256   : > { %11358 = vst [vmem:[#allocation9_spill] sm:$0xff] %v8029_v22  ;;  %v8035_v25 = vadd.f32 %v8019_v16, %v1069_v24  ;;  %6859 = vrot.lane.b32.xlu0 %v8029_v22, %s7707_s26 }
 0x257   : > { %11359 = vst [vmem:[#allocation10_spill] sm:$0xff] %v8032_v23 }
 0x258   : > { %11360 = vst [vmem:[#allocation11_spill] sm:$0xff] %v8035_v25  ;;  %v6298_v26 = vpop.f32.mrb[4].mxu1  ;;  %v8041_v27 = vpack.i.bf16 %v8032_v23, %v8035_v25 }
 0x259   : > { %v8044_v28 = vadd.f32 %v6298_v26, %v8019_v16  ;;  %v1079_v29 = vpop.f32.mrb[5].mxu1 }
 0x25a   : > { %11361 = vst [vmem:[#allocation12_spill] sm:$0xff] %v8041_v27  ;;  %v8047_v30 = vadd.f32 %v8019_v16, %v1079_v29  ;;  %6864 = vrot.lane.b32.xlu1 %v8041_v27, %s7707_s26 }
 0x25b   : > { %11362 = vst [vmem:[#allocation13_spill] sm:$0xff] %v8044_v28 }
 0x25c   : > { %11363 = vst [vmem:[#allocation14_spill] sm:$0xff] %v8047_v30  ;;  %v6301_v31 = vpop.f32.mrb[6].mxu1  ;;  %v8053_v32 = vpack.i.bf16 %v8044_v28, %v8047_v30 }
 0x25d   : > { %v8056_v33 = vadd.f32 %v6301_v31, %v8019_v16  ;;  %v1089_v34 = vpop.f32.mrb[7].mxu1 }
 0x25e   : > { %11364 = vst [vmem:[#allocation15_spill] sm:$0xff] %v8053_v32  ;;  %v8059_v35 = vadd.f32 %v8019_v16, %v1089_v34  ;;  %6869 = vrot.lane.b32.xlu0 %v8053_v32, %s7707_s26 }
 0x25f   : > { %11365 = vst [vmem:[#allocation16_spill] sm:$0xff] %v8056_v33 }
 0x260   : > { %11366 = vst [vmem:[#allocation17_spill] sm:$0xff] %v8059_v35  ;;  %v6304_v36 = vpop.f32.mrb[8].mxu1  ;;  %v8065_v37 = vpack.i.bf16 %v8056_v33, %v8059_v35 }
 0x261   : > { %v8068_v38 = vadd.f32 %v6304_v36, %v8019_v16  ;;  %v1099_v39 = vpop.f32.mrb[9].mxu1 }
 0x262   : > { %11367 = vst [vmem:[#allocation18_spill] sm:$0xff] %v8065_v37  ;;  %v8071_v40 = vadd.f32 %v8019_v16, %v1099_v39  ;;  %6874 = vrot.lane.b32.xlu1 %v8065_v37, %s7707_s26 }
 0x263   : > { %11368 = vst [vmem:[#allocation19_spill] sm:$0xff] %v8068_v38 }
 0x264   : > { %11369 = vst [vmem:[#allocation20_spill] sm:$0xff] %v8071_v40  ;;  %v6307_v41 = vpop.f32.mrb[10].mxu1  ;;  %v8077_v42 = vpack.i.bf16 %v8068_v38, %v8071_v40 }
 0x265   : > { %v8080_v43 = vadd.f32 %v6307_v41, %v8019_v16  ;;  %v1109_v44 = vpop.f32.mrb[11].mxu1 }
 0x266   : > { %11370 = vst [vmem:[#allocation21_spill] sm:$0xff] %v8077_v42  ;;  %v8083_v45 = vadd.f32 %v8019_v16, %v1109_v44  ;;  %6879 = vrot.lane.b32.xlu0 %v8077_v42, %s7707_s26 }
 0x267   : > { %11371 = vst [vmem:[#allocation22_spill] sm:$0xff] %v8080_v43 }
 0x268   : > { %11372 = vst [vmem:[#allocation23_spill] sm:$0xff] %v8083_v45  ;;  %v6310_v46 = vpop.f32.mrb[12].mxu1  ;;  %v8089_v47 = vpack.i.bf16 %v8080_v43, %v8083_v45 }
 0x269   : > { %v8092_v50 = vadd.f32 %v6310_v46, %v8019_v16  ;;  %v1119_v51 = vpop.f32.mrb[13].mxu1 }
 0x26a   : > { %11373 = vst [vmem:[#allocation24_spill] sm:$0xff] %v8089_v47  ;;  %v8095_v53 = vadd.f32 %v8019_v16, %v1119_v51  ;;  %6884 = vrot.lane.b32.xlu1 %v8089_v47, %s7707_s26 }
 0x26b   : > { %11374 = vst [vmem:[#allocation25_spill] sm:$0xff] %v8092_v50 }
 0x26c   : > { %11375 = vst [vmem:[#allocation26_spill] sm:$0xff] %v8095_v53  ;;  %v6313_v49 = vpop.f32.mrb[14].mxu1  ;;  %v8101_v54 = vpack.i.bf16 %v8092_v50, %v8095_v53 }
 0x26d   : > { %v8104_v55 = vadd.f32 %v6313_v49, %v8019_v16  ;;  %v1129_v56 = vpop.f32.mrb[15].mxu1  ;;  %v1208_v49 = vld [vmem:[%s11101_s1] sm:$0xff] }
 0x26e   : > { %11376 = vst [vmem:[#allocation27_spill] sm:$0xff] %v8101_v54  ;;  %v8107_v57 = vadd.f32 %v8019_v16, %v1129_v56  ;;  %6889 = vrot.lane.b32.xlu0 %v8101_v54, %s7707_s26 }
 0x26f   : > { %11377 = vst [vmem:[#allocation28_spill] sm:$0xff] %v8104_v55 }
 0x270   : > { %11378 = vst [vmem:[#allocation29_spill] sm:$0xff] %v8107_v57  ;;  %v6316_v58 = vpop.f32.mrb[16].mxu1  ;;  %v8113_v59 = vpack.i.bf16 %v8104_v55, %v8107_v57 }
 0x271   : > { %v8116_v60 = vadd.f32 %v6316_v58, %v8019_v16  ;;  %v1139_v61 = vpop.f32.mrb[17].mxu1  ;;  %v1209_v58 = vld [vmem:[%s11101_s1 + $0x8] sm:$0xff] }
 0x272   : > { %11379 = vst [vmem:[#allocation30_spill] sm:$0xff] %v8113_v59  ;;  %v8119_v62 = vadd.f32 %v8019_v16, %v1139_v61  ;;  %6894 = vrot.lane.b32.xlu1 %v8113_v59, %s7707_s26  ;;  %v1212_v61 = vld [vmem:[%s11101_s1 + $0x20] sm:$0xff] }
 0x273   : > { %11380 = vst [vmem:[#allocation31_spill] sm:$0xff] %v8116_v60 }
 0x274   : > { %11381 = vst [vmem:[#allocation32_spill] sm:$0xff] %v8119_v62  ;;  %v6319_v63 = vpop.f32.mrb[18].mxu1  ;;  %v8125_v0 = vpack.i.bf16 %v8116_v60, %v8119_v62 }
 0x275   : > { %v8128_v1 = vadd.f32 %v6319_v63, %v8019_v16  ;;  %v1149_v2 = vpop.f32.mrb[19].mxu1  ;;  %v1211_v63 = vld [vmem:[%s11101_s1 + $0x18] sm:$0xff] }
 0x276   : > { %11382 = vst [vmem:[#allocation33_spill] sm:$0xff] %v8125_v0  ;;  %v8131_v3 = vadd.f32 %v8019_v16, %v1149_v2  ;;  %6899 = vrot.lane.b32.xlu0 %v8125_v0, %s7707_s26  ;;  %v1214_v2 = vld [vmem:[%s11101_s1 + $0x30] sm:$0xff] }
 0x277   : > { %11383 = vst [vmem:[#allocation34_spill] sm:$0xff] %v8128_v1 }
 0x278   : > { %11384 = vst [vmem:[#allocation35_spill] sm:$0xff] %v8131_v3  ;;  %v6322_v4 = vpop.f32.mrb[20].mxu1  ;;  %v8137_v5 = vpack.i.bf16 %v8128_v1, %v8131_v3 }
 0x279   : > { %v8140_v6 = vadd.f32 %v6322_v4, %v8019_v16  ;;  %v1159_v7 = vpop.f32.mrb[21].mxu1  ;;  %v1213_v4 = vld [vmem:[%s11101_s1 + $0x28] sm:$0xff] }
 0x27a   : > { %11385 = vst [vmem:[#allocation36_spill] sm:$0xff] %v8137_v5  ;;  %v8143_v8 = vadd.f32 %v8019_v16, %v1159_v7  ;;  %6904 = vrot.lane.b32.xlu1 %v8137_v5, %s7707_s26  ;;  %v1216_v7 = vld [vmem:[%s11101_s1 + $0x40] sm:$0xff] }
 0x27b   : > { %11386 = vst [vmem:[#allocation37_spill] sm:$0xff] %v8140_v6 }
 0x27c   : > { %11387 = vst [vmem:[#allocation38_spill] sm:$0xff] %v8143_v8  ;;  %v6325_v9 = vpop.f32.mrb[22].mxu1  ;;  %v8149_v10 = vpack.i.bf16 %v8140_v6, %v8143_v8 }
 0x27d   : > { %v8152_v11 = vadd.f32 %v6325_v9, %v8019_v16  ;;  %v1169_v12 = vpop.f32.mrb[23].mxu1  ;;  %v1215_v9 = vld [vmem:[%s11101_s1 + $0x38] sm:$0xff] }
 0x27e   : > { %11388 = vst [vmem:[#allocation39_spill] sm:$0xff] %v8149_v10  ;;  %v8155_v13 = vadd.f32 %v8019_v16, %v1169_v12  ;;  %6909 = vrot.lane.b32.xlu0 %v8149_v10, %s7707_s26  ;;  %v1218_v12 = vld [vmem:[%s11101_s1 + $0x50] sm:$0xff] }
 0x27f   : > { %11389 = vst [vmem:[#allocation40_spill] sm:$0xff] %v8152_v11 }
 0x280   : > { %11390 = vst [vmem:[#allocation41_spill] sm:$0xff] %v8155_v13  ;;  %v6328_v14 = vpop.f32.mrb[24].mxu1  ;;  %v8161_v17 = vpack.i.bf16 %v8152_v11, %v8155_v13 }
 0x281   : > { %v8164_v19 = vadd.f32 %v6328_v14, %v8019_v16  ;;  %v1179_v21 = vpop.f32.mrb[25].mxu1  ;;  %v1217_v14 = vld [vmem:[%s11101_s1 + $0x48] sm:$0xff] }
 0x282   : > { %11391 = vst [vmem:[#allocation42_spill] sm:$0xff] %v8161_v17  ;;  %v8167_v24 = vadd.f32 %v8019_v16, %v1179_v21  ;;  %6914 = vrot.lane.b32.xlu1 %v8161_v17, %s7707_s26  ;;  %v1220_v21 = vld [vmem:[%s11101_s1 + $0x60] sm:$0xff] }
 0x283   : > { %11392 = vst [vmem:[#allocation43_spill] sm:$0xff] %v8164_v19 }
 0x284   : > { %11393 = vst [vmem:[#allocation44_spill] sm:$0xff] %v8167_v24  ;;  %v6331_v26 = vpop.f32.mrb[26].mxu1  ;;  %v8173_v29 = vpack.i.bf16 %v8164_v19, %v8167_v24 }
 0x285   : > { %v8176_v31 = vadd.f32 %v6331_v26, %v8019_v16  ;;  %v1189_v34 = vpop.f32.mrb[27].mxu1  ;;  %v1219_v26 = vld [vmem:[%s11101_s1 + $0x58] sm:$0xff] }
 0x286   : > { %11394 = vst [vmem:[#allocation45_spill] sm:$0xff] %v8173_v29  ;;  %v8179_v36 = vadd.f32 %v8019_v16, %v1189_v34  ;;  %6919 = vrot.lane.b32.xlu0 %v8173_v29, %s7707_s26  ;;  %v1222_v34 = vld [vmem:[%s11101_s1 + $0x70] sm:$0xff] }
 0x287   : > { %11395 = vst [vmem:[#allocation46_spill] sm:$0xff] %v8176_v31 }
 0x288   : > { %11396 = vst [vmem:[#allocation47_spill] sm:$0xff] %v8179_v36  ;;  %v6334_v39 = vpop.f32.mrb[28].mxu1  ;;  %v8185_v41 = vpack.i.bf16 %v8176_v31, %v8179_v36 }
 0x289   : > { %v8188_v44 = vadd.f32 %v6334_v39, %v8019_v16  ;;  %v1199_v46 = vpop.f32.mrb[29].mxu1  ;;  %v1221_v39 = vld [vmem:[%s11101_s1 + $0x68] sm:$0xff] }
 0x28a   : > { %11397 = vst [vmem:[#allocation48_spill] sm:$0xff] %v8185_v41  ;;  %v8191_v51 = vadd.f32 %v8019_v16, %v1199_v46  ;;  %6924 = vrot.lane.b32.xlu1 %v8185_v41, %s7707_s26  ;;  %v1210_v16 = vld [vmem:[%s11101_s1 + $0x10] sm:$0xff]  ;;  %v1224_v46 = vld [vmem:[%s11101_s1 + $0x80] sm:$0xff] }
 0x28b   : > { %11398 = vst [vmem:[#allocation49_spill] sm:$0xff] %v8188_v44 }
 0x28c   : > { %11399 = vst [vmem:[#allocation50_spill] sm:$0xff] %v8191_v51  ;;  %v8200_v56 = vpack.i.bf16 %v8188_v44, %v8191_v51 }
 0x28e   : > { %11400 = vst [vmem:[#allocation51_spill] sm:$0xff] %v8200_v56  ;;  %1240 = vperm.xlu1 %6857, %v1208_v49   ;;  %6929 = vrot.lane.b32.xlu0 %v8200_v56, %s7707_s26  ;;  %v1223_v49 = vld [vmem:[%s11101_s1 + $0x78] sm:$0xff]  ;;  %s7644_s26 = sshll.u32 %s7714_s9, 4  ;;  %s7645_s26 = int_to_ptr.vmem [resolvable:$false] %s7644_s26 }
 0x28f   : > { %s7646_s12 = scalar_lea.vmem %s7645_s26, 256 }
 0x292   : > { %1246 = vperm.xlu1 %6857, %v1210_v16   ;;  %1243 = vperm.xlu0 %6856, %v1209_v58   ;;  %v1227_v16 = vld [vmem:[%s11101_s1 + $0x98] sm:$0xff]  ;;  %v1225_v58 = vld [vmem:[%s11101_s1 + $0x88] sm:$0xff] }
 0x296   : > { %1252 = vperm.xlu1 %6857, %v1212_v61   ;;  %1249 = vperm.xlu0 %6856, %v1211_v63   ;;  %v1230_v61 = vld [vmem:[%s11101_s1 + $0xb0] sm:$0xff] }
 0x297   : > { %v1226_v63 = vld [vmem:[%s11101_s1 + $0x90] sm:$0xff] }
 0x29a   : > { %1258 = vperm.xlu1 %6857, %v1214_v2   ;;  %1255 = vperm.xlu0 %6856, %v1213_v4   ;;  %v1233_v2 = vld [vmem:[%s11101_s1 + $0xc8] sm:$0xff]  ;;  %v1228_v4 = vld [vmem:[%s11101_s1 + $0xa0] sm:$0xff] }
 0x29e   : > { %1264 = vperm.xlu1 %6857, %v1216_v7   ;;  %1261 = vperm.xlu0 %6856, %v1215_v9   ;;  %v1235_v7 = vld [vmem:[%s11101_s1 + $0xd8] sm:$0xff]  ;;  %v1229_v9 = vld [vmem:[%s11101_s1 + $0xa8] sm:$0xff] }
 0x2a2   : > { %1270 = vperm.xlu1 %6857, %v1218_v12   ;;  %1267 = vperm.xlu0 %6856, %v1217_v14   ;;  %v1237_v12 = vld [vmem:[%s11101_s1 + $0xe8] sm:$0xff]  ;;  %v1231_v14 = vld [vmem:[%s11101_s1 + $0xb8] sm:$0xff] }
 0x2a6   : > { %1276 = vperm.xlu1 %6857, %v1220_v21   ;;  %1273 = vperm.xlu0 %6856, %v1219_v26   ;;  %v1232_v21 = vld [vmem:[%s11101_s1 + $0xc0] sm:$0xff]  ;;  %v1234_v26 = vld [vmem:[%s11101_s1 + $0xd0] sm:$0xff] }
 0x2aa   : > { %1282 = vperm.xlu1 %6857, %v1222_v34   ;;  %1279 = vperm.xlu0 %6856, %v1221_v39  }
 0x2ae   : > { %1288 = vperm.xlu1 %6857, %v1224_v46   ;;  %1285 = vperm.xlu0 %6856, %v1223_v49   ;;  %v11401_v49 = vmov 0 }
 0x2af   : > { %v11402_v49 = vsel %vm8294_vm3, 4294967295, %v11401_v49 }
 0x2b0   : > { %11403 = vst [vmem:[#allocation52_spill] sm:$0xff] %v11402_v49 }
 0x2b2   : > { %1297 = vperm.xlu1 %6857, %v1227_v16   ;;  %1291 = vperm.xlu0 %6856, %v1225_v58   ;;  %v1236_v58 = vld [vmem:[%s11101_s1 + $0xe0] sm:$0xff] }
 0x2b6   : > { %1306 = vperm.xlu1 %6857, %v1230_v61   ;;  %1294 = vperm.xlu0 %6856, %v1226_v63  }
 0x2ba   : > { %1315 = vperm.xlu1 %6857, %v1233_v2   ;;  %1300 = vperm.xlu0 %6856, %v1228_v4  }
 0x2be   : > { %1321 = vperm.xlu1 %6857, %v1235_v7   ;;  %1303 = vperm.xlu0 %6856, %v1229_v9  }
 0x2c2   : > { %1327 = vperm.xlu1 %6857, %v1237_v12   ;;  %1309 = vperm.xlu0 %6856, %v1231_v14  }
 0x2c6   : > { %6939 = vrot.lane.b32.xlu1 %v8041_v27, %s7708_s29  ;;  %1312 = vperm.xlu0 %6856, %v1232_v21  }
 0x2c8   : > { %v6860_v34 = vpop.permute.xlu0 %6859 }
 0x2c9   : > { %v6862_v39 = vunpack.i.h.bf16 %v6860_v34  ;;  %v6861_v46 = vunpack.i.l.bf16 %v6860_v34 }
 0x2ca   : > { %6949 = vrot.lane.b32.xlu1 %v8065_v37, %s7708_s29  ;;  %1318 = vperm.xlu0 %6856, %v1234_v26  }
 0x2cb   : > { %v6462_v16 = vpack.c.bf16 %v6862_v39, %v6861_v46 }
 0x2cc   : > { %v6865_v61 = vpop.permute.xlu1 %6864 }
 0x2cd   : > { %6464 = vmatpush1.bf16.xpose.msk.msra.mxu1 %vm8294_vm3, %v6462_v16  ;;  %v6867_v63 = vunpack.i.h.bf16 %v6865_v61  ;;  %v6866_v2 = vunpack.i.l.bf16 %v6865_v61 }
 0x2ce   : > { %6959 = vrot.lane.b32.xlu1 %v8089_v47, %s7708_s29  ;;  %1324 = vperm.xlu0 %6856, %v1236_v58  }
 0x2cf   : > { %6465 = vmatprep.subr.bf16.mxu1 %v11132_v15  ;;  %v6466_v4 = vpack.c.bf16 %v6867_v63, %v6866_v2 }
 0x2d0   : > { %v6870_v7 = vpop.permute.xlu0 %6869 }
 0x2d1   : > { %v6872_v9 = vunpack.i.h.bf16 %v6870_v7  ;;  %v6871_v12 = vunpack.i.l.bf16 %v6870_v7 }
 0x2d2   : > { %6969 = vrot.lane.b32.xlu1 %v8113_v59, %s7708_s29  ;;  %6934 = vrot.lane.b32.xlu0 %v8029_v22, %s7708_s29 }
 0x2d3   : > { %v6470_v14 = vpack.c.bf16 %v6872_v9, %v6871_v12 }
 0x2d4   : > { %v6875_v21 = vpop.permute.xlu1 %6874 }
 0x2d5   : > { %6468 = vmatpush1.bf16.xpose.msk.msra.mxu1 %vm8294_vm3, %v6466_v4  ;;  %v6877_v26 = vunpack.i.h.bf16 %v6875_v21  ;;  %v6876_v34 = vunpack.i.l.bf16 %v6875_v21 }
 0x2d6   : > { %6979 = vrot.lane.b32.xlu1 %v8137_v5, %s7708_s29  ;;  %6944 = vrot.lane.b32.xlu0 %v8053_v32, %s7708_s29 }
 0x2d7   : > { %6469 = vmatprep.subr.bf16.mxu1 %v11132_v15  ;;  %v6474_v39 = vpack.c.bf16 %v6877_v26, %v6876_v34 }
 0x2d8   : > { %v6880_v46 = vpop.permute.xlu0 %6879 }
 0x2d9   : > { %v6882_v16 = vunpack.i.h.bf16 %v6880_v46  ;;  %v6881_v58 = vunpack.i.l.bf16 %v6880_v46 }
 0x2da   : > { %6989 = vrot.lane.b32.xlu1 %v8161_v17, %s7708_s29  ;;  %6954 = vrot.lane.b32.xlu0 %v8077_v42, %s7708_s29 }
 0x2db   : > { %v6478_v61 = vpack.c.bf16 %v6882_v16, %v6881_v58 }
 0x2dc   : > { %v6885_v63 = vpop.permute.xlu1 %6884 }
 0x2dd   : > { %6472 = vmatpush1.bf16.xpose.msk.msra.mxu1 %vm8294_vm3, %v6470_v14  ;;  %v6887_v2 = vunpack.i.h.bf16 %v6885_v63  ;;  %v6886_v4 = vunpack.i.l.bf16 %v6885_v63 }
 0x2de   : > { %6999 = vrot.lane.b32.xlu1 %v8185_v41, %s7708_s29  ;;  %6964 = vrot.lane.b32.xlu0 %v8101_v54, %s7708_s29 }
 0x2df   : > { %6473 = vmatprep.subr.bf16.mxu1 %v11132_v15  ;;  %v6482_v7 = vpack.c.bf16 %v6887_v2, %v6886_v4 }
 0x2e0   : > { %v6890_v9 = vpop.permute.xlu0 %6889 }
 0x2e1   : > { %v6892_v12 = vunpack.i.h.bf16 %v6890_v9  ;;  %v6891_v14 = vunpack.i.l.bf16 %v6890_v9 }
 0x2e2   : > { %7004 = vrot.lane.b32.xlu1 %v8029_v22, %s7709_s13  ;;  %6974 = vrot.lane.b32.xlu0 %v8125_v0, %s7708_s29 }
 0x2e3   : > { %v6486_v21 = vpack.c.bf16 %v6892_v12, %v6891_v14 }
 0x2e4   : > { %v6895_v26 = vpop.permute.xlu1 %6894 }
 0x2e5   : > { %6476 = vmatpush1.bf16.xpose.msk.msra.mxu1 %vm8294_vm3, %v6474_v39  ;;  %v6897_v34 = vunpack.i.h.bf16 %v6895_v26  ;;  %v6896_v39 = vunpack.i.l.bf16 %v6895_v26 }
 0x2e6   : > { %7014 = vrot.lane.b32.xlu1 %v8053_v32, %s7709_s13  ;;  %6984 = vrot.lane.b32.xlu0 %v8149_v10, %s7708_s29 }
 0x2e7   : > { %6477 = vmatprep.subr.bf16.mxu1 %v11132_v15  ;;  %v6490_v58 = vpack.c.bf16 %v6897_v34, %v6896_v39 }
 0x2e8   : > { %v6900_v46 = vpop.permute.xlu0 %6899 }
 0x2e9   : > { %v6902_v2 = vunpack.i.h.bf16 %v6900_v46  ;;  %v6901_v4 = vunpack.i.l.bf16 %v6900_v46 }
 0x2ea   : > { %7024 = vrot.lane.b32.xlu1 %v8077_v42, %s7709_s13  ;;  %6994 = vrot.lane.b32.xlu0 %v8173_v29, %s7708_s29 }
 0x2eb   : > { %v6494_v12 = vpack.c.bf16 %v6902_v2, %v6901_v4 }
 0x2ec   : > { %v6905_v16 = vpop.permute.xlu1 %6904 }
 0x2ed   : > { %6480 = vmatpush1.bf16.xpose.msk.msra.mxu1 %vm8294_vm3, %v6478_v61  ;;  %v6907_v26 = vunpack.i.h.bf16 %v6905_v16  ;;  %v6906_v34 = vunpack.i.l.bf16 %v6905_v16 }
 0x2ee   : > { %7034 = vrot.lane.b32.xlu1 %v8101_v54, %s7709_s13  ;;  %7009 = vrot.lane.b32.xlu0 %v8041_v27, %s7709_s13 }
 0x2ef   : > { %6481 = vmatprep.subr.bf16.mxu1 %v11132_v15  ;;  %v6498_v48 = vpack.c.bf16 %v6907_v26, %v6906_v34 }
 0x2f0   : > { %v6910_v61 = vpop.permute.xlu0 %6909 }
 0x2f1   : > { %v6912_v2 = vunpack.i.h.bf16 %v6910_v61  ;;  %v6911_v4 = vunpack.i.l.bf16 %v6910_v61 }
 0x2f2   : > { %7044 = vrot.lane.b32.xlu1 %v8125_v0, %s7709_s13  ;;  %7019 = vrot.lane.b32.xlu0 %v8065_v37, %s7709_s13 }
 0x2f3   : > { %v6502_v16 = vpack.c.bf16 %v6912_v2, %v6911_v4 }
 0x2f4   : > { %v6915_v63 = vpop.permute.xlu1 %6914 }
 0x2f5   : > { %6484 = vmatpush1.bf16.xpose.msk.msra.mxu1 %vm8294_vm3, %v6482_v7  ;;  %v6917_v26 = vunpack.i.h.bf16 %v6915_v63 }
 0x2f6   : > { %7029 = vrot.lane.b32.xlu0 %v8089_v47, %s7709_s13  ;;  %6485 = vmatprep.subr.bf16.mxu1 %v11132_v15 }
 0x2f8   : > { %v6920_v7 = vpop.permute.xlu0 %6919 }
 0x2f9   : > { %v6922_v2 = vunpack.i.h.bf16 %v6920_v7  ;;  %v6921_v4 = vunpack.i.l.bf16 %v6920_v7 }
 0x2fa   : > { %7039 = vrot.lane.b32.xlu0 %v8113_v59, %s7709_s13 }
 0x2fc   : > { %v6925_v9 = vpop.permute.xlu1 %6924 }
 0x2fd   : > { %6488 = vmatpush1.bf16.xpose.msk.msra.mxu1 %vm8294_vm3, %v6486_v21 }
 0x2fe   : > { %7049 = vrot.lane.b32.xlu0 %v8200_v56, %s7708_s29  ;;  %6489 = vmatprep.subr.bf16.mxu1 %v11132_v15  ;;  %s11057_s29 = scalar_lea.hbm %s11110_s10, %s6081_s19 }
 0x300   : > { %v6930_v14 = vpop.permute.xlu0 %6929 }
 0x305   : > { %6492 = vmatpush1.bf16.xpose.msk.msra.mxu1 %vm8294_vm3, %v6490_v58 }
 0x306   : > { %6493 = vmatprep.subr.bf16.mxu1 %v11132_v15 }
 0x30d   : > { %v8369_v21 = vpop.permute.xlu1 %1240  ;;  %6496 = vmatpush1.bf16.xpose.msk.msra.mxu1 %vm8294_vm3, %v6494_v12 }
 0x30e   : > { %11404 = vst [vmem:[#allocation53_spill] sm:$0xff] %v8369_v21  ;;  %6497 = vmatprep.subr.bf16.mxu1 %v11132_v15 }
 0x311   : > { %v8374_v39 = vpop.permute.xlu1 %1246  ;;  %v8376_v58 = vpop.permute.xlu0 %1243 }
 0x312   : > { %11405 = vst [vmem:[#allocation54_spill] sm:$0xff] %v8374_v39  ;;  %11406 = vst [vmem:[#allocation55_spill] sm:$0xff] %v8376_v58 }
 0x315   : > { %v8378_v52 = vpop.permute.xlu1 %1252  ;;  %v8380_v46 = vpop.permute.xlu0 %1249  ;;  %6500 = vmatpush1.bf16.xpose.msk.msra.mxu1 %vm8294_vm3, %v6498_v48  ;;  %v6916_v48 = vunpack.i.l.bf16 %v6915_v63  ;;  %v6510_v63 = vpack.c.bf16 %v6922_v2, %v6921_v4  ;;  %v6932_v2 = vunpack.i.h.bf16 %v6930_v14  ;;  %v6931_v4 = vunpack.i.l.bf16 %v6930_v14 }
 0x316   : > { %11407 = vst [vmem:[#allocation56_spill] sm:$0xff] %v8378_v52  ;;  %11408 = vst [vmem:[#allocation57_spill] sm:$0xff] %v8380_v46  ;;  %6501 = vmatprep.subr.bf16.mxu1 %v11132_v15 }
 0x317   : > { %v6506_v61 = vpack.c.bf16 %v6917_v26, %v6916_v48  ;;  %v6927_v26 = vunpack.i.h.bf16 %v6925_v9  ;;  %v6926_v48 = vunpack.i.l.bf16 %v6925_v9  ;;  %v6518_v29 = vpack.c.bf16 %v6932_v2, %v6931_v4 }
 0x319   : > { %v8385_v12 = vpop.permute.xlu1 %1258  ;;  %v8387_v0 = vpop.permute.xlu0 %1255  ;;  %v6514_v56 = vpack.c.bf16 %v6927_v26, %v6926_v48 }
 0x31a   : > { %11409 = vst [vmem:[#allocation58_spill] sm:$0xff] %v8385_v12  ;;  %11410 = vst [vmem:[#allocation59_spill] sm:$0xff] %v8387_v0 }
 0x31d   : > { %v8389_v54 = vpop.permute.xlu1 %1264  ;;  %v8391_v37 = vpop.permute.xlu0 %1261  ;;  %6504 = vmatpush1.bf16.xpose.msk.msra.mxu1 %vm8294_vm3, %v6502_v16 }
 0x31e   : > { %11411 = vst [vmem:[#allocation60_spill] sm:$0xff] %v8389_v54  ;;  %11412 = vst [vmem:[#allocation61_spill] sm:$0xff] %v8391_v37  ;;  %6505 = vmatprep.subr.bf16.mxu1 %v11132_v15 }
 0x321   : > { %v8396_v34 = vpop.permute.xlu1 %1270  ;;  %v8398_v22 = vpop.permute.xlu0 %1267 }
 0x322   : > { %11413 = vst [vmem:[#allocation62_spill] sm:$0xff] %v8396_v34  ;;  %11414 = vst [vmem:[#allocation63_spill] sm:$0xff] %v8398_v22 }
 0x325   : > { %v8400_v59 = vpop.permute.xlu1 %1276  ;;  %v8402_v47 = vpop.permute.xlu0 %1273  ;;  %6508 = vmatpush1.bf16.xpose.msk.msra.mxu1 %vm8294_vm3, %v6506_v61 }
 0x326   : > { %11415 = vst [vmem:[#allocation64_spill] sm:$0xff] %v8400_v59  ;;  %11416 = vst [vmem:[#allocation65_spill] sm:$0xff] %v8402_v47  ;;  %6509 = vmatprep.subr.bf16.mxu1 %v11132_v15 }
 0x329   : > { %v8407_v16 = vpop.permute.xlu1 %1282  ;;  %v8409_v42 = vpop.permute.xlu0 %1279 }
 0x32a   : > { %11417 = vst [vmem:[#allocation66_spill] sm:$0xff] %v8407_v16  ;;  %11418 = vst [vmem:[#allocation67_spill] sm:$0xff] %v8409_v42 }
 0x32d   : > { %v8411_v32 = vpop.permute.xlu1 %1288  ;;  %v8413_v27 = vpop.permute.xlu0 %1285  ;;  %6512 = vmatpush1.bf16.xpose.msk.msra.mxu1 %vm8294_vm3, %v6510_v63 }
 0x32e   : > { %11419 = vst [vmem:[#allocation68_spill] sm:$0xff] %v8411_v32  ;;  %11420 = vst [vmem:[#allocation69_spill] sm:$0xff] %v8413_v27  ;;  %6513 = vmatprep.subr.bf16.mxu1 %v11132_v15 }
 0x331   : > { %v8418_v61 = vpop.permute.xlu0 %1291  ;;  %v8420_v7 = vpop.permute.xlu1 %1297 }
 0x332   : > { %11421 = vst [vmem:[#allocation70_spill] sm:$0xff] %v8418_v61  ;;  %11422 = vst [vmem:[#allocation71_spill] sm:$0xff] %v8420_v7 }
 0x335   : > { %v8422_v41 = vpop.permute.xlu0 %1294  ;;  %6516 = vmatpush1.bf16.xpose.msk.msra.mxu1 %vm8294_vm3, %v6514_v56  ;;  %v8427_v17 = vpop.permute.xlu1 %1306 }
 0x336   : > { %11423 = vst [vmem:[#allocation72_spill] sm:$0xff] %v8422_v41  ;;  %6517 = vmatprep.subr.bf16.mxu1 %v11132_v15  ;;  %11424 = vst [vmem:[#allocation73_spill] sm:$0xff] %v8427_v17  ;;  %v11431_v17 = vmov 0.0  }
 0x339   : > { %v8429_v63 = vpop.permute.xlu0 %1300  ;;  %v8436_v26 = vpop.permute.xlu1 %1315 }
 0x33a   : > { %11425 = vst [vmem:[#allocation74_spill] sm:$0xff] %v8429_v63  ;;  %11427 = vst [vmem:[#allocation76_spill] sm:$0xff] %v8436_v26 }
 0x33d   : > { %v8431_v9 = vpop.permute.xlu0 %1303  ;;  %6520 = vmatpush1.bf16.xpose.msk.msra.mxu1 %vm8294_vm3, %v6518_v29  ;;  %v8442_v56 = vpop.permute.xlu1 %1321 }
 0x33e   : > { %11426 = vst [vmem:[#allocation75_spill] sm:$0xff] %v8431_v9  ;;  %6777 = vmatprep.subr.bf16.mxu1 %v11132_v15  ;;  %11429 = vst [vmem:[#allocation78_spill] sm:$0xff] %v8442_v56 }
 0x341   : > { %v8438_v48 = vpop.permute.xlu0 %1309  ;;  %v8452_v29 = vpop.permute.xlu1 %1327 }
 0x342   : > { %11428 = vst [vmem:[#allocation77_spill] sm:$0xff] %v8438_v48  ;;  %11433 = vst [vmem:[#allocation81_spill] sm:$0xff] %v8452_v29  ;;  %v11435_v29 = vmov 0.0|0.0  }
 0x344   : > { %5862 = vmatmul.mubr.msk.f32.vlgmr.msra.gmra.mrb[30].mxu1 %vm1487_vm1, %v8025_v20 }
 0x345   : > { %v8444_v14 = vpop.permute.xlu0 %1312  ;;  %1678 = vmatprep.mubr.f32.mxu1 %v11431_v17  ;;  %v6940_v15 = vpop.permute.xlu1 %6939 }
 0x346   : > { %11430 = vst [vmem:[#allocation79_spill] sm:$0xff] %v8444_v14  ;;  %v6942_v56 = vunpack.i.h.bf16 %v6940_v15  ;;  %v6941_v26 = vunpack.i.l.bf16 %v6940_v15 }
 0x348   : > { %5863 = vmatmul.mubr.msk.f32.gmra.mrb[32].mxu1 %vm1487_vm1, %v8022_v18 }
 0x349   : > { %v8449_v2 = vpop.permute.xlu0 %1318  ;;  %1684 = vmatprep.mubr.f32.mxu1 %v11431_v17  ;;  %v6950_v14 = vpop.permute.xlu1 %6949 }
 0x34a   : > { %11432 = vst [vmem:[#allocation80_spill] sm:$0xff] %v8449_v2  ;;  %v6952_v15 = vunpack.i.h.bf16 %v6950_v14 }
 0x34c   : > { %5864 = vmatmul.mubr.msk.f32.gmra.mrb[34].mxu1 %vm1487_vm1, %v8035_v25 }
 0x34d   : > { %v8456_v4 = vpop.permute.xlu0 %1324  ;;  %1690 = vmatprep.mubr.f32.mxu1 %v11431_v17 }
 0x34e   : > { %11434 = vst [vmem:[#allocation82_spill] sm:$0xff] %v8456_v4  ;;  %v6525_v4 = vpack.c.bf16 %v6942_v56, %v6941_v26 }
 0x350   : > { %5865 = vmatmul.mubr.msk.f32.gmra.mrb[36].mxu1 %vm1487_vm1, %v8032_v23 }
 0x351   : > { %v6935_v20 = vpop.permute.xlu0 %6934  ;;  %1696 = vmatprep.mubr.f32.mxu1 %v11431_v17 }
 0x352   : > { %v6937_v18 = vunpack.i.h.bf16 %v6935_v20  ;;  %v6936_v49 = vunpack.i.l.bf16 %v6935_v20 }
 0x354   : > { %v6522_v2 = vpack.c.bf16 %v6937_v18, %v6936_v49  ;;  %5866 = vmatmul.mubr.msk.f32.gmra.mrb[38].mxu1 %vm1487_vm1, %v8047_v30  ;;  %v6951_v18 = vunpack.i.l.bf16 %v6950_v14 }
 0x355   : > { %v6945_v25 = vpop.permute.xlu0 %6944  ;;  %1702 = vmatprep.mubr.f32.mxu1 %v11431_v17 }
 0x356   : > { %6523 = vmatpush1.bf16.msra.mxu0 %v6522_v2  ;;  %v6947_v23 = vunpack.i.h.bf16 %v6945_v25  ;;  %v6946_v48 = vunpack.i.l.bf16 %v6945_v25  ;;  %v6531_v25 = vpack.c.bf16 %v6952_v15, %v6951_v18 }
 0x357   : > { %6524 = vmatprep.subr.bf16.mxu0 %v11435_v29 }
 0x358   : > { %5867 = vmatmul.mubr.msk.f32.gmra.mrb[40].mxu1 %vm1487_vm1, %v8044_v28  ;;  %v6528_v49 = vpack.c.bf16 %v6947_v23, %v6946_v48 }
 0x359   : > { %v6955_v20 = vpop.permute.xlu0 %6954  ;;  %1708 = vmatprep.mubr.f32.mxu1 %v11431_v17 }
 0x35a   : > { %6526 = vmatpush1.bf16.msra.mxu0 %v6525_v4  ;;  %v6957_v26 = vunpack.i.h.bf16 %v6955_v20  ;;  %v6956_v56 = vunpack.i.l.bf16 %v6955_v20  ;;  %v6960_v4 = vpop.permute.xlu1 %6959 }
 0x35b   : > { %6527 = vmatprep.subr.bf16.mxu0 %v11435_v29  ;;  %v6962_v23 = vunpack.i.h.bf16 %v6960_v4  ;;  %v6961_v48 = vunpack.i.l.bf16 %v6960_v4 }
 0x35c   : > { %5868 = vmatmul.mubr.msk.f32.gmra.mrb[42].mxu1 %vm1487_vm1, %v8059_v35  ;;  %v6534_v14 = vpack.c.bf16 %v6957_v26, %v6956_v56 }
 0x35d   : > { %v6965_v2 = vpop.permute.xlu0 %6964  ;;  %1714 = vmatprep.mubr.f32.mxu1 %v11431_v17  ;;  %v6537_v20 = vpack.c.bf16 %v6962_v23, %v6961_v48 }
 0x35e   : > { %6529 = vmatpush1.bf16.msra.mxu0 %v6528_v49  ;;  %v6967_v15 = vunpack.i.h.bf16 %v6965_v2  ;;  %v6966_v18 = vunpack.i.l.bf16 %v6965_v2 }
 0x35f   : > { %6530 = vmatprep.subr.bf16.mxu0 %v11435_v29 }
 0x360   : > { %5869 = vmatmul.mubr.msk.f32.gmra.mrb[44].mxu1 %vm1487_vm1, %v8056_v33  ;;  %v6540_v4 = vpack.c.bf16 %v6967_v15, %v6966_v18 }
 0x361   : > { %v6975_v30 = vpop.permute.xlu0 %6974  ;;  %1720 = vmatprep.mubr.f32.mxu1 %v11431_v17 }
 0x362   : > { %6532 = vmatpush1.bf16.msra.mxu0 %v6531_v25  ;;  %v6970_v25 = vpop.permute.xlu1 %6969  ;;  %v6977_v23 = vunpack.i.h.bf16 %v6975_v30  ;;  %v6976_v48 = vunpack.i.l.bf16 %v6975_v30 }
 0x363   : > { %6533 = vmatprep.subr.bf16.mxu0 %v11435_v29  ;;  %v6972_v26 = vunpack.i.h.bf16 %v6970_v25  ;;  %v6971_v56 = vunpack.i.l.bf16 %v6970_v25 }
 0x364   : > { %5870 = vmatmul.mubr.msk.f32.gmra.mrb[46].mxu1 %vm1487_vm1, %v8071_v40 }
 0x365   : > { %v6985_v49 = vpop.permute.xlu0 %6984  ;;  %1726 = vmatprep.mubr.f32.mxu1 %v11431_v17  ;;  %v6543_v2 = vpack.c.bf16 %v6972_v26, %v6971_v56 }
 0x366   : > { %6535 = vmatpush1.bf16.msra.mxu0 %v6534_v14  ;;  %v6987_v26 = vunpack.i.h.bf16 %v6985_v49  ;;  %v6986_v56 = vunpack.i.l.bf16 %v6985_v49 }
 0x367   : > { %6536 = vmatprep.subr.bf16.mxu0 %v11435_v29 }
 0x368   : > { %5871 = vmatmul.mubr.msk.f32.gmra.mrb[48].mxu1 %vm1487_vm1, %v8068_v38 }
 0x369   : > { %v6995_v35 = vpop.permute.xlu0 %6994  ;;  %1732 = vmatprep.mubr.f32.mxu1 %v11431_v17 }
 0x36a   : > { %6538 = vmatpush1.bf16.msra.mxu0 %v6537_v20  ;;  %v6980_v20 = vpop.permute.xlu1 %6979 }
 0x36b   : > { %6539 = vmatprep.subr.bf16.mxu0 %v11435_v29  ;;  %v6982_v18 = vunpack.i.h.bf16 %v6980_v20  ;;  %v6981_v25 = vunpack.i.l.bf16 %v6980_v20  ;;  %v6552_v20 = vpack.c.bf16 %v6987_v26, %v6986_v56 }
 0x36c   : > { %5872 = vmatmul.mubr.msk.f32.gmra.mrb[50].mxu1 %vm1487_vm1, %v8083_v45  ;;  %v6546_v45 = vpack.c.bf16 %v6977_v23, %v6976_v48 }
 0x36d   : > { %v8488_v14 = vpop.permute.xlu0 %7009  ;;  %1738 = vmatprep.mubr.f32.mxu1 %v11431_v17  ;;  %v6549_v30 = vpack.c.bf16 %v6982_v18, %v6981_v25  ;;  %v6997_v18 = vunpack.i.h.bf16 %v6995_v35  ;;  %v6996_v25 = vunpack.i.l.bf16 %v6995_v35 }
 0x36e   : > { %11436 = vst [vmem:[#allocation83_spill] sm:$0xff] %v8488_v14  ;;  %6541 = vmatpush1.bf16.msra.mxu0 %v6540_v4  ;;  %v6990_v4 = vpop.permute.xlu1 %6989 }
 0x36f   : > { %6542 = vmatprep.subr.bf16.mxu0 %v11435_v29  ;;  %v6992_v23 = vunpack.i.h.bf16 %v6990_v4  ;;  %v6991_v48 = vunpack.i.l.bf16 %v6990_v4  ;;  %v6558_v4 = vpack.c.bf16 %v6997_v18, %v6996_v25  ;;  %v11440_v18 = vlaneseq }
 0x370   : > { %5873 = vmatmul.mubr.msk.f32.gmra.mrb[52].mxu1 %vm1487_vm1, %v8080_v43 }
 0x371   : > { %1744 = vmatprep.mubr.f32.mxu1 %v11431_v17  ;;  %v8495_v15 = vpop.permute.xlu0 %7019  ;;  %v6555_v49 = vpack.c.bf16 %v6992_v23, %v6991_v48  ;;  %v8563_v25 = vshrl.u32 %v11440_v18, 7 }
 0x372   : > { %6544 = vmatpush1.bf16.msra.mxu0 %v6543_v2  ;;  %11437 = vst [vmem:[#allocation84_spill] sm:$0xff] %v8495_v15 }
 0x373   : > { %6545 = vmatprep.subr.bf16.mxu0 %v11435_v29  ;;  %11441 = vst [vmem:[#allocation87_spill] sm:$0xff] %v8563_v25 }
 0x374   : > { %5874 = vmatmul.mubr.msk.f32.gmra.mrb[54].mxu1 %vm1487_vm1, %v8095_v53 }
 0x375   : > { %1750 = vmatprep.mubr.f32.mxu1 %v11431_v17  ;;  %v8504_v2 = vpop.permute.xlu0 %7029 }
 0x376   : > { %6547 = vmatpush1.bf16.msra.mxu0 %v6546_v45  ;;  %11438 = vst [vmem:[#allocation85_spill] sm:$0xff] %v8504_v2 }
 0x377   : > { %6548 = vmatprep.subr.bf16.mxu0 %v11435_v29 }
 0x378   : > { %5875 = vmatmul.mubr.msk.f32.gmra.mrb[56].mxu1 %vm1487_vm1, %v8092_v50 }
 0x379   : > { %1756 = vmatprep.mubr.f32.mxu1 %v11431_v17  ;;  %v8511_v45 = vpop.permute.xlu0 %7039 }
 0x37a   : > { %6550 = vmatpush1.bf16.msra.mxu0 %v6549_v30  ;;  %11439 = vst [vmem:[#allocation86_spill] sm:$0xff] %v8511_v45  ;;  %v7000_v30 = vpop.permute.xlu1 %6999 }
 0x37b   : > { %6551 = vmatprep.subr.bf16.mxu0 %v11435_v29  ;;  %v7002_v26 = vunpack.i.h.bf16 %v7000_v30  ;;  %v7001_v56 = vunpack.i.l.bf16 %v7000_v30  ;;  %v1335_v30 = vsub.s32 1, %v8563_v25 }
 0x37c   : > { %5876 = vmatmul.mubr.msk.f32.gmra.mrb[58].mxu1 %vm1487_vm1, %v8107_v57 }
 0x37d   : > { %1762 = vmatprep.mubr.f32.mxu1 %v11431_v17  ;;  %v6561_v35 = vpack.c.bf16 %v7002_v26, %v7001_v56  ;;  %v1238_v26 = vld [vmem:[%s11102_s2] sm:$0x3]  ;;  %v1331_v56 = vsub.s32 0, %v8563_v25 }
 0x37e   : > { %6553 = vmatpush1.bf16.msra.mxu0 %v6552_v20  ;;  %v7050_v20 = vpop.permute.xlu0 %7049 }
 0x37f   : > { %6554 = vmatprep.subr.bf16.mxu0 %v11435_v29  ;;  %v7052_v23 = vunpack.i.h.bf16 %v7050_v20  ;;  %v7051_v48 = vunpack.i.l.bf16 %v7050_v20  ;;  %v8572_v20 = vrot.slane %v1238_v26, %v1331_v56 }
 0x380   : > { %5877 = vmatmul.mubr.msk.f32.gmra.mrb[60].mxu1 %vm1487_vm1, %v8104_v55 }
 0x381   : > { %1768 = vmatprep.mubr.f32.mxu1 %v11431_v17  ;;  %11443 = vst [vmem:[#allocation89_spill] sm:$0xff] %v8572_v20  ;;  %vm1337_vm6 = vcmp.eq.s32.totalorder %v8369_v21, %v8572_v20  ;;  %vm1339_vm8 = vcmp.eq.s32.totalorder %v8376_v58, %v8572_v20  ;;  %vm1341_vm10 = vcmp.eq.s32.totalorder %v8374_v39, %v8572_v20 }
 0x382   : > { %6556 = vmatpush1.bf16.msra.mxu0 %v6555_v49  ;;  %v6564_v49 = vpack.c.bf16 %v7052_v23, %v7051_v48  ;;  %vm1343_vm12 = vcmp.eq.s32.totalorder %v8380_v46, %v8572_v20  ;;  %vm11254_vm14 = vcmp.eq.s32.totalorder %v8378_v52, %v8572_v20  ;;  %vm11174_vm0 = vcmp.eq.s32.totalorder %v8387_v0, %v8572_v20 }
 0x383   : > { %6557 = vmatprep.subr.bf16.mxu0 %v11435_v29 }
 0x384   : > { %5878 = vmatmul.mubr.msk.f32.gmra.mrb[62].mxu1 %vm1487_vm1, %v8119_v62 }
 0x385   : > { %1774 = vmatprep.mubr.f32.mxu1 %v11431_v17 }
 0x386   : > { %6559 = vmatpush1.bf16.msra.mxu0 %v6558_v4  ;;  %v8570_v4 = vrot.slane %v1238_v26, %v1335_v30 }
 0x387   : > { %6560 = vmatprep.subr.bf16.mxu0 %v11435_v29 }
 0x388   : > { %5879 = vmatmul.mubr.msk.f32.gmra.mrb[64].mxu1 %vm1487_vm1, %v8116_v60  ;;  %11442 = vst [vmem:[#allocation88_spill] sm:$0xff] %v8570_v4  ;;  %vm1338_vm5 = vcmp.eq.s32.totalorder %v8369_v21, %v8570_v4  ;;  %vm1340_vm7 = vcmp.eq.s32.totalorder %v8376_v58, %v8570_v4  ;;  %vm1342_vm9 = vcmp.eq.s32.totalorder %v8374_v39, %v8570_v4 }
 0x389   : > { %1780 = vmatprep.mubr.f32.mxu1 %v11431_v17  ;;  %vm1344_vm11 = vcmp.eq.s32.totalorder %v8380_v46, %v8570_v4  ;;  %vm1346_vm13 = vcmp.eq.s32.totalorder %v8378_v52, %v8570_v4  ;;  %vm11170_vm15 = vcmp.eq.s32.totalorder %v8387_v0, %v8570_v4  ;;  %vm11175_vm2 = vcmp.eq.s32.totalorder %v8385_v12, %v8570_v4 }
 0x38a   : > { %6562 = vmatpush1.bf16.msra.mxu0 %v6561_v35 }
 0x38b   : > { %6563 = vmatprep.subr.bf16.mxu0 %v11435_v29 }
 0x38c   : > { %5880 = vmatmul.mubr.msk.f32.gmra.mrb[66].mxu1 %vm1487_vm1, %v8131_v3 }
 0x38d   : > { %1786 = vmatprep.mubr.f32.mxu1 %v11431_v17 }
 0x38e   : > { %6565 = vmatpush1.bf16.msra.mxu0 %v6564_v49 }
 0x38f   : > { %6566 = vmatprep.subr.bf16.mxu0 %v11435_v29 }
 0x390   : > { %5881 = vmatmul.mubr.msk.f32.gmra.mrb[68].mxu1 %vm1487_vm1, %v8128_v1 }
 0x391   : > { %1792 = vmatprep.mubr.f32.mxu1 %v11431_v17 }
 0x394   : > { %5882 = vmatmul.mubr.msk.f32.gmra.mrb[70].mxu1 %vm1487_vm1, %v8143_v8 }
 0x395   : > { %1798 = vmatprep.mubr.f32.mxu1 %v11431_v17 }
 0x398   : > { %5883 = vmatmul.mubr.msk.f32.gmra.mrb[72].mxu1 %vm1487_vm1, %v8140_v6 }
 0x399   : > { %1804 = vmatprep.mubr.f32.mxu1 %v11431_v17 }
 0x39c   : > { %5884 = vmatmul.mubr.msk.f32.gmra.mrb[74].mxu1 %vm1487_vm1, %v8155_v13 }
 0x39d   : > { %1810 = vmatprep.mubr.f32.mxu1 %v11431_v17 }
 0x3a0   : > { %5885 = vmatmul.mubr.msk.f32.gmra.mrb[76].mxu1 %vm1487_vm1, %v8152_v11 }
 0x3a1   : > { %1816 = vmatprep.mubr.f32.mxu1 %v11431_v17 }
 0x3a4   : > { %5886 = vmatmul.mubr.msk.f32.gmra.mrb[78].mxu1 %vm1487_vm1, %v8167_v24 }
 0x3a5   : > { %1822 = vmatprep.mubr.f32.mxu1 %v11431_v17 }
 0x3a8   : > { %5887 = vmatmul.mubr.msk.f32.gmra.mrb[80].mxu1 %vm1487_vm1, %v8164_v19 }
 0x3a9   : > { %1828 = vmatprep.mubr.f32.mxu1 %v11431_v17 }
 0x3ac   : > { %5888 = vmatmul.mubr.msk.f32.gmra.mrb[82].mxu1 %vm1487_vm1, %v8179_v36 }
 0x3ad   : > { %1834 = vmatprep.mubr.f32.mxu1 %v11431_v17 }
 0x3b0   : > { %5889 = vmatmul.mubr.msk.f32.gmra.mrb[84].mxu1 %vm1487_vm1, %v8176_v31 }
 0x3b1   : > { %1840 = vmatprep.mubr.f32.mxu1 %v11431_v17 }
 0x3b4   : > { %5890 = vmatmul.mubr.msk.f32.gmra.mrb[86].mxu1 %vm1487_vm1, %v8191_v51 }
 0x3b5   : > { %1846 = vmatprep.mubr.f32.mxu1 %v11431_v17 }
 0x3b8   : > { %5891 = vmatmul.mubr.msk.f32.gmra.mrb[88].mxu1 %vm1487_vm1, %v8188_v44 }
 0x417   : > { %v1674_v35 = vpop.f32.mrb[30].mxu1 }
 0x418   : > { %v1853_v23 = vmul.f32 0.25, %v1674_v35  ;;  %v1676_v48 = vpop.f32.mrb[31].mxu1 }
 0x419   : > { %v1854_v49 = vmul.f32 0.25, %v1676_v48 }
 0x41a   : > { %v8586_v56 = vsel %vm1337_vm6, %v1853_v23, -1e+30 }
 0x41b   : > { %v8579_v18 = vsel %vm1338_vm5, %v1854_v49, -1e+30  ;;  %v1680_v17 = vpop.f32.mrb[32].mxu1 }
 0x41c   : > { %v1855_v30 = vmul.f32 0.25, %v1680_v17  ;;  %v1682_v26 = vpop.f32.mrb[33].mxu1  ;;  %v1974_v35 = vsel %vm1973_vm4, %v8579_v18, -inf }
 0x41d   : > { %v1856_v48 = vmul.f32 0.25, %v1682_v26  ;;  %v1975_v25 = vmax.f32 %v8586_v56, %v1974_v35 }
 0x41e   : > { %v8603_v49 = vsel %vm1339_vm8, %v1855_v30, -1e+30 }
 0x41f   : > { %v8598_v17 = vsel %vm1340_vm7, %v1856_v48, -1e+30  ;;  %1976 = vmax.xlane.f32.xlu1 %v1975_v25  ;;  %v1686_v23 = vpop.f32.mrb[34].mxu1 }
 0x420   : > { %v1978_v26 = vsel %vm1973_vm4, %v8598_v17, -inf  ;;  %v1857_v35 = vmul.f32 0.25, %v1686_v23  ;;  %v1688_v21 = vpop.f32.mrb[35].mxu1 }
 0x421   : > { %v1858_v51 = vmul.f32 0.25, %v1688_v21  ;;  %v1979_v36 = vmax.f32 %v8603_v49, %v1978_v26 }
 0x422   : > { %v8620_v48 = vsel %vm1341_vm10, %v1857_v35, -1e+30 }
 0x423   : > { %v8615_v25 = vsel %vm1342_vm9, %v1858_v51, -1e+30  ;;  %1980 = vmax.xlane.f32.xlu0 %v1979_v36  ;;  %v1692_v30 = vpop.f32.mrb[36].mxu1 }
 0x424   : > { %v1982_v21 = vsel %vm1973_vm4, %v8615_v25, -inf  ;;  %v1859_v23 = vmul.f32 0.25, %v1692_v30  ;;  %v1694_v26 = vpop.f32.mrb[37].mxu1 }
 0x425   : > { %v1860_v58 = vmul.f32 0.25, %v1694_v26  ;;  %v1983_v24 = vmax.f32 %v8620_v48, %v1982_v21 }
 0x426   : > { %v8637_v35 = vsel %vm1343_vm12, %v1859_v23, -1e+30 }
 0x427   : > { %v8632_v36 = vsel %vm1344_vm11, %v1860_v58, -1e+30  ;;  %1984 = vmax.xlane.f32.xlu0 %v1983_v24  ;;  %v1698_v51 = vpop.f32.mrb[38].mxu1 }
 0x428   : > { %v1986_v30 = vsel %vm1973_vm4, %v8632_v36, -inf  ;;  %v1861_v21 = vmul.f32 0.25, %v1698_v51  ;;  %v1700_v26 = vpop.f32.mrb[39].mxu1 }
 0x429   : > { %v1862_v39 = vmul.f32 0.25, %v1700_v26  ;;  %v1987_v13 = vmax.f32 %v8637_v35, %v1986_v30 }
 0x42a   : > { %v8654_v23 = vsel %vm11254_vm14, %v1861_v21, -1e+30  ;;  %vm11265_vm14 = vcmp.eq.s32.totalorder %v8420_v7, %v8572_v20 }
 0x42b   : > { %v8649_v24 = vsel %vm1346_vm13, %v1862_v39, -1e+30  ;;  %1988 = vmax.xlane.f32.xlu1 %v1987_v13  ;;  %v1704_v58 = vpop.f32.mrb[40].mxu1 }
 0x42c   : > { %v1990_v51 = vsel %vm1973_vm4, %v8649_v24, -inf  ;;  %v1863_v30 = vmul.f32 0.25, %v1704_v58  ;;  %v1706_v26 = vpop.f32.mrb[41].mxu1 }
 0x42d   : > { %v1864_v46 = vmul.f32 0.25, %v1706_v26  ;;  %v1991_v8 = vmax.f32 %v8654_v23, %v1990_v51 }
 0x42e   : > { %v8671_v21 = vsel %vm11174_vm0, %v1863_v30, -1e+30  ;;  %vm11180_vm0 = vcmp.eq.s32.totalorder %v8391_v37, %v8570_v4 }
 0x42f   : > { %v8666_v13 = vsel %vm11170_vm15, %v1864_v46, -1e+30  ;;  %1992 = vmax.xlane.f32.xlu0 %v1991_v8  ;;  %v1710_v39 = vpop.f32.mrb[42].mxu1  ;;  %vm11179_vm15 = vcmp.eq.s32.totalorder %v8385_v12, %v8572_v20 }
 0x430   : > { %v1994_v58 = vsel %vm1973_vm4, %v8666_v13, -inf  ;;  %v1865_v51 = vmul.f32 0.25, %v1710_v39  ;;  %v1712_v26 = vpop.f32.mrb[43].mxu1 }
 0x431   : > { %v1866_v52 = vmul.f32 0.25, %v1712_v26  ;;  %v1995_v3 = vmax.f32 %v8671_v21, %v1994_v58 }
 0x432   : > { %v8688_v30 = vsel %vm11179_vm15, %v1865_v51, -1e+30  ;;  %vm11185_vm15 = vcmp.eq.s32.totalorder %v8389_v54, %v8570_v4 }
 0x433   : > { %v8683_v8 = vsel %vm11175_vm2, %v1866_v52, -1e+30  ;;  %1996 = vmax.xlane.f32.xlu0 %v1995_v3  ;;  %v1716_v46 = vpop.f32.mrb[44].mxu1  ;;  %vm11184_vm2 = vcmp.eq.s32.totalorder %v8391_v37, %v8572_v20 }
 0x434   : > { %v1998_v39 = vsel %vm1973_vm4, %v8683_v8, -inf  ;;  %v1867_v58 = vmul.f32 0.25, %v1716_v46  ;;  %v1718_v26 = vpop.f32.mrb[45].mxu1 }
 0x435   : > { %v1868_v0 = vmul.f32 0.25, %v1718_v26  ;;  %v1999_v62 = vmax.f32 %v8688_v30, %v1998_v39 }
 0x436   : > { %v8705_v51 = vsel %vm11184_vm2, %v1867_v58, -1e+30  ;;  %vm11190_vm2 = vcmp.eq.s32.totalorder %v8398_v22, %v8570_v4 }
 0x437   : > { %v8700_v52 = vsel %vm11180_vm0, %v1868_v0, -1e+30  ;;  %2000 = vmax.xlane.f32.xlu1 %v1999_v62  ;;  %v1722_v3 = vpop.f32.mrb[46].mxu1  ;;  %vm11189_vm0 = vcmp.eq.s32.totalorder %v8389_v54, %v8572_v20 }
 0x438   : > { %v2002_v46 = vsel %vm1973_vm4, %v8700_v52, -inf  ;;  %v1869_v39 = vmul.f32 0.25, %v1722_v3  ;;  %v1724_v26 = vpop.f32.mrb[47].mxu1 }
 0x439   : > { %v1870_v12 = vmul.f32 0.25, %v1724_v26  ;;  %v2003_v57 = vmax.f32 %v8705_v51, %v2002_v46 }
 0x43a   : > { %v8722_v58 = vsel %vm11189_vm0, %v1869_v39, -1e+30  ;;  %vm11195_vm0 = vcmp.eq.s32.totalorder %v8396_v34, %v8570_v4 }
 0x43b   : > { %v8717_v62 = vsel %vm11185_vm15, %v1870_v12, -1e+30  ;;  %2004 = vmax.xlane.f32.xlu0 %v2003_v57  ;;  %v1728_v0 = vpop.f32.mrb[48].mxu1  ;;  %vm11194_vm15 = vcmp.eq.s32.totalorder %v8398_v22, %v8572_v20 }
 0x43c   : > { %v2006_v3 = vsel %vm1973_vm4, %v8717_v62, -inf  ;;  %v1871_v46 = vmul.f32 0.25, %v1728_v0  ;;  %v1730_v26 = vpop.f32.mrb[49].mxu1 }
 0x43d   : > { %v1872_v37 = vmul.f32 0.25, %v1730_v26  ;;  %v2007_v53 = vmax.f32 %v8722_v58, %v2006_v3 }
 0x43e   : > { %v8739_v39 = vsel %vm11194_vm15, %v1871_v46, -1e+30  ;;  %vm11200_vm15 = vcmp.eq.s32.totalorder %v8402_v47, %v8570_v4 }
 0x43f   : > { %v8734_v57 = vsel %vm11190_vm2, %v1872_v37, -1e+30  ;;  %2008 = vmax.xlane.f32.xlu1 %v2007_v53  ;;  %v1734_v12 = vpop.f32.mrb[50].mxu1  ;;  %vm11199_vm2 = vcmp.eq.s32.totalorder %v8396_v34, %v8572_v20 }
 0x440   : > { %v2010_v0 = vsel %vm1973_vm4, %v8734_v57, -inf  ;;  %v1873_v3 = vmul.f32 0.25, %v1734_v12  ;;  %v1736_v26 = vpop.f32.mrb[51].mxu1 }
 0x441   : > { %v1874_v54 = vmul.f32 0.25, %v1736_v26  ;;  %v2011_v40 = vmax.f32 %v8739_v39, %v2010_v0 }
 0x442   : > { %v8756_v46 = vsel %vm11199_vm2, %v1873_v3, -1e+30  ;;  %vm11205_vm2 = vcmp.eq.s32.totalorder %v8400_v59, %v8570_v4 }
 0x443   : > { %v8751_v37 = vsel %vm11195_vm0, %v1874_v54, -1e+30  ;;  %2012 = vmax.xlane.f32.xlu0 %v2011_v40  ;;  %v1740_v53 = vpop.f32.mrb[52].mxu1  ;;  %vm11204_vm0 = vcmp.eq.s32.totalorder %v8402_v47, %v8572_v20 }
 0x444   : > { %v2014_v12 = vsel %vm1973_vm4, %v8751_v37, -inf  ;;  %v1875_v0 = vmul.f32 0.25, %v1740_v53  ;;  %v1742_v26 = vpop.f32.mrb[53].mxu1 }
 0x445   : > { %v1876_v22 = vmul.f32 0.25, %v1742_v26  ;;  %v2015_v44 = vmax.f32 %v8756_v46, %v2014_v12 }
 0x446   : > { %v8773_v3 = vsel %vm11204_vm0, %v1875_v0, -1e+30  ;;  %vm11210_vm0 = vcmp.eq.s32.totalorder %v8409_v42, %v8570_v4 }
 0x447   : > { %v8768_v40 = vsel %vm11200_vm15, %v1876_v22, -1e+30  ;;  %2016 = vmax.xlane.f32.xlu1 %v2015_v44  ;;  %v1746_v54 = vpop.f32.mrb[54].mxu1  ;;  %vm11209_vm15 = vcmp.eq.s32.totalorder %v8400_v59, %v8572_v20 }
 0x448   : > { %v2018_v53 = vsel %vm1973_vm4, %v8768_v40, -inf  ;;  %v1877_v12 = vmul.f32 0.25, %v1746_v54  ;;  %v1748_v26 = vpop.f32.mrb[55].mxu1 }
 0x449   : > { %v1878_v34 = vmul.f32 0.25, %v1748_v26  ;;  %v2019_v31 = vmax.f32 %v8773_v3, %v2018_v53 }
 0x44a   : > { %v8790_v0 = vsel %vm11209_vm15, %v1877_v12, -1e+30  ;;  %vm11215_vm15 = vcmp.eq.s32.totalorder %v8407_v16, %v8570_v4 }
 0x44b   : > { %v8785_v22 = vsel %vm11205_vm2, %v1878_v34, -1e+30  ;;  %2020 = vmax.xlane.f32.xlu0 %v2019_v31  ;;  %v1752_v44 = vpop.f32.mrb[56].mxu1  ;;  %vm11214_vm2 = vcmp.eq.s32.totalorder %v8409_v42, %v8572_v20 }
 0x44c   : > { %11444 = vst [vmem:[#allocation90_spill] sm:$0xff] %v8785_v22  ;;  %v2022_v54 = vsel %vm1973_vm4, %v8785_v22, -inf  ;;  %v1879_v53 = vmul.f32 0.25, %v1752_v44  ;;  %v1754_v26 = vpop.f32.mrb[57].mxu1 }
 0x44d   : > { %v1880_v47 = vmul.f32 0.25, %v1754_v26  ;;  %v2023_v19 = vmax.f32 %v8790_v0, %v2022_v54 }
 0x44e   : > { %v8807_v12 = vsel %vm11214_vm2, %v1879_v53, -1e+30  ;;  %vm11220_vm2 = vcmp.eq.s32.totalorder %v8413_v27, %v8570_v4 }
 0x44f   : > { %v8802_v31 = vsel %vm11210_vm0, %v1880_v47, -1e+30  ;;  %2024 = vmax.xlane.f32.xlu1 %v2023_v19  ;;  %v1758_v34 = vpop.f32.mrb[58].mxu1  ;;  %11446 = vst [vmem:[#allocation92_spill] sm:$0xff] %v8807_v12  ;;  %vm11219_vm0 = vcmp.eq.s32.totalorder %v8407_v16, %v8572_v20 }
 0x450   : > { %11445 = vst [vmem:[#allocation91_spill] sm:$0xff] %v8802_v31  ;;  %v2026_v44 = vsel %vm1973_vm4, %v8802_v31, -inf  ;;  %v1881_v54 = vmul.f32 0.25, %v1758_v34  ;;  %v1760_v26 = vpop.f32.mrb[59].mxu1 }
 0x451   : > { %v1882_v59 = vmul.f32 0.25, %v1760_v26  ;;  %v2027_v11 = vmax.f32 %v8807_v12, %v2026_v44 }
 0x452   : > { %v8824_v53 = vsel %vm11219_vm0, %v1881_v54, -1e+30  ;;  %vm11247_vm0 = vcmp.eq.s32.totalorder %v8411_v32, %v8570_v4 }
 0x453   : > { %v8819_v47 = vsel %vm11215_vm15, %v1882_v59, -1e+30  ;;  %2028 = vmax.xlane.f32.xlu0 %v2027_v11  ;;  %v1764_v19 = vpop.f32.mrb[60].mxu1  ;;  %11448 = vst [vmem:[#allocation94_spill] sm:$0xff] %v8824_v53  ;;  %vm11246_vm15 = vcmp.eq.s32.totalorder %v8413_v27, %v8572_v20 }
 0x454   : > { %11447 = vst [vmem:[#allocation93_spill] sm:$0xff] %v8819_v47  ;;  %v2030_v34 = vsel %vm1973_vm4, %v8819_v47, -inf  ;;  %v1883_v44 = vmul.f32 0.25, %v1764_v19  ;;  %v1766_v26 = vpop.f32.mrb[61].mxu1 }
 0x455   : > { %v1884_v42 = vmul.f32 0.25, %v1766_v26  ;;  %v2031_v6 = vmax.f32 %v8824_v53, %v2030_v34 }
 0x456   : > { %v8841_v54 = vsel %vm11246_vm15, %v1883_v44, -1e+30  ;;  %vm11253_vm15 = vcmp.eq.s32.totalorder %v8422_v41, %v8570_v4 }
 0x457   : > { %v8836_v59 = vsel %vm11220_vm2, %v1884_v42, -1e+30  ;;  %2032 = vmax.xlane.f32.xlu0 %v2031_v6  ;;  %v1770_v11 = vpop.f32.mrb[62].mxu1  ;;  %11450 = vst [vmem:[#allocation96_spill] sm:$0xff] %v8841_v54  ;;  %vm11239_vm2 = vcmp.eq.s32.totalorder %v8411_v32, %v8572_v20 }
 0x458   : > { %11449 = vst [vmem:[#allocation95_spill] sm:$0xff] %v8836_v59  ;;  %v2034_v19 = vsel %vm1973_vm4, %v8836_v59, -inf  ;;  %v1885_v34 = vmul.f32 0.25, %v1770_v11  ;;  %v1772_v26 = vpop.f32.mrb[63].mxu1 }
 0x459   : > { %v1886_v16 = vmul.f32 0.25, %v1772_v26  ;;  %v2035_v1 = vmax.f32 %v8841_v54, %v2034_v19 }
 0x45a   : > { %v8858_v44 = vsel %vm11239_vm2, %v1885_v34, -1e+30  ;;  %vm11249_vm2 = vcmp.eq.s32.totalorder %v8418_v61, %v8570_v4 }
 0x45b   : > { %v8853_v42 = vsel %vm11247_vm0, %v1886_v16, -1e+30  ;;  %2036 = vmax.xlane.f32.xlu1 %v2035_v1  ;;  %v1776_v6 = vpop.f32.mrb[64].mxu1  ;;  %11452 = vst [vmem:[#allocation98_spill] sm:$0xff] %v8858_v44  ;;  %vm11256_vm0 = vcmp.eq.s32.totalorder %v8420_v7, %v8570_v4 }
 0x45c   : > { %11451 = vst [vmem:[#allocation97_spill] sm:$0xff] %v8853_v42  ;;  %v2038_v11 = vsel %vm1973_vm4, %v8853_v42, -inf  ;;  %v1778_v19 = vpop.f32.mrb[65].mxu1  ;;  %v1887_v53 = vmul.f32 0.25, %v1776_v6 }
 0x45d   : > { %v2039_v26 = vmax.f32 %v8858_v44, %v2038_v11  ;;  %v1888_v29 = vmul.f32 0.25, %v1778_v19 }
 0x45f   : > { %2040 = vmax.xlane.f32.xlu0 %v2039_v26  ;;  %v1782_v27 = vpop.f32.mrb[66].mxu1 }
 0x460   : > { %v1784_v60 = vpop.f32.mrb[67].mxu1  ;;  %v1889_v12 = vmul.f32 0.25, %v1782_v27  ;;  %v8930_v27 = vpop.permute.xlu1 %7004 }
 0x461   : > { %v1890_v44 = vmul.f32 0.25, %v1784_v60  ;;  %11456 = vst [vmem:[#allocation102_spill] sm:$0xff] %v8930_v27 }
 0x463   : > { %v1788_v55 = vpop.f32.mrb[68].mxu1  ;;  %v8897_v60 = vsel %vm11253_vm15, %v1890_v44, -1e+30  ;;  %vm11264_vm15 = vcmp.eq.s32.totalorder %v8422_v41, %v8572_v20 }
 0x464   : > { %v1790_v50 = vpop.f32.mrb[69].mxu1  ;;  %11454 = vst [vmem:[#allocation100_spill] sm:$0xff] %v8897_v60  ;;  %v1891_v22 = vmul.f32 0.25, %v1788_v55 }
 0x465   : > { %v1892_v54 = vmul.f32 0.25, %v1790_v50 }
 0x466   : > { %v8950_v27 = vsel %vm11265_vm14, %v1891_v22, -1e+30 }
 0x467   : > { %v1794_v16 = vpop.f32.mrb[70].mxu1  ;;  %v8908_v50 = vsel %vm11256_vm0, %v1892_v54, -1e+30  ;;  %vm11263_vm0 = vcmp.eq.s32.totalorder %v8431_v9, %v8570_v4 }
 0x468   : > { %v1796_v43 = vpop.f32.mrb[71].mxu1  ;;  %11455 = vst [vmem:[#allocation101_spill] sm:$0xff] %v8908_v50 }
 0x46b   : > { %v1800_v1 = vpop.f32.mrb[72].mxu1 }
 0x46c   : > { %7059 = vrot.lane.b32.xlu1 %v8149_v10, %s7709_s13  ;;  %v1802_v32 = vpop.f32.mrb[73].mxu1 }
 0x46d   : > { %v1896_v6 = vmul.f32 0.25, %v1802_v32  ;;  %v2046_v32 = vsel %vm1973_vm4, %v8897_v60, -inf  ;;  %v1895_v60 = vmul.f32 0.25, %v1800_v1 }
 0x46f   : > { %v8865_v34 = vpop.f32.mrb[74].mxu1 }
 0x470   : > { %v1808_v38 = vpop.f32.mrb[75].mxu1 }
 0x473   : > { %v8867_v33 = vpop.f32.mrb[76].mxu1 }
 0x474   : > { %v1814_v28 = vpop.f32.mrb[77].mxu1 }
 0x475   : > { %7054 = vrot.lane.b32.xlu0 %v8137_v5, %s7709_s13  ;;  %v8888_v5 = vsel %vm11249_vm2, %v1888_v29, -1e+30  ;;  %vm11255_vm2 = vcmp.eq.s32.totalorder %v8418_v61, %v8572_v20  ;;  %v1894_v29 = vmul.f32 0.25, %v1796_v43  ;;  %v2050_v43 = vsel %vm1973_vm4, %v8908_v50, -inf }
 0x476   : > { %11453 = vst [vmem:[#allocation99_spill] sm:$0xff] %v8888_v5  ;;  %v2042_v19 = vsel %vm1973_vm4, %v8888_v5, -inf  ;;  %v8915_v44 = vsel %vm11255_vm2, %v1887_v53, -1e+30  ;;  %vm11262_vm2 = vcmp.eq.s32.totalorder %v8429_v63, %v8570_v4  ;;  %v8940_v53 = vsel %vm11263_vm0, %v1896_v6, -1e+30 }
 0x477   : > { %v1818_v11 = vpop.f32.mrb[78].mxu1  ;;  %v2043_v54 = vmax.f32 %v8915_v44, %v2042_v19  ;;  %v8935_v55 = vsel %vm11262_vm2, %v1894_v29, -1e+30  ;;  %11457 = vst [vmem:[#allocation103_spill] sm:$0xff] %v8940_v53  ;;  %v1898_v19 = vmul.f32 0.25, %v1808_v38  ;;  %v1893_v29 = vmul.f32 0.25, %v1794_v16 }
 0x478   : > { %v1820_v26 = vpop.f32.mrb[79].mxu1  ;;  %v8945_v50 = vsel %vm11264_vm15, %v1889_v12, -1e+30  ;;  %vm11274_vm2 = vcmp.eq.s32.totalorder %v8429_v63, %v8572_v20  ;;  %v11458_v6 = vld [vmem:[#allocation73_spill] sm:$0xff]  ;;  %v2054_v12 = vsel %vm1973_vm4, %v8935_v55, -inf  ;;  %vm11273_vm15 = vcmp.eq.s32.totalorder %v8431_v9, %v8572_v20  ;;  %v11459_v16 = vld [vmem:[#allocation79_spill] sm:$0xff] }
 0x479   : > { %v1902_v61 = vmul.f32 0.25, %v1820_v26  ;;  %vm11271_vm0 = vcmp.eq.s32.totalorder %v11458_v6, %v8570_v4  ;;  %v2047_v38 = vmax.f32 %v8945_v50, %v2046_v32  ;;  %v2051_v26 = vmax.f32 %v8950_v27, %v2050_v43 }
 0x47a   : > { %v2058_v22 = vsel %vm1973_vm4, %v8940_v53, -inf  ;;  %vm11272_vm14 = vcmp.eq.s32.totalorder %v11459_v16, %v8570_v4  ;;  %v8969_v1 = vsel %vm11271_vm0, %v1898_v19, -1e+30  ;;  %v8979_v7 = vsel %vm11274_vm2, %v1893_v29, -1e+30  ;;  %v8987_v53 = vpop.permute.xlu1 %7014 }
 0x47b   : > { %v8871_v45 = vpop.f32.mrb[80].mxu1  ;;  %v8974_v32 = vsel %vm11272_vm14, %v1902_v61, -1e+30  ;;  %v8984_v41 = vsel %vm11273_vm15, %v1895_v60, -1e+30  ;;  %v1901_v19 = vmul.f32 0.25, %v1818_v11  ;;  %vm11281_vm0 = vcmp.eq.s32.totalorder %v11458_v6, %v8572_v20 }
 0x47c   : > { %v8873_v2 = vpop.f32.mrb[81].mxu1  ;;  %v11460_v61 = vld [vmem:[#allocation77_spill] sm:$0xff]  ;;  %v2059_v29 = vmax.f32 %v8984_v41, %v2058_v22  ;;  %vm11282_vm15 = vcmp.eq.s32.totalorder %v11459_v16, %v8572_v20  ;;  %v11461_v11 = vld [vmem:[#allocation80_spill] sm:$0xff]  ;;  %v1899_v63 = vmul.f32 0.25, %v8867_v33 }
 0x47d   : > { %vm11280_vm14 = vcmp.eq.s32.totalorder %v11460_v61, %v8570_v4  ;;  %vm11279_vm2 = vcmp.eq.s32.totalorder %v11461_v11, %v8570_v4 }
 0x47f   : > { %v8875_v15 = vpop.f32.mrb[82].mxu1 }
 0x480   : > { %v1832_v14 = vpop.f32.mrb[83].mxu1 }
 0x481   : > { %v1906_v43 = vmul.f32 0.25, %v1832_v14  ;;  %v2055_v14 = vmax.f32 %v8979_v7, %v2054_v12 }
 0x483   : > { %v8877_v10 = vpop.f32.mrb[84].mxu1  ;;  %v9012_v12 = vsel %vm11279_vm2, %v1906_v43, -1e+30  ;;  %vm11289_vm2 = vcmp.eq.s32.totalorder %v11460_v61, %v8572_v20 }
 0x484   : > { %v8879_v42 = vpop.f32.mrb[85].mxu1  ;;  %v9057_v16 = vsel %vm11289_vm2, %v1899_v63, -1e+30 }
 0x487   : > { %v8883_v59 = vpop.f32.mrb[86].mxu1 }
 0x488   : > { %v1844_v47 = vpop.f32.mrb[87].mxu1 }
 0x489   : > { %v1910_v22 = vmul.f32 0.25, %v1844_v47  ;;  %v11462_v47 = vld [vmem:[#allocation76_spill] sm:$0xff] }
 0x48b   : > { %v8901_v31 = vpop.f32.mrb[88].mxu1 }
 0x48c   : > { %v8910_v5 = vpop.f32.mrb[89].mxu1 }
 0x48d   : > { %v1912_v6 = vmul.f32 0.25, %v8910_v5 }
 0x490   : > { %2044 = vmax.xlane.f32.xlu1 %v2043_v54  ;;  %v1900_v54 = vmul.f32 0.25, %v1814_v28  ;;  %v1897_v28 = vmul.f32 0.25, %v8865_v34  ;;  %v2070_v34 = vsel %vm1973_vm4, %v8974_v32, -inf }
 0x492   : > { %v9006_v60 = vsel %vm11280_vm14, %v1900_v54, -1e+30  ;;  %v9017_v9 = vsel %vm11281_vm0, %v1897_v28, -1e+30  ;;  %v9023_v54 = vsel %vm11282_vm15, %v1901_v19, -1e+30  ;;  %vm11287_vm14 = vcmp.eq.s32.totalorder %v11462_v47, %v8570_v4 }
 0x493   : > { %v2071_v28 = vmax.f32 %v9023_v54, %v2070_v34  ;;  %v2066_v33 = vsel %vm1973_vm4, %v9006_v60, -inf  ;;  %vm11288_vm0 = vcmp.eq.s32.totalorder %v11461_v11, %v8572_v20  ;;  %v2078_v19 = vsel %vm1973_vm4, %v9012_v12, -inf }
 0x494   : > { %2048 = vmax.xlane.f32.xlu0 %v2047_v38  ;;  %2052 = vmax.xlane.f32.xlu1 %v2051_v26  ;;  %v2062_v38 = vsel %vm1973_vm4, %v8969_v1, -inf  ;;  %v1904_v26 = vmul.f32 0.25, %v8873_v2  ;;  %v1905_v2 = vmul.f32 0.25, %v8875_v15  ;;  %v11463_v15 = vld [vmem:[#allocation82_spill] sm:$0xff]  ;;  %v1911_v11 = vmul.f32 0.25, %v8901_v31 }
 0x495   : > { %v2063_v43 = vmax.f32 %v9017_v9, %v2062_v38  ;;  %vm11286_vm15 = vcmp.eq.s32.totalorder %v11463_v15, %v8570_v4  ;;  %v1908_v38 = vmul.f32 0.25, %v8879_v42  ;;  %vm11293_vm2 = vcmp.eq.s32.totalorder %v11463_v15, %v8572_v20 }
 0x496   : > { %v9051_v34 = vsel %vm11286_vm15, %v1910_v22, -1e+30  ;;  %v9063_v42 = vsel %vm11288_vm0, %v1905_v2, -1e+30  ;;  %v2067_v22 = vmax.f32 %v9057_v16, %v2066_v33  ;;  %vm1387_vm0 = vcmp.eq.s32.totalorder %v11462_v47, %v8572_v20 }
 0x497   : > { %11465 = vst [vmem:[#allocation105_spill] sm:$0xff] %v9051_v34  ;;  %v2079_v5 = vmax.f32 %v9063_v42, %v2078_v19  ;;  %v2086_v63 = vsel %vm1973_vm4, %v9051_v34, -inf  ;;  %v1907_v19 = vmul.f32 0.25, %v8877_v10  ;;  %v11491_v34 = vld [vmem:[#allocation99_spill] sm:$0xff] }
 0x498   : > { %2056 = vmax.xlane.f32.xlu0 %v2055_v14  ;;  %2060 = vmax.xlane.f32.xlu1 %v2059_v29  ;;  %v9040_v14 = vpop.permute.xlu1 %7024  ;;  %v9045_v29 = vsel %vm11287_vm14, %v1904_v26, -1e+30  ;;  %v1909_v26 = vmul.f32 0.25, %v8883_v59 }
 0x499   : > { %11464 = vst [vmem:[#allocation104_spill] sm:$0xff] %v9040_v14  ;;  %v1903_v14 = vmul.f32 0.25, %v8871_v45  ;;  %v11467_v45 = vld [vmem:[#allocation81_spill] sm:$0xff] }
 0x49a   : > { %vm11292_vm14 = vcmp.eq.s32.totalorder %v11467_v45, %v8570_v4 }
 0x49b   : > { %v9088_v2 = vsel %vm11292_vm14, %v1912_v6, -1e+30  ;;  %v9093_v33 = vsel %vm1387_vm0, %v1903_v14, -1e+30 }
 0x49c   : > { %2064 = vmax.xlane.f32.xlu0 %v2063_v43  ;;  %2072 = vmax.xlane.f32.xlu1 %v2071_v28  ;;  %v2074_v43 = vsel %vm1973_vm4, %v9045_v29, -inf  ;;  %v11466_v28 = vld [vmem:[#allocation78_spill] sm:$0xff]  ;;  %v9102_v61 = vpop.permute.xlu1 %7034  ;;  %v2090_v14 = vsel %vm1973_vm4, %v9088_v2, -inf }
 0x49d   : > { %vm1392_vm15 = vcmp.eq.s32.totalorder %v11466_v28, %v8570_v4  ;;  %v2075_v6 = vmax.f32 %v9093_v33, %v2074_v43  ;;  %vm1391_vm14 = vcmp.eq.s32.totalorder %v11466_v28, %v8572_v20 }
 0x49e   : > { %v9081_v59 = vsel %vm1392_vm15, %v1908_v38, -1e+30  ;;  %v9099_v38 = vsel %vm11293_vm2, %v1909_v26, -1e+30  ;;  %vm1395_vm2 = vcmp.eq.s32.totalorder %v11467_v45, %v8572_v20  ;;  %v9117_v10 = vsel %vm1391_vm14, %v1907_v19, -1e+30 }
 0x49f   : > { %11468 = vst [vmem:[#allocation106_spill] sm:$0xff] %v9099_v38  ;;  %v9122_v31 = vsel %vm1395_vm2, %v1911_v11, -1e+30 }
 0x4a0   : > { %2068 = vmax.xlane.f32.xlu0 %v2067_v22  ;;  %2080 = vmax.xlane.f32.xlu1 %v2079_v5  ;;  %v2087_v22 = vmax.f32 %v9099_v38, %v2086_v63  ;;  %v2082_v5 = vsel %vm1973_vm4, %v9081_v59, -inf  ;;  %v2091_v43 = vmax.f32 %v9122_v31, %v2090_v14  ;;  %v9126_v63 = vpop.permute.xlu1 %7044 }
 0x4a1   : > { %v2083_v26 = vmax.f32 %v9117_v10, %v2082_v5  ;;  %11469 = vst [vmem:[#allocation107_spill] sm:$0xff] %v9126_v63 }
 0x4a4   : > { %2076 = vmax.xlane.f32.xlu0 %v2075_v6  ;;  %2088 = vmax.xlane.f32.xlu1 %v2087_v22 }
 0x4a8   : > { %2084 = vmax.xlane.f32.xlu0 %v2083_v26  ;;  %2092 = vmax.xlane.f32.xlu1 %v2091_v43 }
 0x4ac   : > { %v1977_v6 = vpop.xlane.xlu1 %1976 }
 0x4ad   : > { %v2094_v22 = vsub.f32 %v8586_v56, %v1977_v6  ;;  %v2095_v15 = vsub.f32 %v8579_v18, %v1977_v6 }
 0x4af   : > { %v2154_v19 = vmul.f32 1.442695, %v2094_v22  ;;  %v2156_v28 = vmul.f32 1.442695, %v2095_v15 }
 0x4b0   : > { %v1981_v47 = vpop.xlane.xlu0 %1980 }
 0x4b1   : > { %7158 = vpow2.f32 %v2154_v19  ;;  %v2096_v11 = vsub.f32 %v8603_v49, %v1981_v47  ;;  %v2097_v45 = vsub.f32 %v8598_v17, %v1981_v47 }
 0x4b2   : > { %7160 = vpow2.f32 %v2156_v28 }
 0x4b3   : > { %v2158_v5 = vmul.f32 1.442695, %v2096_v11  ;;  %v2160_v14 = vmul.f32 1.442695, %v2097_v45 }
 0x4b4   : > { %v1985_v20 = vpop.xlane.xlu0 %1984 }
 0x4b5   : > { %7162 = vpow2.f32 %v2158_v5  ;;  %v2098_v26 = vsub.f32 %v8620_v48, %v1985_v20  ;;  %v2099_v43 = vsub.f32 %v8615_v25, %v1985_v20 }
 0x4b6   : > { %7164 = vpow2.f32 %v2160_v14 }
 0x4b7   : > { %v2162_v56 = vmul.f32 1.442695, %v2098_v26  ;;  %v2164_v18 = vmul.f32 1.442695, %v2099_v43 }
 0x4b8   : > { %v1989_v6 = vpop.xlane.xlu1 %1988 }
 0x4b9   : > { %7166 = vpow2.f32 %v2162_v56  ;;  %v2100_v15 = vsub.f32 %v8637_v35, %v1989_v6  ;;  %v2101_v49 = vsub.f32 %v8632_v36, %v1989_v6 }
 0x4ba   : > { %7168 = vpow2.f32 %v2164_v18 }
 0x4bb   : > { %v9136_v17 = vpop.eup %7158  ;;  %v2166_v47 = vmul.f32 1.442695, %v2100_v15  ;;  %v2168_v28 = vmul.f32 1.442695, %v2101_v49 }
 0x4bc   : > { %v9138_v45 = vpop.eup %7160  ;;  %v1993_v22 = vpop.xlane.xlu0 %1992 }
 0x4bd   : > { %7170 = vpow2.f32 %v2166_v47  ;;  %v2102_v20 = vsub.f32 %v8654_v23, %v1993_v22  ;;  %v2103_v25 = vsub.f32 %v8649_v24, %v1993_v22  ;;  %v2274_v48 = vsel %vm1973_vm4, %v9138_v45, 0.0 }
 0x4be   : > { %7172 = vpow2.f32 %v2168_v28  ;;  %v2275_v35 = vadd.f32 %v9136_v17, %v2274_v48 }
 0x4bf   : > { %v9145_v36 = vpop.eup %7162  ;;  %v2170_v19 = vmul.f32 1.442695, %v2102_v20  ;;  %v2172_v11 = vmul.f32 1.442695, %v2103_v25 }
 0x4c0   : > { %v9147_v5 = vpop.eup %7164  ;;  %2276 = vadd.xlane.f32.xlu1 %v2275_v35  ;;  %v1997_v14 = vpop.xlane.xlu0 %1996 }
 0x4c1   : > { %7174 = vpow2.f32 %v2170_v19  ;;  %v2104_v26 = vsub.f32 %v8671_v21, %v1997_v14  ;;  %v2105_v23 = vsub.f32 %v8666_v13, %v1997_v14  ;;  %v2278_v24 = vsel %vm1973_vm4, %v9147_v5, 0.0 }
 0x4c2   : > { %7176 = vpow2.f32 %v2172_v11  ;;  %v2279_v43 = vadd.f32 %v9145_v36, %v2278_v24 }
 0x4c3   : > { %v9154_v56 = vpop.eup %7166  ;;  %v2174_v18 = vmul.f32 1.442695, %v2104_v26  ;;  %v2176_v6 = vmul.f32 1.442695, %v2105_v23 }
 0x4c4   : > { %v9156_v15 = vpop.eup %7168  ;;  %2280 = vadd.xlane.f32.xlu0 %v2279_v43  ;;  %v2001_v49 = vpop.xlane.xlu1 %2000 }
 0x4c5   : > { %7178 = vpow2.f32 %v2174_v18  ;;  %v2106_v47 = vsub.f32 %v8688_v30, %v2001_v49  ;;  %v2107_v21 = vsub.f32 %v8683_v8, %v2001_v49  ;;  %v2282_v13 = vsel %vm1973_vm4, %v9156_v15, 0.0 }
 0x4c6   : > { %7180 = vpow2.f32 %v2176_v6  ;;  %v2283_v28 = vadd.f32 %v9154_v56, %v2282_v13 }
 0x4c7   : > { %v9163_v22 = vpop.eup %7170  ;;  %v2178_v20 = vmul.f32 1.442695, %v2106_v47  ;;  %v2180_v25 = vmul.f32 1.442695, %v2107_v21 }
 0x4c8   : > { %v9165_v48 = vpop.eup %7172  ;;  %2284 = vadd.xlane.f32.xlu1 %v2283_v28  ;;  %v2005_v35 = vpop.xlane.xlu0 %2004 }
 0x4c9   : > { %7182 = vpow2.f32 %v2178_v20  ;;  %v2108_v19 = vsub.f32 %v8705_v51, %v2005_v35  ;;  %v2109_v30 = vsub.f32 %v8700_v52, %v2005_v35  ;;  %v2286_v8 = vsel %vm1973_vm4, %v9165_v48, 0.0 }
 0x4ca   : > { %7184 = vpow2.f32 %v2180_v25  ;;  %v2287_v11 = vadd.f32 %v9163_v22, %v2286_v8 }
 0x4cb   : > { %v9172_v14 = vpop.eup %7174  ;;  %v2182_v26 = vmul.f32 1.442695, %v2108_v19  ;;  %v2184_v23 = vmul.f32 1.442695, %v2109_v30 }
 0x4cc   : > { %v9174_v24 = vpop.eup %7176  ;;  %2288 = vadd.xlane.f32.xlu0 %v2287_v11  ;;  %v2009_v43 = vpop.xlane.xlu1 %2008 }
 0x4cd   : > { %7186 = vpow2.f32 %v2182_v26  ;;  %v2110_v18 = vsub.f32 %v8722_v58, %v2009_v43  ;;  %v2111_v51 = vsub.f32 %v8717_v62, %v2009_v43  ;;  %v2290_v52 = vsel %vm1973_vm4, %v9174_v24, 0.0 }
 0x4ce   : > { %7188 = vpow2.f32 %v2184_v23  ;;  %v2291_v6 = vadd.f32 %v9172_v14, %v2290_v52 }
 0x4cf   : > { %v9181_v49 = vpop.eup %7178  ;;  %v2186_v47 = vmul.f32 1.442695, %v2110_v18  ;;  %v2188_v21 = vmul.f32 1.442695, %v2111_v51 }
 0x4d0   : > { %v9183_v13 = vpop.eup %7180  ;;  %2292 = vadd.xlane.f32.xlu1 %v2291_v6  ;;  %v2013_v28 = vpop.xlane.xlu0 %2012 }
 0x4d1   : > { %7190 = vpow2.f32 %v2186_v47  ;;  %v2112_v20 = vsub.f32 %v8739_v39, %v2013_v28  ;;  %v2113_v58 = vsub.f32 %v8734_v57, %v2013_v28  ;;  %v2294_v62 = vsel %vm1973_vm4, %v9183_v13, 0.0 }
 0x4d2   : > { %7192 = vpow2.f32 %v2188_v21  ;;  %v2295_v25 = vadd.f32 %v9181_v49, %v2294_v62 }
 0x4d3   : > { %v9190_v35 = vpop.eup %7182  ;;  %v2190_v19 = vmul.f32 1.442695, %v2112_v20  ;;  %v2192_v30 = vmul.f32 1.442695, %v2113_v58 }
 0x4d4   : > { %v9192_v8 = vpop.eup %7184  ;;  %2296 = vadd.xlane.f32.xlu0 %v2295_v25  ;;  %v2017_v11 = vpop.xlane.xlu1 %2016 }
 0x4d5   : > { %7194 = vpow2.f32 %v2190_v19  ;;  %v2114_v26 = vsub.f32 %v8756_v46, %v2017_v11  ;;  %v2115_v39 = vsub.f32 %v8751_v37, %v2017_v11  ;;  %v2298_v57 = vsel %vm1973_vm4, %v9192_v8, 0.0 }
 0x4d6   : > { %7196 = vpow2.f32 %v2192_v30  ;;  %v2299_v23 = vadd.f32 %v9190_v35, %v2298_v57 }
 0x4d7   : > { %v9199_v43 = vpop.eup %7186  ;;  %v2194_v18 = vmul.f32 1.442695, %v2114_v26  ;;  %v2196_v51 = vmul.f32 1.442695, %v2115_v39 }
 0x4d8   : > { %v9201_v52 = vpop.eup %7188  ;;  %2300 = vadd.xlane.f32.xlu1 %v2299_v23  ;;  %v2021_v6 = vpop.xlane.xlu0 %2020 }
 0x4d9   : > { %7198 = vpow2.f32 %v2194_v18  ;;  %v2116_v47 = vsub.f32 %v8773_v3, %v2021_v6  ;;  %v2117_v46 = vsub.f32 %v8768_v40, %v2021_v6  ;;  %v2302_v37 = vsel %vm1973_vm4, %v9201_v52, 0.0  ;;  %v11470_v3 = vld [vmem:[#allocation90_spill] sm:$0xff] }
 0x4da   : > { %7200 = vpow2.f32 %v2196_v51  ;;  %v2303_v21 = vadd.f32 %v9199_v43, %v2302_v37  ;;  %v11471_v51 = vld [vmem:[#allocation92_spill] sm:$0xff] }
 0x4db   : > { %v9208_v28 = vpop.eup %7190  ;;  %v2198_v20 = vmul.f32 1.442695, %v2116_v47  ;;  %v2200_v58 = vmul.f32 1.442695, %v2117_v46 }
 0x4dc   : > { %v9210_v62 = vpop.eup %7192  ;;  %2304 = vadd.xlane.f32.xlu0 %v2303_v21  ;;  %v2025_v25 = vpop.xlane.xlu1 %2024 }
 0x4dd   : > { %7202 = vpow2.f32 %v2198_v20  ;;  %v2118_v19 = vsub.f32 %v8790_v0, %v2025_v25  ;;  %v2119_v30 = vsub.f32 %v11470_v3, %v2025_v25  ;;  %v2306_v40 = vsel %vm1973_vm4, %v9210_v62, 0.0  ;;  %v11472_v0 = vld [vmem:[#allocation91_spill] sm:$0xff]  ;;  %v11473_v3 = vld [vmem:[#allocation94_spill] sm:$0xff] }
 0x4de   : > { %7204 = vpow2.f32 %v2200_v58  ;;  %v2307_v11 = vadd.f32 %v9208_v28, %v2306_v40  ;;  %v11474_v40 = vld [vmem:[#allocation93_spill] sm:$0xff] }
 0x4df   : > { %v9217_v26 = vpop.eup %7194  ;;  %v2202_v39 = vmul.f32 1.442695, %v2118_v19  ;;  %v2204_v57 = vmul.f32 1.442695, %v2119_v30 }
 0x4e0   : > { %v9219_v23 = vpop.eup %7196  ;;  %2308 = vadd.xlane.f32.xlu1 %v2307_v11  ;;  %v2029_v18 = vpop.xlane.xlu0 %2028 }
 0x4e1   : > { %7206 = vpow2.f32 %v2202_v39  ;;  %v2120_v6 = vsub.f32 %v11471_v51, %v2029_v18  ;;  %v2121_v47 = vsub.f32 %v11472_v0, %v2029_v18  ;;  %v2310_v46 = vsel %vm1973_vm4, %v9219_v23, 0.0 }
 0x4e2   : > { %7208 = vpow2.f32 %v2204_v57  ;;  %v2311_v37 = vadd.f32 %v9217_v26, %v2310_v46  ;;  %v11475_v46 = vld [vmem:[#allocation96_spill] sm:$0xff] }
 0x4e3   : > { %v9226_v21 = vpop.eup %7198  ;;  %v2206_v20 = vmul.f32 1.442695, %v2120_v6  ;;  %v2208_v58 = vmul.f32 1.442695, %v2121_v47 }
 0x4e4   : > { %v9228_v25 = vpop.eup %7200  ;;  %2312 = vadd.xlane.f32.xlu0 %v2311_v37  ;;  %v2033_v19 = vpop.xlane.xlu0 %2032 }
 0x4e5   : > { %7210 = vpow2.f32 %v2206_v20  ;;  %v2122_v30 = vsub.f32 %v11473_v3, %v2033_v19  ;;  %v2123_v11 = vsub.f32 %v11474_v40, %v2033_v19  ;;  %v2314_v39 = vsel %vm1973_vm4, %v9228_v25, 0.0  ;;  %v11476_v20 = vld [vmem:[#allocation95_spill] sm:$0xff] }
 0x4e6   : > { %7212 = vpow2.f32 %v2208_v58  ;;  %v2315_v57 = vadd.f32 %v9226_v21, %v2314_v39 }
 0x4e7   : > { %v9235_v18 = vpop.eup %7202  ;;  %v2210_v51 = vmul.f32 1.442695, %v2122_v30  ;;  %v2212_v6 = vmul.f32 1.442695, %v2123_v11 }
 0x4e8   : > { %v9237_v0 = vpop.eup %7204  ;;  %2316 = vadd.xlane.f32.xlu1 %v2315_v57  ;;  %v2037_v47 = vpop.xlane.xlu1 %2036 }
 0x4e9   : > { %7214 = vpow2.f32 %v2210_v51  ;;  %v2124_v37 = vsub.f32 %v11475_v46, %v2037_v47  ;;  %v2125_v3 = vsub.f32 %v11476_v20, %v2037_v47  ;;  %v2318_v19 = vsel %vm1973_vm4, %v9237_v0, 0.0  ;;  %v11479_v51 = vld [vmem:[#allocation98_spill] sm:$0xff]  ;;  %v11480_v46 = vld [vmem:[#allocation97_spill] sm:$0xff] }
 0x4ea   : > { %7216 = vpow2.f32 %v2212_v6  ;;  %v2319_v58 = vadd.f32 %v9235_v18, %v2318_v19 }
 0x4eb   : > { %v9244_v40 = vpop.eup %7206  ;;  %v2214_v39 = vmul.f32 1.442695, %v2124_v37  ;;  %v2216_v30 = vmul.f32 1.442695, %v2125_v3 }
 0x4ec   : > { %11477 = vst [vmem:[#allocation90_spill] sm:$0xff] %v9244_v40  ;;  %v9246_v11 = vpop.eup %7208  ;;  %2320 = vadd.xlane.f32.xlu0 %v2319_v58  ;;  %v2041_v57 = vpop.xlane.xlu0 %2040 }
 0x4ed   : > { %11478 = vst [vmem:[#allocation92_spill] sm:$0xff] %v9246_v11  ;;  %7218 = vpow2.f32 %v2214_v39  ;;  %v2126_v4 = vsub.f32 %v11479_v51, %v2041_v57  ;;  %v2127_v47 = vsub.f32 %v11480_v46, %v2041_v57  ;;  %v2322_v20 = vsel %vm1973_vm4, %v9246_v11, 0.0 }
 0x4ee   : > { %7220 = vpow2.f32 %v2216_v30  ;;  %v2323_v63 = vadd.f32 %v9244_v40, %v2322_v20 }
 0x4ef   : > { %v9252_v6 = vpop.eup %7210  ;;  %v2218_v19 = vmul.f32 1.442695, %v2126_v4  ;;  %v2220_v3 = vmul.f32 1.442695, %v2127_v47 }
 0x4f0   : > { %11481 = vst [vmem:[#allocation91_spill] sm:$0xff] %v9252_v6  ;;  %v9255_v37 = vpop.eup %7212  ;;  %2324 = vadd.xlane.f32.xlu1 %v2323_v63  ;;  %v9283_v38 = vpop.permute.xlu0 %7054 }
 0x4f1   : > { %11482 = vst [vmem:[#allocation94_spill] sm:$0xff] %v9255_v37  ;;  %7222 = vpow2.f32 %v2218_v19  ;;  %v2326_v58 = vsel %vm1973_vm4, %v9255_v37, 0.0  ;;  %11490 = vst [vmem:[#allocation110_spill] sm:$0xff] %v9283_v38  ;;  %v11492_v37 = vld [vmem:[#allocation100_spill] sm:$0xff] }
 0x4f2   : > { %7224 = vpow2.f32 %v2220_v3  ;;  %v2327_v39 = vadd.f32 %v9252_v6, %v2326_v58 }
 0x4f3   : > { %v9260_v30 = vpop.eup %7214 }
 0x4f4   : > { %11483 = vst [vmem:[#allocation93_spill] sm:$0xff] %v9260_v30  ;;  %v9262_v57 = vpop.eup %7216  ;;  %2328 = vadd.xlane.f32.xlu0 %v2327_v39 }
 0x4f5   : > { %11484 = vst [vmem:[#allocation96_spill] sm:$0xff] %v9262_v57  ;;  %v2330_v4 = vsel %vm1973_vm4, %v9262_v57, 0.0 }
 0x4f6   : > { %v2331_v51 = vadd.f32 %v9260_v30, %v2330_v4  ;;  %v9281_v4 = vpop.permute.xlu1 %7059 }
 0x4f7   : > { %v9267_v46 = vpop.eup %7218  ;;  %11489 = vst [vmem:[#allocation109_spill] sm:$0xff] %v9281_v4 }
 0x4f8   : > { %11485 = vst [vmem:[#allocation95_spill] sm:$0xff] %v9267_v46  ;;  %v9269_v47 = vpop.eup %7220  ;;  %2332 = vadd.xlane.f32.xlu1 %v2331_v51 }
 0x4f9   : > { %11486 = vst [vmem:[#allocation98_spill] sm:$0xff] %v9269_v47  ;;  %v2334_v63 = vsel %vm1973_vm4, %v9269_v47, 0.0 }
 0x4fa   : > { %v2335_v20 = vadd.f32 %v9267_v46, %v2334_v63 }
 0x4fb   : > { %v9274_v19 = vpop.eup %7222 }
 0x4fc   : > { %11487 = vst [vmem:[#allocation97_spill] sm:$0xff] %v9274_v19  ;;  %v9276_v3 = vpop.eup %7224  ;;  %2336 = vadd.xlane.f32.xlu0 %v2335_v20 }
 0x4fd   : > { %11488 = vst [vmem:[#allocation108_spill] sm:$0xff] %v9276_v3  ;;  %v2338_v58 = vsel %vm1973_vm4, %v9276_v3, 0.0 }
 0x4fe   : > { %v2339_v39 = vadd.f32 %v9274_v19, %v2338_v58 }
 0x500   : > { %2340 = vadd.xlane.f32.xlu1 %v2339_v39  ;;  %v11493_v39 = vld [vmem:[#allocation101_spill] sm:$0xff] }
 0x51d   : > { %v2045_v51 = vpop.xlane.xlu1 %2044 }
 0x51e   : > { %v2128_v47 = vsub.f32 %v8915_v44, %v2045_v51  ;;  %v2129_v63 = vsub.f32 %v11491_v34, %v2045_v51 }
 0x520   : > { %v2222_v46 = vmul.f32 1.442695, %v2128_v47  ;;  %v2224_v30 = vmul.f32 1.442695, %v2129_v63 }
 0x521   : > { %v2049_v57 = vpop.xlane.xlu0 %2048  ;;  %v2053_v6 = vpop.xlane.xlu1 %2052 }
 0x522   : > { %v2130_v20 = vsub.f32 %v8945_v50, %v2049_v57  ;;  %v2131_v3 = vsub.f32 %v11492_v37, %v2049_v57  ;;  %v2132_v58 = vsub.f32 %v8950_v27, %v2053_v6  ;;  %7226 = vpow2.f32 %v2224_v30  ;;  %v11494_v37 = vld [vmem:[#allocation103_spill] sm:$0xff] }
 0x523   : > { %v2133_v4 = vsub.f32 %v11493_v39, %v2053_v6  ;;  %7228 = vpow2.f32 %v2222_v46 }
 0x524   : > { %v2226_v38 = vmul.f32 1.442695, %v2130_v20  ;;  %v2228_v19 = vmul.f32 1.442695, %v2131_v3  ;;  %v2230_v40 = vmul.f32 1.442695, %v2132_v58 }
 0x525   : > { %v2232_v44 = vmul.f32 1.442695, %v2133_v4  ;;  %v2057_v11 = vpop.xlane.xlu0 %2056  ;;  %v2061_v34 = vpop.xlane.xlu1 %2060 }
 0x526   : > { %7230 = vpow2.f32 %v2226_v38  ;;  %v2134_v47 = vsub.f32 %v8979_v7, %v2057_v11  ;;  %v2135_v51 = vsub.f32 %v8935_v55, %v2057_v11  ;;  %v2136_v50 = vsub.f32 %v8984_v41, %v2061_v34 }
 0x527   : > { %7232 = vpow2.f32 %v2228_v19  ;;  %v2137_v27 = vsub.f32 %v11494_v37, %v2061_v34 }
 0x528   : > { %7234 = vpow2.f32 %v2230_v40  ;;  %v2234_v30 = vmul.f32 1.442695, %v2134_v47  ;;  %v2236_v6 = vmul.f32 1.442695, %v2135_v51  ;;  %v2238_v57 = vmul.f32 1.442695, %v2136_v50 }
 0x529   : > { %7236 = vpow2.f32 %v2232_v44  ;;  %v2240_v46 = vmul.f32 1.442695, %v2137_v27  ;;  %v2065_v3 = vpop.xlane.xlu0 %2064 }
 0x52a   : > { %7238 = vpow2.f32 %v2234_v30  ;;  %v2138_v4 = vsub.f32 %v9017_v9, %v2065_v3  ;;  %v2139_v38 = vsub.f32 %v8969_v1, %v2065_v3 }
 0x52b   : > { %7240 = vpow2.f32 %v2236_v6 }
 0x52c   : > { %7242 = vpow2.f32 %v2238_v57  ;;  %v2242_v7 = vmul.f32 1.442695, %v2138_v4  ;;  %v2244_v55 = vmul.f32 1.442695, %v2139_v38  ;;  %v9297_v41 = vpop.eup %7226  ;;  %v2073_v57 = vpop.xlane.xlu1 %2072 }
 0x52d   : > { %7244 = vpow2.f32 %v2240_v46  ;;  %v2069_v11 = vpop.xlane.xlu0 %2068  ;;  %v9299_v40 = vpop.eup %7228  ;;  %v2342_v9 = vsel %vm1973_vm4, %v9297_v41, 0.0 }
 0x52e   : > { %7246 = vpow2.f32 %v2242_v7  ;;  %v2140_v19 = vsub.f32 %v9057_v16, %v2069_v11  ;;  %v2141_v63 = vsub.f32 %v9006_v60, %v2069_v11  ;;  %v2343_v44 = vadd.f32 %v9299_v40, %v2342_v9 }
 0x52f   : > { %7248 = vpow2.f32 %v2244_v55 }
 0x530   : > { %v9305_v1 = vpop.eup %7230  ;;  %v2246_v20 = vmul.f32 1.442695, %v2140_v19  ;;  %v2248_v58 = vmul.f32 1.442695, %v2141_v63  ;;  %2344 = vadd.xlane.f32.xlu0 %v2343_v44 }
 0x531   : > { %v9307_v39 = vpop.eup %7232 }
 0x532   : > { %v9310_v34 = vpop.eup %7234  ;;  %7250 = vpow2.f32 %v2246_v20  ;;  %v2346_v16 = vsel %vm1973_vm4, %v9307_v39, 0.0  ;;  %v9345_v20 = vpop.xlane.xlu1 %2080 }
 0x533   : > { %v9312_v47 = vpop.eup %7236  ;;  %7252 = vpow2.f32 %v2248_v58  ;;  %v2347_v37 = vadd.f32 %v9305_v1, %v2346_v16 }
 0x534   : > { %v9316_v60 = vpop.eup %7238  ;;  %v2350_v50 = vsel %vm1973_vm4, %v9312_v47, 0.0 }
 0x535   : > { %v9318_v51 = vpop.eup %7240  ;;  %v2351_v30 = vadd.f32 %v9310_v34, %v2350_v50  ;;  %2348 = vadd.xlane.f32.xlu1 %v2347_v37  ;;  %v2077_v50 = vpop.xlane.xlu0 %2076 }
 0x536   : > { %v9323_v27 = vpop.eup %7242  ;;  %v2354_v46 = vsel %vm1973_vm4, %v9318_v51, 0.0  ;;  %v9350_v16 = vpop.xlane.xlu1 %2088 }
 0x537   : > { %11495 = vst [vmem:[#allocation99_spill] sm:$0xff] %v9323_v27  ;;  %v9326_v6 = vpop.eup %7244  ;;  %2352 = vadd.xlane.f32.xlu0 %v2351_v30  ;;  %v2355_v55 = vadd.f32 %v9316_v60, %v2354_v46 }
 0x538   : > { %v9330_v3 = vpop.eup %7246  ;;  %v2358_v4 = vsel %vm1973_vm4, %v9326_v6, 0.0 }
 0x539   : > { %11496 = vst [vmem:[#allocation100_spill] sm:$0xff] %v9330_v3  ;;  %v9334_v38 = vpop.eup %7248  ;;  %v2359_v7 = vadd.f32 %v9323_v27, %v2358_v4  ;;  %2356 = vadd.xlane.f32.xlu1 %v2355_v55  ;;  %v9354_v30 = vpop.xlane.xlu0 %2084  ;;  %v11500_v4 = vld [vmem:[#allocation45_spill] sm:$0xff] }
 0x53a   : > { %11497 = vst [vmem:[#allocation101_spill] sm:$0xff] %v9334_v38  ;;  %v2362_v11 = vsel %vm1973_vm4, %v9334_v38, 0.0  ;;  %v9352_v37 = vpop.xlane.xlu1 %2092 }
 0x53b   : > { %2360 = vadd.xlane.f32.xlu0 %v2359_v7  ;;  %v2363_v63 = vadd.f32 %v9330_v3, %v2362_v11  ;;  %v11501_v11 = vld [vmem:[#allocation102_spill] sm:$0xff] }
 0x53c   : > { %v9340_v19 = vpop.eup %7250 }
 0x53d   : > { %11498 = vst [vmem:[#allocation103_spill] sm:$0xff] %v9340_v19  ;;  %v9343_v9 = vpop.eup %7252  ;;  %2364 = vadd.xlane.f32.xlu1 %v2363_v63  ;;  %v7006_v63 = vunpack.i.l.bf16 %v11501_v11 }
 0x53e   : > { %11499 = vst [vmem:[#allocation111_spill] sm:$0xff] %v9343_v9  ;;  %v2366_v58 = vsel %vm1973_vm4, %v9343_v9, 0.0  ;;  %v2142_v9 = vsub.f32 %v9023_v54, %v2073_v57 }
 0x53f   : > { %v2367_v44 = vadd.f32 %v9340_v19, %v2366_v58  ;;  %v7007_v58 = vunpack.i.h.bf16 %v11501_v11  ;;  %v2145_v11 = vsub.f32 %v9045_v29, %v2077_v50 }
 0x540   : > { %v2250_v27 = vmul.f32 1.442695, %v2142_v9  ;;  %v2144_v9 = vsub.f32 %v9093_v33, %v2077_v50 }
 0x541   : > { %2368 = vadd.xlane.f32.xlu0 %v2367_v44  ;;  %v11502_v44 = vld [vmem:[#allocation42_spill] sm:$0xff] }
 0x542   : > { %v2254_v50 = vmul.f32 1.442695, %v2144_v9 }
 0x54d   : > { %v2277_v46 = vpop.xlane.xlu1 %2276 }
 0x54e   : > { %7254 = vrcp.f32 %v2277_v46  ;;  %7069 = vrot.lane.b32.xlu1 %v11500_v4, %s7709_s13  ;;  %v6567_v4 = vpack.c.bf16 %v7007_v58, %v7006_v63  ;;  %v2256_v58 = vmul.f32 1.442695, %v2145_v11  ;;  %v2152_v11 = vsub.f32 %v9122_v31, %v9352_v37 }
 0x551   : > { %v2281_v7 = vpop.xlane.xlu0 %2280 }
 0x552   : > { %7256 = vrcp.f32 %v2281_v7  ;;  %v2143_v7 = vsub.f32 %v8974_v32, %v2073_v57  ;;  %v11504_v32 = vmov 0.0|0.0   ;;  %v11505_v57 = vld [vmem:[#allocation83_spill] sm:$0xff] }
 0x553   : > { %v7011_v29 = vunpack.i.l.bf16 %v11505_v57 }
 0x555   : > { %v2285_v55 = vpop.xlane.xlu1 %2284 }
 0x556   : > { %7258 = vrcp.f32 %v2285_v55 }
 0x557   : > { %7064 = vrot.lane.b32.xlu0 %v11502_v44, %s7709_s13  ;;  %v2147_v44 = vsub.f32 %v9012_v12, %v9345_v20 }
 0x558   : > { %v7255_v19 = vpop.eup %7254 }
 0x559   : > { %v2289_v3 = vpop.xlane.xlu0 %2288  ;;  %v2425_v46 = vmul.f32 %v7255_v19, %v9138_v45  ;;  %v2424_v38 = vmul.f32 %v7255_v19, %v9136_v17  ;;  %v7012_v19 = vunpack.i.h.bf16 %v11505_v57 }
 0x55a   : > { %7260 = vrcp.f32 %v2289_v3 }
 0x55b   : > { %5892 = vmatprep.mubr.msk.f32.mxu0 %vm1973_vm4, %v2425_v46  ;;  %v6571_v33 = vpack.c.bf16 %v7012_v19, %v7011_v29  ;;  %v2270_v19 = vmul.f32 1.442695, %v2152_v11 }
 0x55c   : > { %v7257_v55 = vpop.eup %7256  ;;  %2729 = vmatmul.mubr.f32.vlgmr.msra.gmra.mrb[30].mxu0 %v2424_v38  ;;  %v2252_v38 = vmul.f32 1.442695, %v2143_v7 }
 0x55d   : > { %6569 = vmatpush1.bf16.xpose.msk.msra.mxu0 %vm8294_vm3, %v6567_v4  ;;  %v2293_v45 = vpop.xlane.xlu1 %2292  ;;  %v2427_v17 = vmul.f32 %v7257_v55, %v9147_v5  ;;  %v2426_v3 = vmul.f32 %v7257_v55, %v9145_v36  ;;  %v2146_v4 = vsub.f32 %v9063_v42, %v9345_v20  ;;  %v2149_v36 = vsub.f32 %v9081_v59, %v9354_v30 }
 0x55e   : > { %7262 = vrcp.f32 %v2293_v45  ;;  %6570 = vmatprep.subr.bf16.mxu0 %v11504_v32  ;;  %v2260_v5 = vmul.f32 1.442695, %v2147_v44  ;;  %v2148_v55 = vsub.f32 %v9117_v10, %v9354_v30  ;;  %v7017_v10 = vunpack.i.h.bf16 %v8987_v53 }
 0x55f   : > { %5893 = vmatprep.mubr.msk.f32.mxu0 %vm1973_vm4, %v2427_v17  ;;  %7264 = vpow2.f32 %v2250_v27  ;;  %v2264_v59 = vmul.f32 1.442695, %v2149_v36  ;;  %v2153_v27 = vsub.f32 %v9088_v2, %v9352_v37  ;;  %v2258_v20 = vmul.f32 1.442695, %v2146_v4 }
 0x560   : > { %v7259_v12 = vpop.eup %7258  ;;  %2734 = vmatmul.mubr.f32.gmra.mrb[32].mxu0 %v2426_v3  ;;  %v7016_v30 = vunpack.i.l.bf16 %v8987_v53  ;;  %v2262_v2 = vmul.f32 1.442695, %v2148_v55 }
 0x561   : > { %v2297_v63 = vpop.xlane.xlu0 %2296  ;;  %v2429_v46 = vmul.f32 %v7259_v12, %v9156_v15  ;;  %v2428_v7 = vmul.f32 %v7259_v12, %v9154_v56  ;;  %v2272_v17 = vmul.f32 1.442695, %v2153_v27  ;;  %v11506_v12 = vld [vmem:[#allocation84_spill] sm:$0xff] }
 0x562   : > { %7266 = vrcp.f32 %v2297_v63  ;;  %v6575_v53 = vpack.c.bf16 %v7017_v10, %v7016_v30  ;;  %v7022_v4 = vunpack.i.h.bf16 %v11506_v12  ;;  %v11507_v30 = vld [vmem:[#allocation104_spill] sm:$0xff] }
 0x563   : > { %7268 = vpow2.f32 %v2252_v38  ;;  %5894 = vmatprep.mubr.msk.f32.mxu0 %vm1973_vm4, %v2429_v46  ;;  %v7026_v11 = vunpack.i.l.bf16 %v11507_v30 }
 0x564   : > { %v7261_v42 = vpop.eup %7260  ;;  %7270 = vpow2.f32 %v2256_v58  ;;  %2739 = vmatmul.mubr.f32.gmra.mrb[34].mxu0 %v2428_v7  ;;  %v7021_v58 = vunpack.i.l.bf16 %v11506_v12 }
 0x565   : > { %7272 = vpow2.f32 %v2260_v5  ;;  %6573 = vmatpush1.bf16.xpose.msk.msra.mxu0 %vm8294_vm3, %v6571_v33  ;;  %v2301_v56 = vpop.xlane.xlu1 %2300  ;;  %v2431_v15 = vmul.f32 %v7261_v42, %v9165_v48  ;;  %v2430_v44 = vmul.f32 %v7261_v42, %v9163_v22 }
 0x566   : > { %7274 = vrcp.f32 %v2301_v56  ;;  %6574 = vmatprep.subr.bf16.mxu0 %v11504_v32  ;;  %v6579_v55 = vpack.c.bf16 %v7022_v4, %v7021_v58 }
 0x567   : > { %7276 = vpow2.f32 %v2254_v50  ;;  %5895 = vmatprep.mubr.msk.f32.mxu0 %vm1973_vm4, %v2431_v15 }
 0x568   : > { %v7263_v45 = vpop.eup %7262  ;;  %7278 = vpow2.f32 %v2264_v59  ;;  %2744 = vmatmul.mubr.f32.gmra.mrb[36].mxu0 %v2430_v44 }
 0x569   : > { %7280 = vpow2.f32 %v2258_v20  ;;  %v2305_v22 = vpop.xlane.xlu0 %2304  ;;  %v2433_v48 = vmul.f32 %v7263_v45, %v9174_v24  ;;  %v2432_v3 = vmul.f32 %v7263_v45, %v9172_v14  ;;  %v9402_v57 = vpop.eup %7264 }
 0x56a   : > { %7282 = vrcp.f32 %v2305_v22 }
 0x56b   : > { %7284 = vpow2.f32 %v2262_v2  ;;  %5896 = vmatprep.mubr.msk.f32.mxu0 %vm1973_vm4, %v2433_v48  ;;  %v7027_v2 = vunpack.i.h.bf16 %v11507_v30 }
 0x56c   : > { %v7267_v31 = vpop.eup %7266  ;;  %7286 = vpow2.f32 %v2272_v17  ;;  %2749 = vmatmul.mubr.f32.gmra.mrb[38].mxu0 %v2432_v3 }
 0x56d   : > { %v9405_v37 = vpop.eup %7268  ;;  %6577 = vmatpush1.bf16.xpose.msk.msra.mxu0 %vm8294_vm3, %v6575_v53  ;;  %v2309_v29 = vpop.xlane.xlu1 %2308  ;;  %v2435_v24 = vmul.f32 %v7267_v31, %v9183_v13  ;;  %v2434_v14 = vmul.f32 %v7267_v31, %v9181_v49 }
 0x56e   : > { %v9411_v38 = vpop.eup %7270  ;;  %7288 = vrcp.f32 %v2309_v29  ;;  %6578 = vmatprep.subr.bf16.mxu0 %v11504_v32  ;;  %v2370_v13 = vsel %vm1973_vm4, %v9405_v37, 0.0 }
 0x56f   : > { %v9414_v9 = vpop.eup %7272  ;;  %7290 = vpow2.f32 %v2270_v19  ;;  %5897 = vmatprep.mubr.msk.f32.mxu0 %vm1973_vm4, %v2435_v24  ;;  %v2374_v7 = vsel %vm1973_vm4, %v9411_v38, 0.0  ;;  %v2371_v42 = vadd.f32 %v9402_v57, %v2370_v13  ;;  %v6583_v19 = vpack.c.bf16 %v7027_v2, %v7026_v11 }
 0x570   : > { %v7275_v36 = vpop.eup %7274  ;;  %2754 = vmatmul.mubr.f32.gmra.mrb[40].mxu0 %v2434_v14  ;;  %v11508_v14 = vld [vmem:[#allocation85_spill] sm:$0xff] }
 0x571   : > { %v9421_v49 = vpop.eup %7276  ;;  %v2313_v5 = vpop.xlane.xlu0 %2312  ;;  %v2437_v63 = vmul.f32 %v7275_v36, %v9192_v8  ;;  %v2436_v46 = vmul.f32 %v7275_v36, %v9190_v35  ;;  %v2378_v35 = vsel %vm1973_vm4, %v9414_v9, 0.0  ;;  %v7032_v12 = vunpack.i.h.bf16 %v11508_v14 }
 0x572   : > { %v9427_v33 = vpop.eup %7278  ;;  %7292 = vrcp.f32 %v2313_v5  ;;  %v2375_v27 = vadd.f32 %v9421_v49, %v2374_v7  ;;  %2372 = vadd.xlane.f32.xlu1 %v2371_v42  ;;  %v7031_v4 = vunpack.i.l.bf16 %v11508_v14 }
 0x573   : > { %v9429_v50 = vpop.eup %7280  ;;  %5898 = vmatprep.mubr.msk.f32.mxu0 %vm1973_vm4, %v2437_v63  ;;  %v2382_v44 = vsel %vm1973_vm4, %v9427_v33, 0.0 }
 0x574   : > { %v7283_v59 = vpop.eup %7282  ;;  %2759 = vmatmul.mubr.f32.gmra.mrb[42].mxu0 %v2436_v46  ;;  %v2379_v45 = vadd.f32 %v9429_v50, %v2378_v35  ;;  %v11511_v35 = vld [vmem:[#allocation90_spill] sm:$0xff] }
 0x575   : > { %v9436_v8 = vpop.eup %7284  ;;  %6581 = vmatpush1.bf16.xpose.msk.msra.mxu0 %vm8294_vm3, %v6579_v55  ;;  %v2317_v20 = vpop.xlane.xlu1 %2316  ;;  %v2439_v56 = vmul.f32 %v7283_v59, %v9201_v52  ;;  %v2438_v15 = vmul.f32 %v7283_v59, %v9199_v43  ;;  %v11509_v59 = vld [vmem:[#allocation48_spill] sm:$0xff] }
 0x576   : > { %v9444_v10 = vpop.eup %7286  ;;  %7294 = vrcp.f32 %v2317_v20  ;;  %2376 = vadd.xlane.f32.xlu0 %v2375_v27  ;;  %6582 = vmatprep.subr.bf16.mxu0 %v11504_v32  ;;  %v2383_v43 = vadd.f32 %v9436_v8, %v2382_v44  ;;  %v11510_v27 = vld [vmem:[#allocation92_spill] sm:$0xff]  ;;  %v11512_v44 = vld [vmem:[#allocation94_spill] sm:$0xff] }
 0x577   : > { %5899 = vmatprep.mubr.msk.f32.mxu0 %vm1973_vm4, %v2439_v56  ;;  %2380 = vadd.xlane.f32.xlu1 %v2379_v45  ;;  %v2390_v53 = vsel %vm1973_vm4, %v9444_v10, 0.0  ;;  %v11514_v45 = vld [vmem:[#allocation86_spill] sm:$0xff] }
 0x578   : > { %v7289_v52 = vpop.eup %7288  ;;  %2764 = vmatmul.mubr.f32.gmra.mrb[44].mxu0 %v2438_v15 }
 0x579   : > { %v9452_v17 = vpop.eup %7290  ;;  %v2321_v22 = vpop.xlane.xlu0 %2320  ;;  %v2441_v48 = vmul.f32 %v7289_v52, %v9210_v62  ;;  %v2440_v3 = vmul.f32 %v7289_v52, %v9208_v28  ;;  %v7042_v52 = vunpack.i.h.bf16 %v11514_v45 }
 0x57a   : > { %7296 = vrcp.f32 %v2321_v22  ;;  %2384 = vadd.xlane.f32.xlu0 %v2383_v43  ;;  %v2391_v29 = vadd.f32 %v9452_v17, %v2390_v53  ;;  %v7041_v43 = vunpack.i.l.bf16 %v11514_v45  ;;  %v11515_v22 = vld [vmem:[#allocation96_spill] sm:$0xff] }
 0x57b   : > { %5900 = vmatprep.mubr.msk.f32.mxu0 %vm1973_vm4, %v2441_v48 }
 0x57c   : > { %v7293_v31 = vpop.eup %7292  ;;  %2769 = vmatmul.mubr.f32.gmra.mrb[46].mxu0 %v2440_v3  ;;  %v11516_v3 = vld [vmem:[#allocation93_spill] sm:$0xff] }
 0x57d   : > { %6585 = vmatpush1.bf16.xpose.msk.msra.mxu0 %vm8294_vm3, %v6583_v19  ;;  %v2443_v24 = vmul.f32 %v7293_v31, %v9219_v23  ;;  %v2442_v62 = vmul.f32 %v7293_v31, %v9217_v26  ;;  %v2325_v28 = vpop.xlane.xlu1 %2324  ;;  %v6587_v26 = vpack.c.bf16 %v7032_v12, %v7031_v4  ;;  %v6595_v31 = vpack.c.bf16 %v7042_v52, %v7041_v43  ;;  %v11520_v12 = vld [vmem:[#allocation95_spill] sm:$0xff] }
 0x57e   : > { %2392 = vadd.xlane.f32.xlu0 %v2391_v29  ;;  %6586 = vmatprep.subr.bf16.mxu0 %v11504_v32  ;;  %7298 = vrcp.f32 %v2325_v28  ;;  %v11517_v29 = vld [vmem:[#allocation105_spill] sm:$0xff]  ;;  %v11519_v28 = vld [vmem:[#allocation98_spill] sm:$0xff] }
 0x57f   : > { %5901 = vmatprep.mubr.msk.f32.mxu0 %vm1973_vm4, %v2443_v24  ;;  %v2151_v24 = vsub.f32 %v11517_v29, %v9350_v16  ;;  %v11537_v29 = vld [vmem:[#allocation8_spill] sm:$0xff] }
 0x580   : > { %v7295_v58 = vpop.eup %7294  ;;  %2774 = vmatmul.mubr.f32.gmra.mrb[48].mxu0 %v2442_v62  ;;  %v11518_v62 = vld [vmem:[#allocation51_spill] sm:$0xff] }
 0x581   : > { %v2329_v36 = vpop.xlane.xlu0 %2328  ;;  %v2445_v13 = vmul.f32 %v7295_v58, %v9228_v25  ;;  %v2444_v23 = vmul.f32 %v7295_v58, %v9226_v21  ;;  %v7037_v21 = vunpack.i.h.bf16 %v9102_v61  ;;  %v7036_v25 = vunpack.i.l.bf16 %v9102_v61  ;;  %v11513_v61 = vld [vmem:[#allocation91_spill] sm:$0xff]  ;;  %v11521_v58 = vld [vmem:[#allocation106_spill] sm:$0xff] }
 0x582   : > { %7300 = vrcp.f32 %v2329_v36  ;;  %v2150_v36 = vsub.f32 %v11521_v58, %v9350_v16 }
 0x583   : > { %5902 = vmatprep.mubr.msk.f32.mxu0 %vm1973_vm4, %v2445_v13  ;;  %v6591_v56 = vpack.c.bf16 %v7037_v21, %v7036_v25  ;;  %v11525_v25 = vld [vmem:[#allocation97_spill] sm:$0xff] }
 0x584   : > { %v7297_v5 = vpop.eup %7296  ;;  %2779 = vmatmul.mubr.f32.gmra.mrb[50].mxu0 %v2444_v23  ;;  %v11522_v23 = vld [vmem:[#allocation107_spill] sm:$0xff]  ;;  %v2266_v16 = vmul.f32 1.442695, %v2150_v36 }
 0x585   : > { %6589 = vmatpush1.bf16.xpose.msk.msra.mxu0 %vm8294_vm3, %v6587_v26  ;;  %v2333_v63 = vpop.xlane.xlu1 %2332  ;;  %v2447_v46 = vmul.f32 %v7297_v5, %v9237_v0  ;;  %v2446_v7 = vmul.f32 %v7297_v5, %v9235_v18  ;;  %v7047_v26 = vunpack.i.h.bf16 %v11522_v23  ;;  %v7046_v5 = vunpack.i.l.bf16 %v11522_v23  ;;  %v11541_v36 = vld [vmem:[#allocation11_spill] sm:$0xff] }
 0x586   : > { %7302 = vrcp.f32 %v2333_v63  ;;  %6590 = vmatprep.subr.bf16.mxu0 %v11504_v32  ;;  %v2268_v63 = vmul.f32 1.442695, %v2151_v24 }
 0x587   : > { %5903 = vmatprep.mubr.msk.f32.mxu0 %vm1973_vm4, %v2447_v46  ;;  %v11523_v46 = vld [vmem:[#allocation13_spill] sm:$0xff] }
 0x588   : > { %2784 = vmatmul.mubr.f32.gmra.mrb[52].mxu0 %v2446_v7  ;;  %v7299_v55 = vpop.eup %7298  ;;  %7074 = vrot.lane.b32.xlu1 %v11509_v59, %s7709_s13  ;;  %v11524_v7 = vld [vmem:[#allocation108_spill] sm:$0xff] }
 0x589   : > { %v2337_v42 = vpop.xlane.xlu0 %2336  ;;  %v2449_v0 = vmul.f32 %v7299_v55, %v11510_v27  ;;  %v2448_v18 = vmul.f32 %v7299_v55, %v11511_v35  ;;  %v11526_v27 = vld [vmem:[#allocation16_spill] sm:$0xff] }
 0x58a   : > { %7304 = vrcp.f32 %v2337_v42  ;;  %v6599_v42 = vpack.c.bf16 %v7047_v26, %v7046_v5 }
 0x58b   : > { %5904 = vmatprep.mubr.msk.f32.mxu0 %vm1973_vm4, %v2449_v0  ;;  %v11527_v0 = vld [vmem:[#allocation110_spill] sm:$0xff] }
 0x58c   : > { %v7301_v20 = vpop.eup %7300  ;;  %2789 = vmatmul.mubr.f32.gmra.mrb[54].mxu0 %v2448_v18  ;;  %v7057_v35 = vunpack.i.h.bf16 %v11527_v0  ;;  %v7056_v18 = vunpack.i.l.bf16 %v11527_v0  ;;  %v11546_v0 = vld [vmem:[#allocation15_spill] sm:$0xff] }
 0x58d   : > { %v2341_v15 = vpop.xlane.xlu1 %2340  ;;  %v2451_v30 = vmul.f32 %v7301_v20, %v11512_v44  ;;  %v2450_v2 = vmul.f32 %v7301_v20, %v11513_v61  ;;  %6593 = vmatpush1.bf16.xpose.msk.msra.mxu0 %vm8294_vm3, %v6591_v56  ;;  %v11528_v20 = vld [vmem:[#allocation19_spill] sm:$0xff] }
 0x58e   : > { %7306 = vrcp.f32 %v2341_v15  ;;  %6594 = vmatprep.subr.bf16.mxu0 %v11504_v32  ;;  %v6603_v56 = vpack.c.bf16 %v7057_v35, %v7056_v18  ;;  %v11529_v15 = vld [vmem:[#allocation22_spill] sm:$0xff] }
 0x58f   : > { %5905 = vmatprep.mubr.msk.f32.mxu0 %vm1973_vm4, %v2451_v30  ;;  %7308 = vpow2.f32 %v2268_v63  ;;  %v11530_v30 = vld [vmem:[#allocation109_spill] sm:$0xff]  ;;  %v11543_v63 = vld [vmem:[#allocation10_spill] sm:$0xff] }
 0x590   : > { %v7303_v11 = vpop.eup %7302  ;;  %2794 = vmatmul.mubr.f32.gmra.mrb[56].mxu0 %v2450_v2  ;;  %7310 = vpow2.f32 %v2266_v16  ;;  %v7062_v61 = vunpack.i.h.bf16 %v11530_v30  ;;  %v7061_v2 = vunpack.i.l.bf16 %v11530_v30  ;;  %v11548_v30 = vld [vmem:[#allocation21_spill] sm:$0xff] }
 0x591   : > { %v2453_v48 = vmul.f32 %v7303_v11, %v11515_v22  ;;  %v2452_v53 = vmul.f32 %v7303_v11, %v11516_v3  ;;  %v11531_v11 = vld [vmem:[#allocation25_spill] sm:$0xff]  ;;  %v11533_v3 = vld [vmem:[#allocation31_spill] sm:$0xff] }
 0x592   : > { %v6607_v43 = vpack.c.bf16 %v7062_v61, %v7061_v2 }
 0x593   : > { %5906 = vmatprep.mubr.msk.f32.mxu0 %vm1973_vm4, %v2453_v48  ;;  %v11532_v48 = vld [vmem:[#allocation28_spill] sm:$0xff] }
 0x594   : > { %v7305_v19 = vpop.eup %7304  ;;  %7079 = vrot.lane.b32.xlu0 %v11518_v62, %s7709_s13  ;;  %2799 = vmatmul.mubr.f32.gmra.mrb[58].mxu0 %v2452_v53  ;;  %v11534_v53 = vld [vmem:[#allocation34_spill] sm:$0xff]  ;;  %s353_s13 = sand.u32 1, %s7694_s16  }
 0x595   : > { %v2455_v14 = vmul.f32 %v7305_v19, %v11519_v28  ;;  %v2454_v4 = vmul.f32 %v7305_v19, %v11520_v12  ;;  %6597 = vmatpush1.bf16.xpose.msk.msra.mxu0 %vm8294_vm3, %v6595_v31  ;;  %v11535_v19 = vld [vmem:[#allocation37_spill] sm:$0xff]  ;;  %v11536_v31 = vld [vmem:[#allocation40_spill] sm:$0xff]  ;;  %v11538_v28 = vld [vmem:[#allocation43_spill] sm:$0xff]  ;;  %s5662_s30 = scalar_lea.sflag [#allocation5], %s353_s13 }
 0x596   : > { %6598 = vmatprep.subr.bf16.mxu0 %v11504_v32 }
 0x597   : > { %5907 = vmatprep.mubr.msk.f32.mxu0 %vm1973_vm4, %v2455_v14  ;;  %v11539_v14 = vld [vmem:[#allocation7_spill] sm:$0xff] }
 0x598   : > { %v7307_v13 = vpop.eup %7306  ;;  %2919 = vrot.lane.b32.xlu0 %v11523_v46, %s7710_s21  ;;  %2804 = vmatmul.mubr.f32.gmra.mrb[60].mxu0 %v2454_v4  ;;  %v11540_v4 = vld [vmem:[#allocation46_spill] sm:$0xff]  ;;  %v11544_v46 = vld [vmem:[#allocation12_spill] sm:$0xff] }
 0x599   : > { %v2457_v21 = vmul.f32 %v7307_v13, %v11524_v7  ;;  %v2456_v55 = vmul.f32 %v7307_v13, %v11525_v25  ;;  %v9525_v44 = vpop.eup %7308  ;;  %v11542_v13 = vld [vmem:[#allocation49_spill] sm:$0xff] }
 0x59a   : > { %v9534_v45 = vpop.eup %7310  ;;  %v2386_v52 = vsel %vm1973_vm4, %v9525_v44, 0.0 }
 0x59b   : > { %5908 = vmatprep.mubr.msk.f32.mxu0 %vm1973_vm4, %v2457_v21  ;;  %v2387_v22 = vadd.f32 %v9534_v45, %v2386_v52  ;;  %v11549_v52 = vld [vmem:[#allocation20_spill] sm:$0xff] }
 0x59c   : > { %2923 = vrot.lane.b32.xlu0 %v11526_v27, %s7710_s21  ;;  %2809 = vmatmul.mubr.f32.gmra.mrb[62].mxu0 %v2456_v55 }
 0x59d   : > { %6601 = vmatpush1.bf16.xpose.msk.msra.mxu0 %vm8294_vm3, %v6599_v42  ;;  %v11545_v42 = vld [vmem:[#allocation14_spill] sm:$0xff] }
 0x59e   : > { %6602 = vmatprep.subr.bf16.mxu0 %v11504_v32 }
 0x5a0   : > { %2927 = vrot.lane.b32.xlu0 %v11528_v20, %s7710_s21  ;;  %v11547_v20 = vld [vmem:[#allocation17_spill] sm:$0xff] }
 0x5a4   : > { %2931 = vrot.lane.b32.xlu0 %v11529_v15, %s7710_s21 }
 0x5a5   : > { %6605 = vmatpush1.bf16.xpose.msk.msra.mxu0 %vm8294_vm3, %v6603_v56 }
 0x5a6   : > { %6606 = vmatprep.subr.bf16.mxu0 %v11504_v32 }
 0x5a8   : > { %2935 = vrot.lane.b32.xlu0 %v11531_v11, %s7710_s21 }
 0x5ac   : > { %2939 = vrot.lane.b32.xlu0 %v11532_v48, %s7710_s21  ;;  %2388 = vadd.xlane.f32.xlu1 %v2387_v22 }
 0x5ad   : > { %6609 = vmatpush1.bf16.xpose.msk.msra.mxu0 %vm8294_vm3, %v6607_v43  ;;  %v11550_v43 = vld [vmem:[#allocation24_spill] sm:$0xff] }
 0x5ae   : > { %6610 = vmatprep.subr.bf16.mxu0 %v11504_v32 }
 0x5b0   : > { %2943 = vrot.lane.b32.xlu0 %v11533_v3, %s7710_s21 }
 0x5b4   : > { %2947 = vrot.lane.b32.xlu0 %v11534_v53, %s7710_s21  ;;  %v11551_v53 = vld [vmem:[#allocation23_spill] sm:$0xff] }
 0x5b8   : > { %2951 = vrot.lane.b32.xlu0 %v11535_v19, %s7710_s21  ;;  %v11552_v19 = vld [vmem:[#allocation30_spill] sm:$0xff] }
 0x5bc   : > { %2955 = vrot.lane.b32.xlu0 %v11536_v31, %s7710_s21  ;;  %v11553_v31 = vld [vmem:[#allocation99_spill] sm:$0xff] }
 0x5bd   : > { %2909 = vrot.lane.b32.xlu1 %v11537_v29, %s7710_s21  ;;  %v2345_v24 = vpop.xlane.xlu0 %2344 }
 0x5be   : > { %7312 = vrcp.f32 %v2345_v24 }
 0x5c0   : > { %2959 = vrot.lane.b32.xlu0 %v11538_v28, %s7710_s21 }
 0x5c1   : > { %2911 = vrot.lane.b32.xlu1 %v11539_v14, %s7710_s21 }
 0x5c2   : > { %v2349_v12 = vpop.xlane.xlu1 %2348 }
 0x5c3   : > { %7314 = vrcp.f32 %v2349_v12  ;;  %v11555_v12 = vld [vmem:[#allocation26_spill] sm:$0xff] }
 0x5c4   : > { %2963 = vrot.lane.b32.xlu0 %v11540_v4, %s7710_s21  ;;  %v2353_v58 = vpop.xlane.xlu0 %2352  ;;  %v11557_v4 = vld [vmem:[#allocation100_spill] sm:$0xff] }
 0x5c5   : > { %7316 = vrcp.f32 %v2353_v58  ;;  %2913 = vrot.lane.b32.xlu1 %v11541_v36, %s7710_s21  ;;  %v11558_v36 = vld [vmem:[#allocation111_spill] sm:$0xff] }
 0x5c6   : > { %v2357_v23 = vpop.xlane.xlu1 %2356 }
 0x5c7   : > { %7318 = vrcp.f32 %v2357_v23  ;;  %v11559_v23 = vld [vmem:[#allocation29_spill] sm:$0xff] }
 0x5c8   : > { %2967 = vrot.lane.b32.xlu0 %v11542_v13, %s7710_s21  ;;  %v2361_v26 = vpop.xlane.xlu0 %2360  ;;  %v7313_v5 = vpop.eup %7312 }
 0x5c9   : > { %2915 = vrot.lane.b32.xlu1 %v11543_v63, %s7710_s21  ;;  %v2459_v7 = vmul.f32 %v7313_v5, %v9297_v41  ;;  %v2458_v21 = vmul.f32 %v7313_v5, %v9299_v40  ;;  %7320 = vrcp.f32 %v2361_v26  ;;  %v11560_v26 = vld [vmem:[#allocation42_spill] sm:$0xff]  ;;  %v11561_v5 = vld [vmem:[#allocation103_spill] sm:$0xff] }
 0x5ca   : > { %v2365_v25 = vpop.xlane.xlu1 %2364 }
 0x5cb   : > { %5909 = vmatprep.mubr.msk.f32.mxu0 %vm1973_vm4, %v2459_v7  ;;  %7322 = vrcp.f32 %v2365_v25  ;;  %v11563_v7 = vld [vmem:[#allocation35_spill] sm:$0xff]  ;;  %v11565_v25 = vld [vmem:[#allocation41_spill] sm:$0xff] }
 0x5cc   : > { %7089 = vrot.lane.b32.xlu0 %v11544_v46, %s7711_s22  ;;  %2814 = vmatmul.mubr.f32.gmra.mrb[64].mxu0 %v2458_v21  ;;  %v11562_v46 = vld [vmem:[#allocation32_spill] sm:$0xff]  ;;  %v11564_v21 = vld [vmem:[#allocation38_spill] sm:$0xff] }
 0x5cd   : > { %v7315_v16 = vpop.eup %7314  ;;  %2917 = vrot.lane.b32.xlu1 %v11545_v42, %s7710_s21  ;;  %v11568_v42 = vld [vmem:[#allocation50_spill] sm:$0xff] }
 0x5ce   : > { %v2369_v55 = vpop.xlane.xlu0 %2368  ;;  %v2461_v35 = vmul.f32 %v7315_v16, %v9307_v39  ;;  %v2460_v41 = vmul.f32 %v7315_v16, %v9305_v1  ;;  %v11567_v16 = vld [vmem:[#allocation47_spill] sm:$0xff] }
 0x5cf   : > { %v7317_v27 = vpop.eup %7316  ;;  %7324 = vrcp.f32 %v2369_v55  ;;  %v11566_v55 = vld [vmem:[#allocation44_spill] sm:$0xff] }
 0x5d0   : > { %7094 = vrot.lane.b32.xlu0 %v11546_v0, %s7711_s22  ;;  %5910 = vmatprep.mubr.msk.f32.mxu0 %vm1973_vm4, %v2461_v35  ;;  %v2463_v18 = vmul.f32 %v7317_v27, %v9312_v47  ;;  %v2462_v61 = vmul.f32 %v7317_v27, %v9310_v34  ;;  %v7070_v47 = vpop.permute.xlu1 %7069  ;;  %v11569_v0 = vld [vmem:[#allocation9_spill] sm:$0xff] }
 0x5d1   : > { %2921 = vrot.lane.b32.xlu1 %v11547_v20, %s7710_s21  ;;  %2819 = vmatmul.mubr.f32.gmra.mrb[66].mxu0 %v2460_v41  ;;  %v7319_v39 = vpop.eup %7318  ;;  %v7072_v34 = vunpack.i.h.bf16 %v7070_v47 }
 0x5d2   : > { %v7065_v40 = vpop.permute.xlu0 %7064  ;;  %5911 = vmatprep.mubr.msk.f32.mxu0 %vm1973_vm4, %v2463_v18  ;;  %v2465_v2 = vmul.f32 %v7319_v39, %v9318_v51  ;;  %v2464_v22 = vmul.f32 %v7319_v39, %v9316_v60  ;;  %v7071_v51 = vunpack.i.l.bf16 %v7070_v47  ;;  %v11554_v60 = vld [vmem:[#allocation101_spill] sm:$0xff] }
 0x5d3   : > { %v7067_v56 = vunpack.i.h.bf16 %v7065_v40  ;;  %v7066_v15 = vunpack.i.l.bf16 %v7065_v40  ;;  %v7321_v11 = vpop.eup %7320  ;;  %v11570_v40 = vld [vmem:[#allocation18_spill] sm:$0xff] }
 0x5d4   : > { %7104 = vrot.lane.b32.xlu0 %v11548_v30, %s7711_s22  ;;  %v2467_v48 = vmul.f32 %v7321_v11, %v9326_v6  ;;  %v2466_v29 = vmul.f32 %v7321_v11, %v11553_v31  ;;  %v6615_v24 = vpack.c.bf16 %v7072_v34, %v7071_v51  ;;  %v11556_v6 = vld [vmem:[#allocation36_spill] sm:$0xff]  ;;  %v11571_v30 = vld [vmem:[#allocation27_spill] sm:$0xff] }
 0x5d5   : > { %v6611_v1 = vpack.c.bf16 %v7067_v56, %v7066_v15  ;;  %2925 = vrot.lane.b32.xlu1 %v11549_v52, %s7710_s21  ;;  %2824 = vmatmul.mubr.f32.gmra.mrb[68].mxu0 %v2462_v61  ;;  %v7323_v3 = vpop.eup %7322  ;;  %v11572_v52 = vld [vmem:[#allocation33_spill] sm:$0xff] }
 0x5d6   : > { %5912 = vmatprep.mubr.msk.f32.mxu0 %vm1973_vm4, %v2465_v2  ;;  %v2469_v28 = vmul.f32 %v7323_v3, %v11554_v60  ;;  %v2468_v58 = vmul.f32 %v7323_v3, %v11557_v4  ;;  %v11573_v3 = vld [vmem:[#allocation39_spill] sm:$0xff] }
 0x5d7   : > { %6613 = vmatpush1.bf16.xpose.msk.msra.mxu0 %vm8294_vm3, %v6611_v1 }
 0x5d8   : > { %7109 = vrot.lane.b32.xlu0 %v11550_v43, %s7711_s22  ;;  %6614 = vmatprep.subr.bf16.mxu0 %v11504_v32 }
 0x5d9   : > { %2929 = vrot.lane.b32.xlu1 %v11551_v53, %s7710_s21  ;;  %2829 = vmatmul.mubr.f32.gmra.mrb[70].mxu0 %v2464_v22  ;;  %v7325_v14 = vpop.eup %7324 }
 0x5da   : > { %5913 = vmatprep.mubr.msk.f32.mxu0 %vm1973_vm4, %v2467_v48  ;;  %v2471_v13 = vmul.f32 %v7325_v14, %v11558_v36  ;;  %v2470_v63 = vmul.f32 %v7325_v14, %v11561_v5 }
 0x5dc   : > { %7119 = vrot.lane.b32.xlu0 %v11552_v19, %s7711_s22 }
 0x5dd   : > { %2933 = vrot.lane.b32.xlu1 %v11555_v12, %s7710_s21  ;;  %2834 = vmatmul.mubr.f32.gmra.mrb[72].mxu0 %v2466_v29 }
 0x5de   : > { %5914 = vmatprep.mubr.msk.f32.mxu0 %vm1973_vm4, %v2469_v28 }
 0x5df   : > { %6617 = vmatpush1.bf16.xpose.msk.msra.mxu0 %vm8294_vm3, %v6615_v24 }
 0x5e0   : > { %7129 = vrot.lane.b32.xlu0 %v11556_v6, %s7711_s22  ;;  %6618 = vmatprep.subr.bf16.mxu0 %v11504_v32 }
 0x5e1   : > { %2937 = vrot.lane.b32.xlu1 %v11559_v23, %s7710_s21  ;;  %2839 = vmatmul.mubr.f32.gmra.mrb[74].mxu0 %v2468_v58 }
 0x5e2   : > { %5915 = vmatprep.mubr.msk.f32.mxu0 %vm1973_vm4, %v2471_v13 }
 0x5e4   : > { %7139 = vrot.lane.b32.xlu0 %v11560_v26, %s7711_s22 }
 0x5e5   : > { %2941 = vrot.lane.b32.xlu1 %v11562_v46, %s7710_s21  ;;  %2844 = vmatmul.mubr.f32.gmra.mrb[76].mxu0 %v2470_v63 }
 0x5e9   : > { %2945 = vrot.lane.b32.xlu1 %v11563_v7, %s7710_s21 }
 0x5ed   : > { %2949 = vrot.lane.b32.xlu1 %v11564_v21, %s7710_s21 }
 0x5f1   : > { %2953 = vrot.lane.b32.xlu1 %v11565_v25, %s7710_s21 }
 0x5f5   : > { %2957 = vrot.lane.b32.xlu1 %v11566_v55, %s7710_s21 }
 0x5f9   : > { %2961 = vrot.lane.b32.xlu1 %v11567_v16, %s7710_s21 }
 0x5fd   : > { %2965 = vrot.lane.b32.xlu1 %v11568_v42, %s7710_s21 }
 0x5ff   : > { %v2373_v27 = vpop.xlane.xlu1 %2372 }
 0x600   : > { %7326 = vrcp.f32 %v2373_v27 }
 0x601   : > { %7084 = vrot.lane.b32.xlu1 %v11569_v0, %s7711_s22 }
 0x603   : > { %v2377_v35 = vpop.xlane.xlu0 %2376 }
 0x604   : > { %7328 = vrcp.f32 %v2377_v35  ;;  %v2381_v41 = vpop.xlane.xlu1 %2380 }
 0x605   : > { %7330 = vrcp.f32 %v2381_v41  ;;  %7099 = vrot.lane.b32.xlu1 %v11570_v40, %s7711_s22  ;;  %v11574_v40 = vmov 0.0  }
 0x607   : > { %v2385_v18 = vpop.xlane.xlu0 %2384 }
 0x608   : > { %v7075_v20 = vpop.permute.xlu1 %7074  ;;  %7332 = vrcp.f32 %v2385_v18 }
 0x609   : > { %v7077_v56 = vunpack.i.h.bf16 %v7075_v20  ;;  %v7076_v15 = vunpack.i.l.bf16 %v7075_v20  ;;  %7114 = vrot.lane.b32.xlu1 %v11571_v30, %s7711_s22 }
 0x60a   : > { %v7327_v1 = vpop.eup %7326 }
 0x60b   : > { %v2393_v39 = vpop.xlane.xlu0 %2392  ;;  %v6619_v61 = vpack.c.bf16 %v7077_v56, %v7076_v15  ;;  %v2473_v11 = vmul.f32 %v7327_v1, %v9405_v37  ;;  %v2472_v47 = vmul.f32 %v7327_v1, %v9402_v57 }
 0x60c   : > { %7334 = vrcp.f32 %v2393_v39 }
 0x60d   : > { %7124 = vrot.lane.b32.xlu1 %v11572_v52, %s7711_s22  ;;  %6621 = vmatpush1.bf16.xpose.msk.msra.mxu0 %vm8294_vm3, %v6619_v61 }
 0x60e   : > { %v7329_v2 = vpop.eup %7328  ;;  %5916 = vmatprep.mubr.msk.f32.mxu0 %vm1973_vm4, %v2473_v11  ;;  %6622 = vmatprep.subr.bf16.mxu0 %v11504_v32 }
 0x60f   : > { %v7080_v43 = vpop.permute.xlu0 %7079  ;;  %v2475_v22 = vmul.f32 %v7329_v2, %v9411_v38  ;;  %v7331_v48 = vpop.eup %7330  ;;  %2849 = vmatmul.mubr.f32.gmra.mrb[78].mxu0 %v2472_v47  ;;  %v2474_v37 = vmul.f32 %v7329_v2, %v9421_v49 }
 0x610   : > { %v7082_v34 = vunpack.i.h.bf16 %v7080_v43  ;;  %v7081_v51 = vunpack.i.l.bf16 %v7080_v43  ;;  %v2477_v53 = vmul.f32 %v7331_v48, %v9414_v9  ;;  %v2476_v38 = vmul.f32 %v7331_v48, %v9429_v50 }
 0x611   : > { %5917 = vmatprep.mubr.msk.f32.mxu0 %vm1973_vm4, %v2475_v22  ;;  %7134 = vrot.lane.b32.xlu1 %v11573_v3, %s7711_s22 }
 0x612   : > { %v6623_v57 = vpack.c.bf16 %v7082_v34, %v7081_v51  ;;  %v7333_v19 = vpop.eup %7332 }
 0x613   : > { %2854 = vmatmul.mubr.f32.gmra.mrb[80].mxu0 %v2474_v37  ;;  %v2479_v31 = vmul.f32 %v7333_v19, %v9427_v33  ;;  %v2478_v49 = vmul.f32 %v7333_v19, %v9436_v8  ;;  %v9662_v24 = vpop.permute.xlu0 %2919 }
 0x614   : > { %5918 = vmatprep.mubr.msk.f32.mxu0 %vm1973_vm4, %v2477_v53 }
 0x615   : > { %6625 = vmatpush1.bf16.xpose.msk.msra.mxu0 %vm8294_vm3, %v6623_v57 }
 0x616   : > { %6626 = vmatprep.subr.bf16.mxu0 %v11504_v32  ;;  %v7335_v26 = vpop.eup %7334 }
 0x617   : > { %2859 = vmatmul.mubr.f32.gmra.mrb[82].mxu0 %v2476_v38  ;;  %v9666_v28 = vpop.permute.xlu0 %2923  ;;  %v2483_v42 = vmul.f32 %v7335_v26, %v9444_v10  ;;  %v2482_v41 = vmul.f32 %v7335_v26, %v9452_v17 }
 0x618   : > { %5919 = vmatprep.mubr.msk.f32.mxu0 %vm1973_vm4, %v2479_v31 }
 0x61b   : > { %2864 = vmatmul.mubr.f32.gmra.mrb[84].mxu0 %v2478_v49  ;;  %v9669_v6 = vpop.permute.xlu0 %2927 }
 0x61f   : > { %v9672_v5 = vpop.permute.xlu0 %2931 }
 0x623   : > { %v9680_v27 = vpop.permute.xlu0 %2935 }
 0x627   : > { %v9686_v20 = vpop.permute.xlu0 %2939 }
 0x62b   : > { %v9693_v30 = vpop.permute.xlu0 %2943 }
 0x62f   : > { %v2730_v9 = vpop.f32.mrb[30].mxu0  ;;  %v9699_v47 = vpop.permute.xlu0 %2947 }
 0x630   : > { %2879 = vst.msk [vmem:[#allocation2] sm:$0xff] %vm1487_vm1, %v2730_v9  ;;  %v2732_v29 = vpop.f32.mrb[31].mxu0 }
 0x633   : > { %v2735_v54 = vpop.f32.mrb[32].mxu0  ;;  %v9706_v51 = vpop.permute.xlu0 %2951 }
 0x634   : > { %2880 = vst.msk [vmem:[#allocation2 + $0x8] sm:$0xff] %vm1487_vm1, %v2735_v54  ;;  %v2737_v50 = vpop.f32.mrb[33].mxu0 }
 0x637   : > { %v2740_v60 = vpop.f32.mrb[34].mxu0  ;;  %v9715_v19 = vpop.permute.xlu0 %2955 }
 0x638   : > { %2881 = vst.msk [vmem:[#allocation2 + $0x10] sm:$0xff] %vm1487_vm1, %v2740_v60  ;;  %v2742_v33 = vpop.f32.mrb[35].mxu0 }
 0x639   : > { %v2389_v14 = vpop.xlane.xlu1 %2388 }
 0x63a   : > { %7336 = vrcp.f32 %v2389_v14 }
 0x63b   : > { %v2745_v8 = vpop.f32.mrb[36].mxu0  ;;  %v9725_v29 = vpop.permute.xlu0 %2959 }
 0x63c   : > { %2882 = vst.msk [vmem:[#allocation2 + $0x18] sm:$0xff] %vm1487_vm1, %v2745_v8  ;;  %v2747_v12 = vpop.f32.mrb[37].mxu0 }
 0x63d   : > { %v2910_v4 = vpop.permute.xlu1 %2909 }
 0x63f   : > { %v2750_v58 = vpop.f32.mrb[38].mxu0  ;;  %v9735_v33 = vpop.permute.xlu0 %2963 }
 0x640   : > { %2883 = vst.msk [vmem:[#allocation2 + $0x20] sm:$0xff] %vm1487_vm1, %v2750_v58  ;;  %v2752_v36 = vpop.f32.mrb[39].mxu0 }
 0x641   : > { %v2912_v13 = vpop.permute.xlu1 %2911 }
 0x643   : > { %v2755_v23 = vpop.f32.mrb[40].mxu0  ;;  %v9743_v14 = vpop.permute.xlu0 %2967 }
 0x644   : > { %2884 = vst.msk [vmem:[#allocation2 + $0x28] sm:$0xff] %vm1487_vm1, %v2755_v23  ;;  %v2757_v63 = vpop.f32.mrb[41].mxu0  ;;  %v7337_v46 = vpop.eup %7336 }
 0x645   : > { %v2914_v7 = vpop.permute.xlu1 %2913  ;;  %v2481_v21 = vmul.f32 %v7337_v46, %v9525_v44  ;;  %v2480_v25 = vmul.f32 %v7337_v46, %v9534_v45 }
 0x647   : > { %v2760_v55 = vpop.f32.mrb[42].mxu0  ;;  %5920 = vmatprep.mubr.msk.f32.mxu0 %vm1973_vm4, %v2481_v21 }
 0x648   : > { %2885 = vst.msk [vmem:[#allocation2 + $0x30] sm:$0xff] %vm1487_vm1, %v2760_v55  ;;  %v2762_v16 = vpop.f32.mrb[43].mxu0  ;;  %2869 = vmatmul.mubr.f32.gmra.mrb[86].mxu0 %v2480_v25 }
 0x649   : > { %5921 = vmatprep.mubr.msk.f32.mxu0 %vm1973_vm4, %v2483_v42  ;;  %v2916_v0 = vpop.permute.xlu1 %2915 }
 0x64b   : > { %v2765_v35 = vpop.f32.mrb[44].mxu0 }
 0x64c   : > { %2886 = vst.msk [vmem:[#allocation2 + $0x38] sm:$0xff] %vm1487_vm1, %v2765_v35  ;;  %v2767_v44 = vpop.f32.mrb[45].mxu0  ;;  %2874 = vmatmul.mubr.f32.gmra.mrb[88].mxu0 %v2482_v41 }
 0x64d   : > { %v2918_v45 = vpop.permute.xlu1 %2917  ;;  %3213 = vmatprep.mubr.f32.mxu0 %v11574_v40 }
 0x64f   : > { %v2770_v18 = vpop.f32.mrb[46].mxu0 }
 0x650   : > { %2887 = vst.msk [vmem:[#allocation2 + $0x40] sm:$0xff] %vm1487_vm1, %v2770_v18  ;;  %v2772_v10 = vpop.f32.mrb[47].mxu0  ;;  %5952 = vmatmul.mubr.msk.f32.vlgmr.msra.gmra.mrb[90].mxu0 %vm1487_vm1, %v2910_v4 }
 0x651   : > { %v2922_v56 = vpop.permute.xlu1 %2921  ;;  %3219 = vmatprep.mubr.f32.mxu0 %v11574_v40 }
 0x653   : > { %v2775_v15 = vpop.f32.mrb[48].mxu0 }
 0x654   : > { %2888 = vst.msk [vmem:[#allocation2 + $0x48] sm:$0xff] %vm1487_vm1, %v2775_v15  ;;  %v2777_v17 = vpop.f32.mrb[49].mxu0  ;;  %5953 = vmatmul.mubr.msk.f32.gmra.mrb[92].mxu0 %vm1487_vm1, %v2912_v13 }
 0x655   : > { %v2926_v39 = vpop.permute.xlu1 %2925  ;;  %3225 = vmatprep.mubr.f32.mxu0 %v11574_v40 }
 0x657   : > { %v2780_v1 = vpop.f32.mrb[50].mxu0 }
 0x658   : > { %2889 = vst.msk [vmem:[#allocation2 + $0x50] sm:$0xff] %vm1487_vm1, %v2780_v1  ;;  %v2782_v61 = vpop.f32.mrb[51].mxu0  ;;  %5954 = vmatmul.mubr.msk.f32.gmra.mrb[94].mxu0 %vm1487_vm1, %v2914_v7 }
 0x659   : > { %v2930_v2 = vpop.permute.xlu1 %2929  ;;  %3231 = vmatprep.mubr.f32.mxu0 %v11574_v40 }
 0x65b   : > { %v2785_v11 = vpop.f32.mrb[52].mxu0 }
 0x65c   : > { %2890 = vst.msk [vmem:[#allocation2 + $0x58] sm:$0xff] %vm1487_vm1, %v2785_v11  ;;  %v2787_v52 = vpop.f32.mrb[53].mxu0  ;;  %5955 = vmatmul.mubr.msk.f32.gmra.mrb[96].mxu0 %vm1487_vm1, %v2916_v0 }
 0x65d   : > { %v2934_v43 = vpop.permute.xlu1 %2933  ;;  %3237 = vmatprep.mubr.f32.mxu0 %v11574_v40 }
 0x65f   : > { %v2790_v22 = vpop.f32.mrb[54].mxu0 }
 0x660   : > { %2891 = vst.msk [vmem:[#allocation2 + $0x60] sm:$0xff] %vm1487_vm1, %v2790_v22  ;;  %v2792_v34 = vpop.f32.mrb[55].mxu0  ;;  %5956 = vmatmul.mubr.msk.f32.gmra.mrb[98].mxu0 %vm1487_vm1, %v2918_v45 }
 0x661   : > { %v2938_v48 = vpop.permute.xlu1 %2937  ;;  %3243 = vmatprep.mubr.f32.mxu0 %v11574_v40 }
 0x663   : > { %v2795_v37 = vpop.f32.mrb[56].mxu0 }
 0x664   : > { %2892 = vst.msk [vmem:[#allocation2 + $0x68] sm:$0xff] %vm1487_vm1, %v2795_v37  ;;  %v2797_v57 = vpop.f32.mrb[57].mxu0  ;;  %5957 = vmatmul.mubr.msk.f32.gmra.mrb[100].mxu0 %vm1487_vm1, %v9662_v24 }
 0x665   : > { %v9712_v3 = vpop.permute.xlu1 %2941  ;;  %3249 = vmatprep.mubr.f32.mxu0 %v11574_v40 }
 0x667   : > { %v2800_v53 = vpop.f32.mrb[58].mxu0 }
 0x668   : > { %2893 = vst.msk [vmem:[#allocation2 + $0x70] sm:$0xff] %vm1487_vm1, %v2800_v53  ;;  %v2802_v38 = vpop.f32.mrb[59].mxu0  ;;  %5958 = vmatmul.mubr.msk.f32.gmra.mrb[102].mxu0 %vm1487_vm1, %v2922_v56 }
 0x669   : > { %v9719_v31 = vpop.permute.xlu1 %2945  ;;  %3255 = vmatprep.mubr.f32.mxu0 %v11574_v40 }
 0x66b   : > { %v2805_v49 = vpop.f32.mrb[60].mxu0 }
 0x66c   : > { %2894 = vst.msk [vmem:[#allocation2 + $0x78] sm:$0xff] %vm1487_vm1, %v2805_v49  ;;  %v2807_v9 = vpop.f32.mrb[61].mxu0  ;;  %5959 = vmatmul.mubr.msk.f32.gmra.mrb[104].mxu0 %vm1487_vm1, %v9666_v28 }
 0x66d   : > { %v9727_v24 = vpop.permute.xlu1 %2949  ;;  %3261 = vmatprep.mubr.f32.mxu0 %v11574_v40 }
 0x66f   : > { %v2810_v54 = vpop.f32.mrb[62].mxu0 }
 0x670   : > { %2895 = vst.msk [vmem:[#allocation2 + $0x80] sm:$0xff] %vm1487_vm1, %v2810_v54  ;;  %v2812_v50 = vpop.f32.mrb[63].mxu0  ;;  %5960 = vmatmul.mubr.msk.f32.gmra.mrb[106].mxu0 %vm1487_vm1, %v2926_v39 }
 0x671   : > { %v9732_v60 = vpop.permute.xlu1 %2953  ;;  %3267 = vmatprep.mubr.f32.mxu0 %v11574_v40 }
 0x674   : > { %5961 = vmatmul.mubr.msk.f32.gmra.mrb[108].mxu0 %vm1487_vm1, %v9669_v6  ;;  %v7090_v6 = vpop.permute.xlu0 %7089 }
 0x675   : > { %v9739_v28 = vpop.permute.xlu1 %2957  ;;  %3273 = vmatprep.mubr.f32.mxu0 %v11574_v40  ;;  %v7092_v13 = vunpack.i.h.bf16 %v7090_v6  ;;  %v7091_v23 = vunpack.i.l.bf16 %v7090_v6 }
 0x678   : > { %5962 = vmatmul.mubr.msk.f32.gmra.mrb[110].mxu0 %vm1487_vm1, %v2930_v2  ;;  %v7095_v63 = vpop.permute.xlu0 %7094 }
 0x679   : > { %v9745_v8 = vpop.permute.xlu1 %2961  ;;  %3279 = vmatprep.mubr.f32.mxu0 %v11574_v40  ;;  %v7097_v46 = vunpack.i.h.bf16 %v7095_v63  ;;  %v7096_v7 = vunpack.i.l.bf16 %v7095_v63 }
 0x67b   : > { %v6633_v55 = vpack.c.bf16 %v7097_v46, %v7096_v7 }
 0x67c   : > { %5963 = vmatmul.mubr.msk.f32.gmra.mrb[112].mxu0 %vm1487_vm1, %v9672_v5  ;;  %v6630_v5 = vpack.c.bf16 %v7092_v13, %v7091_v23  ;;  %v7105_v25 = vpop.permute.xlu0 %7104 }
 0x67d   : > { %v9750_v12 = vpop.permute.xlu1 %2965  ;;  %3285 = vmatprep.mubr.f32.mxu0 %v11574_v40  ;;  %v7106_v0 = vunpack.i.l.bf16 %v7105_v25 }
 0x680   : > { %5964 = vmatmul.mubr.msk.f32.gmra.mrb[114].mxu0 %vm1487_vm1, %v2934_v43  ;;  %v7110_v41 = vpop.permute.xlu0 %7109 }
 0x681   : > { %v7085_v4 = vpop.permute.xlu1 %7084  ;;  %3291 = vmatprep.mubr.f32.mxu0 %v11574_v40  ;;  %v7112_v45 = vunpack.i.h.bf16 %v7110_v41  ;;  %v7111_v18 = vunpack.i.l.bf16 %v7110_v41  ;;  %v11576_v41 = vld [vmem:[#allocation88_spill] sm:$0xff] }
 0x682   : > { %v7087_v58 = vunpack.i.h.bf16 %v7085_v4  ;;  %v7086_v36 = vunpack.i.l.bf16 %v7085_v4 }
 0x683   : > { %v6642_v10 = vpack.c.bf16 %v7112_v45, %v7111_v18  ;;  %v11577_v18 = vld [vmem:[#allocation89_spill] sm:$0xff] }
 0x684   : > { %v6627_v26 = vpack.c.bf16 %v7087_v58, %v7086_v36  ;;  %5965 = vmatmul.mubr.msk.f32.gmra.mrb[116].mxu0 %vm1487_vm1, %v9680_v27  ;;  %v7107_v27 = vunpack.i.h.bf16 %v7105_v25  ;;  %v7120_v17 = vpop.permute.xlu0 %7119 }
 0x685   : > { %3297 = vmatprep.mubr.f32.mxu0 %v11574_v40  ;;  %v7100_v21 = vpop.permute.xlu1 %7099  ;;  %v7121_v39 = vunpack.i.l.bf16 %v7120_v17 }
 0x686   : > { %6628 = vmatpush1.bf16.msra.mxu0 %v6627_v26  ;;  %6792 = vmatpush1.bf16.msra.mxu1 %v6627_v26  ;;  %v7102_v16 = vunpack.i.h.bf16 %v7100_v21  ;;  %v7101_v42 = vunpack.i.l.bf16 %v7100_v21  ;;  %v6639_v44 = vpack.c.bf16 %v7107_v27, %v7106_v0 }
 0x687   : > { %6629 = vmatprep.subr.bf16.mxu0 %v11504_v32  ;;  %6778 = vmatprep.subr.bf16.mxu1 %v11504_v32 }
 0x688   : > { %5966 = vmatmul.mubr.msk.f32.gmra.mrb[118].mxu0 %vm1487_vm1, %v2938_v48  ;;  %v6636_v35 = vpack.c.bf16 %v7102_v16, %v7101_v42  ;;  %v7130_v22 = vpop.permute.xlu0 %7129 }
 0x689   : > { %3303 = vmatprep.mubr.f32.mxu0 %v11574_v40  ;;  %v7132_v34 = vunpack.i.h.bf16 %v7130_v22  ;;  %v7131_v48 = vunpack.i.l.bf16 %v7130_v22 }
 0x68a   : > { %6631 = vmatpush1.bf16.msra.mxu0 %v6630_v5  ;;  %6793 = vmatpush1.bf16.msra.mxu1 %v6630_v5 }
 0x68b   : > { %6632 = vmatprep.subr.bf16.mxu0 %v11504_v32  ;;  %6779 = vmatprep.subr.bf16.mxu1 %v11504_v32  ;;  %v6654_v38 = vpack.c.bf16 %v7132_v34, %v7131_v48  ;;  %v11593_v34 = vld [vmem:[#allocation60_spill] sm:$0xff] }
 0x68c   : > { %5967 = vmatmul.mubr.msk.f32.gmra.mrb[120].mxu0 %vm1487_vm1, %v9686_v20  ;;  %v7115_v20 = vpop.permute.xlu1 %7114  ;;  %v7140_v9 = vpop.permute.xlu0 %7139 }
 0x68d   : > { %3309 = vmatprep.mubr.f32.mxu0 %v11574_v40  ;;  %v7117_v56 = vunpack.i.h.bf16 %v7115_v20  ;;  %v7116_v15 = vunpack.i.l.bf16 %v7115_v20  ;;  %v7142_v54 = vunpack.i.h.bf16 %v7140_v9  ;;  %v7141_v50 = vunpack.i.l.bf16 %v7140_v9 }
 0x68e   : > { %6634 = vmatpush1.bf16.msra.mxu0 %v6633_v55  ;;  %6794 = vmatpush1.bf16.msra.mxu1 %v6633_v55 }
 0x68f   : > { %6635 = vmatprep.subr.bf16.mxu0 %v11504_v32  ;;  %6780 = vmatprep.subr.bf16.mxu1 %v11504_v32  ;;  %v6645_v1 = vpack.c.bf16 %v7117_v56, %v7116_v15  ;;  %v6660_v58 = vpack.c.bf16 %v7142_v54, %v7141_v50 }
 0x690   : > { %5968 = vmatmul.mubr.msk.f32.gmra.mrb[122].mxu0 %vm1487_vm1, %v9712_v3  ;;  %v7125_v61 = vpop.permute.xlu1 %7124 }
 0x691   : > { %3315 = vmatprep.mubr.f32.mxu0 %v11574_v40  ;;  %v7127_v11 = vunpack.i.h.bf16 %v7125_v61  ;;  %v7126_v52 = vunpack.i.l.bf16 %v7125_v61 }
 0x692   : > { %6637 = vmatpush1.bf16.msra.mxu0 %v6636_v35  ;;  %6795 = vmatpush1.bf16.msra.mxu1 %v6636_v35 }
 0x693   : > { %6638 = vmatprep.subr.bf16.mxu0 %v11504_v32  ;;  %6781 = vmatprep.subr.bf16.mxu1 %v11504_v32  ;;  %v6651_v37 = vpack.c.bf16 %v7127_v11, %v7126_v52 }
 0x694   : > { %5969 = vmatmul.mubr.msk.f32.gmra.mrb[124].mxu0 %vm1487_vm1, %v9693_v30  ;;  %v7122_v30 = vunpack.i.h.bf16 %v7120_v17  ;;  %v7135_v3 = vpop.permute.xlu1 %7134 }
 0x695   : > { %3321 = vmatprep.mubr.f32.mxu0 %v11574_v40  ;;  %v7136_v49 = vunpack.i.l.bf16 %v7135_v3 }
 0x696   : > { %6640 = vmatpush1.bf16.msra.mxu0 %v6639_v44  ;;  %6796 = vmatpush1.bf16.msra.mxu1 %v6639_v44  ;;  %v6648_v2 = vpack.c.bf16 %v7122_v30, %v7121_v39 }
 0x697   : > { %6641 = vmatprep.subr.bf16.mxu0 %v11504_v32  ;;  %6782 = vmatprep.subr.bf16.mxu1 %v11504_v32 }
 0x698   : > { %5970 = vmatmul.mubr.msk.f32.gmra.mrb[126].mxu0 %vm1487_vm1, %v9719_v31  ;;  %v7137_v31 = vunpack.i.h.bf16 %v7135_v3 }
 0x699   : > { %3327 = vmatprep.mubr.f32.mxu0 %v11574_v40 }
 0x69a   : > { %6643 = vmatpush1.bf16.msra.mxu0 %v6642_v10  ;;  %6797 = vmatpush1.bf16.msra.mxu1 %v6642_v10  ;;  %v6657_v6 = vpack.c.bf16 %v7137_v31, %v7136_v49 }
 0x69b   : > { %6644 = vmatprep.subr.bf16.mxu0 %v11504_v32  ;;  %6783 = vmatprep.subr.bf16.mxu1 %v11504_v32 }
 0x69c   : > { %5971 = vmatmul.mubr.msk.f32.gmra.mrb[128].mxu0 %vm1487_vm1, %v9699_v47 }
 0x69d   : > { %3333 = vmatprep.mubr.f32.mxu0 %v11574_v40 }
 0x69e   : > { %6646 = vmatpush1.bf16.msra.mxu0 %v6645_v1  ;;  %6798 = vmatpush1.bf16.msra.mxu1 %v6645_v1 }
 0x69f   : > { %6647 = vmatprep.subr.bf16.mxu0 %v11504_v32  ;;  %6784 = vmatprep.subr.bf16.mxu1 %v11504_v32  ;;  %v2815_v43 = vpop.f32.mrb[64].mxu0 }
 0x6a0   : > { %5972 = vmatmul.mubr.msk.f32.gmra.mrb[130].mxu0 %vm1487_vm1, %v9727_v24  ;;  %2896 = vst.msk [vmem:[#allocation2 + $0x88] sm:$0xff] %vm1487_vm1, %v2815_v43  ;;  %v2817_v47 = vpop.f32.mrb[65].mxu0 }
 0x6a1   : > { %3339 = vmatprep.mubr.f32.mxu0 %v11574_v40 }
 0x6a2   : > { %6649 = vmatpush1.bf16.msra.mxu0 %v6648_v2  ;;  %6799 = vmatpush1.bf16.msra.mxu1 %v6648_v2 }
 0x6a3   : > { %6650 = vmatprep.subr.bf16.mxu0 %v11504_v32  ;;  %6785 = vmatprep.subr.bf16.mxu1 %v11504_v32 }
 0x6a4   : > { %5973 = vmatmul.mubr.msk.f32.gmra.mrb[132].mxu0 %vm1487_vm1, %v9706_v51  ;;  %v2820_v57 = vpop.f32.mrb[66].mxu0 }
 0x6a5   : > { %2897 = vst.msk [vmem:[#allocation2 + $0x90] sm:$0xff] %vm1487_vm1, %v2820_v57  ;;  %v2822_v53 = vpop.f32.mrb[67].mxu0  ;;  %3345 = vmatprep.mubr.f32.mxu0 %v11574_v40 }
 0x6a6   : > { %6652 = vmatpush1.bf16.msra.mxu0 %v6651_v37  ;;  %6800 = vmatpush1.bf16.msra.mxu1 %v6651_v37 }
 0x6a7   : > { %6653 = vmatprep.subr.bf16.mxu0 %v11504_v32  ;;  %6786 = vmatprep.subr.bf16.mxu1 %v11504_v32 }
 0x6a8   : > { %5974 = vmatmul.mubr.msk.f32.gmra.mrb[134].mxu0 %vm1487_vm1, %v9732_v60  ;;  %v2825_v51 = vpop.f32.mrb[68].mxu0 }
 0x6a9   : > { %2898 = vst.msk [vmem:[#allocation2 + $0x98] sm:$0xff] %vm1487_vm1, %v2825_v51  ;;  %v2827_v24 = vpop.f32.mrb[69].mxu0  ;;  %3351 = vmatprep.mubr.f32.mxu0 %v11574_v40 }
 0x6aa   : > { %6655 = vmatpush1.bf16.msra.mxu0 %v6654_v38  ;;  %6801 = vmatpush1.bf16.msra.mxu1 %v6654_v38 }
 0x6ab   : > { %6656 = vmatprep.subr.bf16.mxu0 %v11504_v32  ;;  %6787 = vmatprep.subr.bf16.mxu1 %v11504_v32 }
 0x6ac   : > { %5975 = vmatmul.mubr.msk.f32.gmra.mrb[136].mxu0 %vm1487_vm1, %v9715_v19  ;;  %v2830_v60 = vpop.f32.mrb[70].mxu0 }
 0x6ad   : > { %2899 = vst.msk [vmem:[#allocation2 + $0xa0] sm:$0xff] %vm1487_vm1, %v2830_v60  ;;  %v2832_v4 = vpop.f32.mrb[71].mxu0  ;;  %3357 = vmatprep.mubr.f32.mxu0 %v11574_v40 }
 0x6ae   : > { %6658 = vmatpush1.bf16.msra.mxu0 %v6657_v6  ;;  %6802 = vmatpush1.bf16.msra.mxu1 %v6657_v6 }
 0x6af   : > { %6659 = vmatprep.subr.bf16.mxu0 %v11504_v32  ;;  %6788 = vmatprep.subr.bf16.mxu1 %v11504_v32 }
 0x6b0   : > { %5976 = vmatmul.mubr.msk.f32.gmra.mrb[138].mxu0 %vm1487_vm1, %v9739_v28  ;;  %v2835_v36 = vpop.f32.mrb[72].mxu0 }
 0x6b1   : > { %2900 = vst.msk [vmem:[#allocation2 + $0xa8] sm:$0xff] %vm1487_vm1, %v2835_v36  ;;  %v2837_v19 = vpop.f32.mrb[73].mxu0  ;;  %3363 = vmatprep.mubr.f32.mxu0 %v11574_v40  ;;  %v11581_v36 = vld [vmem:[#allocation56_spill] sm:$0xff] }
 0x6b2   : > { %6661 = vmatpush1.bf16.msra.mxu0 %v6660_v58  ;;  %6803 = vmatpush1.bf16.msra.mxu1 %v6660_v58 }
 0x6b3   : > { %6662 = vmatprep.subr.bf16.mxu0 %v11504_v32  ;;  %6789 = vmatprep.subr.bf16.mxu1 %v11504_v32 }
 0x6b4   : > { %5977 = vmatmul.mubr.msk.f32.gmra.mrb[140].mxu0 %vm1487_vm1, %v9725_v29  ;;  %v2840_v13 = vpop.f32.mrb[74].mxu0 }
 0x6b5   : > { %2901 = vst.msk [vmem:[#allocation2 + $0xb0] sm:$0xff] %vm1487_vm1, %v2840_v13  ;;  %v2842_v23 = vpop.f32.mrb[75].mxu0  ;;  %3369 = vmatprep.mubr.f32.mxu0 %v11574_v40 }
 0x6b8   : > { %5978 = vmatmul.mubr.msk.f32.gmra.mrb[142].mxu0 %vm1487_vm1, %v9745_v8  ;;  %v2845_v28 = vpop.f32.mrb[76].mxu0 }
 0x6b9   : > { %2902 = vst.msk [vmem:[#allocation2 + $0xb8] sm:$0xff] %vm1487_vm1, %v2845_v28  ;;  %v2847_v26 = vpop.f32.mrb[77].mxu0  ;;  %3375 = vmatprep.mubr.f32.mxu0 %v11574_v40 }
 0x6bc   : > { %5979 = vmatmul.mubr.msk.f32.gmra.mrb[144].mxu0 %vm1487_vm1, %v9735_v33 }
 0x6bd   : > { %3381 = vmatprep.mubr.f32.mxu0 %v11574_v40 }
 0x6c0   : > { %5980 = vmatmul.mubr.msk.f32.gmra.mrb[146].mxu0 %vm1487_vm1, %v9750_v12 }
 0x6c1   : > { %3387 = vmatprep.mubr.f32.mxu0 %v11574_v40 }
 0x6c4   : > { %5981 = vmatmul.mubr.msk.f32.gmra.mrb[148].mxu0 %vm1487_vm1, %v9743_v14 }
 0x6e2   : > { %v2850_v29 = vpop.f32.mrb[78].mxu0 }
 0x6e3   : > { %2903 = vst.msk [vmem:[#allocation2 + $0xc0] sm:$0xff] %vm1487_vm1, %v2850_v29  ;;  %v2852_v8 = vpop.f32.mrb[79].mxu0 }
 0x6e6   : > { %v2855_v63 = vpop.f32.mrb[80].mxu0 }
 0x6e7   : > { %2904 = vst.msk [vmem:[#allocation2 + $0xc8] sm:$0xff] %vm1487_vm1, %v2855_v63  ;;  %v2857_v5 = vpop.f32.mrb[81].mxu0 }
 0x6e8   : > { %v11583_v5 = vld [vmem:[#allocation59_spill] sm:$0xff] }
 0x6e9   : > { %vm11584_vm3 = vcmp.eq.s32.totalorder %v11583_v5, %v11576_v41 }
 0x6ea   : > { %v2860_v46 = vpop.f32.mrb[82].mxu0 }
 0x6eb   : > { %2905 = vst.msk [vmem:[#allocation2 + $0xd0] sm:$0xff] %vm1487_vm1, %v2860_v46  ;;  %v2862_v33 = vpop.f32.mrb[83].mxu0 }
 0x6ee   : > { %v2865_v7 = vpop.f32.mrb[84].mxu0 }
 0x6ef   : > { %2906 = vst.msk [vmem:[#allocation2 + $0xd8] sm:$0xff] %vm1487_vm1, %v2865_v7  ;;  %v2867_v12 = vpop.f32.mrb[85].mxu0 }
 0x71b   : > { %v2870_v21 = vpop.f32.mrb[86].mxu0 }
 0x71c   : > { %2907 = vst.msk [vmem:[#allocation2 + $0xe0] sm:$0xff] %vm1487_vm1, %v2870_v21  ;;  %v2872_v14 = vpop.f32.mrb[87].mxu0 }
 0x71f   : > { %v2875_v25 = vpop.f32.mrb[88].mxu0 }
 0x720   : > { %2908 = vst.msk [vmem:[#allocation2 + $0xe8] sm:$0xff] %vm1487_vm1, %v2875_v25  ;;  %v2877_v55 = vpop.f32.mrb[89].mxu0  ;;  %vm11582_vm1 = vcmp.eq.s32.totalorder %v11581_v36, %v11577_v18 }
 0x723   : > { %v3215_v16 = vpop.f32.mrb[90].mxu0 }
 0x724   : > { %v3394_v42 = vmul.f32 0.25, %v3215_v16  ;;  %v3217_v27 = vpop.f32.mrb[91].mxu0  ;;  %v11587_v16 = vld [vmem:[#allocation58_spill] sm:$0xff] }
 0x725   : > { %v3395_v0 = vmul.f32 0.25, %v3217_v27 }
 0x726   : > { %v9849_v20 = vsel %vm1337_vm6, %v3394_v42, -1e+30  ;;  %vm11588_vm6 = vcmp.eq.s32.totalorder %v11587_v16, %v11576_v41 }
 0x727   : > { %v9844_v44 = vsel %vm1338_vm5, %v3395_v0, -1e+30  ;;  %v3221_v45 = vpop.f32.mrb[92].mxu0  ;;  %vm11586_vm5 = vcmp.eq.s32.totalorder %v11583_v5, %v11577_v18 }
 0x728   : > { %v3514_v10 = vsel %vm1973_vm4, %v9844_v44, -inf  ;;  %v3396_v56 = vmul.f32 0.25, %v3221_v45  ;;  %v3223_v15 = vpop.f32.mrb[93].mxu0 }
 0x729   : > { %v3397_v17 = vmul.f32 0.25, %v3223_v15  ;;  %v3515_v30 = vmax.f32 %v9849_v20, %v3514_v10 }
 0x72a   : > { %v9862_v2 = vsel %vm1339_vm8, %v3396_v56, -1e+30 }
 0x72b   : > { %v9857_v1 = vsel %vm1340_vm7, %v3397_v17, -1e+30  ;;  %3516 = vmax.xlane.f32.xlu0 %v3515_v30  ;;  %v3227_v61 = vpop.f32.mrb[94].mxu0  ;;  %vm11589_vm7 = vcmp.eq.s32.totalorder %v11587_v16, %v11577_v18  ;;  %v11590_v17 = vld [vmem:[#allocation61_spill] sm:$0xff] }
 0x72c   : > { %v3518_v11 = vsel %vm1973_vm4, %v9857_v1, -inf  ;;  %v3398_v52 = vmul.f32 0.25, %v3227_v61  ;;  %v3229_v43 = vpop.f32.mrb[95].mxu0  ;;  %vm11591_vm8 = vcmp.eq.s32.totalorder %v11590_v17, %v11576_v41 }
 0x72d   : > { %v3399_v22 = vmul.f32 0.25, %v3229_v43  ;;  %v3519_v47 = vmax.f32 %v9862_v2, %v3518_v11 }
 0x72e   : > { %v9875_v57 = vsel %vm1341_vm10, %v3398_v52, -1e+30  ;;  %vm11594_vm10 = vcmp.eq.s32.totalorder %v11593_v34, %v11576_v41 }
 0x72f   : > { %v9870_v48 = vsel %vm1342_vm9, %v3399_v22, -1e+30  ;;  %3520 = vmax.xlane.f32.xlu0 %v3519_v47  ;;  %v3233_v37 = vpop.f32.mrb[96].mxu0  ;;  %vm11592_vm9 = vcmp.eq.s32.totalorder %v11590_v17, %v11577_v18 }
 0x730   : > { %v3522_v3 = vsel %vm1973_vm4, %v9870_v48, -inf  ;;  %v3400_v53 = vmul.f32 0.25, %v3233_v37  ;;  %v3235_v38 = vpop.f32.mrb[97].mxu0 }
 0x731   : > { %v3401_v31 = vmul.f32 0.25, %v3235_v38  ;;  %v3523_v49 = vmax.f32 %v9875_v57, %v3522_v3 }
 0x732   : > { %v9888_v54 = vsel %vm1343_vm12, %v3400_v53, -1e+30 }
 0x733   : > { %v9883_v9 = vsel %vm1344_vm11, %v3401_v31, -1e+30  ;;  %3524 = vmax.xlane.f32.xlu0 %v3523_v49  ;;  %v3239_v24 = vpop.f32.mrb[98].mxu0  ;;  %vm11595_vm11 = vcmp.eq.s32.totalorder %v11593_v34, %v11577_v18 }
 0x734   : > { %v3526_v50 = vsel %vm1973_vm4, %v9883_v9, -inf  ;;  %v3402_v6 = vmul.f32 0.25, %v3239_v24  ;;  %v3241_v60 = vpop.f32.mrb[99].mxu0 }
 0x735   : > { %v3403_v4 = vmul.f32 0.25, %v3241_v60  ;;  %v3527_v58 = vmax.f32 %v9888_v54, %v3526_v50  ;;  %v11596_v60 = vld [vmem:[#allocation62_spill] sm:$0xff] }
 0x736   : > { %v9901_v23 = vsel %vm11582_vm1, %v3402_v6, -1e+30  ;;  %vm11597_vm12 = vcmp.eq.s32.totalorder %v11596_v60, %v11576_v41 }
 0x737   : > { %v9896_v19 = vsel %vm1346_vm13, %v3403_v4, -1e+30  ;;  %3528 = vmax.xlane.f32.xlu0 %v3527_v58  ;;  %v3245_v13 = vpop.f32.mrb[100].mxu0  ;;  %vm11598_vm13 = vcmp.eq.s32.totalorder %v11596_v60, %v11577_v18  ;;  %v11607_v60 = vld [vmem:[#allocation65_spill] sm:$0xff] }
 0x738   : > { %v3530_v28 = vsel %vm1973_vm4, %v9896_v19, -inf  ;;  %v3404_v26 = vmul.f32 0.25, %v3245_v13  ;;  %v3247_v29 = vpop.f32.mrb[101].mxu0 }
 0x739   : > { %v3405_v8 = vmul.f32 0.25, %v3247_v29  ;;  %v3531_v63 = vmax.f32 %v9901_v23, %v3530_v28 }
 0x73a   : > { %v9914_v7 = vsel %vm11586_vm5, %v3404_v26, -1e+30 }
 0x73b   : > { %v9909_v46 = vsel %vm11584_vm3, %v3405_v8, -1e+30  ;;  %3532 = vmax.xlane.f32.xlu0 %v3531_v63  ;;  %v3251_v33 = vpop.f32.mrb[102].mxu0  ;;  %v11599_v8 = vld [vmem:[#allocation45_spill] sm:$0xff] }
 0x73c   : > { %11585 = vst [vmem:[#allocation102_spill] sm:$0xff] %v9909_v46  ;;  %v3534_v12 = vsel %vm1973_vm4, %v9909_v46, -inf  ;;  %v3406_v21 = vmul.f32 0.25, %v3251_v33  ;;  %v3253_v14 = vpop.f32.mrb[103].mxu0  ;;  %v11656_v46 = vld [vmem:[#allocation76_spill] sm:$0xff] }
 0x73d   : > { %v3407_v25 = vmul.f32 0.25, %v3253_v14  ;;  %v3535_v55 = vmax.f32 %v9914_v7, %v3534_v12 }
 0x73e   : > { %v9927_v0 = vsel %vm11589_vm7, %v3406_v21, -1e+30 }
 0x73f   : > { %v9922_v42 = vsel %vm11588_vm6, %v3407_v25, -1e+30  ;;  %3536 = vmax.xlane.f32.xlu0 %v3535_v55  ;;  %v3257_v27 = vpop.f32.mrb[104].mxu0  ;;  %vm11608_vm6 = vcmp.eq.s32.totalorder %v11607_v60, %v11576_v41 }
 0x740   : > { %v3538_v35 = vsel %vm1973_vm4, %v9922_v42, -inf  ;;  %v3408_v45 = vmul.f32 0.25, %v3257_v27  ;;  %v3259_v10 = vpop.f32.mrb[105].mxu0 }
 0x741   : > { %v3409_v56 = vmul.f32 0.25, %v3259_v10  ;;  %v3539_v15 = vmax.f32 %v9927_v0, %v3538_v35 }
 0x742   : > { %v9940_v61 = vsel %vm11592_vm9, %v3408_v45, -1e+30 }
 0x743   : > { %v9935_v30 = vsel %vm11591_vm8, %v3409_v56, -1e+30  ;;  %3540 = vmax.xlane.f32.xlu1 %v3539_v15  ;;  %v3263_v39 = vpop.f32.mrb[106].mxu0 }
 0x744   : > { %v3542_v11 = vsel %vm1973_vm4, %v9935_v30, -inf  ;;  %v3410_v52 = vmul.f32 0.25, %v3263_v39  ;;  %v3265_v43 = vpop.f32.mrb[107].mxu0  ;;  %v11600_v39 = vld [vmem:[#allocation63_spill] sm:$0xff] }
 0x745   : > { %v3411_v22 = vmul.f32 0.25, %v3265_v43  ;;  %v3543_v47 = vmax.f32 %v9940_v61, %v3542_v11  ;;  %vm11601_vm1 = vcmp.eq.s32.totalorder %v11600_v39, %v11576_v41  ;;  %vm11609_vm7 = vcmp.eq.s32.totalorder %v11600_v39, %v11577_v18 }
 0x746   : > { %v9953_v53 = vsel %vm11595_vm11, %v3410_v52, -1e+30  ;;  %v11602_v52 = vld [vmem:[#allocation72_spill] sm:$0xff]  ;;  %vm11617_vm11 = vcmp.eq.s32.totalorder %v11607_v60, %v11577_v18  ;;  %v11620_v60 = vld [vmem:[#allocation67_spill] sm:$0xff] }
 0x747   : > { %v9948_v37 = vsel %vm11594_vm10, %v3411_v22, -1e+30  ;;  %3544 = vmax.xlane.f32.xlu0 %v3543_v47  ;;  %v3269_v3 = vpop.f32.mrb[108].mxu0  ;;  %vm11603_vm3 = vcmp.eq.s32.totalorder %v11602_v52, %v11576_v41  ;;  %vm11605_vm5 = vcmp.eq.s32.totalorder %v11602_v52, %v11577_v18 }
 0x748   : > { %v3546_v38 = vsel %vm1973_vm4, %v9948_v37, -inf  ;;  %v3271_v31 = vpop.f32.mrb[109].mxu0 }
 0x749   : > { %v3547_v49 = vmax.f32 %v9953_v53, %v3546_v38  ;;  %v3413_v45 = vmul.f32 0.25, %v3271_v31 }
 0x74b   : > { %3548 = vmax.xlane.f32.xlu0 %v3547_v49  ;;  %v3275_v51 = vpop.f32.mrb[110].mxu0  ;;  %v9988_v11 = vsel %vm11601_vm1, %v3413_v45, -1e+30  ;;  %v3412_v49 = vmul.f32 0.25, %v3269_v3 }
 0x74c   : > { %v3414_v24 = vmul.f32 0.25, %v3275_v51  ;;  %v3277_v50 = vpop.f32.mrb[111].mxu0 }
 0x74d   : > { %v3415_v6 = vmul.f32 0.25, %v3277_v50 }
 0x74e   : > { %v9966_v36 = vsel %vm11598_vm13, %v3414_v24, -1e+30  ;;  %v3550_v24 = vsel %vm1973_vm4, %v9988_v11, -inf  ;;  %vm11621_vm13 = vcmp.eq.s32.totalorder %v11620_v60, %v11576_v41 }
 0x74f   : > { %v9961_v4 = vsel %vm11597_vm12, %v3415_v6, -1e+30  ;;  %v3281_v58 = vpop.f32.mrb[112].mxu0 }
 0x750   : > { %v3554_v13 = vsel %vm1973_vm4, %v9961_v4, -inf  ;;  %v3283_v28 = vpop.f32.mrb[113].mxu0  ;;  %v3416_v3 = vmul.f32 0.25, %v3281_v58 }
 0x751   : > { %v3555_v26 = vmax.f32 %v9966_v36, %v3554_v13  ;;  %v3417_v47 = vmul.f32 0.25, %v3283_v28 }
 0x753   : > { %3556 = vmax.xlane.f32.xlu0 %v3555_v26  ;;  %v3287_v29 = vpop.f32.mrb[114].mxu0  ;;  %v10012_v13 = vsel %vm11608_vm6, %v3417_v47, -1e+30  ;;  %vm11627_vm6 = vcmp.eq.s32.totalorder %v11620_v60, %v11577_v18 }
 0x754   : > { %7144 = vrot.lane.b32.xlu1 %v11599_v8, %s7711_s22  ;;  %v3289_v63 = vpop.f32.mrb[115].mxu0  ;;  %v10017_v8 = vsel %vm11609_vm7, %v3412_v49, -1e+30 }
 0x755   : > { %v3419_v50 = vmul.f32 0.25, %v3289_v63  ;;  %v3558_v63 = vsel %vm1973_vm4, %v10012_v13, -inf }
 0x757   : > { %v3293_v5 = vpop.f32.mrb[116].mxu0 }
 0x758   : > { %v3295_v33 = vpop.f32.mrb[117].mxu0 }
 0x759   : > { %v3421_v47 = vmul.f32 0.25, %v3295_v33 }
 0x75b   : > { %v9973_v12 = vpop.f32.mrb[118].mxu0 }
 0x75c   : > { %v3301_v21 = vpop.f32.mrb[119].mxu0 }
 0x75f   : > { %v9975_v14 = vpop.f32.mrb[120].mxu0 }
 0x760   : > { %v3307_v25 = vpop.f32.mrb[121].mxu0 }
 0x763   : > { %v9977_v55 = vpop.f32.mrb[122].mxu0 }
 0x764   : > { %v9979_v16 = vpop.f32.mrb[123].mxu0 }
 0x767   : > { %v9981_v27 = vpop.f32.mrb[124].mxu0 }
 0x768   : > { %v9983_v35 = vpop.f32.mrb[125].mxu0 }
 0x76b   : > { %v3323_v10 = vpop.f32.mrb[126].mxu0 }
 0x76c   : > { %v3430_v56 = vmul.f32 0.25, %v3323_v10  ;;  %v3325_v15 = vpop.f32.mrb[127].mxu0  ;;  %v3551_v10 = vmax.f32 %v10017_v8, %v3550_v24  ;;  %v10042_v24 = vsel %vm11617_vm11, %v3416_v3, -1e+30 }
 0x76d   : > { %v3431_v17 = vmul.f32 0.25, %v3325_v15 }
 0x76e   : > { %v10000_v34 = vsel %vm11605_vm5, %v3430_v56, -1e+30  ;;  %v11610_v56 = vld [vmem:[#allocation64_spill] sm:$0xff] }
 0x76f   : > { %v9993_v43 = vsel %vm11603_vm3, %v3431_v17, -1e+30  ;;  %v9995_v22 = vpop.f32.mrb[128].mxu0  ;;  %11606 = vst [vmem:[#allocation83_spill] sm:$0xff] %v10000_v34  ;;  %vm11611_vm8 = vcmp.eq.s32.totalorder %v11610_v56, %v11576_v41  ;;  %v11612_v17 = vld [vmem:[#allocation74_spill] sm:$0xff]  ;;  %vm11624_vm3 = vcmp.eq.s32.totalorder %v11610_v56, %v11577_v18 }
 0x770   : > { %11604 = vst [vmem:[#allocation52_spill] sm:$0xff] %v9993_v43  ;;  %v3586_v38 = vsel %vm1973_vm4, %v9993_v43, -inf  ;;  %v10004_v31 = vpop.f32.mrb[129].mxu0  ;;  %v10025_v15 = vsel %vm11611_vm8, %v3419_v50, -1e+30  ;;  %vm11613_vm9 = vcmp.eq.s32.totalorder %v11612_v17, %v11576_v41  ;;  %vm11615_vm10 = vcmp.eq.s32.totalorder %v11612_v17, %v11577_v18  ;;  %v11618_v17 = vld [vmem:[#allocation75_spill] sm:$0xff] }
 0x771   : > { %v3587_v51 = vmax.f32 %v10000_v34, %v3586_v38  ;;  %v3418_v50 = vmul.f32 0.25, %v3287_v29  ;;  %vm11619_vm12 = vcmp.eq.s32.totalorder %v11618_v17, %v11576_v41  ;;  %v10058_v29 = vsel %vm11621_vm13, %v3421_v47, -1e+30  ;;  %v11636_v43 = vld [vmem:[#allocation68_spill] sm:$0xff] }
 0x772   : > { %vm11622_vm1 = vcmp.eq.s32.totalorder %v11618_v17, %v11577_v18  ;;  %vm11637_vm11 = vcmp.eq.s32.totalorder %v11636_v43, %v11576_v41 }
 0x773   : > { %3588 = vmax.xlane.f32.xlu0 %v3587_v51  ;;  %v3335_v6 = vpop.f32.mrb[130].mxu0 }
 0x774   : > { %v3434_v28 = vmul.f32 0.25, %v3335_v6  ;;  %v3337_v26 = vpop.f32.mrb[131].mxu0 }
 0x775   : > { %v3435_v45 = vmul.f32 0.25, %v3337_v26  ;;  %v3559_v26 = vmax.f32 %v10042_v24, %v3558_v63 }
 0x776   : > { %v10035_v58 = vsel %vm11615_vm10, %v3434_v28, -1e+30  ;;  %v3562_v28 = vsel %vm1973_vm4, %v10025_v15, -inf }
 0x777   : > { %v10030_v52 = vsel %vm11613_vm9, %v3435_v45, -1e+30  ;;  %v3341_v39 = vpop.f32.mrb[132].mxu0  ;;  %11616 = vst [vmem:[#allocation104_spill] sm:$0xff] %v10035_v58  ;;  %v3423_v45 = vmul.f32 0.25, %v3301_v21 }
 0x778   : > { %11614 = vst [vmem:[#allocation84_spill] sm:$0xff] %v10030_v52  ;;  %v3594_v38 = vsel %vm1973_vm4, %v10030_v52, -inf  ;;  %v3436_v49 = vmul.f32 0.25, %v3341_v39  ;;  %3552 = vmax.xlane.f32.xlu1 %v3551_v10  ;;  %v3343_v51 = vpop.f32.mrb[133].mxu0  ;;  %v11628_v52 = vld [vmem:[#allocation69_spill] sm:$0xff] }
 0x779   : > { %v3437_v6 = vmul.f32 0.25, %v3343_v51  ;;  %v3595_v33 = vmax.f32 %v10035_v58, %v3594_v38  ;;  %v10070_v38 = vsel %vm11624_vm3, %v3418_v50, -1e+30  ;;  %v3420_v51 = vmul.f32 0.25, %v3293_v5 }
 0x77a   : > { %v10063_v3 = vsel %vm11622_vm1, %v3436_v49, -1e+30  ;;  %v3563_v47 = vmax.f32 %v10070_v38, %v3562_v28  ;;  %v11625_v49 = vld [vmem:[#allocation66_spill] sm:$0xff]  ;;  %v3422_v50 = vmul.f32 0.25, %v9973_v12  ;;  %vm11629_vm7 = vcmp.eq.s32.totalorder %v11628_v52, %v11576_v41 }
 0x77b   : > { %v10051_v10 = vsel %vm11619_vm12, %v3437_v6, -1e+30  ;;  %3596 = vmax.xlane.f32.xlu0 %v3595_v33  ;;  %v10053_v39 = vpop.f32.mrb[134].mxu0  ;;  %11623 = vst [vmem:[#allocation85_spill] sm:$0xff] %v10063_v3  ;;  %v3566_v33 = vsel %vm1973_vm4, %v10058_v29, -inf  ;;  %vm11626_vm5 = vcmp.eq.s32.totalorder %v11625_v49, %v11576_v41  ;;  %vm11635_vm10 = vcmp.eq.s32.totalorder %v11625_v49, %v11577_v18 }
 0x77c   : > { %v3598_v21 = vsel %vm1973_vm4, %v10051_v10, -inf  ;;  %3560 = vmax.xlane.f32.xlu1 %v3559_v26  ;;  %v3349_v63 = vpop.f32.mrb[135].mxu0  ;;  %v10079_v17 = vsel %vm11626_vm5, %v3423_v45, -1e+30  ;;  %v3425_v26 = vmul.f32 0.25, %v3307_v25  ;;  %vm11643_vm1 = vcmp.eq.s32.totalorder %v11628_v52, %v11577_v18 }
 0x77d   : > { %v3599_v6 = vmax.f32 %v10063_v3, %v3598_v21  ;;  %v10084_v5 = vsel %vm11627_vm6, %v3420_v51, -1e+30  ;;  %v3570_v21 = vsel %vm1973_vm4, %v10079_v17, -inf  ;;  %v3433_v52 = vmul.f32 0.25, %v10004_v31  ;;  %v11651_v3 = vld [vmem:[#allocation73_spill] sm:$0xff] }
 0x77e   : > { %v3567_v45 = vmax.f32 %v10084_v5, %v3566_v33  ;;  %v10093_v25 = vsel %vm11629_vm7, %v3425_v26, -1e+30  ;;  %vm11646_vm5 = vcmp.eq.s32.totalorder %v11636_v43, %v11577_v18  ;;  %v3439_v31 = vmul.f32 0.25, %v3349_v63 }
 0x77f   : > { %3600 = vmax.xlane.f32.xlu0 %v3599_v6  ;;  %v3353_v40 = vpop.f32.mrb[136].mxu0  ;;  %v11630_v6 = vld [vmem:[#allocation77_spill] sm:$0xff] }
 0x780   : > { %v3440_v58 = vmul.f32 0.25, %v3353_v40  ;;  %3564 = vmax.xlane.f32.xlu1 %v3563_v47  ;;  %v3355_v56 = vpop.f32.mrb[137].mxu0  ;;  %v3427_v40 = vmul.f32 0.25, %v9979_v16  ;;  %vm11631_vm8 = vcmp.eq.s32.totalorder %v11630_v6, %v11576_v41  ;;  %vm11633_vm9 = vcmp.eq.s32.totalorder %v11630_v6, %v11577_v18 }
 0x781   : > { %v3441_v28 = vmul.f32 0.25, %v3355_v56  ;;  %v10111_v16 = vsel %vm11635_vm10, %v3422_v50, -1e+30  ;;  %v3424_v56 = vmul.f32 0.25, %v9975_v14  ;;  %v3429_v50 = vmul.f32 0.25, %v9983_v35 }
 0x782   : > { %v10104_v12 = vsel %vm11633_vm9, %v3440_v58, -1e+30  ;;  %v3571_v6 = vmax.f32 %v10111_v16, %v3570_v21  ;;  %v3574_v58 = vsel %vm1973_vm4, %v10093_v25, -inf  ;;  %vm11657_vm10 = vcmp.eq.s32.totalorder %v11656_v46, %v11576_v41 }
 0x783   : > { %v10099_v60 = vsel %vm11631_vm8, %v3441_v28, -1e+30  ;;  %v3359_v51 = vpop.f32.mrb[138].mxu0  ;;  %11634 = vst [vmem:[#allocation92_spill] sm:$0xff] %v10104_v12  ;;  %vm11652_vm8 = vcmp.eq.s32.totalorder %v11651_v3, %v11576_v41 }
 0x784   : > { %11632 = vst [vmem:[#allocation48_spill] sm:$0xff] %v10099_v60  ;;  %v3606_v47 = vsel %vm1973_vm4, %v10099_v60, -inf  ;;  %v3442_v33 = vmul.f32 0.25, %v3359_v51  ;;  %3568 = vmax.xlane.f32.xlu1 %v3567_v45  ;;  %v3361_v26 = vpop.f32.mrb[139].mxu0  ;;  %v10121_v45 = vsel %vm11637_vm11, %v3427_v40, -1e+30  ;;  %vm11658_vm11 = vcmp.eq.s32.totalorder %v11651_v3, %v11577_v18 }
 0x785   : > { %v3443_v28 = vmul.f32 0.25, %v3361_v26  ;;  %v3607_v34 = vmax.f32 %v10104_v12, %v3606_v47  ;;  %v11638_v51 = vld [vmem:[#allocation79_spill] sm:$0xff]  ;;  %v10139_v26 = vsel %vm11643_vm1, %v3424_v56, -1e+30  ;;  %v11644_v12 = vld [vmem:[#allocation70_spill] sm:$0xff]  ;;  %vm11712_vm1 = vcmask 261120  }
 0x786   : > { %vm11639_vm12 = vcmp.eq.s32.totalorder %v11638_v51, %v11576_v41  ;;  %vm11641_vm13 = vcmp.eq.s32.totalorder %v11638_v51, %v11577_v18  ;;  %v3575_v35 = vmax.f32 %v10139_v26, %v3574_v58  ;;  %vm11645_vm3 = vcmp.eq.s32.totalorder %v11644_v12, %v11576_v41 }
 0x787   : > { %v10126_v49 = vsel %vm11639_vm12, %v3443_v28, -1e+30  ;;  %3608 = vmax.xlane.f32.xlu0 %v3607_v34  ;;  %v3365_v14 = vpop.f32.mrb[140].mxu0  ;;  %v10132_v21 = vsel %vm11641_vm13, %v3442_v33, -1e+30  ;;  %v3426_v34 = vmul.f32 0.25, %v9977_v55  ;;  %vm11650_vm7 = vcmp.eq.s32.totalorder %v11644_v12, %v11577_v18 }
 0x788   : > { %11640 = vst [vmem:[#allocation90_spill] sm:$0xff] %v10126_v49  ;;  %11642 = vst [vmem:[#allocation94_spill] sm:$0xff] %v10132_v21  ;;  %v3610_v47 = vsel %vm1973_vm4, %v10126_v49, -inf  ;;  %3572 = vmax.xlane.f32.xlu1 %v3571_v6  ;;  %v3367_v40 = vpop.f32.mrb[141].mxu0  ;;  %v3578_v33 = vsel %vm1973_vm4, %v10121_v45, -inf  ;;  %v3428_v58 = vmul.f32 0.25, %v9981_v27 }
 0x789   : > { %v3611_v28 = vmax.f32 %v10132_v21, %v3610_v47  ;;  %v10149_v6 = vsel %vm11645_vm3, %v3429_v50, -1e+30  ;;  %v10155_v55 = vsel %vm11646_vm5, %v3426_v34, -1e+30  ;;  %v11647_v49 = vld [vmem:[#allocation71_spill] sm:$0xff]  ;;  %v3432_v27 = vmul.f32 0.25, %v9995_v22  ;;  %vm11713_vm3 = vmmov %vm11712_vm1 }
 0x78a   : > { %v3579_v47 = vmax.f32 %v10155_v55, %v3578_v33  ;;  %vm11648_vm6 = vcmp.eq.s32.totalorder %v11647_v49, %v11576_v41  ;;  %v10169_v43 = vsel %vm11650_vm7, %v3428_v58, -1e+30  ;;  %v3445_v63 = vmul.f32 0.25, %v3367_v40  ;;  %vm11714_vm5 = vmmov %vm11712_vm1 }
 0x78b   : > { %3612 = vmax.xlane.f32.xlu0 %v3611_v28  ;;  %v3371_v51 = vpop.f32.mrb[142].mxu0  ;;  %v3582_v28 = vsel %vm1973_vm4, %v10149_v6, -inf  ;;  %v10164_v50 = vsel %vm11648_vm6, %v3433_v52, -1e+30  ;;  %v10178_v52 = vsel %vm11652_vm8, %v3439_v31, -1e+30  ;;  %vm11654_vm9 = vcmp.eq.s32.totalorder %v11647_v49, %v11577_v18  ;;  %vm11715_vm6 = vmmov %vm11712_vm1 }
 0x78c   : > { %3576 = vmax.xlane.f32.xlu1 %v3575_v35  ;;  %v3373_v56 = vpop.f32.mrb[143].mxu0  ;;  %11649 = vst [vmem:[#allocation91_spill] sm:$0xff] %v10164_v50  ;;  %v3583_v34 = vmax.f32 %v10169_v43, %v3582_v28  ;;  %v3590_v33 = vsel %vm1973_vm4, %v10164_v50, -inf  ;;  %11653 = vst [vmem:[#allocation86_spill] sm:$0xff] %v10178_v52  ;;  %v10183_v12 = vsel %vm11654_vm9, %v3432_v27, -1e+30 }
 0x78d   : > { %11655 = vst [vmem:[#allocation96_spill] sm:$0xff] %v10183_v12  ;;  %v3438_v22 = vmul.f32 0.25, %v10053_v39  ;;  %v3591_v58 = vmax.f32 %v10183_v12, %v3590_v33  ;;  %v3602_v28 = vsel %vm1973_vm4, %v10178_v52, -inf  ;;  %v10192_v31 = vsel %vm11657_vm10, %v3445_v63, -1e+30  ;;  %vm11716_vm7 = vmmov %vm11712_vm1 }
 0x78e   : > { %v3444_v39 = vmul.f32 0.25, %v3365_v14  ;;  %v3614_v33 = vsel %vm1973_vm4, %v10192_v31, -inf  ;;  %v3447_v46 = vmul.f32 0.25, %v3373_v56  ;;  %vm11717_vm8 = vmmov %vm11712_vm1 }
 0x78f   : > { %v3377_v21 = vpop.f32.mrb[144].mxu0  ;;  %v10197_v49 = vsel %vm11658_vm11, %v3438_v22, -1e+30  ;;  %vm11718_vm9 = vmmov %vm11712_vm1 }
 0x790   : > { %3580 = vmax.xlane.f32.xlu1 %v3579_v47  ;;  %v3379_v35 = vpop.f32.mrb[145].mxu0  ;;  %v3603_v27 = vmax.f32 %v10197_v49, %v3602_v28  ;;  %v3448_v3 = vmul.f32 0.25, %v3377_v21  ;;  %v11660_v28 = vld [vmem:[#allocation80_spill] sm:$0xff]  ;;  %vm11719_vm10 = vmmov %vm11712_vm1 }
 0x791   : > { %v3449_v40 = vmul.f32 0.25, %v3379_v35  ;;  %v10210_v35 = vsel %vm1387_vm0, %v3444_v39, -1e+30  ;;  %vm11666_vm0 = vcmp.eq.s32.totalorder %v11660_v28, %v11577_v18  ;;  %vm11720_vm11 = vmmov %vm11712_vm1 }
 0x792   : > { %v3615_v63 = vmax.f32 %v10210_v35, %v3614_v33  ;;  %v10218_v22 = vsel %vm1391_vm14, %v3448_v3, -1e+30  ;;  %v11663_v33 = vld [vmem:[#allocation82_spill] sm:$0xff] }
 0x793   : > { %v3383_v60 = vpop.f32.mrb[146].mxu0  ;;  %v10205_v12 = vsel %vm1392_vm15, %v3449_v40, -1e+30  ;;  %vm11661_vm15 = vcmp.eq.s32.totalorder %v11660_v28, %v11576_v41  ;;  %vm11664_vm14 = vcmp.eq.s32.totalorder %v11663_v33, %v11576_v41  ;;  %vm11671_vm13 = vcmp.eq.s32.totalorder %v11663_v33, %v11577_v18 }
 0x794   : > { %3584 = vmax.xlane.f32.xlu1 %v3583_v34  ;;  %v3385_v47 = vpop.f32.mrb[147].mxu0  ;;  %v3622_v14 = vsel %vm1973_vm4, %v10205_v12, -inf  ;;  %v10226_v21 = vsel %vm11661_vm15, %v3447_v46, -1e+30  ;;  %vm11721_vm15 = vmmov %vm11712_vm1 }
 0x795   : > { %11662 = vst [vmem:[#allocation93_spill] sm:$0xff] %v10226_v21  ;;  %v3451_v40 = vmul.f32 0.25, %v3385_v47  ;;  %v3618_v52 = vsel %vm1973_vm4, %v10226_v21, -inf  ;;  %v3450_v47 = vmul.f32 0.25, %v3383_v60 }
 0x797   : > { %v3389_v50 = vpop.f32.mrb[148].mxu0 }
 0x798   : > { %3592 = vmax.xlane.f32.xlu1 %v3591_v58  ;;  %v3391_v34 = vpop.f32.mrb[149].mxu0  ;;  %v3623_v58 = vmax.f32 %v10218_v22, %v3622_v14  ;;  %v3452_v28 = vmul.f32 0.25, %v3389_v50 }
 0x799   : > { %v3453_v3 = vmul.f32 0.25, %v3391_v34  ;;  %v10257_v34 = vsel %vm11671_vm13, %v3450_v47, -1e+30 }
 0x79a   : > { %11672 = vst [vmem:[#allocation95_spill] sm:$0xff] %v10257_v34 }
 0x79c   : > { %3604 = vmax.xlane.f32.xlu1 %v3603_v27  ;;  %v3446_v27 = vmul.f32 0.25, %v3371_v51 }
 0x79e   : > { %v10242_v56 = vsel %vm11666_vm0, %v3446_v27, -1e+30  ;;  %vm11723_vm0 = vmmov %vm11712_vm1 }
 0x79f   : > { %11667 = vst [vmem:[#allocation51_spill] sm:$0xff] %v10242_v56  ;;  %v3619_v14 = vmax.f32 %v10242_v56, %v3618_v52  ;;  %vm11725_vm13 = vmmov %vm11723_vm0 }
 0x7a0   : > { %3616 = vmax.xlane.f32.xlu1 %v3615_v63 }
 0x7a1   : > { %7149 = vrot.lane.b32.xlu0 %v11509_v59, %s7711_s22  ;;  %v10235_v59 = vsel %vm11664_vm14, %v3451_v40, -1e+30  ;;  %vm11722_vm14 = vmmov %vm11712_vm1 }
 0x7a2   : > { %11665 = vst [vmem:[#allocation105_spill] sm:$0xff] %v10235_v59  ;;  %v3626_v51 = vsel %vm1973_vm4, %v10235_v59, -inf }
 0x7a3   : > { %v3627_v60 = vmax.f32 %v10257_v34, %v3626_v51 }
 0x7a4   : > { %3624 = vmax.xlane.f32.xlu1 %v3623_v58  ;;  %v11668_v58 = vld [vmem:[#allocation81_spill] sm:$0xff] }
 0x7a5   : > { %vm11669_vm12 = vcmp.eq.s32.totalorder %v11668_v58, %v11576_v41 }
 0x7a6   : > { %v10250_v46 = vsel %vm11669_vm12, %v3453_v3, -1e+30  ;;  %v10267_v3 = vsel %vm1395_vm2, %v3452_v28, -1e+30  ;;  %vm4539_vm2 = vcmask 261248   ;;  %vm11724_vm12 = vmmov %vm11723_vm0 }
 0x7a7   : > { %11670 = vst [vmem:[#allocation98_spill] sm:$0xff] %v10250_v46  ;;  %v3630_v27 = vsel %vm1973_vm4, %v10250_v46, -inf  ;;  %11673 = vst [vmem:[#allocation106_spill] sm:$0xff] %v10267_v3 }
 0x7b8   : > { %v10228_v39 = vpop.xlane.xlu0 %3516 }
 0x7bc   : > { %v10237_v63 = vpop.xlane.xlu0 %3520 }
 0x7c0   : > { %v10252_v40 = vpop.xlane.xlu0 %3524  ;;  %3620 = vmax.xlane.f32.xlu0 %v3619_v14  ;;  %v3631_v14 = vmax.f32 %v10267_v3, %v3630_v27 }
 0x7c4   : > { %v10262_v52 = vpop.xlane.xlu0 %3528  ;;  %3628 = vmax.xlane.f32.xlu0 %v3627_v60 }
 0x7c8   : > { %3632 = vmax.xlane.f32.xlu0 %v3631_v14  ;;  %v10270_v33 = vpop.xlane.xlu0 %3532 }
 0x7cc   : > { %v10272_v47 = vpop.xlane.xlu0 %3536 }
 0x7d0   : > { %v3541_v50 = vpop.xlane.xlu1 %3540 }
 0x7d1   : > { %v3646_v51 = vsub.f32 %v9927_v0, %v3541_v50  ;;  %v3647_v41 = vsub.f32 %v9922_v42, %v3541_v50 }
 0x7d3   : > { %v3718_v46 = vmul.f32 1.442695, %v3646_v51  ;;  %v3720_v59 = vmul.f32 1.442695, %v3647_v41 }
 0x7d4   : > { %v7145_v60 = vpop.permute.xlu1 %7144  ;;  %v3545_v34 = vpop.xlane.xlu0 %3544 }
 0x7d5   : > { %7338 = vpow2.f32 %v3718_v46  ;;  %v7147_v58 = vunpack.i.h.bf16 %v7145_v60  ;;  %v7146_v28 = vunpack.i.l.bf16 %v7145_v60  ;;  %v3648_v18 = vsub.f32 %v9940_v61, %v3545_v34 }
 0x7d6   : > { %7340 = vpow2.f32 %v3720_v59  ;;  %v3649_v27 = vsub.f32 %v9935_v30, %v3545_v34 }
 0x7d7   : > { %v6663_v14 = vpack.c.bf16 %v7147_v58, %v7146_v28  ;;  %v3722_v3 = vmul.f32 1.442695, %v3648_v18 }
 0x7d8   : > { %v3724_v21 = vmul.f32 1.442695, %v3649_v27  ;;  %v3549_v56 = vpop.xlane.xlu0 %3548 }
 0x7d9   : > { %7342 = vpow2.f32 %v3722_v3  ;;  %v3650_v0 = vsub.f32 %v9953_v53, %v3549_v56  ;;  %v3651_v42 = vsub.f32 %v9948_v37, %v3549_v56  ;;  %6664 = vmatpush1.bf16.msra.mxu0 %v6663_v14  ;;  %6804 = vmatpush1.bf16.msra.mxu1 %v6663_v14 }
 0x7da   : > { %7344 = vpow2.f32 %v3724_v21  ;;  %6665 = vmatprep.subr.bf16.mxu0 %v11504_v32  ;;  %6790 = vmatprep.subr.bf16.mxu1 %v11504_v32 }
 0x7db   : > { %v3726_v41 = vmul.f32 1.442695, %v3650_v0  ;;  %v3728_v61 = vmul.f32 1.442695, %v3651_v42 }
 0x7dd   : > { %7346 = vpow2.f32 %v3726_v41  ;;  %v3637_v41 = vsub.f32 %v9857_v1, %v10237_v63  ;;  %v3635_v1 = vsub.f32 %v9844_v44, %v10228_v39  ;;  %v3634_v44 = vsub.f32 %v9849_v20, %v10228_v39 }
 0x7de   : > { %7348 = vpow2.f32 %v3728_v61  ;;  %v3636_v61 = vsub.f32 %v9862_v2, %v10237_v63 }
 0x7df   : > { %v10282_v30 = vpop.eup %7338 }
 0x7e0   : > { %v10284_v18 = vpop.eup %7340  ;;  %v3557_v59 = vpop.xlane.xlu0 %3556  ;;  %v3698_v2 = vmul.f32 1.442695, %v3636_v61 }
 0x7e1   : > { %v3654_v53 = vsub.f32 %v9966_v36, %v3557_v59  ;;  %v3655_v37 = vsub.f32 %v9961_v4, %v3557_v59  ;;  %v3838_v21 = vsel %vm1973_vm4, %v10284_v18, 0.0  ;;  %v3700_v59 = vmul.f32 1.442695, %v3637_v41 }
 0x7e2   : > { %v3839_v56 = vadd.f32 %v10282_v30, %v3838_v21  ;;  %v3642_v41 = vsub.f32 %v9901_v23, %v10270_v33 }
 0x7e3   : > { %v10291_v46 = vpop.eup %7342  ;;  %v3734_v34 = vmul.f32 1.442695, %v3654_v53  ;;  %v3736_v3 = vmul.f32 1.442695, %v3655_v37  ;;  %v3639_v37 = vsub.f32 %v9870_v48, %v10252_v40  ;;  %v3641_v48 = vsub.f32 %v9883_v9, %v10262_v52 }
 0x7e4   : > { %v10293_v50 = vpop.eup %7344  ;;  %3840 = vadd.xlane.f32.xlu1 %v3839_v56  ;;  %v3710_v23 = vmul.f32 1.442695, %v3642_v41 }
 0x7e5   : > { %7350 = vpow2.f32 %v3734_v34  ;;  %v3842_v51 = vsel %vm1973_vm4, %v10293_v50, 0.0 }
 0x7e6   : > { %7352 = vpow2.f32 %v3736_v3  ;;  %v3843_v36 = vadd.f32 %v10291_v46, %v3842_v51 }
 0x7e7   : > { %v10298_v4 = vpop.eup %7346  ;;  %7354 = vpow2.f32 %v3700_v59 }
 0x7e8   : > { %v10300_v60 = vpop.eup %7348  ;;  %3844 = vadd.xlane.f32.xlu0 %v3843_v36  ;;  %v3704_v36 = vmul.f32 1.442695, %v3639_v37 }
 0x7e9   : > { %v3846_v58 = vsel %vm1973_vm4, %v10300_v60, 0.0 }
 0x7ea   : > { %v3847_v28 = vadd.f32 %v10298_v4, %v3846_v58 }
 0x7ec   : > { %3848 = vadd.xlane.f32.xlu1 %v3847_v28 }
 0x7ef   : > { %v10305_v27 = vpop.eup %7350 }
 0x7f0   : > { %v10307_v14 = vpop.eup %7352 }
 0x7f1   : > { %v3854_v0 = vsel %vm1973_vm4, %v10307_v14, 0.0  ;;  %v10342_v59 = vpop.eup %7354 }
 0x7f2   : > { %v3855_v42 = vadd.f32 %v10305_v27, %v3854_v0 }
 0x7f4   : > { %3856 = vadd.xlane.f32.xlu1 %v3855_v42  ;;  %v3694_v42 = vmul.f32 1.442695, %v3634_v44 }
 0x800   : > { %v10320_v21 = vpop.xlane.xlu0 %3588 }
 0x805   : > { %7154 = vrot.lane.b32.xlu1 %v11518_v62, %s7711_s22  ;;  %v3553_v53 = vpop.xlane.xlu1 %3552  ;;  %v3638_v62 = vsub.f32 %v9875_v57, %v10252_v40  ;;  %v3640_v57 = vsub.f32 %v9888_v54, %v10262_v52  ;;  %v3708_v40 = vmul.f32 1.442695, %v3641_v48 }
 0x806   : > { %v3652_v56 = vsub.f32 %v10017_v8, %v3553_v53  ;;  %v3653_v34 = vsub.f32 %v9988_v11, %v3553_v53  ;;  %v3696_v8 = vmul.f32 1.442695, %v3635_v1 }
 0x807   : > { %v3702_v11 = vmul.f32 1.442695, %v3638_v62  ;;  %v3706_v20 = vmul.f32 1.442695, %v3640_v57 }
 0x808   : > { %v3730_v3 = vmul.f32 1.442695, %v3652_v56  ;;  %v3732_v51 = vmul.f32 1.442695, %v3653_v34  ;;  %v10330_v58 = vpop.xlane.xlu0 %3596 }
 0x809   : > { %v3561_v63 = vpop.xlane.xlu1 %3560 }
 0x80a   : > { %7356 = vpow2.f32 %v3730_v3  ;;  %v3657_v0 = vsub.f32 %v10012_v13, %v3561_v63  ;;  %v3656_v39 = vsub.f32 %v10042_v24, %v3561_v63  ;;  %v3643_v13 = vsub.f32 %v9896_v19, %v10270_v33 }
 0x80b   : > { %7358 = vpow2.f32 %v3732_v51 }
 0x80c   : > { %7360 = vpow2.f32 %v3698_v2  ;;  %v10337_v9 = vpop.xlane.xlu0 %3600  ;;  %v3740_v53 = vmul.f32 1.442695, %v3657_v0  ;;  %v3738_v1 = vmul.f32 1.442695, %v3656_v39  ;;  %v3712_v62 = vmul.f32 1.442695, %v3643_v13 }
 0x80d   : > { %v3565_v28 = vpop.xlane.xlu1 %3564  ;;  %7362 = vpow2.f32 %v3704_v36 }
 0x80e   : > { %7364 = vpow2.f32 %v3696_v8  ;;  %v3659_v54 = vsub.f32 %v10025_v15, %v3565_v28  ;;  %v3658_v24 = vsub.f32 %v10070_v38, %v3565_v28  ;;  %v3818_v38 = vsel %vm1973_vm4, %v10342_v59, 0.0 }
 0x80f   : > { %7366 = vpow2.f32 %v3702_v11 }
 0x810   : > { %7368 = vpow2.f32 %v3708_v40  ;;  %v3744_v51 = vmul.f32 1.442695, %v3659_v54 }
 0x811   : > { %v3569_v61 = vpop.xlane.xlu1 %3568  ;;  %7370 = vpow2.f32 %v3694_v42 }
 0x812   : > { %7372 = vpow2.f32 %v3706_v20  ;;  %v3661_v19 = vsub.f32 %v10058_v29, %v3569_v61  ;;  %v3660_v63 = vsub.f32 %v10084_v5, %v3569_v61  ;;  %v3742_v29 = vmul.f32 1.442695, %v3658_v24 }
 0x813   : > { %7374 = vpow2.f32 %v3740_v53 }
 0x814   : > { %v10345_v52 = vpop.eup %7356  ;;  %v10349_v37 = vpop.xlane.xlu0 %3608  ;;  %7376 = vpow2.f32 %v3710_v23  ;;  %v3748_v28 = vmul.f32 1.442695, %v3661_v19  ;;  %v3746_v0 = vmul.f32 1.442695, %v3660_v63 }
 0x815   : > { %v10351_v56 = vpop.eup %7358  ;;  %v3573_v34 = vpop.xlane.xlu1 %3572  ;;  %7378 = vpow2.f32 %v3738_v1 }
 0x816   : > { %v3850_v3 = vsel %vm1973_vm4, %v10351_v56, 0.0  ;;  %v10356_v15 = vpop.eup %7360  ;;  %v3663_v8 = vsub.f32 %v10079_v17, %v3573_v34  ;;  %7380 = vpow2.f32 %v3744_v51  ;;  %v3662_v42 = vsub.f32 %v10111_v16, %v3573_v34 }
 0x817   : > { %v3851_v33 = vadd.f32 %v10345_v52, %v3850_v3  ;;  %v10360_v2 = vpop.eup %7362  ;;  %v3819_v5 = vadd.f32 %v10356_v15, %v3818_v38  ;;  %7382 = vpow2.f32 %v3712_v62  ;;  %v3677_v16 = vsub.f32 %v10051_v10, %v10337_v9 }
 0x818   : > { %v10363_v36 = vpop.xlane.xlu0 %3612  ;;  %v10367_v48 = vpop.eup %7364  ;;  %v3822_v57 = vsel %vm1973_vm4, %v10360_v2, 0.0  ;;  %v3752_v61 = vmul.f32 1.442695, %v3663_v8  ;;  %7384 = vpow2.f32 %v3742_v29  ;;  %v3750_v51 = vmul.f32 1.442695, %v3662_v42 }
 0x819   : > { %3852 = vadd.xlane.f32.xlu0 %v3851_v33  ;;  %v3577_v44 = vpop.xlane.xlu1 %3576  ;;  %v10370_v11 = vpop.eup %7366  ;;  %v3814_v41 = vsel %vm1973_vm4, %v10367_v48, 0.0  ;;  %7386 = vpow2.f32 %v3748_v28  ;;  %v3780_v28 = vmul.f32 1.442695, %v3677_v16  ;;  %v11678_v16 = vld [vmem:[#allocation52_spill] sm:$0xff] }
 0x81a   : > { %v10375_v40 = vpop.eup %7368  ;;  %v3665_v20 = vsub.f32 %v10093_v25, %v3577_v44  ;;  %v3823_v1 = vadd.f32 %v10370_v11, %v3822_v57  ;;  %7388 = vpow2.f32 %v3746_v0  ;;  %v3664_v62 = vsub.f32 %v10139_v26, %v3577_v44  ;;  %v11674_v0 = vld [vmem:[#allocation102_spill] sm:$0xff] }
 0x81b   : > { %v10384_v24 = vpop.eup %7370  ;;  %v3826_v25 = vsel %vm1973_vm4, %v10375_v40, 0.0  ;;  %7390 = vpow2.f32 %v3752_v61  ;;  %v3645_v42 = vsub.f32 %v11674_v0, %v10272_v47 }
 0x81c   : > { %v7150_v17 = vpop.permute.xlu0 %7149  ;;  %v10390_v3 = vpop.eup %7372  ;;  %v3756_v10 = vmul.f32 1.442695, %v3665_v20  ;;  %v3815_v26 = vadd.f32 %v10384_v24, %v3814_v41  ;;  %v3754_v61 = vmul.f32 1.442695, %v3664_v62 }
 0x81d   : > { %v7152_v39 = vunpack.i.h.bf16 %v7150_v17  ;;  %v7151_v53 = vunpack.i.l.bf16 %v7150_v17  ;;  %3820 = vadd.xlane.f32.xlu0 %v3819_v5  ;;  %v3581_v54 = vpop.xlane.xlu1 %3580  ;;  %v10392_v33 = vpop.eup %7374 }
 0x81e   : > { %v3666_v13 = vsub.f32 %v10155_v55, %v3581_v54  ;;  %v3667_v23 = vsub.f32 %v10121_v45, %v3581_v54  ;;  %v3644_v45 = vsub.f32 %v9914_v7, %v10272_v47  ;;  %v10400_v29 = vpop.eup %7376  ;;  %v3827_v7 = vadd.f32 %v10390_v3, %v3826_v25  ;;  %v11676_v54 = vld [vmem:[#allocation96_spill] sm:$0xff] }
 0x81f   : > { %v6666_v34 = vpack.c.bf16 %v7152_v39, %v7151_v53  ;;  %v10405_v44 = vpop.eup %7378  ;;  %v11675_v39 = vld [vmem:[#allocation85_spill] sm:$0xff]  ;;  %v11679_v47 = vld [vmem:[#allocation48_spill] sm:$0xff] }
 0x820   : > { %v3758_v19 = vmul.f32 1.442695, %v3666_v13  ;;  %v3760_v55 = vmul.f32 1.442695, %v3667_v23  ;;  %v10409_v57 = vpop.eup %7380  ;;  %v3714_v17 = vmul.f32 1.442695, %v3644_v45  ;;  %v3676_v53 = vsub.f32 %v11675_v39, %v10337_v9 }
 0x821   : > { %3824 = vadd.xlane.f32.xlu0 %v3823_v1  ;;  %v3585_v63 = vpop.xlane.xlu1 %3584  ;;  %6667 = vmatpush1.bf16.msra.mxu0 %v6666_v34  ;;  %v10413_v20 = vpop.eup %7382  ;;  %v11677_v23 = vld [vmem:[#allocation91_spill] sm:$0xff]  ;;  %v3681_v25 = vsub.f32 %v11679_v47, %v10349_v37  ;;  %v3862_v9 = vsel %vm1973_vm4, %v10409_v57, 0.0  ;;  %v11682_v39 = vld [vmem:[#allocation84_spill] sm:$0xff] }
 0x822   : > { %7392 = vpow2.f32 %v3758_v19  ;;  %v3668_v38 = vsub.f32 %v10169_v43, %v3585_v63  ;;  %v3669_v8 = vsub.f32 %v10149_v6, %v3585_v63  ;;  %6805 = vmatpush1.bf16.msra.mxu1 %v6666_v34  ;;  %6668 = vmatprep.subr.bf16.mxu0 %v11504_v32  ;;  %v3858_v6 = vsel %vm1973_vm4, %v10392_v33, 0.0  ;;  %v10424_v19 = vpop.eup %7384  ;;  %v11680_v63 = vld [vmem:[#allocation92_spill] sm:$0xff] }
 0x823   : > { %7394 = vpow2.f32 %v3760_v55  ;;  %6791 = vmatprep.subr.bf16.mxu1 %v11504_v32  ;;  %v3671_v34 = vsub.f32 %v11678_v16, %v10320_v21  ;;  %v10428_v62 = vpop.eup %7386 }
 0x824   : > { %7396 = vpow2.f32 %v3750_v51  ;;  %v3762_v5 = vmul.f32 1.442695, %v3668_v38  ;;  %v3764_v43 = vmul.f32 1.442695, %v3669_v8  ;;  %v3859_v51 = vadd.f32 %v10405_v44, %v3858_v6 }
 0x825   : > { %7398 = vpow2.f32 %v3756_v10  ;;  %3828 = vadd.xlane.f32.xlu0 %v3827_v7  ;;  %v3593_v41 = vpop.xlane.xlu1 %3592  ;;  %v3716_v10 = vmul.f32 1.442695, %v3645_v42  ;;  %v3680_v38 = vsub.f32 %v11680_v63, %v10349_v37  ;;  %v10434_v7 = vpop.eup %7388  ;;  %v3863_v6 = vadd.f32 %v10424_v19, %v3862_v9  ;;  %v11681_v37 = vld [vmem:[#allocation83_spill] sm:$0xff] }
 0x826   : > { %7400 = vpow2.f32 %v3762_v5  ;;  %v3672_v13 = vsub.f32 %v11676_v54, %v3593_v41  ;;  %v3673_v1 = vsub.f32 %v11677_v23, %v3593_v41  ;;  %v3778_v5 = vmul.f32 1.442695, %v3676_v53 }
 0x827   : > { %7402 = vpow2.f32 %v3764_v43  ;;  %v3788_v43 = vmul.f32 1.442695, %v3681_v25  ;;  %v3670_v42 = vsub.f32 %v11681_v37, %v10320_v21  ;;  %v3675_v53 = vsub.f32 %v11682_v39, %v10330_v58 }
 0x828   : > { %7404 = vpow2.f32 %v3780_v28  ;;  %v3770_v55 = vmul.f32 1.442695, %v3672_v13  ;;  %v3772_v45 = vmul.f32 1.442695, %v3673_v1  ;;  %v10436_v28 = vpop.eup %7390  ;;  %v3786_v54 = vmul.f32 1.442695, %v3680_v38 }
 0x829   : > { %7406 = vpow2.f32 %v3754_v61  ;;  %3816 = vadd.xlane.f32.xlu1 %v3815_v26  ;;  %3860 = vadd.xlane.f32.xlu0 %v3859_v51  ;;  %v10432_v8 = vpop.xlane.xlu1 %3604  ;;  %v3768_v26 = vmul.f32 1.442695, %v3671_v34  ;;  %v3866_v61 = vsel %vm1973_vm4, %v10428_v62, 0.0  ;;  %v3766_v51 = vmul.f32 1.442695, %v3670_v42 }
 0x82a   : > { %7408 = vpow2.f32 %v3770_v55  ;;  %v3867_v47 = vadd.f32 %v10434_v7, %v3866_v61 }
 0x82b   : > { %7410 = vpow2.f32 %v3772_v45 }
 0x82c   : > { %v10439_v0 = vpop.eup %7392  ;;  %7412 = vpow2.f32 %v3714_v17 }
 0x82d   : > { %v10445_v41 = vpop.eup %7394  ;;  %7414 = vpow2.f32 %v3716_v10  ;;  %3864 = vadd.xlane.f32.xlu0 %v3863_v6  ;;  %v3617_v13 = vpop.xlane.xlu1 %3616  ;;  %v3776_v10 = vmul.f32 1.442695, %v3675_v53 }
 0x82e   : > { %v10449_v23 = vpop.eup %7396  ;;  %7416 = vpow2.f32 %v3778_v5  ;;  %v3684_v17 = vsub.f32 %v10210_v35, %v3617_v13  ;;  %v3685_v21 = vsub.f32 %v10192_v31, %v3617_v13  ;;  %v3878_v1 = vsel %vm1973_vm4, %v10445_v41, 0.0  ;;  %v11683_v31 = vld [vmem:[#allocation104_spill] sm:$0xff] }
 0x82f   : > { %v10455_v16 = vpop.eup %7398  ;;  %7418 = vpow2.f32 %v3788_v43  ;;  %v3879_v34 = vadd.f32 %v10439_v0, %v3878_v1  ;;  %v3870_v35 = vsel %vm1973_vm4, %v10436_v28, 0.0  ;;  %v3674_v9 = vsub.f32 %v11683_v31, %v10330_v58 }
 0x830   : > { %v10459_v25 = vpop.eup %7400  ;;  %7420 = vpow2.f32 %v3768_v26  ;;  %v3796_v55 = vmul.f32 1.442695, %v3685_v21  ;;  %v3794_v5 = vmul.f32 1.442695, %v3684_v17  ;;  %v11684_v26 = vld [vmem:[#allocation86_spill] sm:$0xff]  ;;  %v3871_v39 = vadd.f32 %v10449_v23, %v3870_v35 }
 0x831   : > { %v10463_v45 = vpop.eup %7402  ;;  %7422 = vpow2.f32 %v3786_v54  ;;  %3880 = vadd.xlane.f32.xlu1 %v3879_v34  ;;  %3868 = vadd.xlane.f32.xlu0 %v3867_v47  ;;  %v3625_v63 = vpop.xlane.xlu1 %3624  ;;  %v3679_v58 = vsub.f32 %v11684_v26, %v10432_v8  ;;  %v3774_v13 = vmul.f32 1.442695, %v3674_v9  ;;  %v11685_v17 = vld [vmem:[#allocation90_spill] sm:$0xff]  ;;  %v3678_v34 = vsub.f32 %v10197_v49, %v10432_v8 }
 0x832   : > { %v10467_v38 = vpop.eup %7404  ;;  %v3688_v43 = vsub.f32 %v10218_v22, %v3625_v63  ;;  %v3689_v6 = vsub.f32 %v10205_v12, %v3625_v63  ;;  %v3882_v37 = vsel %vm1973_vm4, %v10463_v45, 0.0  ;;  %7424 = vpow2.f32 %v3796_v55 }
 0x833   : > { %v10473_v42 = vpop.eup %7406  ;;  %v3883_v61 = vadd.f32 %v10459_v25, %v3882_v37  ;;  %7426 = vpow2.f32 %v3766_v51  ;;  %v3874_v12 = vsel %vm1973_vm4, %v10455_v16, 0.0  ;;  %v3683_v21 = vsub.f32 %v11685_v17, %v10363_v36 }
 0x834   : > { %v10479_v53 = vpop.eup %7408  ;;  %v3804_v54 = vmul.f32 1.442695, %v3689_v6  ;;  %7428 = vpow2.f32 %v3776_v10  ;;  %v3802_v47 = vmul.f32 1.442695, %v3688_v43  ;;  %v3784_v35 = vmul.f32 1.442695, %v3679_v58 }
 0x835   : > { %v10483_v22 = vpop.eup %7410  ;;  %3884 = vadd.xlane.f32.xlu1 %v3883_v61  ;;  %3872 = vadd.xlane.f32.xlu0 %v3871_v39  ;;  %7430 = vpow2.f32 %v3794_v5  ;;  %v3875_v9 = vadd.f32 %v10473_v42, %v3874_v12  ;;  %v3898_v63 = vsel %vm1973_vm4, %v10467_v38, 0.0  ;;  %v3830_v49 = vsel %vm1973_vm4, %v10413_v20, 0.0  ;;  %v11687_v43 = vld [vmem:[#allocation94_spill] sm:$0xff] }
 0x836   : > { %v10487_v1 = vpop.eup %7412  ;;  %v3890_v51 = vsel %vm1973_vm4, %v10483_v22, 0.0  ;;  %7432 = vpow2.f32 %v3804_v54  ;;  %v3682_v6 = vsub.f32 %v11687_v43, %v10363_v36  ;;  %v3782_v37 = vmul.f32 1.442695, %v3678_v34 }
 0x837   : > { %v10493_v55 = vpop.eup %7414  ;;  %v3891_v31 = vadd.f32 %v10479_v53, %v3890_v51  ;;  %7434 = vpow2.f32 %v3774_v13  ;;  %v3792_v58 = vmul.f32 1.442695, %v3683_v21  ;;  %v3831_v39 = vadd.f32 %v10400_v29, %v3830_v49 }
 0x838   : > { %v10497_v10 = vpop.eup %7416  ;;  %7436 = vpow2.f32 %v3802_v47  ;;  %v3834_v12 = vsel %vm1973_vm4, %v10493_v55, 0.0  ;;  %v3790_v17 = vmul.f32 1.442695, %v3682_v6 }
 0x839   : > { %v10503_v8 = vpop.eup %7418  ;;  %3892 = vadd.xlane.f32.xlu1 %v3891_v31  ;;  %3876 = vadd.xlane.f32.xlu0 %v3875_v9  ;;  %7438 = vpow2.f32 %v3784_v35  ;;  %v3899_v61 = vadd.f32 %v10497_v10, %v3898_v63  ;;  %v3835_v47 = vadd.f32 %v10487_v1, %v3834_v12 }
 0x83a   : > { %11686 = vst [vmem:[#allocation107_spill] sm:$0xff] %v10503_v8  ;;  %v10505_v5 = vpop.eup %7420  ;;  %v3906_v54 = vsel %vm1973_vm4, %v10503_v8, 0.0  ;;  %7440 = vpow2.f32 %v3782_v37 }
 0x83b   : > { %v10509_v26 = vpop.eup %7422  ;;  %7442 = vpow2.f32 %v3792_v58  ;;  %v3886_v31 = vsel %vm1973_vm4, %v10505_v5, 0.0 }
 0x83c   : > { %11688 = vst [vmem:[#allocation13_spill] sm:$0xff] %v10509_v26  ;;  %v10517_v13 = vpop.eup %7424  ;;  %v3907_v34 = vadd.f32 %v10509_v26, %v3906_v54  ;;  %7444 = vpow2.f32 %v3790_v17 }
 0x83d   : > { %11689 = vst [vmem:[#allocation108_spill] sm:$0xff] %v10517_v13  ;;  %3900 = vadd.xlane.f32.xlu1 %v3899_v61  ;;  %3832 = vadd.xlane.f32.xlu0 %v3831_v39  ;;  %v10519_v36 = vpop.eup %7426  ;;  %v3914_v35 = vsel %vm1973_vm4, %v10517_v13, 0.0  ;;  %v11699_v13 = vld [vmem:[#allocation105_spill] sm:$0xff] }
 0x83e   : > { %v10521_v21 = vpop.eup %7428  ;;  %v3887_v43 = vadd.f32 %v10519_v36, %v3886_v31 }
 0x83f   : > { %v10525_v51 = vpop.eup %7430  ;;  %v3894_v58 = vsel %vm1973_vm4, %v10521_v21, 0.0 }
 0x840   : > { %11690 = vst [vmem:[#allocation97_spill] sm:$0xff] %v10525_v51  ;;  %v10531_v9 = vpop.eup %7432  ;;  %v3915_v49 = vadd.f32 %v10525_v51, %v3914_v35 }
 0x841   : > { %11691 = vst [vmem:[#allocation16_spill] sm:$0xff] %v10531_v9  ;;  %3908 = vadd.xlane.f32.xlu1 %v3907_v34  ;;  %3836 = vadd.xlane.f32.xlu0 %v3835_v47  ;;  %v10533_v63 = vpop.eup %7434  ;;  %v3922_v37 = vsel %vm1973_vm4, %v10531_v9, 0.0 }
 0x842   : > { %v10537_v6 = vpop.eup %7436  ;;  %v3895_v54 = vadd.f32 %v10533_v63, %v3894_v58  ;;  %v11697_v58 = vld [vmem:[#allocation93_spill] sm:$0xff] }
 0x843   : > { %11692 = vst [vmem:[#allocation110_spill] sm:$0xff] %v10537_v6  ;;  %v10543_v61 = vpop.eup %7438  ;;  %v3923_v39 = vadd.f32 %v10537_v6, %v3922_v37 }
 0x844   : > { %11693 = vst [vmem:[#allocation19_spill] sm:$0xff] %v10543_v61  ;;  %v10547_v12 = vpop.eup %7440  ;;  %v3902_v17 = vsel %vm1973_vm4, %v10543_v61, 0.0  ;;  %v11701_v61 = vld [vmem:[#allocation98_spill] sm:$0xff] }
 0x845   : > { %3916 = vadd.xlane.f32.xlu1 %v3915_v49  ;;  %3888 = vadd.xlane.f32.xlu0 %v3887_v43  ;;  %11694 = vst [vmem:[#allocation22_spill] sm:$0xff] %v10547_v12  ;;  %v10551_v34 = vpop.eup %7442  ;;  %v3903_v47 = vadd.f32 %v10547_v12, %v3902_v17  ;;  %v11696_v43 = vld [vmem:[#allocation51_spill] sm:$0xff]  ;;  %v11700_v12 = vld [vmem:[#allocation106_spill] sm:$0xff] }
 0x846   : > { %11695 = vst [vmem:[#allocation109_spill] sm:$0xff] %v10551_v34  ;;  %v10554_v35 = vpop.eup %7444  ;;  %v3910_v31 = vsel %vm1973_vm4, %v10551_v34, 0.0 }
 0x847   : > { %v3911_v6 = vadd.f32 %v10554_v35, %v3910_v31 }
 0x849   : > { %3924 = vadd.xlane.f32.xlu1 %v3923_v39  ;;  %3896 = vadd.xlane.f32.xlu0 %v3895_v54  ;;  %v11698_v54 = vld [vmem:[#allocation95_spill] sm:$0xff] }
 0x84d   : > { %3904 = vadd.xlane.f32.xlu0 %v3903_v47  ;;  %v3621_v49 = vpop.xlane.xlu0 %3620 }
 0x84e   : > { %v3686_v37 = vsub.f32 %v11696_v43, %v3621_v49  ;;  %v3687_v32 = vsub.f32 %v11697_v58, %v3621_v49 }
 0x850   : > { %v3798_v9 = vmul.f32 1.442695, %v3686_v37  ;;  %v3800_v51 = vmul.f32 1.442695, %v3687_v32 }
 0x851   : > { %3912 = vadd.xlane.f32.xlu0 %v3911_v6  ;;  %v3629_v39 = vpop.xlane.xlu0 %3628 }
 0x852   : > { %7446 = vpow2.f32 %v3798_v9  ;;  %v3690_v17 = vsub.f32 %v11698_v54, %v3629_v39  ;;  %v3691_v26 = vsub.f32 %v11699_v13, %v3629_v39 }
 0x853   : > { %7448 = vpow2.f32 %v3800_v51 }
 0x854   : > { %v3806_v8 = vmul.f32 1.442695, %v3690_v17  ;;  %v3808_v34 = vmul.f32 1.442695, %v3691_v26 }
 0x855   : > { %v3633_v47 = vpop.xlane.xlu0 %3632 }
 0x856   : > { %7450 = vpow2.f32 %v3806_v8  ;;  %v3692_v43 = vsub.f32 %v11700_v12, %v3633_v47  ;;  %v3693_v49 = vsub.f32 %v11701_v61, %v3633_v47 }
 0x857   : > { %7452 = vpow2.f32 %v3808_v34 }
 0x858   : > { %v3810_v31 = vmul.f32 1.442695, %v3692_v43  ;;  %v3812_v37 = vmul.f32 1.442695, %v3693_v49 }
 0x85a   : > { %7454 = vpow2.f32 %v3810_v31 }
 0x85b   : > { %7456 = vpow2.f32 %v3812_v37 }
 0x85c   : > { %v10565_v32 = vpop.eup %7446 }
 0x85d   : > { %v10567_v9 = vpop.eup %7448 }
 0x85e   : > { %v3918_v13 = vsel %vm1973_vm4, %v10567_v9, 0.0 }
 0x85f   : > { %v3919_v26 = vadd.f32 %v10565_v32, %v3918_v13 }
 0x860   : > { %v10572_v51 = vpop.eup %7450 }
 0x861   : > { %v10574_v8 = vpop.eup %7452  ;;  %3920 = vadd.xlane.f32.xlu0 %v3919_v26 }
 0x862   : > { %v3926_v6 = vsel %vm1973_vm4, %v10574_v8, 0.0 }
 0x863   : > { %v3927_v61 = vadd.f32 %v10572_v51, %v3926_v6 }
 0x864   : > { %v10579_v12 = vpop.eup %7454 }
 0x865   : > { %v10581_v34 = vpop.eup %7456  ;;  %3928 = vadd.xlane.f32.xlu0 %v3927_v61 }
 0x866   : > { %v3930_v58 = vsel %vm1973_vm4, %v10581_v34, 0.0 }
 0x867   : > { %v3931_v39 = vadd.f32 %v10579_v12, %v3930_v58 }
 0x869   : > { %3932 = vadd.xlane.f32.xlu1 %v3931_v39 }
 0x871   : > { %v3841_v54 = vpop.xlane.xlu1 %3840 }
 0x872   : > { %7458 = vrcp.f32 %v3841_v54 }
 0x875   : > { %v3845_v47 = vpop.xlane.xlu0 %3844 }
 0x876   : > { %7460 = vrcp.f32 %v3845_v47 }
 0x879   : > { %v3849_v43 = vpop.xlane.xlu1 %3848 }
 0x87a   : > { %7462 = vrcp.f32 %v3849_v43 }
 0x87c   : > { %v7459_v17 = vpop.eup %7458 }
 0x87d   : > { %v3977_v49 = vmul.f32 %v7459_v17, %v10284_v18  ;;  %v3976_v58 = vmul.f32 %v7459_v17, %v10282_v30 }
 0x87f   : > { %5988 = vmatprep.mubr.msk.f32.mxu1 %vm1973_vm4, %v3977_v49 }
 0x880   : > { %v7461_v61 = vpop.eup %7460 }
 0x881   : > { %v3857_v31 = vpop.xlane.xlu1 %3856  ;;  %v3979_v39 = vmul.f32 %v7461_v61, %v10293_v50  ;;  %v3978_v18 = vmul.f32 %v7461_v61, %v10291_v46 }
 0x882   : > { %7464 = vrcp.f32 %v3857_v31 }
 0x884   : > { %v7463_v54 = vpop.eup %7462 }
 0x885   : > { %v7155_v37 = vpop.permute.xlu1 %7154  ;;  %v3981_v47 = vmul.f32 %v7463_v54, %v10300_v60  ;;  %v3980_v43 = vmul.f32 %v7463_v54, %v10298_v4 }
 0x886   : > { %v7157_v13 = vunpack.i.h.bf16 %v7155_v37  ;;  %v7156_v26 = vunpack.i.l.bf16 %v7155_v37 }
 0x888   : > { %v6669_v6 = vpack.c.bf16 %v7157_v13, %v7156_v26 }
 0x88a   : > { %6670 = vmatpush1.bf16.msra.mxu0 %v6669_v6  ;;  %6806 = vmatpush1.bf16.msra.mxu1 %v6669_v6 }
 0x88c   : > { %v7465_v50 = vpop.eup %7464 }
 0x88d   : > { %4299 = vmatmul.mubr.f32.vlgmr.msra.gmra.mrb[90].mxu1 %v3976_v58  ;;  %v3985_v60 = vmul.f32 %v7465_v50, %v10307_v14  ;;  %v3984_v6 = vmul.f32 %v7465_v50, %v10305_v27 }
 0x88e   : > { %5989 = vmatprep.mubr.msk.f32.mxu1 %vm1973_vm4, %v3979_v39 }
 0x891   : > { %4304 = vmatmul.mubr.f32.gmra.mrb[92].mxu1 %v3978_v18 }
 0x892   : > { %5990 = vmatprep.mubr.msk.f32.mxu1 %vm1973_vm4, %v3981_v47 }
 0x895   : > { %4309 = vmatmul.mubr.f32.gmra.mrb[94].mxu1 %v3980_v43 }
 0x8a6   : > { %v3853_v49 = vpop.xlane.xlu0 %3852 }
 0x8a7   : > { %7466 = vrcp.f32 %v3853_v49 }
 0x8aa   : > { %v3821_v30 = vpop.xlane.xlu0 %3820 }
 0x8ab   : > { %7468 = vrcp.f32 %v3821_v30 }
 0x8ae   : > { %v3825_v17 = vpop.xlane.xlu0 %3824 }
 0x8b1   : > { %v7467_v37 = vpop.eup %7466 }
 0x8b2   : > { %v3829_v13 = vpop.xlane.xlu0 %3828  ;;  %v3983_v26 = vmul.f32 %v7467_v37, %v10351_v56  ;;  %v3982_v46 = vmul.f32 %v7467_v37, %v10345_v52 }
 0x8b4   : > { %5991 = vmatprep.mubr.msk.f32.mxu1 %vm1973_vm4, %v3983_v26 }
 0x8b5   : > { %4314 = vmatmul.mubr.f32.gmra.mrb[96].mxu1 %v3982_v46  ;;  %v7469_v52 = vpop.eup %7468 }
 0x8b6   : > { %v3817_v4 = vpop.xlane.xlu1 %3816  ;;  %5992 = vmatprep.mubr.msk.f32.mxu1 %vm1973_vm4, %v3985_v60  ;;  %v3861_v31 = vpop.xlane.xlu0 %3860  ;;  %v3967_v30 = vmul.f32 %v7469_v52, %v10342_v59 }
 0x8b7   : > { %7470 = vrcp.f32 %v3817_v4 }
 0x8b8   : > { %7472 = vrcp.f32 %v3861_v31 }
 0x8b9   : > { %4319 = vmatmul.mubr.f32.gmra.mrb[98].mxu1 %v3984_v6  ;;  %7474 = vrcp.f32 %v3825_v17 }
 0x8ba   : > { %v3865_v61 = vpop.xlane.xlu0 %3864 }
 0x8bb   : > { %7476 = vrcp.f32 %v3865_v61 }
 0x8bc   : > { %7478 = vrcp.f32 %v3829_v13 }
 0x8be   : > { %v3869_v56 = vpop.xlane.xlu0 %3868  ;;  %v3881_v54 = vpop.xlane.xlu1 %3880 }
 0x8bf   : > { %7480 = vrcp.f32 %v3869_v56 }
 0x8c1   : > { %v7471_v58 = vpop.eup %7470 }
 0x8c2   : > { %v7473_v14 = vpop.eup %7472  ;;  %v3964_v39 = vmul.f32 %v7471_v58, %v10384_v24  ;;  %v3873_v18 = vpop.xlane.xlu0 %3872  ;;  %v3965_v47 = vmul.f32 %v7471_v58, %v10367_v48 }
 0x8c3   : > { %v3987_v43 = vmul.f32 %v7473_v14, %v10392_v33  ;;  %v3986_v27 = vmul.f32 %v7473_v14, %v10405_v44  ;;  %v7475_v49 = vpop.eup %7474  ;;  %7482 = vrcp.f32 %v3873_v18  ;;  %v3966_v44 = vmul.f32 %v7469_v52, %v10356_v15  ;;  %v3885_v50 = vpop.xlane.xlu1 %3884 }
 0x8c4   : > { %5982 = vmatprep.mubr.msk.f32.mxu0 %vm1973_vm4, %v3965_v47  ;;  %7484 = vrcp.f32 %v3881_v54  ;;  %v3969_v59 = vmul.f32 %v7475_v49, %v10360_v2 }
 0x8c5   : > { %v7477_v17 = vpop.eup %7476  ;;  %5993 = vmatprep.mubr.msk.f32.mxu1 %vm1973_vm4, %v3987_v43  ;;  %4269 = vmatmul.mubr.f32.vlgmr.msra.gmra.mrb[150].mxu0 %v3964_v39 }
 0x8c6   : > { %4324 = vmatmul.mubr.f32.gmra.mrb[100].mxu1 %v3986_v27  ;;  %5983 = vmatprep.mubr.msk.f32.mxu0 %vm1973_vm4, %v3967_v30  ;;  %v3877_v24 = vpop.xlane.xlu0 %3876  ;;  %v3989_v48 = vmul.f32 %v7477_v17, %v10409_v57  ;;  %v3988_v33 = vmul.f32 %v7477_v17, %v10424_v19  ;;  %v7479_v37 = vpop.eup %7478  ;;  %v3968_v19 = vmul.f32 %v7475_v49, %v10370_v11 }
 0x8c7   : > { %7486 = vrcp.f32 %v3877_v24  ;;  %v3971_v46 = vmul.f32 %v7479_v37, %v10375_v40  ;;  %v3970_v31 = vmul.f32 %v7479_v37, %v10390_v3  ;;  %v3893_v11 = vpop.xlane.xlu1 %3892  ;;  %v11704_v37 = vld [vmem:[#allocation107_spill] sm:$0xff] }
 0x8c8   : > { %5994 = vmatprep.mubr.msk.f32.mxu1 %vm1973_vm4, %v3989_v48  ;;  %7488 = vrcp.f32 %v3885_v50  ;;  %v11702_v48 = vld [vmem:[#allocation19_spill] sm:$0xff]  ;;  %v11703_v50 = vld [vmem:[#allocation22_spill] sm:$0xff] }
 0x8c9   : > { %4274 = vmatmul.mubr.f32.gmra.mrb[152].mxu0 %v3966_v44  ;;  %v7481_v13 = vpop.eup %7480 }
 0x8ca   : > { %4329 = vmatmul.mubr.f32.gmra.mrb[102].mxu1 %v3988_v33  ;;  %5984 = vmatprep.mubr.msk.f32.mxu0 %vm1973_vm4, %v3969_v59  ;;  %v3833_v26 = vpop.xlane.xlu0 %3832  ;;  %v3991_v57 = vmul.f32 %v7481_v13, %v10428_v62  ;;  %v3990_v15 = vmul.f32 %v7481_v13, %v10434_v7 }
 0x8cb   : > { %7490 = vrcp.f32 %v3833_v26  ;;  %v3901_v39 = vpop.xlane.xlu1 %3900  ;;  %v11705_v26 = vld [vmem:[#allocation13_spill] sm:$0xff] }
 0x8cc   : > { %5995 = vmatprep.mubr.msk.f32.mxu1 %vm1973_vm4, %v3991_v57 }
 0x8cd   : > { %4279 = vmatmul.mubr.f32.gmra.mrb[154].mxu0 %v3968_v19  ;;  %v7483_v2 = vpop.eup %7482  ;;  %v11706_v19 = vld [vmem:[#allocation109_spill] sm:$0xff] }
 0x8ce   : > { %4334 = vmatmul.mubr.f32.gmra.mrb[104].mxu1 %v3990_v15  ;;  %5985 = vmatprep.mubr.msk.f32.mxu0 %vm1973_vm4, %v3971_v46  ;;  %v3837_v60 = vpop.xlane.xlu0 %3836  ;;  %v3993_v4 = vmul.f32 %v7483_v2, %v10436_v28  ;;  %v3992_v62 = vmul.f32 %v7483_v2, %v10449_v23  ;;  %v7485_v7 = vpop.eup %7484 }
 0x8cf   : > { %7492 = vrcp.f32 %v3837_v60  ;;  %v3997_v3 = vmul.f32 %v7485_v7, %v10445_v41  ;;  %v3909_v27 = vpop.xlane.xlu1 %3908 }
 0x8d0   : > { %5996 = vmatprep.mubr.msk.f32.mxu1 %vm1973_vm4, %v3993_v4  ;;  %7494 = vrcp.f32 %v3893_v11  ;;  %v11707_v4 = vld [vmem:[#allocation108_spill] sm:$0xff]  ;;  %v11708_v11 = vld [vmem:[#allocation97_spill] sm:$0xff] }
 0x8d1   : > { %4284 = vmatmul.mubr.f32.gmra.mrb[156].mxu0 %v3970_v31  ;;  %v7487_v40 = vpop.eup %7486 }
 0x8d2   : > { %4339 = vmatmul.mubr.f32.gmra.mrb[106].mxu1 %v3992_v62  ;;  %v3889_v6 = vpop.xlane.xlu0 %3888  ;;  %v3995_v61 = vmul.f32 %v7487_v40, %v10455_v16  ;;  %v3994_v56 = vmul.f32 %v7487_v40, %v10473_v42  ;;  %v7489_v28 = vpop.eup %7488  ;;  %v3996_v16 = vmul.f32 %v7485_v7, %v10439_v0 }
 0x8d3   : > { %7496 = vrcp.f32 %v3889_v6  ;;  %v3999_v42 = vmul.f32 %v7489_v28, %v10463_v45 }
 0x8d4   : > { %5997 = vmatprep.mubr.msk.f32.mxu1 %vm1973_vm4, %v3995_v61 }
 0x8d5   : > { %v7491_v23 = vpop.eup %7490 }
 0x8d6   : > { %4344 = vmatmul.mubr.f32.gmra.mrb[108].mxu1 %v3994_v56  ;;  %v3897_v52 = vpop.xlane.xlu0 %3896  ;;  %v3973_v58 = vmul.f32 %v7491_v23, %v10413_v20  ;;  %v3972_v14 = vmul.f32 %v7491_v23, %v10400_v29  ;;  %v3998_v29 = vmul.f32 %v7489_v28, %v10459_v25  ;;  %v11709_v56 = vld [vmem:[#allocation16_spill] sm:$0xff] }
 0x8d7   : > { %5998 = vmatprep.mubr.msk.f32.mxu1 %vm1973_vm4, %v3997_v3  ;;  %7498 = vrcp.f32 %v3897_v52  ;;  %v11710_v3 = vld [vmem:[#allocation110_spill] sm:$0xff] }
 0x8d8   : > { %5986 = vmatprep.mubr.msk.f32.mxu0 %vm1973_vm4, %v3973_v58  ;;  %7500 = vrcp.f32 %v3901_v39 }
 0x8d9   : > { %v7493_v54 = vpop.eup %7492  ;;  %4289 = vmatmul.mubr.f32.gmra.mrb[158].mxu0 %v3972_v14 }
 0x8da   : > { %4349 = vmatmul.mubr.f32.gmra.mrb[110].mxu1 %v3996_v16  ;;  %v3975_v41 = vmul.f32 %v7493_v54, %v10493_v55  ;;  %v3974_v18 = vmul.f32 %v7493_v54, %v10487_v1  ;;  %v7495_v20 = vpop.eup %7494  ;;  %v3905_v47 = vpop.xlane.xlu0 %3904 }
 0x8db   : > { %5999 = vmatprep.mubr.msk.f32.mxu1 %vm1973_vm4, %v3999_v42  ;;  %7502 = vrcp.f32 %v3905_v47  ;;  %v4003_v1 = vmul.f32 %v7495_v20, %v10483_v22  ;;  %v4002_v25 = vmul.f32 %v7495_v20, %v10479_v53 }
 0x8dc   : > { %5987 = vmatprep.mubr.msk.f32.mxu0 %vm1973_vm4, %v3975_v41  ;;  %7504 = vrcp.f32 %v3909_v27  ;;  %v11711_v27 = vmov 0.0|0.0  }
 0x8dd   : > { %v7497_v0 = vpop.eup %7496  ;;  %4294 = vmatmul.mubr.f32.gmra.mrb[160].mxu0 %v3974_v18 }
 0x8de   : > { %4354 = vmatmul.mubr.f32.gmra.mrb[112].mxu1 %v3998_v29  ;;  %v4001_v45 = vmul.f32 %v7497_v0, %v10505_v5  ;;  %v4000_v43 = vmul.f32 %v7497_v0, %v10519_v36  ;;  %v3913_v49 = vpop.xlane.xlu0 %3912  ;;  %v3917_v36 = vpop.xlane.xlu1 %3916  ;;  %v4602_v0 = vld [vmem:[%s11106_s6 + $0x10] sm:$0xff] }
 0x8df   : > { %7506 = vrcp.f32 %v3913_v49 }
 0x8e0   : > { %6000 = vmatprep.mubr.msk.f32.mxu1 %vm1973_vm4, %v4001_v45  ;;  %7508 = vrcp.f32 %v3917_v36  ;;  %v4603_v45 = vld [vmem:[%s11106_s6 + $0x18] sm:$0xff] }
 0x8e1   : > { %v7499_v55 = vpop.eup %7498 }
 0x8e2   : > { %4359 = vmatmul.mubr.f32.gmra.mrb[114].mxu1 %v4000_v43  ;;  %v4005_v30 = vmul.f32 %v7499_v55, %v10521_v21  ;;  %v7501_v17 = vpop.eup %7500  ;;  %v4004_v5 = vmul.f32 %v7499_v55, %v10533_v63  ;;  %v3925_v59 = vpop.xlane.xlu1 %3924  ;;  %v6675_v43 = vpack.c.bf16 %v4603_v45, %v4602_v0 }
 0x8e3   : > { %6001 = vmatprep.mubr.msk.f32.mxu1 %vm1973_vm4, %v4003_v1  ;;  %v4007_v22 = vmul.f32 %v7501_v17, %v10467_v38  ;;  %v4006_v53 = vmul.f32 %v7501_v17, %v10497_v10 }
 0x8e5   : > { %v7503_v24 = vpop.eup %7502 }
 0x8e6   : > { %4364 = vmatmul.mubr.f32.gmra.mrb[116].mxu1 %v4002_v25  ;;  %v4009_v33 = vmul.f32 %v7503_v24, %v11702_v48  ;;  %v7505_v21 = vpop.eup %7504  ;;  %v4008_v63 = vmul.f32 %v7503_v24, %v11703_v50 }
 0x8e7   : > { %6002 = vmatprep.mubr.msk.f32.mxu1 %vm1973_vm4, %v4005_v30  ;;  %v4011_v38 = vmul.f32 %v7505_v21, %v11704_v37  ;;  %v4010_v10 = vmul.f32 %v7505_v21, %v11705_v26 }
 0x8e9   : > { %v7507_v13 = vpop.eup %7506 }
 0x8ea   : > { %4369 = vmatmul.mubr.f32.gmra.mrb[118].mxu1 %v4004_v5  ;;  %v4013_v15 = vmul.f32 %v7507_v13, %v11706_v19  ;;  %v7509_v46 = vpop.eup %7508  ;;  %v4012_v2 = vmul.f32 %v7507_v13, %v10554_v35 }
 0x8eb   : > { %6003 = vmatprep.mubr.msk.f32.mxu1 %vm1973_vm4, %v4007_v22  ;;  %v4015_v31 = vmul.f32 %v7509_v46, %v11707_v4  ;;  %v4014_v7 = vmul.f32 %v7509_v46, %v11708_v11 }
 0x8ee   : > { %4374 = vmatmul.mubr.f32.gmra.mrb[120].mxu1 %v4006_v53  ;;  %v3921_v44 = vpop.xlane.xlu0 %3920 }
 0x8ef   : > { %6004 = vmatprep.mubr.msk.f32.mxu1 %vm1973_vm4, %v4009_v33  ;;  %7510 = vrcp.f32 %v3921_v44 }
 0x8f0   : > { %7512 = vrcp.f32 %v3925_v59 }
 0x8f2   : > { %4379 = vmatmul.mubr.f32.gmra.mrb[122].mxu1 %v4008_v63  ;;  %v3929_v57 = vpop.xlane.xlu0 %3928 }
 0x8f3   : > { %6005 = vmatprep.mubr.msk.f32.mxu1 %vm1973_vm4, %v4011_v38  ;;  %7514 = vrcp.f32 %v3929_v57 }
 0x8f6   : > { %4384 = vmatmul.mubr.f32.gmra.mrb[124].mxu1 %v4010_v10  ;;  %v3933_v60 = vpop.xlane.xlu1 %3932 }
 0x8f7   : > { %6006 = vmatprep.mubr.msk.f32.mxu1 %vm1973_vm4, %v4013_v15  ;;  %7516 = vrcp.f32 %v3933_v60 }
 0x8f9   : > { %v7511_v62 = vpop.eup %7510 }
 0x8fa   : > { %4389 = vmatmul.mubr.f32.gmra.mrb[126].mxu1 %v4012_v2  ;;  %v4017_v40 = vmul.f32 %v7511_v62, %v10567_v9  ;;  %v7513_v6 = vpop.eup %7512  ;;  %v4016_v61 = vmul.f32 %v7511_v62, %v10565_v32 }
 0x8fb   : > { %6007 = vmatprep.mubr.msk.f32.mxu1 %vm1973_vm4, %v4015_v31  ;;  %v4019_v35 = vmul.f32 %v7513_v6, %v11709_v56  ;;  %v4018_v23 = vmul.f32 %v7513_v6, %v11710_v3 }
 0x8fd   : > { %v7515_v28 = vpop.eup %7514 }
 0x8fe   : > { %4394 = vmatmul.mubr.f32.gmra.mrb[128].mxu1 %v4014_v7  ;;  %v4021_v52 = vmul.f32 %v7515_v28, %v10574_v8  ;;  %v4020_v9 = vmul.f32 %v7515_v28, %v10572_v51  ;;  %v4600_v51 = vld [vmem:[%s11106_s6] sm:$0xff] }
 0x8ff   : > { %6008 = vmatprep.mubr.msk.f32.mxu1 %vm1973_vm4, %v4017_v40 }
 0x901   : > { %v7517_v58 = vpop.eup %7516 }
 0x902   : > { %4399 = vmatmul.mubr.f32.gmra.mrb[130].mxu1 %v4016_v61  ;;  %v4023_v14 = vmul.f32 %v7517_v58, %v10581_v34  ;;  %v4022_v32 = vmul.f32 %v7517_v58, %v10579_v12  ;;  %v4601_v34 = vld [vmem:[%s11106_s6 + $0x8] sm:$0xff] }
 0x903   : > { %6009 = vmatprep.mubr.msk.f32.mxu1 %vm1973_vm4, %v4019_v35  ;;  %v6671_v12 = vpack.c.bf16 %v4601_v34, %v4600_v51 }
 0x905   : > { %6672 = vmatprep.subr.bf16.mxu0 %v6671_v12 }
 0x906   : > { %4404 = vmatmul.mubr.f32.gmra.mrb[132].mxu1 %v4018_v23  ;;  %6674 = vmatpush3.bf16.msra.mxu0 %v6671_v12 }
 0x907   : > { %6010 = vmatprep.mubr.msk.f32.mxu1 %vm1973_vm4, %v4021_v52  ;;  %6676 = vmatprep.subr.bf16.mxu0 %v6675_v43 }
 0x90a   : > { %4409 = vmatmul.mubr.f32.gmra.mrb[134].mxu1 %v4020_v9  ;;  %6678 = vmatpush3.bf16.msra.mxu0 %v6675_v43 }
 0x90b   : > { %6011 = vmatprep.mubr.msk.f32.mxu1 %vm1973_vm4, %v4023_v14  ;;  %6687 = vmatprep.subr.bf16.mxu0 %v11711_v27 }
 0x90e   : > { %4414 = vmatmul.mubr.f32.gmra.mrb[136].mxu1 %v4022_v32 }
 0x960   : > { %v4300_v16 = vpop.f32.mrb[90].mxu1 }
 0x961   : > { %v4302_v39 = vpop.f32.mrb[91].mxu1 }
 0x962   : > { %v4947_v39 = vld [vmem:[%s11108_s8 + $0x8] sm:$0xff] }
 0x964   : > { %v4305_v42 = vpop.f32.mrb[92].mxu1 }
 0x965   : > { %v4307_v54 = vpop.f32.mrb[93].mxu1 }
 0x968   : > { %v4310_v41 = vpop.f32.mrb[94].mxu1 }
 0x969   : > { %v4312_v8 = vpop.f32.mrb[95].mxu1 }
 0x96a   : > { %v4949_v8 = vld [vmem:[%s11108_s8 + $0x18] sm:$0xff] }
 0x988   : > { %v4315_v18 = vpop.f32.mrb[96].mxu1 }
 0x989   : > { %v4317_v29 = vpop.f32.mrb[97].mxu1 }
 0x98c   : > { %v4320_v20 = vpop.f32.mrb[98].mxu1 }
 0x98d   : > { %v4322_v47 = vpop.f32.mrb[99].mxu1 }
 0x998   : > { %v4270_v1 = vpop.f32.mrb[150].mxu0 }
 0x999   : > { %v4325_v55 = vpop.f32.mrb[100].mxu1  ;;  %v4272_v25 = vpop.f32.mrb[151].mxu0  ;;  %4449 = vrot.lane.b32.xlu0 %v4270_v1, %s7712_s14 }
 0x99a   : > { %v4327_v49 = vpop.f32.mrb[101].mxu1 }
 0x99c   : > { %v4275_v30 = vpop.f32.mrb[152].mxu0 }
 0x99d   : > { %v4330_v17 = vpop.f32.mrb[102].mxu1  ;;  %4451 = vrot.lane.b32.xlu1 %v4275_v30, %s7712_s14  ;;  %v4277_v5 = vpop.f32.mrb[153].mxu0 }
 0x99e   : > { %v4332_v36 = vpop.f32.mrb[103].mxu1 }
 0x9a0   : > { %v4280_v22 = vpop.f32.mrb[154].mxu0 }
 0x9a1   : > { %v4335_v24 = vpop.f32.mrb[104].mxu1  ;;  %4453 = vrot.lane.b32.xlu1 %v4280_v22, %s7712_s14  ;;  %v4282_v53 = vpop.f32.mrb[155].mxu0 }
 0x9a2   : > { %v4337_v48 = vpop.f32.mrb[105].mxu1 }
 0x9a4   : > { %v4285_v33 = vpop.f32.mrb[156].mxu0 }
 0x9a5   : > { %v4340_v21 = vpop.f32.mrb[106].mxu1  ;;  %4455 = vrot.lane.b32.xlu0 %v4285_v33, %s7712_s14  ;;  %v4287_v44 = vpop.f32.mrb[157].mxu0 }
 0x9a6   : > { %v4342_v50 = vpop.f32.mrb[107].mxu1 }
 0x9a9   : > { %v4345_v63 = vpop.f32.mrb[108].mxu1 }
 0x9aa   : > { %v4347_v59 = vpop.f32.mrb[109].mxu1 }
 0x9ac   : > { %v4290_v37 = vpop.f32.mrb[158].mxu0 }
 0x9ad   : > { %v4350_v38 = vpop.f32.mrb[110].mxu1  ;;  %4457 = vrot.lane.b32.xlu1 %v4290_v37, %s7712_s14  ;;  %v4292_v26 = vpop.f32.mrb[159].mxu0 }
 0x9ae   : > { %v4352_v13 = vpop.f32.mrb[111].mxu1 }
 0x9b0   : > { %v4295_v10 = vpop.f32.mrb[160].mxu0 }
 0x9b1   : > { %v4355_v57 = vpop.f32.mrb[112].mxu1  ;;  %4461 = vrot.lane.b32.xlu1 %v4300_v16, %s7712_s14  ;;  %4459 = vrot.lane.b32.xlu0 %v4295_v10, %s7712_s14  ;;  %v4297_v15 = vpop.f32.mrb[161].mxu0  ;;  %v4946_v16 = vld [vmem:[%s11108_s8] sm:$0xff] }
 0x9b2   : > { %v4357_v19 = vpop.f32.mrb[113].mxu1 }
 0x9b5   : > { %v4360_v46 = vpop.f32.mrb[114].mxu1  ;;  %4465 = vrot.lane.b32.xlu1 %v4310_v41, %s7712_s14  ;;  %4463 = vrot.lane.b32.xlu0 %v4305_v42, %s7712_s14  ;;  %v4948_v42 = vld [vmem:[%s11108_s8 + $0x10] sm:$0xff]  ;;  %v6679_v41 = vpack.c.bf16 %v4947_v39, %v4946_v16 }
 0x9b6   : > { %v4362_v2 = vpop.f32.mrb[115].mxu1 }
 0x9b7   : > { %6680 = vmatprep.subr.bf16.mxu1 %v6679_v41 }
 0x9b8   : > { %6682 = vmatpush3.bf16.msra.mxu1 %v6679_v41 }
 0x9b9   : > { %v4365_v60 = vpop.f32.mrb[116].mxu1  ;;  %4469 = vrot.lane.b32.xlu1 %v4320_v20, %s7712_s14  ;;  %4467 = vrot.lane.b32.xlu0 %v4315_v18, %s7712_s14  ;;  %v6683_v18 = vpack.c.bf16 %v4949_v8, %v4948_v42 }
 0x9ba   : > { %v4367_v4 = vpop.f32.mrb[117].mxu1 }
 0x9bb   : > { %6684 = vmatprep.subr.bf16.mxu1 %v6683_v18 }
 0x9bc   : > { %6686 = vmatpush3.bf16.msra.mxu1 %v6683_v18  ;;  %v10885_v18 = vld [vmem:[%s11107_s7] ss:$0 sm:$0xff] }
 0x9bd   : > { %v4370_v31 = vpop.f32.mrb[118].mxu1  ;;  %4473 = vrot.lane.b32.xlu1 %v4330_v17, %s7712_s14  ;;  %4471 = vrot.lane.b32.xlu0 %v4325_v55, %s7712_s14 }
 0x9be   : > { %v4372_v62 = vpop.f32.mrb[119].mxu1  ;;  %6732 = vmatprep.subr.bf16.mxu1 %v11711_v27 }
 0x9c1   : > { %v4375_v11 = vpop.f32.mrb[120].mxu1  ;;  %4477 = vrot.lane.b32.xlu1 %v4340_v21, %s7712_s14  ;;  %4475 = vrot.lane.b32.xlu0 %v4335_v24, %s7712_s14 }
 0x9c2   : > { %v4377_v7 = vpop.f32.mrb[121].mxu1 }
 0x9c5   : > { %v4380_v40 = vpop.f32.mrb[122].mxu1  ;;  %4481 = vrot.lane.b32.xlu1 %v4350_v38, %s7712_s14  ;;  %4479 = vrot.lane.b32.xlu0 %v4345_v63, %s7712_s14 }
 0x9c6   : > { %v4382_v6 = vpop.f32.mrb[123].mxu1 }
 0x9c9   : > { %v4385_v61 = vpop.f32.mrb[124].mxu1  ;;  %4483 = vrot.lane.b32.xlu0 %v4355_v57, %s7712_s14  ;;  %4485 = vrot.lane.b32.xlu1 %v4360_v46, %s7712_s14 }
 0x9ca   : > { %v4387_v56 = vpop.f32.mrb[125].mxu1 }
 0x9cd   : > { %v4390_v35 = vpop.f32.mrb[126].mxu1  ;;  %4487 = vrot.lane.b32.xlu0 %v4365_v60, %s7712_s14  ;;  %4489 = vrot.lane.b32.xlu1 %v4370_v31, %s7712_s14 }
 0x9ce   : > { %v4392_v28 = vpop.f32.mrb[127].mxu1 }
 0x9d1   : > { %v4395_v3 = vpop.f32.mrb[128].mxu1  ;;  %4491 = vrot.lane.b32.xlu0 %v4375_v11, %s7712_s14  ;;  %4493 = vrot.lane.b32.xlu1 %v4380_v40, %s7712_s14 }
 0x9d2   : > { %v4397_v23 = vpop.f32.mrb[129].mxu1 }
 0x9d5   : > { %v4400_v52 = vpop.f32.mrb[130].mxu1  ;;  %4495 = vrot.lane.b32.xlu0 %v4385_v61, %s7712_s14  ;;  %4497 = vrot.lane.b32.xlu1 %v4390_v35, %s7712_s14 }
 0x9d6   : > { %v4402_v58 = vpop.f32.mrb[131].mxu1 }
 0x9d9   : > { %v4405_v9 = vpop.f32.mrb[132].mxu1  ;;  %4499 = vrot.lane.b32.xlu0 %v4395_v3, %s7712_s14  ;;  %4501 = vrot.lane.b32.xlu1 %v4400_v52, %s7712_s14 }
 0x9da   : > { %v4407_v14 = vpop.f32.mrb[133].mxu1 }
 0x9dd   : > { %v4410_v32 = vpop.f32.mrb[134].mxu1  ;;  %4503 = vrot.lane.b32.xlu0 %v4405_v9, %s7712_s14 }
 0x9de   : > { %4505 = vrot.lane.b32.xlu1 %v4410_v32, %s7712_s14  ;;  %v4412_v54 = vpop.f32.mrb[135].mxu1 }
 0x9e1   : > { %v4415_v29 = vpop.f32.mrb[136].mxu1 }
 0x9e2   : > { %4507 = vrot.lane.b32.xlu0 %v4415_v29, %s7712_s14  ;;  %v4417_v20 = vpop.f32.mrb[137].mxu1  ;;  %s5738_s14 = sshll.u32 %s353_s13, 3 }
 0x9e3   : > { %s355_s21 = scalar_lea.vmem [#allocation4], %s5738_s14 }
 0x9e4   : > { %s5675_s22 = sshll.u32 %s355_s21, 4  ;;  %s11059_s22 = int_to_ptr.vmem [resolvable:$true] %s5675_s22 }
 0x9e5   : > { %s7640_s11 = scalar_lea.vmem %s11059_s22, 128  ;;  %p7647_p0 = scmp.lt.s32.totalorder %s11059_s22, %s7645_s26 }
 0x9e6   : > { %p7641_p11 = scmp.ne.s32.totalorder %s11059_s22, %s7640_s11  ;;  %p7648_p1 = scmp.lt.s32.totalorder %s7646_s12, %s7640_s11 }
 0x9e8   : > { %p7642_p12 = pnand %p7641_p11, %p7811_p5  ;;  %p7649_p2 = por %p7648_p1, %p7647_p0 }
 0x9ea   : > { %p7643_p13 = pneg %p7642_p12 }
 0x9ec   : > { %p7650_p3 = pnand %p7649_p2, %p7643_p13 }
 0xa0b   : > { %v4450_v51 = vpop.permute.xlu0 %4449 }
 0xa0c   : > { %4540 = vst.msk [vmem:[#allocation2] sm:$0xff] %vm4539_vm2, %v4450_v51 }
 0xa0f   : > { %v4452_v34 = vpop.permute.xlu1 %4451 }
 0xa10   : > { %4541 = vst.msk [vmem:[#allocation2 + $0x8] sm:$0xff] %vm4539_vm2, %v4452_v34 }
 0xa13   : > { %v4454_v47 = vpop.permute.xlu1 %4453  ;;  %v10734_v12 = vld [vmem:[#allocation2] sm:$0xff] }
 0xa14   : > { %4542 = vst.msk [vmem:[#allocation2 + $0x10] sm:$0xff] %vm4539_vm2, %v4454_v47  ;;  %6343 = vmatprep.mubr.msk.f32.mxu0 %vm11712_vm1, %v10734_v12  ;;  %vm11726_vm1 = vmmov %vm11723_vm0 }
 0xa17   : > { %v4456_v0 = vpop.permute.xlu0 %4455  ;;  %v10739_v45 = vld [vmem:[#allocation2 + $0x8] sm:$0xff] }
 0xa18   : > { %4543 = vst.msk [vmem:[#allocation2 + $0x18] sm:$0xff] %vm4539_vm2, %v4456_v0  ;;  %6344 = vmatmul.mubr.msk.f32.vlgmr.msra.gmra.mrb[162].mxu0 %vm11713_vm3, %v10739_v45  ;;  %vm11727_vm3 = vmmov %vm11723_vm0 }
 0xa1b   : > { %v10744_v43 = vld [vmem:[#allocation2 + $0x10] sm:$0xff] }
 0xa1c   : > { %6346 = vmatprep.mubr.msk.f32.mxu0 %vm11714_vm5, %v10744_v43  ;;  %vm11728_vm5 = vmmov %vm11723_vm0 }
 0xa1f   : > { %v10748_v1 = vld [vmem:[#allocation2 + $0x18] sm:$0xff]  ;;  %v4458_v55 = vpop.permute.xlu1 %4457 }
 0xa20   : > { %6347 = vmatmul.mubr.msk.f32.gmra.mrb[164].mxu0 %vm11715_vm6, %v10748_v1  ;;  %4544 = vst.msk [vmem:[#allocation2 + $0x20] sm:$0xff] %vm4539_vm2, %v4458_v55  ;;  %vm11729_vm6 = vmmov %vm11723_vm0 }
 0xa23   : > { %v4462_v25 = vpop.permute.xlu1 %4461  ;;  %v4460_v49 = vpop.permute.xlu0 %4459 }
 0xa24   : > { %4546 = vst.msk [vmem:[#allocation2 + $0x30] sm:$0xff] %vm4539_vm2, %v4462_v25  ;;  %4545 = vst.msk [vmem:[#allocation2 + $0x28] sm:$0xff] %vm4539_vm2, %v4460_v49 }
 0xa27   : > { %v4466_v30 = vpop.permute.xlu1 %4465  ;;  %v4464_v17 = vpop.permute.xlu0 %4463  ;;  %v10755_v5 = vld [vmem:[#allocation2 + $0x20] sm:$0xff] }
 0xa28   : > { %4548 = vst.msk [vmem:[#allocation2 + $0x40] sm:$0xff] %vm4539_vm2, %v4466_v30  ;;  %4547 = vst.msk [vmem:[#allocation2 + $0x38] sm:$0xff] %vm4539_vm2, %v4464_v17  ;;  %6349 = vmatprep.mubr.msk.f32.mxu0 %vm11716_vm7, %v10755_v5 }
 0xa29   : > { %vm11730_vm7 = vmmov %vm11723_vm0 }
 0xa2b   : > { %v4470_v36 = vpop.permute.xlu1 %4469  ;;  %v4468_v22 = vpop.permute.xlu0 %4467  ;;  %v10761_v24 = vld [vmem:[#allocation2 + $0x28] sm:$0xff]  ;;  %v10763_v53 = vld [vmem:[#allocation2 + $0x30] sm:$0xff] }
 0xa2c   : > { %4550 = vst.msk [vmem:[#allocation2 + $0x50] sm:$0xff] %vm4539_vm2, %v4470_v36  ;;  %4549 = vst.msk [vmem:[#allocation2 + $0x48] sm:$0xff] %vm4539_vm2, %v4468_v22  ;;  %6350 = vmatmul.mubr.msk.f32.gmra.mrb[166].mxu0 %vm11717_vm8, %v10761_v24 }
 0xa2d   : > { %6352 = vmatprep.mubr.msk.f32.mxu0 %vm11718_vm9, %v10763_v53  ;;  %vm11731_vm8 = vmmov %vm11723_vm0 }
 0xa2e   : > { %vm11732_vm9 = vmmov %vm11723_vm0 }
 0xa2f   : > { %v4474_v48 = vpop.permute.xlu1 %4473  ;;  %v4472_v33 = vpop.permute.xlu0 %4471  ;;  %v10771_v21 = vld [vmem:[#allocation2 + $0x38] sm:$0xff]  ;;  %v10773_v44 = vld [vmem:[#allocation2 + $0x40] sm:$0xff] }
 0xa30   : > { %4552 = vst.msk [vmem:[#allocation2 + $0x60] sm:$0xff] %vm4539_vm2, %v4474_v48  ;;  %4551 = vst.msk [vmem:[#allocation2 + $0x58] sm:$0xff] %vm4539_vm2, %v4472_v33  ;;  %6353 = vmatmul.mubr.msk.f32.gmra.mrb[168].mxu0 %vm11719_vm10, %v10771_v21 }
 0xa31   : > { %6355 = vmatprep.mubr.msk.f32.mxu0 %vm11720_vm11, %v10773_v44  ;;  %vm11733_vm10 = vmmov %vm11723_vm0 }
 0xa32   : > { %vm11734_vm11 = vmmov %vm11723_vm0 }
 0xa33   : > { %v4478_v50 = vpop.permute.xlu1 %4477  ;;  %v4476_v63 = vpop.permute.xlu0 %4475  ;;  %v10781_v59 = vld [vmem:[#allocation2 + $0x48] sm:$0xff]  ;;  %v10783_v37 = vld [vmem:[#allocation2 + $0x50] sm:$0xff] }
 0xa34   : > { %4554 = vst.msk [vmem:[#allocation2 + $0x70] sm:$0xff] %vm4539_vm2, %v4478_v50  ;;  %4553 = vst.msk [vmem:[#allocation2 + $0x68] sm:$0xff] %vm4539_vm2, %v4476_v63  ;;  %6356 = vmatmul.mubr.msk.f32.gmra.mrb[170].mxu0 %vm11721_vm15, %v10781_v59 }
 0xa35   : > { %6358 = vmatprep.mubr.msk.f32.mxu0 %vm11722_vm14, %v10783_v37  ;;  %vm11735_vm15 = vmmov %vm11723_vm0 }
 0xa36   : > { %vm11736_vm14 = vmmov %vm11723_vm0 }
 0xa37   : > { %v4482_v38 = vpop.permute.xlu1 %4481  ;;  %v4480_v13 = vpop.permute.xlu0 %4479  ;;  %v10791_v26 = vld [vmem:[#allocation2 + $0x58] sm:$0xff]  ;;  %v10793_v10 = vld [vmem:[#allocation2 + $0x60] sm:$0xff] }
 0xa38   : > { %4556 = vst.msk [vmem:[#allocation2 + $0x80] sm:$0xff] %vm4539_vm2, %v4482_v38  ;;  %4555 = vst.msk [vmem:[#allocation2 + $0x78] sm:$0xff] %vm4539_vm2, %v4480_v13  ;;  %6359 = vmatmul.mubr.msk.f32.gmra.mrb[172].mxu0 %vm11723_vm0, %v10791_v26 }
 0xa39   : > { %6361 = vmatprep.mubr.msk.f32.mxu0 %vm11724_vm12, %v10793_v10  ;;  %vm11737_vm12 = vmmov %vm11723_vm0 }
 0xa3b   : > { %v4486_v57 = vpop.permute.xlu1 %4485  ;;  %v4484_v19 = vpop.permute.xlu0 %4483  ;;  %v10801_v15 = vld [vmem:[#allocation2 + $0x68] sm:$0xff]  ;;  %v10803_v46 = vld [vmem:[#allocation2 + $0x70] sm:$0xff] }
 0xa3c   : > { %4558 = vst.msk [vmem:[#allocation2 + $0x90] sm:$0xff] %vm4539_vm2, %v4486_v57  ;;  %4557 = vst.msk [vmem:[#allocation2 + $0x88] sm:$0xff] %vm4539_vm2, %v4484_v19  ;;  %6362 = vmatmul.mubr.msk.f32.gmra.mrb[174].mxu0 %vm11725_vm13, %v10801_v15 }
 0xa3d   : > { %6364 = vmatprep.mubr.msk.f32.mxu0 %vm11726_vm1, %v10803_v46  ;;  %vm11738_vm13 = vmmov %vm11723_vm0 }
 0xa3e   : > { %vm11739_vm1 = vmmov %vm11723_vm0 }
 0xa3f   : > { %v4490_v2 = vpop.permute.xlu1 %4489  ;;  %v4488_v60 = vpop.permute.xlu0 %4487  ;;  %v10811_v4 = vld [vmem:[#allocation2 + $0x78] sm:$0xff]  ;;  %v10813_v31 = vld [vmem:[#allocation2 + $0x80] sm:$0xff] }
 0xa40   : > { %4560 = vst.msk [vmem:[#allocation2 + $0xa0] sm:$0xff] %vm4539_vm2, %v4490_v2  ;;  %4559 = vst.msk [vmem:[#allocation2 + $0x98] sm:$0xff] %vm4539_vm2, %v4488_v60  ;;  %6365 = vmatmul.mubr.msk.f32.gmra.mrb[176].mxu0 %vm11727_vm3, %v10811_v4 }
 0xa41   : > { %6367 = vmatprep.mubr.msk.f32.mxu0 %vm11728_vm5, %v10813_v31  ;;  %vm11741_vm3 = vmmov %vm11723_vm0 }
 0xa42   : > { %vm11742_vm5 = vmmov %vm11723_vm0 }
 0xa43   : > { %v4494_v62 = vpop.permute.xlu1 %4493  ;;  %v4492_v11 = vpop.permute.xlu0 %4491  ;;  %v10821_v7 = vld [vmem:[#allocation2 + $0x88] sm:$0xff]  ;;  %v10823_v40 = vld [vmem:[#allocation2 + $0x90] sm:$0xff] }
 0xa44   : > { %4562 = vst.msk [vmem:[#allocation2 + $0xb0] sm:$0xff] %vm4539_vm2, %v4494_v62  ;;  %4561 = vst.msk [vmem:[#allocation2 + $0xa8] sm:$0xff] %vm4539_vm2, %v4492_v11  ;;  %6368 = vmatmul.mubr.msk.f32.gmra.mrb[178].mxu0 %vm11729_vm6, %v10821_v7 }
 0xa45   : > { %6370 = vmatprep.mubr.msk.f32.mxu0 %vm11730_vm7, %v10823_v40  ;;  %vm11743_vm6 = vmmov %vm11723_vm0 }
 0xa46   : > { %vm11744_vm7 = vmmov %vm11723_vm0 }
 0xa47   : > { %v4498_v6 = vpop.permute.xlu1 %4497  ;;  %v4496_v61 = vpop.permute.xlu0 %4495  ;;  %v10831_v56 = vld [vmem:[#allocation2 + $0x98] sm:$0xff]  ;;  %v10833_v35 = vld [vmem:[#allocation2 + $0xa0] sm:$0xff] }
 0xa48   : > { %4564 = vst.msk [vmem:[#allocation2 + $0xc0] sm:$0xff] %vm4539_vm2, %v4498_v6  ;;  %4563 = vst.msk [vmem:[#allocation2 + $0xb8] sm:$0xff] %vm4539_vm2, %v4496_v61  ;;  %6371 = vmatmul.mubr.msk.f32.gmra.mrb[180].mxu0 %vm11731_vm8, %v10831_v56 }
 0xa49   : > { %6373 = vmatprep.mubr.msk.f32.mxu0 %vm11732_vm9, %v10833_v35  ;;  %vm11745_vm8 = vmmov %vm11723_vm0 }
 0xa4a   : > { %vm11746_vm9 = vmmov %vm11723_vm0 }
 0xa4b   : > { %v4502_v28 = vpop.permute.xlu1 %4501  ;;  %v4500_v3 = vpop.permute.xlu0 %4499  ;;  %v10841_v23 = vld [vmem:[#allocation2 + $0xa8] sm:$0xff]  ;;  %v10843_v52 = vld [vmem:[#allocation2 + $0xb0] sm:$0xff] }
 0xa4c   : > { %4566 = vst.msk [vmem:[#allocation2 + $0xd0] sm:$0xff] %vm4539_vm2, %v4502_v28  ;;  %4565 = vst.msk [vmem:[#allocation2 + $0xc8] sm:$0xff] %vm4539_vm2, %v4500_v3  ;;  %6374 = vmatmul.mubr.msk.f32.gmra.mrb[182].mxu0 %vm11733_vm10, %v10841_v23 }
 0xa4d   : > { %6376 = vmatprep.mubr.msk.f32.mxu0 %vm11734_vm11, %v10843_v52  ;;  %vm11747_vm10 = vmmov %vm11723_vm0 }
 0xa4e   : > { %vm11748_vm11 = vmmov %vm11723_vm0 }
 0xa4f   : > { %v4504_v9 = vpop.permute.xlu0 %4503  ;;  %v10851_v14 = vld [vmem:[#allocation2 + $0xb8] sm:$0xff]  ;;  %v10853_v32 = vld [vmem:[#allocation2 + $0xc0] sm:$0xff] }
 0xa50   : > { %v4506_v58 = vpop.permute.xlu1 %4505  ;;  %4567 = vst.msk [vmem:[#allocation2 + $0xd8] sm:$0xff] %vm4539_vm2, %v4504_v9  ;;  %6377 = vmatmul.mubr.msk.f32.gmra.mrb[184].mxu0 %vm11735_vm15, %v10851_v14  ;;  %vm11749_vm15 = vmmov %vm11723_vm0 }
 0xa51   : > { %4568 = vst.msk [vmem:[#allocation2 + $0xe0] sm:$0xff] %vm4539_vm2, %v4506_v58  ;;  %6379 = vmatprep.mubr.msk.f32.mxu0 %vm11736_vm14, %v10853_v32  ;;  %vm11750_vm14 = vmmov %vm11723_vm0 }
 0xa53   : > { %v10861_v39 = vld [vmem:[#allocation2 + $0xc8] sm:$0xff]  ;;  %v10863_v42 = vld [vmem:[#allocation2 + $0xd0] sm:$0xff] }
 0xa54   : > { %v4508_v16 = vpop.permute.xlu0 %4507  ;;  %6380 = vmatmul.mubr.msk.f32.gmra.mrb[186].mxu0 %vm11723_vm0, %v10861_v39 }
 0xa55   : > { %4569 = vst.msk [vmem:[#allocation2 + $0xe8] sm:$0xff] %vm4539_vm2, %v4508_v16  ;;  %6382 = vmatprep.mubr.msk.f32.mxu0 %vm11737_vm12, %v10863_v42  ;;  %vm11740_vm2 = vmmov %vm11723_vm0 }
 0xa56   : > { %vm11751_vm12 = vmmov %vm11723_vm0 }
 0xa57   : > { %v10870_v54 = vld [vmem:[#allocation2 + $0xd8] sm:$0xff] }
 0xa58   : > { %v10872_v41 = vld [vmem:[#allocation2 + $0xe0] sm:$0xff]  ;;  %6383 = vmatmul.mubr.msk.f32.gmra.mrb[188].mxu0 %vm11738_vm13, %v10870_v54  ;;  %vm11752_vm13 = vmmov %vm11723_vm0 }
 0xa59   : > { %6385 = vmatprep.mubr.msk.f32.mxu0 %vm11739_vm1, %v10872_v41  ;;  %vm11753_vm1 = vmmov %vm11723_vm0 }
 0xa5c   : > { %v10878_v8 = vld [vmem:[#allocation2 + $0xe8] sm:$0xff] }
 0xa5d   : > { %6386 = vmatmul.mubr.msk.f32.gmra.mrb[190].mxu0 %vm11740_vm2, %v10878_v8  ;;  %vm11754_vm2 = vmmov %vm11723_vm0 }
 0xaeb   : > { %v6345_v29 = vpop.f32.mrb[162].mxu0 }
 0xaec   : > { %v4773_v20 = vadd.f32 %v6345_v29, %v10885_v18  ;;  %v4767_v51 = vpop.f32.mrb[163].mxu0 }
 0xaed   : > { %v4768_v34 = vadd.f32 %v10885_v18, %v4767_v51 }
 0xaef   : > { %7518 = vtanh.f32 %v4768_v34 }
 0xaf0   : > { %7520 = vtanh.f32 %v4773_v20 }
 0xaf3   : > { %v6348_v47 = vpop.f32.mrb[164].mxu0 }
 0xaf4   : > { %v4783_v0 = vadd.f32 %v6348_v47, %v10885_v18  ;;  %v4777_v55 = vpop.f32.mrb[165].mxu0 }
 0xaf5   : > { %v4778_v25 = vadd.f32 %v10885_v18, %v4777_v55 }
 0xaf7   : > { %7522 = vtanh.f32 %v4778_v25 }
 0xaf8   : > { %7524 = vtanh.f32 %v4783_v0 }
 0xaf9   : > { %v7519_v49 = vpop.eup %7518 }
 0xafa   : > { %v7521_v30 = vpop.eup %7520  ;;  %6396 = vmatprep.mubr.msk.f32.mxu1 %vm11741_vm3, %v7519_v49  ;;  %vm11755_vm3 = vmmov %vm11723_vm0 }
 0xafb   : > { %6397 = vmatmul.mubr.msk.f32.vlgmr.msra.gmra.mrb[138].mxu1 %vm11742_vm5, %v7521_v30  ;;  %vm11756_vm5 = vmmov %vm11723_vm0 }
 0xaff   : > { %v6351_v17 = vpop.f32.mrb[166].mxu0 }
 0xb00   : > { %v4793_v22 = vadd.f32 %v6351_v17, %v10885_v18  ;;  %v4787_v48 = vpop.f32.mrb[167].mxu0 }
 0xb01   : > { %v7523_v36 = vpop.eup %7522  ;;  %v4788_v50 = vadd.f32 %v10885_v18, %v4787_v48 }
 0xb02   : > { %v7525_v33 = vpop.eup %7524  ;;  %6399 = vmatprep.mubr.msk.f32.mxu1 %vm11743_vm6, %v7523_v36  ;;  %vm11757_vm6 = vmmov %vm11723_vm0 }
 0xb03   : > { %6400 = vmatmul.mubr.msk.f32.gmra.mrb[140].mxu1 %vm11744_vm7, %v7525_v33  ;;  %7526 = vtanh.f32 %v4788_v50  ;;  %v6354_v63 = vpop.f32.mrb[168].mxu0  ;;  %vm11758_vm7 = vmmov %vm11723_vm0 }
 0xb04   : > { %7528 = vtanh.f32 %v4793_v22  ;;  %v4803_v38 = vadd.f32 %v6354_v63, %v10885_v18  ;;  %v4797_v13 = vpop.f32.mrb[169].mxu0 }
 0xb05   : > { %v4798_v57 = vadd.f32 %v10885_v18, %v4797_v13 }
 0xb07   : > { %7530 = vtanh.f32 %v4798_v57  ;;  %v6357_v19 = vpop.f32.mrb[170].mxu0 }
 0xb08   : > { %7532 = vtanh.f32 %v4803_v38  ;;  %v4813_v2 = vadd.f32 %v6357_v19, %v10885_v18  ;;  %v4807_v60 = vpop.f32.mrb[171].mxu0 }
 0xb09   : > { %v4808_v62 = vadd.f32 %v10885_v18, %v4807_v60 }
 0xb0b   : > { %7534 = vtanh.f32 %v4808_v62  ;;  %v6360_v11 = vpop.f32.mrb[172].mxu0 }
 0xb0c   : > { %7536 = vtanh.f32 %v4813_v2  ;;  %v4823_v6 = vadd.f32 %v6360_v11, %v10885_v18  ;;  %v4817_v61 = vpop.f32.mrb[173].mxu0 }
 0xb0d   : > { %v7527_v28 = vpop.eup %7526  ;;  %v4818_v3 = vadd.f32 %v10885_v18, %v4817_v61 }
 0xb0e   : > { %v7529_v58 = vpop.eup %7528  ;;  %6402 = vmatprep.mubr.msk.f32.mxu1 %vm11745_vm8, %v7527_v28  ;;  %vm11759_vm8 = vmmov %vm11723_vm0 }
 0xb0f   : > { %7538 = vtanh.f32 %v4818_v3  ;;  %v6363_v9 = vpop.f32.mrb[174].mxu0  ;;  %6403 = vmatmul.mubr.msk.f32.gmra.mrb[142].mxu1 %vm11746_vm9, %v7529_v58  ;;  %vm11760_vm9 = vmmov %vm11723_vm0 }
 0xb10   : > { %7540 = vtanh.f32 %v4823_v6  ;;  %v4833_v16 = vadd.f32 %v6363_v9, %v10885_v18  ;;  %v4827_v29 = vpop.f32.mrb[175].mxu0 }
 0xb11   : > { %v7531_v20 = vpop.eup %7530  ;;  %v4828_v51 = vadd.f32 %v10885_v18, %v4827_v29 }
 0xb12   : > { %v7533_v34 = vpop.eup %7532  ;;  %6405 = vmatprep.mubr.msk.f32.mxu1 %vm11747_vm10, %v7531_v20  ;;  %vm11761_vm10 = vmmov %vm11723_vm0 }
 0xb13   : > { %7542 = vtanh.f32 %v4828_v51  ;;  %v6366_v47 = vpop.f32.mrb[176].mxu0  ;;  %6406 = vmatmul.mubr.msk.f32.gmra.mrb[144].mxu1 %vm11748_vm11, %v7533_v34  ;;  %vm11762_vm11 = vmmov %vm11723_vm0 }
 0xb14   : > { %7544 = vtanh.f32 %v4833_v16  ;;  %v4843_v0 = vadd.f32 %v6366_v47, %v10885_v18  ;;  %v4837_v55 = vpop.f32.mrb[177].mxu0 }
 0xb15   : > { %v7535_v25 = vpop.eup %7534  ;;  %v4838_v49 = vadd.f32 %v10885_v18, %v4837_v55 }
 0xb16   : > { %v7537_v30 = vpop.eup %7536  ;;  %6408 = vmatprep.mubr.msk.f32.mxu1 %vm11749_vm15, %v7535_v25  ;;  %vm11763_vm15 = vmmov %vm11723_vm0 }
 0xb17   : > { %7546 = vtanh.f32 %v4838_v49  ;;  %v6369_v17 = vpop.f32.mrb[178].mxu0  ;;  %6409 = vmatmul.mubr.msk.f32.gmra.mrb[146].mxu1 %vm11750_vm14, %v7537_v30  ;;  %vm11764_vm14 = vmmov %vm11723_vm0 }
 0xb18   : > { %7548 = vtanh.f32 %v4843_v0  ;;  %v4853_v36 = vadd.f32 %v6369_v17, %v10885_v18  ;;  %v4847_v22 = vpop.f32.mrb[179].mxu0 }
 0xb19   : > { %v7539_v48 = vpop.eup %7538  ;;  %v4848_v33 = vadd.f32 %v10885_v18, %v4847_v22 }
 0xb1a   : > { %v7541_v50 = vpop.eup %7540  ;;  %6411 = vmatprep.mubr.msk.f32.mxu1 %vm11723_vm0, %v7539_v48 }
 0xb1b   : > { %7550 = vtanh.f32 %v4848_v33  ;;  %v6372_v63 = vpop.f32.mrb[180].mxu0  ;;  %6412 = vmatmul.mubr.msk.f32.gmra.mrb[148].mxu1 %vm11751_vm12, %v7541_v50  ;;  %vm11765_vm12 = vmmov %vm11723_vm0 }
 0xb1c   : > { %7552 = vtanh.f32 %v4853_v36  ;;  %v4863_v38 = vadd.f32 %v6372_v63, %v10885_v18  ;;  %v4857_v13 = vpop.f32.mrb[181].mxu0 }
 0xb1d   : > { %v7543_v57 = vpop.eup %7542  ;;  %v4858_v19 = vadd.f32 %v10885_v18, %v4857_v13 }
 0xb1e   : > { %v7545_v2 = vpop.eup %7544  ;;  %6414 = vmatprep.mubr.msk.f32.mxu1 %vm11752_vm13, %v7543_v57  ;;  %vm11766_vm13 = vmmov %vm11723_vm0 }
 0xb1f   : > { %7554 = vtanh.f32 %v4858_v19  ;;  %v6375_v60 = vpop.f32.mrb[182].mxu0  ;;  %6415 = vmatmul.mubr.msk.f32.gmra.mrb[150].mxu1 %vm11753_vm1, %v7545_v2  ;;  %vm11767_vm1 = vmmov %vm11723_vm0 }
 0xb20   : > { %7556 = vtanh.f32 %v4863_v38  ;;  %v4873_v62 = vadd.f32 %v6375_v60, %v10885_v18  ;;  %v4867_v11 = vpop.f32.mrb[183].mxu0 }
 0xb21   : > { %v7547_v6 = vpop.eup %7546  ;;  %v4868_v61 = vadd.f32 %v10885_v18, %v4867_v11 }
 0xb22   : > { %v7549_v28 = vpop.eup %7548  ;;  %6417 = vmatprep.mubr.msk.f32.mxu1 %vm11754_vm2, %v7547_v6  ;;  %vm11768_vm2 = vmmov %vm11723_vm0  ;;  %v11769_v6 = vld [vmem:[#allocation88_spill] sm:$0xff] }
 0xb23   : > { %7558 = vtanh.f32 %v4868_v61  ;;  %v6378_v3 = vpop.f32.mrb[184].mxu0  ;;  %6418 = vmatmul.mubr.msk.f32.gmra.mrb[152].mxu1 %vm11755_vm3, %v7549_v28  ;;  %v11770_v61 = vld [vmem:[#allocation87_spill] sm:$0xff]  ;;  %v11771_v28 = vmov 0.0  }
 0xb24   : > { %7560 = vtanh.f32 %v4873_v62  ;;  %v4883_v58 = vadd.f32 %v6378_v3, %v10885_v18  ;;  %v4877_v9 = vpop.f32.mrb[185].mxu0  ;;  %vm5325_vm3 = vcmp.eq.s32.totalorder %v11770_v61, %v11769_v6 }
 0xb25   : > { %v7551_v16 = vpop.eup %7550  ;;  %v4878_v29 = vadd.f32 %v10885_v18, %v4877_v9  ;;  %v6075_v3 = vsel %vm5325_vm3, 1.0, %v11771_v28 }
 0xb26   : > { %v7553_v20 = vpop.eup %7552  ;;  %6420 = vmatprep.mubr.msk.f32.mxu1 %vm11756_vm5, %v7551_v16  ;;  %6076 = vmatprep.mubr.msk.f32.mxu0 %vm1973_vm4, %v6075_v3  ;;  %vm11773_vm5 = vmmov %vm11723_vm0 }
 0xb27   : > { %7562 = vtanh.f32 %v4878_v29  ;;  %v6381_v51 = vpop.f32.mrb[186].mxu0  ;;  %6421 = vmatmul.mubr.msk.f32.gmra.mrb[154].mxu1 %vm11757_vm6, %v7553_v20 }
 0xb28   : > { %7564 = vtanh.f32 %v4883_v58  ;;  %v4893_v34 = vadd.f32 %v6381_v51, %v10885_v18  ;;  %v4887_v47 = vpop.f32.mrb[187].mxu0  ;;  %v10952_v58 = vld [vmem:[#allocation3] ss:$0 sm:$0xff] }
 0xb29   : > { %v7555_v0 = vpop.eup %7554  ;;  %v4888_v55 = vadd.f32 %v10885_v18, %v4887_v47 }
 0xb2a   : > { %v7557_v25 = vpop.eup %7556  ;;  %6423 = vmatprep.mubr.msk.f32.mxu1 %vm11758_vm7, %v7555_v0 }
 0xb2b   : > { %7566 = vtanh.f32 %v4888_v55  ;;  %v6384_v49 = vpop.f32.mrb[188].mxu0  ;;  %6424 = vmatmul.mubr.msk.f32.gmra.mrb[156].mxu1 %vm11759_vm8, %v7557_v25 }
 0xb2c   : > { %7568 = vtanh.f32 %v4893_v34  ;;  %v4903_v30 = vadd.f32 %v6384_v49, %v10885_v18  ;;  %v4897_v17 = vpop.f32.mrb[189].mxu0 }
 0xb2d   : > { %v7559_v36 = vpop.eup %7558  ;;  %v4898_v22 = vadd.f32 %v10885_v18, %v4897_v17 }
 0xb2e   : > { %v7561_v48 = vpop.eup %7560  ;;  %6426 = vmatprep.mubr.msk.f32.mxu1 %vm11760_vm9, %v7559_v36 }
 0xb2f   : > { %7570 = vtanh.f32 %v4898_v22  ;;  %6427 = vmatmul.mubr.msk.f32.gmra.mrb[158].mxu1 %vm11761_vm10, %v7561_v48 }
 0xb30   : > { %v6387_v33 = vpop.f32.mrb[190].mxu0  ;;  %7572 = vtanh.f32 %v4903_v30 }
 0xb31   : > { %v4913_v50 = vadd.f32 %v6387_v33, %v10885_v18  ;;  %v4907_v63 = vpop.f32.mrb[191].mxu0  ;;  %v7563_v38 = vpop.eup %7562 }
 0xb32   : > { %v4908_v13 = vadd.f32 %v10885_v18, %v4907_v63  ;;  %v7565_v57 = vpop.eup %7564  ;;  %6429 = vmatprep.mubr.msk.f32.mxu1 %vm11762_vm11, %v7563_v38 }
 0xb33   : > { %6430 = vmatmul.mubr.msk.f32.gmra.mrb[160].mxu1 %vm11763_vm15, %v7565_v57 }
 0xb34   : > { %7574 = vtanh.f32 %v4908_v13 }
 0xb35   : > { %7576 = vtanh.f32 %v4913_v50  ;;  %v7567_v19 = vpop.eup %7566 }
 0xb36   : > { %v7569_v2 = vpop.eup %7568  ;;  %6432 = vmatprep.mubr.msk.f32.mxu1 %vm11764_vm14, %v7567_v19 }
 0xb37   : > { %6433 = vmatmul.mubr.msk.f32.gmra.mrb[162].mxu1 %vm11723_vm0, %v7569_v2 }
 0xb39   : > { %v7571_v60 = vpop.eup %7570 }
 0xb3a   : > { %v7573_v62 = vpop.eup %7572  ;;  %6435 = vmatprep.mubr.msk.f32.mxu1 %vm11765_vm12, %v7571_v60 }
 0xb3b   : > { %6436 = vmatmul.mubr.msk.f32.gmra.mrb[164].mxu1 %vm11766_vm13, %v7573_v62 }
 0xb3e   : > { %v7575_v18 = vpop.eup %7574 }
 0xb3f   : > { %v7577_v11 = vpop.eup %7576  ;;  %6438 = vmatprep.mubr.msk.f32.mxu1 %vm11767_vm1, %v7575_v18 }
 0xb40   : > { %6439 = vmatmul.mubr.msk.f32.gmra.mrb[166].mxu1 %vm11768_vm2, %v7577_v11 }
 0xb41   : > { %6078 = vmatprep.mubr.msk.f32.mxu1 %vm1973_vm4, %v6075_v3 }
 0xbce   : > { %v6398_v9 = vpop.f32.mrb[138].mxu1 }
 0xbcf   : > { %v5119_v16 = vadd.f32 %v6398_v9, %v10952_v58  ;;  %v5113_v29 = vpop.f32.mrb[139].mxu1 }
 0xbd0   : > { %v5114_v20 = vadd.f32 %v10952_v58, %v5113_v29 }
 0xbd1   : > { %v5264_v51 = vmul.f32 1.442695, %v5119_v16 }
 0xbd2   : > { %v5262_v34 = vmul.f32 1.442695, %v5114_v20 }
 0xbd3   : > { %7578 = vpow2.f32 %v5264_v51 }
 0xbd4   : > { %7580 = vpow2.f32 %v5262_v34 }
 0xbd6   : > { %v6401_v47 = vpop.f32.mrb[140].mxu1 }
 0xbd7   : > { %v5129_v0 = vadd.f32 %v6401_v47, %v10952_v58  ;;  %v5123_v55 = vpop.f32.mrb[141].mxu1 }
 0xbd8   : > { %v5124_v25 = vadd.f32 %v10952_v58, %v5123_v55 }
 0xbd9   : > { %v5268_v49 = vmul.f32 1.442695, %v5129_v0 }
 0xbda   : > { %v5266_v30 = vmul.f32 1.442695, %v5124_v25 }
 0xbdb   : > { %7582 = vpow2.f32 %v5268_v49 }
 0xbdc   : > { %7584 = vpow2.f32 %v5266_v30 }
 0xbdd   : > { %v7579_v17 = vpop.eup %7578 }
 0xbde   : > { %v7581_v36 = vpop.eup %7580  ;;  %5337 = vperm.xlu0 %6856, %v7579_v17  }
 0xbdf   : > { %5332 = vperm.xlu1 %6857, %v7581_v36   ;;  %v6733_v22 = vpack.c.bf16 %v7579_v17, %v7581_v36 }
 0xbe1   : > { %6734 = vmatpush1.bf16.msra.mxu1 %v6733_v22 }
 0xbe2   : > { %6735 = vmatprep.subr.bf16.mxu1 %v11711_v27  ;;  %v6404_v48 = vpop.f32.mrb[142].mxu1 }
 0xbe3   : > { %v5139_v33 = vadd.f32 %v6404_v48, %v10952_v58  ;;  %v5133_v50 = vpop.f32.mrb[143].mxu1 }
 0xbe4   : > { %v5134_v38 = vadd.f32 %v10952_v58, %v5133_v50 }
 0xbe5   : > { %v7583_v63 = vpop.eup %7582  ;;  %v5272_v57 = vmul.f32 1.442695, %v5139_v33 }
 0xbe6   : > { %v7585_v13 = vpop.eup %7584  ;;  %5347 = vperm.xlu0 %6856, %v7583_v63   ;;  %v5270_v19 = vmul.f32 1.442695, %v5134_v38  ;;  %v6407_v2 = vpop.f32.mrb[144].mxu1 }
 0xbe7   : > { %5342 = vperm.xlu1 %6857, %v7585_v13   ;;  %v6736_v60 = vpack.c.bf16 %v7583_v63, %v7585_v13  ;;  %7586 = vpow2.f32 %v5272_v57  ;;  %v5149_v62 = vadd.f32 %v6407_v2, %v10952_v58  ;;  %v5143_v18 = vpop.f32.mrb[145].mxu1 }
 0xbe8   : > { %7588 = vpow2.f32 %v5270_v19  ;;  %v5144_v11 = vadd.f32 %v10952_v58, %v5143_v18 }
 0xbe9   : > { %6737 = vmatpush1.bf16.msra.mxu1 %v6736_v60  ;;  %v5276_v6 = vmul.f32 1.442695, %v5149_v62 }
 0xbea   : > { %6738 = vmatprep.subr.bf16.mxu1 %v11711_v27  ;;  %v5274_v28 = vmul.f32 1.442695, %v5144_v11  ;;  %v6410_v3 = vpop.f32.mrb[146].mxu1 }
 0xbeb   : > { %7590 = vpow2.f32 %v5276_v6  ;;  %v5159_v9 = vadd.f32 %v6410_v3, %v10952_v58  ;;  %v5153_v16 = vpop.f32.mrb[147].mxu1 }
 0xbec   : > { %7592 = vpow2.f32 %v5274_v28  ;;  %v5154_v29 = vadd.f32 %v10952_v58, %v5153_v16 }
 0xbed   : > { %v5280_v20 = vmul.f32 1.442695, %v5159_v9 }
 0xbee   : > { %v5278_v51 = vmul.f32 1.442695, %v5154_v29  ;;  %v6413_v34 = vpop.f32.mrb[148].mxu1 }
 0xbef   : > { %7594 = vpow2.f32 %v5280_v20  ;;  %v5169_v47 = vadd.f32 %v6413_v34, %v10952_v58  ;;  %v5163_v0 = vpop.f32.mrb[149].mxu1 }
 0xbf0   : > { %7596 = vpow2.f32 %v5278_v51  ;;  %v5164_v55 = vadd.f32 %v10952_v58, %v5163_v0 }
 0xbf1   : > { %v7587_v25 = vpop.eup %7586  ;;  %v5284_v49 = vmul.f32 1.442695, %v5169_v47 }
 0xbf2   : > { %v7589_v30 = vpop.eup %7588  ;;  %v5282_v17 = vmul.f32 1.442695, %v5164_v55  ;;  %5357 = vperm.xlu0 %6856, %v7587_v25   ;;  %v6416_v36 = vpop.f32.mrb[150].mxu1 }
 0xbf3   : > { %7598 = vpow2.f32 %v5284_v49  ;;  %v5179_v22 = vadd.f32 %v6416_v36, %v10952_v58  ;;  %5352 = vperm.xlu1 %6857, %v7589_v30   ;;  %v5173_v48 = vpop.f32.mrb[151].mxu1  ;;  %v6739_v33 = vpack.c.bf16 %v7587_v25, %v7589_v30 }
 0xbf4   : > { %7600 = vpow2.f32 %v5282_v17  ;;  %v5174_v50 = vadd.f32 %v10952_v58, %v5173_v48 }
 0xbf5   : > { %v7591_v63 = vpop.eup %7590  ;;  %v5288_v38 = vmul.f32 1.442695, %v5179_v22  ;;  %6740 = vmatpush1.bf16.msra.mxu1 %v6739_v33 }
 0xbf6   : > { %v7593_v13 = vpop.eup %7592  ;;  %v5286_v57 = vmul.f32 1.442695, %v5174_v50  ;;  %5367 = vperm.xlu0 %6856, %v7591_v63   ;;  %v6419_v19 = vpop.f32.mrb[152].mxu1  ;;  %6741 = vmatprep.subr.bf16.mxu1 %v11711_v27 }
 0xbf7   : > { %7602 = vpow2.f32 %v5288_v38  ;;  %v5189_v2 = vadd.f32 %v6419_v19, %v10952_v58  ;;  %5362 = vperm.xlu1 %6857, %v7593_v13   ;;  %v5183_v60 = vpop.f32.mrb[153].mxu1  ;;  %v6742_v62 = vpack.c.bf16 %v7591_v63, %v7593_v13 }
 0xbf8   : > { %7604 = vpow2.f32 %v5286_v57  ;;  %v5184_v18 = vadd.f32 %v10952_v58, %v5183_v60 }
 0xbf9   : > { %v7595_v11 = vpop.eup %7594  ;;  %v5292_v6 = vmul.f32 1.442695, %v5189_v2  ;;  %6743 = vmatpush1.bf16.msra.mxu1 %v6742_v62 }
 0xbfa   : > { %v7597_v28 = vpop.eup %7596  ;;  %v5290_v3 = vmul.f32 1.442695, %v5184_v18  ;;  %5377 = vperm.xlu0 %6856, %v7595_v11   ;;  %v6422_v9 = vpop.f32.mrb[154].mxu1  ;;  %6744 = vmatprep.subr.bf16.mxu1 %v11711_v27 }
 0xbfb   : > { %7606 = vpow2.f32 %v5292_v6  ;;  %v5199_v16 = vadd.f32 %v6422_v9, %v10952_v58  ;;  %5372 = vperm.xlu1 %6857, %v7597_v28   ;;  %v5193_v29 = vpop.f32.mrb[155].mxu1  ;;  %v6745_v20 = vpack.c.bf16 %v7595_v11, %v7597_v28 }
 0xbfc   : > { %7608 = vpow2.f32 %v5290_v3  ;;  %v5194_v51 = vadd.f32 %v10952_v58, %v5193_v29 }
 0xbfd   : > { %v7599_v34 = vpop.eup %7598  ;;  %v5296_v47 = vmul.f32 1.442695, %v5199_v16  ;;  %6746 = vmatpush1.bf16.msra.mxu1 %v6745_v20 }
 0xbfe   : > { %v7601_v0 = vpop.eup %7600  ;;  %v5294_v55 = vmul.f32 1.442695, %v5194_v51  ;;  %5387 = vperm.xlu0 %6856, %v7599_v34   ;;  %v6425_v25 = vpop.f32.mrb[156].mxu1  ;;  %6747 = vmatprep.subr.bf16.mxu1 %v11711_v27 }
 0xbff   : > { %7610 = vpow2.f32 %v5296_v47  ;;  %v5209_v49 = vadd.f32 %v6425_v25, %v10952_v58  ;;  %5382 = vperm.xlu1 %6857, %v7601_v0   ;;  %v5203_v30 = vpop.f32.mrb[157].mxu1  ;;  %v6748_v17 = vpack.c.bf16 %v7599_v34, %v7601_v0 }
 0xc00   : > { %7612 = vpow2.f32 %v5294_v55  ;;  %v5204_v36 = vadd.f32 %v10952_v58, %v5203_v30 }
 0xc01   : > { %v7603_v22 = vpop.eup %7602  ;;  %v5300_v48 = vmul.f32 1.442695, %v5209_v49  ;;  %6749 = vmatpush1.bf16.msra.mxu1 %v6748_v17 }
 0xc02   : > { %v7605_v33 = vpop.eup %7604  ;;  %v5298_v50 = vmul.f32 1.442695, %v5204_v36  ;;  %5397 = vperm.xlu0 %6856, %v7603_v22   ;;  %v6428_v63 = vpop.f32.mrb[158].mxu1  ;;  %6750 = vmatprep.subr.bf16.mxu1 %v11711_v27 }
 0xc03   : > { %7614 = vpow2.f32 %v5300_v48  ;;  %v5219_v38 = vadd.f32 %v6428_v63, %v10952_v58  ;;  %5392 = vperm.xlu1 %6857, %v7605_v33   ;;  %v5213_v13 = vpop.f32.mrb[159].mxu1  ;;  %v6751_v57 = vpack.c.bf16 %v7603_v22, %v7605_v33 }
 0xc04   : > { %7616 = vpow2.f32 %v5298_v50  ;;  %v5214_v19 = vadd.f32 %v10952_v58, %v5213_v13 }
 0xc05   : > { %v7607_v2 = vpop.eup %7606  ;;  %v5304_v60 = vmul.f32 1.442695, %v5219_v38  ;;  %6752 = vmatpush1.bf16.msra.mxu1 %v6751_v57 }
 0xc06   : > { %v7609_v62 = vpop.eup %7608  ;;  %v5302_v18 = vmul.f32 1.442695, %v5214_v19  ;;  %5407 = vperm.xlu0 %6856, %v7607_v2   ;;  %v6431_v11 = vpop.f32.mrb[160].mxu1  ;;  %6753 = vmatprep.subr.bf16.mxu1 %v11711_v27 }
 0xc07   : > { %7618 = vpow2.f32 %v5304_v60  ;;  %v5229_v6 = vadd.f32 %v6431_v11, %v10952_v58  ;;  %5402 = vperm.xlu1 %6857, %v7609_v62   ;;  %v5223_v28 = vpop.f32.mrb[161].mxu1  ;;  %v6754_v3 = vpack.c.bf16 %v7607_v2, %v7609_v62 }
 0xc08   : > { %7620 = vpow2.f32 %v5302_v18  ;;  %v5224_v9 = vadd.f32 %v10952_v58, %v5223_v28 }
 0xc09   : > { %v7611_v16 = vpop.eup %7610  ;;  %v5308_v29 = vmul.f32 1.442695, %v5229_v6  ;;  %6755 = vmatpush1.bf16.msra.mxu1 %v6754_v3 }
 0xc0a   : > { %v7613_v20 = vpop.eup %7612  ;;  %v5306_v51 = vmul.f32 1.442695, %v5224_v9  ;;  %5417 = vperm.xlu0 %6856, %v7611_v16   ;;  %v6434_v34 = vpop.f32.mrb[162].mxu1  ;;  %6756 = vmatprep.subr.bf16.mxu1 %v11711_v27 }
 0xc0b   : > { %7622 = vpow2.f32 %v5308_v29  ;;  %v5239_v47 = vadd.f32 %v6434_v34, %v10952_v58  ;;  %5412 = vperm.xlu1 %6857, %v7613_v20   ;;  %v5233_v0 = vpop.f32.mrb[163].mxu1  ;;  %v6757_v55 = vpack.c.bf16 %v7611_v16, %v7613_v20 }
 0xc0c   : > { %7624 = vpow2.f32 %v5306_v51  ;;  %v5234_v25 = vadd.f32 %v10952_v58, %v5233_v0 }
 0xc0d   : > { %v7615_v49 = vpop.eup %7614  ;;  %v5312_v30 = vmul.f32 1.442695, %v5239_v47  ;;  %6758 = vmatpush1.bf16.msra.mxu1 %v6757_v55 }
 0xc0e   : > { %v7617_v17 = vpop.eup %7616  ;;  %v5310_v36 = vmul.f32 1.442695, %v5234_v25  ;;  %5427 = vperm.xlu0 %6856, %v7615_v49   ;;  %v6437_v22 = vpop.f32.mrb[164].mxu1  ;;  %6759 = vmatprep.subr.bf16.mxu1 %v11711_v27 }
 0xc0f   : > { %7626 = vpow2.f32 %v5312_v30  ;;  %v5249_v48 = vadd.f32 %v6437_v22, %v10952_v58  ;;  %5422 = vperm.xlu1 %6857, %v7617_v17   ;;  %v5243_v33 = vpop.f32.mrb[165].mxu1  ;;  %v6760_v50 = vpack.c.bf16 %v7615_v49, %v7617_v17  ;;  %v11772_v49 = vld [vmem:[#allocation89_spill] sm:$0xff]  ;;  %v7713_v30 = vmov 1.0  }
 0xc10   : > { %7628 = vpow2.f32 %v5310_v36  ;;  %v5244_v63 = vadd.f32 %v10952_v58, %v5243_v33  ;;  %vm5324_vm4 = vcmp.eq.s32.totalorder %v11770_v61, %v11772_v49 }
 0xc11   : > { %v7619_v38 = vpop.eup %7618  ;;  %v5316_v13 = vmul.f32 1.442695, %v5249_v48  ;;  %6761 = vmatpush1.bf16.msra.mxu1 %v6760_v50 }
 0xc12   : > { %v7621_v57 = vpop.eup %7620  ;;  %v5314_v19 = vmul.f32 1.442695, %v5244_v63  ;;  %5437 = vperm.xlu0 %6856, %v7619_v38   ;;  %6762 = vmatprep.subr.bf16.mxu1 %v11711_v27 }
 0xc13   : > { %v6440_v2 = vpop.f32.mrb[166].mxu1  ;;  %7630 = vpow2.f32 %v5316_v13  ;;  %5432 = vperm.xlu1 %6857, %v7621_v57   ;;  %v6763_v18 = vpack.c.bf16 %v7619_v38, %v7621_v57 }
 0xc14   : > { %v5259_v60 = vadd.f32 %v6440_v2, %v10952_v58  ;;  %v5253_v62 = vpop.f32.mrb[167].mxu1  ;;  %7632 = vpow2.f32 %v5314_v19 }
 0xc15   : > { %v5254_v11 = vadd.f32 %v10952_v58, %v5253_v62  ;;  %v7623_v6 = vpop.eup %7622  ;;  %6764 = vmatpush1.bf16.msra.mxu1 %v6763_v18 }
 0xc16   : > { %v5320_v28 = vmul.f32 1.442695, %v5259_v60  ;;  %v7625_v3 = vpop.eup %7624  ;;  %5447 = vperm.xlu0 %6856, %v7623_v6   ;;  %6765 = vmatprep.subr.bf16.mxu1 %v11711_v27 }
 0xc17   : > { %v5318_v9 = vmul.f32 1.442695, %v5254_v11  ;;  %5442 = vperm.xlu1 %6857, %v7625_v3   ;;  %v6766_v16 = vpack.c.bf16 %v7623_v6, %v7625_v3 }
 0xc18   : > { %7634 = vpow2.f32 %v5320_v28 }
 0xc19   : > { %7636 = vpow2.f32 %v5318_v9  ;;  %v7627_v29 = vpop.eup %7626  ;;  %6767 = vmatpush1.bf16.msra.mxu1 %v6766_v16 }
 0xc1a   : > { %v7629_v20 = vpop.eup %7628  ;;  %5457 = vperm.xlu0 %6856, %v7627_v29   ;;  %6768 = vmatprep.subr.bf16.mxu1 %v11711_v27 }
 0xc1b   : > { %5452 = vperm.xlu1 %6857, %v7629_v20   ;;  %v6769_v58 = vpack.c.bf16 %v7627_v29, %v7629_v20 }
 0xc1d   : > { %v7631_v51 = vpop.eup %7630  ;;  %6770 = vmatpush1.bf16.msra.mxu1 %v6769_v58 }
 0xc1e   : > { %v7633_v34 = vpop.eup %7632  ;;  %5467 = vperm.xlu0 %6856, %v7631_v51   ;;  %6771 = vmatprep.subr.bf16.mxu1 %v11711_v27 }
 0xc1f   : > { %5462 = vperm.xlu1 %6857, %v7633_v34   ;;  %v6772_v47 = vpack.c.bf16 %v7631_v51, %v7633_v34 }
 0xc21   : > { %6773 = vmatpush1.bf16.msra.mxu1 %v6772_v47 }
 0xc22   : > { %v7635_v0 = vpop.eup %7634  ;;  %6774 = vmatprep.subr.bf16.mxu1 %v11711_v27 }
 0xc23   : > { %v7637_v55 = vpop.eup %7636  ;;  %5477 = vperm.xlu0 %6856, %v7635_v0  }
 0xc24   : > { %5472 = vperm.xlu1 %6857, %v7637_v55   ;;  %v6775_v25 = vpack.c.bf16 %v7635_v0, %v7637_v55 }
 0xc26   : > { %6776 = vmatpush1.bf16.msra.mxu1 %v6775_v25 }
 0xc29   : > { %6079 = vmatmul.mubr.msk.f32.vlgmr.msra.gmra.mrb[168].mxu1 %vm5324_vm4, %v7713_v30 }
 0xc5d   : > { %v5338_v17 = vpop.permute.xlu0 %5337 }
 0xc5e   : > { %v5481_v36 = vmul.f32 %v5338_v17, %v10739_v45  ;;  %v5333_v22 = vpop.permute.xlu1 %5332 }
 0xc5f   : > { %v5480_v48 = vmul.f32 %v5333_v22, %v10734_v12 }
 0xc61   : > { %v6688_v33 = vpack.c.bf16 %v5481_v36, %v5480_v48 }
 0xc63   : > { %6689 = vmatpush1.bf16.msra.mxu0 %v6688_v33 }
 0xc64   : > { %6690 = vmatprep.subr.bf16.mxu0 %v11711_v27 }
 0xc65   : > { %v5348_v50 = vpop.permute.xlu0 %5347 }
 0xc66   : > { %v5483_v63 = vmul.f32 %v5348_v50, %v10748_v1  ;;  %v5343_v38 = vpop.permute.xlu1 %5342 }
 0xc67   : > { %v5482_v13 = vmul.f32 %v5343_v38, %v10744_v43 }
 0xc69   : > { %v6691_v57 = vpack.c.bf16 %v5483_v63, %v5482_v13 }
 0xc6b   : > { %6692 = vmatpush1.bf16.msra.mxu0 %v6691_v57 }
 0xc6c   : > { %6693 = vmatprep.subr.bf16.mxu0 %v11711_v27 }
 0xc71   : > { %v5358_v19 = vpop.permute.xlu0 %5357 }
 0xc72   : > { %v5485_v45 = vmul.f32 %v5358_v19, %v10761_v24  ;;  %v5353_v2 = vpop.permute.xlu1 %5352 }
 0xc73   : > { %v5484_v12 = vmul.f32 %v5353_v2, %v10755_v5 }
 0xc75   : > { %v6694_v60 = vpack.c.bf16 %v5485_v45, %v5484_v12  ;;  %v5368_v62 = vpop.permute.xlu0 %5367 }
 0xc76   : > { %v5487_v18 = vmul.f32 %v5368_v62, %v10771_v21  ;;  %v5363_v11 = vpop.permute.xlu1 %5362 }
 0xc77   : > { %v5486_v1 = vmul.f32 %v5363_v11, %v10763_v53  ;;  %6695 = vmatpush1.bf16.msra.mxu0 %v6694_v60 }
 0xc78   : > { %6696 = vmatprep.subr.bf16.mxu0 %v11711_v27 }
 0xc79   : > { %v6697_v43 = vpack.c.bf16 %v5487_v18, %v5486_v1  ;;  %v5378_v6 = vpop.permute.xlu0 %5377 }
 0xc7a   : > { %v5489_v28 = vmul.f32 %v5378_v6, %v10781_v59  ;;  %v5373_v3 = vpop.permute.xlu1 %5372 }
 0xc7b   : > { %v5488_v24 = vmul.f32 %v5373_v3, %v10773_v44  ;;  %6698 = vmatpush1.bf16.msra.mxu0 %v6697_v43 }
 0xc7c   : > { %6699 = vmatprep.subr.bf16.mxu0 %v11711_v27 }
 0xc7d   : > { %v6700_v5 = vpack.c.bf16 %v5489_v28, %v5488_v24  ;;  %v5388_v9 = vpop.permute.xlu0 %5387 }
 0xc7e   : > { %v5491_v21 = vmul.f32 %v5388_v9, %v10791_v26  ;;  %v5383_v16 = vpop.permute.xlu1 %5382 }
 0xc7f   : > { %v5490_v53 = vmul.f32 %v5383_v16, %v10783_v37  ;;  %6701 = vmatpush1.bf16.msra.mxu0 %v6700_v5 }
 0xc80   : > { %6702 = vmatprep.subr.bf16.mxu0 %v11711_v27 }
 0xc81   : > { %v6703_v29 = vpack.c.bf16 %v5491_v21, %v5490_v53  ;;  %v5398_v20 = vpop.permute.xlu0 %5397 }
 0xc82   : > { %v5493_v59 = vmul.f32 %v5398_v20, %v10801_v15  ;;  %v5393_v58 = vpop.permute.xlu1 %5392 }
 0xc83   : > { %v5492_v44 = vmul.f32 %v5393_v58, %v10793_v10  ;;  %6704 = vmatpush1.bf16.msra.mxu0 %v6703_v29 }
 0xc84   : > { %6705 = vmatprep.subr.bf16.mxu0 %v11711_v27 }
 0xc85   : > { %v6706_v51 = vpack.c.bf16 %v5493_v59, %v5492_v44  ;;  %v5408_v34 = vpop.permute.xlu0 %5407 }
 0xc86   : > { %v5495_v26 = vmul.f32 %v5408_v34, %v10811_v4  ;;  %v5403_v47 = vpop.permute.xlu1 %5402 }
 0xc87   : > { %v5494_v37 = vmul.f32 %v5403_v47, %v10803_v46  ;;  %6707 = vmatpush1.bf16.msra.mxu0 %v6706_v51 }
 0xc88   : > { %6708 = vmatprep.subr.bf16.mxu0 %v11711_v27 }
 0xc89   : > { %v6709_v0 = vpack.c.bf16 %v5495_v26, %v5494_v37  ;;  %v5418_v55 = vpop.permute.xlu0 %5417 }
 0xc8a   : > { %v5497_v15 = vmul.f32 %v5418_v55, %v10821_v7  ;;  %v5413_v25 = vpop.permute.xlu1 %5412 }
 0xc8b   : > { %v5496_v10 = vmul.f32 %v5413_v25, %v10813_v31  ;;  %6710 = vmatpush1.bf16.msra.mxu0 %v6709_v0 }
 0xc8c   : > { %6711 = vmatprep.subr.bf16.mxu0 %v11711_v27 }
 0xc8d   : > { %v6712_v17 = vpack.c.bf16 %v5497_v15, %v5496_v10  ;;  %v5428_v36 = vpop.permute.xlu0 %5427 }
 0xc8e   : > { %v5499_v4 = vmul.f32 %v5428_v36, %v10831_v56  ;;  %v5423_v22 = vpop.permute.xlu1 %5422 }
 0xc8f   : > { %v5498_v46 = vmul.f32 %v5423_v22, %v10823_v40  ;;  %6713 = vmatpush1.bf16.msra.mxu0 %v6712_v17 }
 0xc90   : > { %6714 = vmatprep.subr.bf16.mxu0 %v11711_v27 }
 0xc91   : > { %v6715_v48 = vpack.c.bf16 %v5499_v4, %v5498_v46  ;;  %v5438_v33 = vpop.permute.xlu0 %5437 }
 0xc92   : > { %v5501_v7 = vmul.f32 %v5438_v33, %v10841_v23  ;;  %v5433_v50 = vpop.permute.xlu1 %5432 }
 0xc93   : > { %v5500_v31 = vmul.f32 %v5433_v50, %v10833_v35  ;;  %6716 = vmatpush1.bf16.msra.mxu0 %v6715_v48 }
 0xc94   : > { %6717 = vmatprep.subr.bf16.mxu0 %v11711_v27 }
 0xc95   : > { %v6718_v63 = vpack.c.bf16 %v5501_v7, %v5500_v31  ;;  %v5448_v38 = vpop.permute.xlu0 %5447 }
 0xc96   : > { %v5503_v56 = vmul.f32 %v5448_v38, %v10851_v14  ;;  %v5443_v13 = vpop.permute.xlu1 %5442 }
 0xc97   : > { %v5502_v40 = vmul.f32 %v5443_v13, %v10843_v52  ;;  %6719 = vmatpush1.bf16.msra.mxu0 %v6718_v63 }
 0xc98   : > { %6720 = vmatprep.subr.bf16.mxu0 %v11711_v27 }
 0xc99   : > { %v6721_v57 = vpack.c.bf16 %v5503_v56, %v5502_v40  ;;  %v5458_v19 = vpop.permute.xlu0 %5457 }
 0xc9a   : > { %v5505_v23 = vmul.f32 %v5458_v19, %v10861_v39  ;;  %v5453_v45 = vpop.permute.xlu1 %5452 }
 0xc9b   : > { %v5504_v35 = vmul.f32 %v5453_v45, %v10853_v32  ;;  %6722 = vmatpush1.bf16.msra.mxu0 %v6721_v57 }
 0xc9c   : > { %6723 = vmatprep.subr.bf16.mxu0 %v11711_v27 }
 0xc9d   : > { %v6724_v2 = vpack.c.bf16 %v5505_v23, %v5504_v35  ;;  %v5468_v12 = vpop.permute.xlu0 %5467 }
 0xc9e   : > { %v5507_v14 = vmul.f32 %v5468_v12, %v10870_v54  ;;  %v5463_v60 = vpop.permute.xlu1 %5462 }
 0xc9f   : > { %v5506_v52 = vmul.f32 %v5463_v60, %v10863_v42  ;;  %6725 = vmatpush1.bf16.msra.mxu0 %v6724_v2 }
 0xca0   : > { %6726 = vmatprep.subr.bf16.mxu0 %v11711_v27 }
 0xca1   : > { %v6727_v62 = vpack.c.bf16 %v5507_v14, %v5506_v52 }
 0xca2   : > { %v5478_v18 = vpop.permute.xlu0 %5477 }
 0xca3   : > { %v5509_v39 = vmul.f32 %v5478_v18, %v10878_v8  ;;  %v5473_v11 = vpop.permute.xlu1 %5472  ;;  %6728 = vmatpush1.bf16.msra.mxu0 %v6727_v62 }
 0xca4   : > { %v5508_v32 = vmul.f32 %v5473_v11, %v10872_v41  ;;  %6729 = vmatprep.subr.bf16.mxu0 %v11711_v27 }
 0xca6   : > { %v6730_v1 = vpack.c.bf16 %v5509_v39, %v5508_v32 }
 0xca8   : > { %6731 = vmatpush1.bf16.msra.mxu0 %v6730_v1 }
 0xcab   : > { %6077 = vmatmul.mubr.msk.f32.vlgmr.msra.gmra.mrb[192].mxu0 %vm5324_vm4, %v7713_v30 }
 0xcfc   : > { %v5649_v42 = vpop.f32.mrb[168].mxu1 }
 0xcfd   : > { %v5650_v54 = vadd.f32 1e-08, %v5649_v42  ;;  %v5651_v43 = vpop.f32.mrb[169].mxu1 }
 0xcff   : > { %7638 = vrcp.f32 %v5650_v54 }
 0xd09   : > { %v7639_v6 = vpop.eup %7638 }
 0xd0a   : > { %5656 = vperm.xlu1 %6857, %v7639_v6  }
 0xd7e   : > { %v5579_v8 = vpop.f32.mrb[192].mxu0 }
 0xd7f   : > { %v5581_v41 = vpop.f32.mrb[193].mxu0 }
 0xd89   : > { %v5657_v27 = vpop.permute.xlu1 %5656 }
 0xd8a   : > { %v5659_v28 = vmul.f32 %v5657_v27, %v5579_v8 }
 0xd8c   : > { %5660 = vst.msk [vmem:[%s355_s21] sm:$0xff] %vm11773_vm5, %v5659_v28 }
 0xd8d   : > { %7653 = shalt.err (!%p7650_p3)
}
 0xd8e   : > { %s7654_s13 = scalar_lea.hbm %s11057_s29, 128  ;;  %s7658_s21 = scalar_lea.hbm %s11110_s10, 512 }
 0xd8f   : > { %p7655_p4 = scmp.ne.s32.totalorder %s11057_s29, %s7654_s13  ;;  %p7659_p9 = scmp.lt.u32.totalorder %s11057_s29, %s11110_s10 }
 0xd90   : > { %p7660_p10 = scmp.lt.u32.totalorder %s7658_s21, %s7654_s13  ;;  %p7662_p12 = scmp.lt.u32.totalorder %s7654_s13, %s11057_s29 }
 0xd91   : > { %p7656_p7 = pnand %p7655_p4, %p7811_p5 }
 0xd92   : > { %p7661_p11 = por %p7660_p10, %p7659_p9 }
 0xd93   : > { %p7657_p8 = pneg %p7656_p7 }
 0xd94   : > { %p7663_p13 = por %p7662_p12, %p7661_p11 }
 0xd96   : > { %p7664_p0 = pnand %p7663_p13, %p7657_p8 }
 0xd98   : > { %7667 = shalt.err (!%p7664_p0)
}
 0xd99   : > { %6807 = dma.vmem_to_hbm [thread:$0]  (%p7811_p5), %s11059_s22, 128, %s11057_s29, %s5662_s30  }
 0xd9a PF: > { %p6813_p1 = scmp.ge.s32.totalorder %s7702_s18, 2  ;;  %s5687_s11 = sand.u32 1, %s7690_s15  }
 0xd9b   : > { %s5688_s9 = scalar_lea.sflag [#allocation5], %s5687_s11 }
 0xd9c   : > { %p6810_p2 = pnand %p6813_p1, %p7815_p6 }
 0xd9e   : > { %7685 = dma.done.wait (!%p6810_p2), %s5688_s9, 128  }
 0xd9f   : > { %7687 = vsyncadd (!%p6810_p2), %s5688_s9, 4294967168  ;;  %p22_p3 = scmp.ge.s32.totalorder %s7798_s20, 6   ;;  %s11774_s15 = smov %s7694_s16 }
 0xda0   : > { %s11775_s16 = smov %s7698_s17  ;;  %s11776_s17 = smov %s7809_s23 }
 0xda1   : > { %s11777_s18 = smov %s7798_s20  ;;  %24 = sbr.rel (!%p22_p3) target bundleno = 6 (0x6), region = 95 }
 0xda8   :  { %5693 = vsyncpa [#allocation5], 1 }
 0xda9   :  { %5695 = vsyncpa [#allocation5 + $0x1], 1 }

</bundles_post_ra>
